<compile_context>
chip_gen: v6e
topology: v6e:2x2x1
jax: 0.10.0
libtpu: 0.0.40
codegen_flags: <defaults>
</compile_context>

<pallas_src>
import jax
import jax.numpy as jnp
from jax.experimental import pallas as pl
from jax.experimental.pallas import tpu as pltpu

B = 2                       # batch
IN_ROWS = 150
IN_COLS = 100
K = IN_ROWS * IN_COLS       # 15000 flattened input features
KP = 15104                  # 118 * 128 : smallest lane-aligned pad of K
TK = 7552                   # KP // 2   : K streamed in 2 tiles (double-buffered ~12 MB)
H = 200                     # hidden features (unpadded; last dim == full dim is legal)
OUT = 9                     # logical output features
OUT_P = 128                 # padded output width -> unmasked lane-dense store


def mlp_kernel(x_ref,       # (B, TK)      current K-slice of the input
               w1_ref,      # (TK, H)      current K-slice of linear1 weight (transposed)
               b1_ref,      # (1, H)       linear1 bias (resident)
               w2_ref,      # (H, OUT_P)   linear2 weight (resident, transposed, padded)
               b2_ref,      # (1, OUT_P)   linear2 bias (resident, padded)
               out_ref,     # (B, OUT_P)
               acc_ref):    # (B, H) f32 scratch accumulator
    k = pl.program_id(0)

    @pl.when(k == 0)
    def _():
        acc_ref[...] = jnp.zeros_like(acc_ref)

    # Partial product for this K tile; accumulate in f32.
    acc_ref[...] += jnp.dot(x_ref[...], w1_ref[...],
                            preferred_element_type=jnp.float32)

    @pl.when(k == pl.num_programs(0) - 1)
    def _():
        z = acc_ref[...] + b1_ref[...]
        z = jnp.where(z >= 0, z, 0.01 * z)          # LeakyReLU(negative_slope=0.01)
        y = jnp.dot(z, w2_ref[...],
                    preferred_element_type=jnp.float32) + b2_ref[...]
        out_ref[...] = y.astype(out_ref.dtype)


def prepare_params(params):
    """Transpose to right-multiply form and zero-pad to aligned shapes.

    Call ONCE (outside the per-step forward) so padding is not redone per call.
    """
    w1 = params["w1"]       # (H, K)   PyTorch layout
    b1 = params["b1"]       # (H,)
    w2 = params["w2"]       # (OUT, H)
    b2 = params["b2"]       # (OUT,)
    w1p = jnp.zeros((KP, H), jnp.float32).at[:K, :].set(w1.T)
    b1p = b1.reshape(1, H).astype(jnp.float32)
    w2p = jnp.zeros((H, OUT_P), jnp.float32).at[:, :OUT].set(w2.T)
    b2p = jnp.zeros((1, OUT_P), jnp.float32).at[0, :OUT].set(b2)
    return w1p, b1p, w2p, b2p


@jax.jit
def mlp_net_forward(states, w1p, b1p, w2p, b2p):
    """states: (batch, 150, 100) float32 (anything that flattens to (batch, 15000))."""
    batch = states.shape[0]
    x = states.reshape(batch, -1).astype(jnp.float32)        # (batch, 15000)
    x = jnp.pad(x, ((0, 0), (0, KP - K)))                     # (batch, KP) zero pad

    n_k = KP // TK
    cost = pl.CostEstimate(
        flops=2 * batch * KP * H + 2 * batch * H * OUT_P,
        transcendentals=0,
        bytes_accessed=4 * (KP * H + batch * KP + H * OUT_P
                            + H + OUT_P + batch * OUT_P),
    )

    out = pl.pallas_call(
        mlp_kernel,
        out_shape=jax.ShapeDtypeStruct((batch, OUT_P), jnp.float32),
        grid_spec=pltpu.PrefetchScalarGridSpec(
            num_scalar_prefetch=0,
            grid=(n_k,),
            in_specs=[
                pl.BlockSpec((batch, TK), lambda k: (0, k)),   # x K-slice
                pl.BlockSpec((TK, H), lambda k: (k, 0)),       # w1 K-slice (streamed)
                pl.BlockSpec((1, H), lambda k: (0, 0)),        # b1 (resident)
                pl.BlockSpec((H, OUT_P), lambda k: (0, 0)),    # w2 (resident)
                pl.BlockSpec((1, OUT_P), lambda k: (0, 0)),    # b2 (resident)
            ],
            out_specs=pl.BlockSpec((batch, OUT_P), lambda k: (0, 0)),
            scratch_shapes=[pltpu.VMEM((batch, H), jnp.float32)],
        ),
        compiler_params=pltpu.CompilerParams(
            dimension_semantics=("arbitrary",),    # K axis is a reduction
            vmem_limit_bytes=32 * 1024 * 1024,
        ),
        cost_estimate=cost,
    )(x, w1p, b1p, w2p, b2p)

    return out[:, :OUT].reshape(-1, 3, 3)


def init_params(key):
    """Deterministic init matching PyTorch nn.Linear defaults and shapes."""
    k1, k2, k3, k4 = jax.random.split(key, 4)
    bound1 = 1.0 / jnp.sqrt(float(K))
    bound2 = 1.0 / jnp.sqrt(float(H))
    u = lambda k, shape, b: jax.random.uniform(k, shape, jnp.float32, -b, b)
    return dict(
        w1=u(k1, (H, K), bound1),      # linear1.weight (200, 15000)
        b1=u(k2, (H,), bound1),        # linear1.bias   (200,)
        w2=u(k3, (OUT, H), bound2),    # linear2.weight (9, 200)
        b2=u(k4, (OUT,), bound2),      # linear2.bias   (9,)
    )


def reference_forward(states, p):
    """Pure-JAX reference matching the PyTorch forward (for validation)."""
    x = states.reshape(states.shape[0], -1).astype(jnp.float32)
    z = x @ p["w1"].T + p["b1"]
    z = jnp.where(z >= 0, z, 0.01 * z)
    y = z @ p["w2"].T + p["b2"]
    return y.reshape(-1, 3, 3)


if __name__ == "__main__":
    key = jax.random.PRNGKey(0)
    k_param, k_x = jax.random.split(key)
    params = init_params(k_param)
    states = jax.random.normal(k_x, (B, IN_ROWS, IN_COLS), jnp.float32)

    # One-time padding/transposition of the weights (kept out of the hot path).
    w1p, b1p, w2p, b2p = prepare_params(params)

    out = jax.block_until_ready(mlp_net_forward(states, w1p, b1p, w2p, b2p))
    assert out.shape == (B, 3, 3), out.shape

    ref = jax.block_until_ready(reference_forward(states, params))
    assert jnp.allclose(out, ref, atol=1e-3, rtol=1e-3), (out, ref)

    print("KERNEL_OK")
</pallas_src>

<mosaic_0001>
module attributes {stable_mosaic.version = 11 : i64} {
  func.func @mlp_kernel(%arg0: i32, %arg1: memref<2x7552xf32, #tpu.memory_space<vmem>>, %arg2: memref<7552x200xf32, #tpu.memory_space<vmem>>, %arg3: memref<1x200xf32, #tpu.memory_space<vmem>>, %arg4: memref<200x128xf32, #tpu.memory_space<vmem>>, %arg5: memref<1x128xf32, #tpu.memory_space<vmem>>, %arg6: memref<2x128xf32, #tpu.memory_space<vmem>>, %arg7: memref<2x200xf32, #tpu.memory_space<vmem>>) attributes {dimension_semantics = [#tpu.dimension_semantics<arbitrary>], iteration_bounds = array<i64: 2>, scalar_prefetch = 0 : i64, scratch_operands = 1 : i64, tpu.core_type = #tpu.core_type<tc>, window_params = [{transform_indices = @transform_0, window_bounds = array<i64: 2, 7552>}, {transform_indices = @transform_1, window_bounds = array<i64: 7552, 200>}, {pipeline_mode = #tpu.pipeline_mode<synchronous>, transform_indices = @transform_2, window_bounds = array<i64: 1, 200>}, {pipeline_mode = #tpu.pipeline_mode<synchronous>, transform_indices = @transform_3, window_bounds = array<i64: 200, 128>}, {pipeline_mode = #tpu.pipeline_mode<synchronous>, transform_indices = @transform_4, window_bounds = array<i64: 1, 128>}, {pipeline_mode = #tpu.pipeline_mode<synchronous>, transform_indices = @transform_5, window_bounds = array<i64: 2, 128>}]} {
    %c0_i32 = arith.constant 0 : i32
    %0 = arith.cmpi eq, %arg0, %c0_i32 : i32
    %1 = arith.extui %0 : i1 to i32
    %c0_i32_0 = arith.constant 0 : i32
    %2 = arith.cmpi ne, %1, %c0_i32_0 : i32
    scf.if %2 {
      %cst_9 = arith.constant 0.000000e+00 : f32
      %12 = vector.broadcast %cst_9 : f32 to vector<2x200xf32>
      %c0_10 = arith.constant 0 : index
      %c0_11 = arith.constant 0 : index
      %13 = vector.load %arg7[%c0_10, %c0_11] : memref<2x200xf32, #tpu.memory_space<vmem>>, vector<2x200xf32>
      tpu.vector_store %arg7[%c0_10, %c0_11], %12 {strides = array<i32>} : memref<2x200xf32, #tpu.memory_space<vmem>>, vector<2x200xf32>,
    } else {
    }
    %c0 = arith.constant 0 : index
    %c0_1 = arith.constant 0 : index
    %3 = vector.load %arg7[%c0, %c0_1] : memref<2x200xf32, #tpu.memory_space<vmem>>, vector<2x200xf32>
    %c0_2 = arith.constant 0 : index
    %c0_3 = arith.constant 0 : index
    %4 = vector.load %arg1[%c0_2, %c0_3] : memref<2x7552xf32, #tpu.memory_space<vmem>>, vector<2x7552xf32>
    %c0_4 = arith.constant 0 : index
    %c0_5 = arith.constant 0 : index
    %5 = vector.load %arg2[%c0_4, %c0_5] : memref<7552x200xf32, #tpu.memory_space<vmem>>, vector<7552x200xf32>
    %cst = arith.constant dense<0.000000e+00> : vector<2x200xf32>
    %6 = tpu.matmul %4, %5, %cst {dimension_numbers = #tpu.dot_dimension_numbers<[1], [0], [0], [1], [0, 0, 1, 1], [], []>} : vector<2x7552xf32>, vector<7552x200xf32>, vector<2x200xf32> -> vector<2x200xf32>
    %7 = arith.addf %3, %6 : vector<2x200xf32>
    %c0_6 = arith.constant 0 : index
    %c0_7 = arith.constant 0 : index
    %8 = vector.load %arg7[%c0_6, %c0_7] : memref<2x200xf32, #tpu.memory_space<vmem>>, vector<2x200xf32>
    tpu.vector_store %arg7[%c0_6, %c0_7], %7 {strides = array<i32>} : memref<2x200xf32, #tpu.memory_space<vmem>>, vector<2x200xf32>,
    %c1_i32 = arith.constant 1 : i32
    %9 = arith.cmpi eq, %arg0, %c1_i32 : i32
    %10 = arith.extui %9 : i1 to i32
    %c0_i32_8 = arith.constant 0 : i32
    %11 = arith.cmpi ne, %10, %c0_i32_8 : i32
    scf.if %11 {
      %c0_9 = arith.constant 0 : index
      %c0_10 = arith.constant 0 : index
      %12 = vector.load %arg7[%c0_9, %c0_10] : memref<2x200xf32, #tpu.memory_space<vmem>>, vector<2x200xf32>
      %c0_11 = arith.constant 0 : index
      %c0_12 = arith.constant 0 : index
      %13 = vector.load %arg3[%c0_11, %c0_12] : memref<1x200xf32, #tpu.memory_space<vmem>>, vector<1x200xf32>
      %14 = vector.broadcast %13 : vector<1x200xf32> to vector<2x200xf32>
      %15 = arith.addf %12, %14 : vector<2x200xf32>
      %cst_13 = arith.constant 0.000000e+00 : f32
      %16 = vector.broadcast %cst_13 : f32 to vector<2x200xf32>
      %17 = arith.cmpf oge, %15, %16 : vector<2x200xf32>
      %cst_14 = arith.constant 0.00999999977 : f32
      %18 = vector.broadcast %cst_14 : f32 to vector<2x200xf32>
      %19 = arith.mulf %18, %15 : vector<2x200xf32>
      %20 = arith.select %17, %15, %19 : vector<2x200xi1>, vector<2x200xf32>
      %c0_15 = arith.constant 0 : index
      %c0_16 = arith.constant 0 : index
      %21 = vector.load %arg4[%c0_15, %c0_16] : memref<200x128xf32, #tpu.memory_space<vmem>>, vector<200x128xf32>
      %cst_17 = arith.constant dense<0.000000e+00> : vector<2x128xf32>
      %22 = tpu.matmul %20, %21, %cst_17 {dimension_numbers = #tpu.dot_dimension_numbers<[1], [0], [0], [1], [0, 0, 1, 1], [], []>} : vector<2x200xf32>, vector<200x128xf32>, vector<2x128xf32> -> vector<2x128xf32>
      %c0_18 = arith.constant 0 : index
      %c0_19 = arith.constant 0 : index
      %23 = vector.load %arg5[%c0_18, %c0_19] : memref<1x128xf32, #tpu.memory_space<vmem>>, vector<1x128xf32>
      %24 = vector.broadcast %23 : vector<1x128xf32> to vector<2x128xf32>
      %25 = arith.addf %22, %24 : vector<2x128xf32>
      %c0_20 = arith.constant 0 : index
      %c0_21 = arith.constant 0 : index
      %26 = vector.load %arg6[%c0_20, %c0_21] : memref<2x128xf32, #tpu.memory_space<vmem>>, vector<2x128xf32>
      tpu.vector_store %arg6[%c0_20, %c0_21], %25 {strides = array<i32>} : memref<2x128xf32, #tpu.memory_space<vmem>>, vector<2x128xf32>,
    } else {
    }
    return
  }
  func.func @transform_0(%arg0: i32) -> (i32, i32) {
    %c0_i32 = arith.constant 0 : i32
    %c0_i32_0 = arith.constant 0 : i32
    return %c0_i32, %arg0 : i32, i32
  }
  func.func @transform_1(%arg0: i32) -> (i32, i32) {
    %c0_i32 = arith.constant 0 : i32
    %c0_i32_0 = arith.constant 0 : i32
    return %arg0, %c0_i32 : i32, i32
  }
  func.func @transform_2(%arg0: i32) -> (i32, i32) {
    %c0_i32 = arith.constant 0 : i32
    %c0_i32_0 = arith.constant 0 : i32
    %c0_i32_1 = arith.constant 0 : i32
    return %c0_i32, %c0_i32_0 : i32, i32
  }
  func.func @transform_3(%arg0: i32) -> (i32, i32) {
    %c0_i32 = arith.constant 0 : i32
    %c0_i32_0 = arith.constant 0 : i32
    %c0_i32_1 = arith.constant 0 : i32
    return %c0_i32, %c0_i32_0 : i32, i32
  }
  func.func @transform_4(%arg0: i32) -> (i32, i32) {
    %c0_i32 = arith.constant 0 : i32
    %c0_i32_0 = arith.constant 0 : i32
    %c0_i32_1 = arith.constant 0 : i32
    return %c0_i32, %c0_i32_0 : i32, i32
  }
  func.func @transform_5(%arg0: i32) -> (i32, i32) {
    %c0_i32 = arith.constant 0 : i32
    %c0_i32_0 = arith.constant 0 : i32
    %c0_i32_1 = arith.constant 0 : i32
    return %c0_i32, %c0_i32_0 : i32, i32
  }
}

</mosaic_0001>

<bundles_post_ra>
// kernel: mlp_net_forward.1
= control target key start
LH: loop header
LB: loop body
LE: loop exit
PB: predicated region body
PF: predicated region fallthrough
CT: control target
= control target key end

     0   :  { %s4890_s18 = smov 0   ;;  %s6974_s0 = inlined_call_operand.vmem [shape: f32[2,15104], index: 0, kind: input, shape index: {}]   ;;  %s6975_s1 = inlined_call_operand.vmem [shape: f32[15104,200], index: 1, kind: input, shape index: {}]   ;;  %s6976_s2 = inlined_call_operand.vmem [shape: f32[1,200], index: 2, kind: input, shape index: {}]   ;;  %s6977_s3 = inlined_call_operand.vmem [shape: f32[200,128], index: 3, kind: input, shape index: {}]   ;;  %s6978_s4 = inlined_call_operand.vmem [shape: f32[1,128], index: 4, kind: input, shape index: {}]   ;;  %s6979_s5 = inlined_call_operand.vmem [shape: f32[2,128], index: 5, kind: output, shape index: {}]  }
   0x1 LB: > { %s4896_s19 = sadd.s32 4294967295, %s4854_s18   ;;  %p4810_p0 = scmp.ge.s32.totalorder %s4854_s18, 1  ;;  %s4854_s18 = sphi %s4890_s18, %s15_s18  }
   0x2   : > { %p195_p1 = scmp.lt.s32.totalorder %s4854_s18, 3 }
   0x4   : > { %p196_p2 = pnand %p4810_p0, %p195_p1 }
   0x5   : > { %s224_s20 = smul.u32 (!%p196_p2), 59, %s4896_s19  ;;  %p4814_p5 = scmp.ne.s32.totalorder (!%p196_p2), %s4896_s19, 0 }
   0x6   : > { %199 = sbr.rel (%p196_p2) target bundleno = 1463 (0x5b7), region = 40 }
   0x7   : > { %s230_s21 = smul.u32 (!%p196_p2), 944, %s4896_s19  ;;  %p225_p3 = scmp.lt.s32.totalorder (!%p196_p2), %s224_s20, 117 }
   0x9   : > { %p231_p4 = scmp.lt.s32.totalorder (!%p196_p2), %s230_s21, 1887 }
   0xb   : > { %s6981_s20 = smov (!%p225_p3, %s224_s20), 117  ;;  %s6983_s21 = smov (!%p231_p4, %s230_s21), 1887 }
   0xc   : > { %s4811_s22 = sshll.u32 %s6981_s20, 1  ;;  %s4820_s26 = sshll.u32 %s6983_s21, 4 }
   0xd   : > { %s4905_s25 = scalar_lea.vmem %s6974_s0, %s4811_s22  ;;  %s4910_s29 = scalar_lea.vmem %s6975_s1, %s4820_s26 }
   0xe   : > { %240 = sbr.rel (%p4814_p5) target bundleno = 22 (0x16), region = 44 }
  0x13   : > { %vm241_vm0 = vcmask 1041408   ;;  %vm242_vm1 = vcmask 584706   ;;  %v4856_v0 = vmov 0.0  }
  0x14   : > { %vm243_vm2 = vmor %vm242_vm1, %vm241_vm0 }
  0x15   : > { %244 = vst.msk [vmem:[#allocation2] sm:$0xf] %vm243_vm2, %v4856_v0 }
  0x16 PF: > { %v292_v1 = vld [vmem:[%s4910_s29 + $0xf8] sm:$0xff]  ;;  %v291_v3 = vld [vmem:[%s4910_s29 + $0xf0] sm:$0xff]  ;;  %v290_v5 = vld [vmem:[%s4910_s29 + $0xe8] sm:$0xff]  ;;  %vm4619_vm3 = vcmask 1041408   ;;  %vm4620_vm4 = vcmask 584706   ;;  %p4815_p6 = scmp.ne.s32.totalorder %s4896_s19, 1 }
  0x17   : > { %v356_v2 = vld [vmem:[%s4910_s29 + $0x2f8] sm:$0xff]  ;;  %2477 = vmatprep.subr.mxu0 %v292_v1  ;;  %v355_v4 = vld [vmem:[%s4910_s29 + $0x2f0] sm:$0xff]  ;;  %v354_v6 = vld [vmem:[%s4910_s29 + $0x2e8] sm:$0xff] }
  0x18   : > { %2548 = vmatprep.subr.mxu1 %v356_v2  ;;  %2478 = vmatpush1.msra.mxu0 %v291_v3  ;;  %v289_v7 = vld [vmem:[%s4910_s29 + $0xe0] sm:$0xff]  ;;  %v288_v9 = vld [vmem:[%s4910_s29 + $0xd8] sm:$0xff]  ;;  %v287_v11 = vld [vmem:[%s4910_s29 + $0xd0] sm:$0xff] }
  0x19   : > { %2549 = vmatpush1.msra.mxu1 %v355_v4  ;;  %v353_v8 = vld [vmem:[%s4910_s29 + $0x2e0] sm:$0xff]  ;;  %2479 = vmatprep.subr.mxu0 %v290_v5  ;;  %v352_v10 = vld [vmem:[%s4910_s29 + $0x2d8] sm:$0xff]  ;;  %v351_v12 = vld [vmem:[%s4910_s29 + $0x2d0] sm:$0xff] }
  0x1a   : > { %2550 = vmatprep.subr.mxu1 %v354_v6  ;;  %2480 = vmatpush1.msra.mxu0 %v289_v7  ;;  %v286_v13 = vld [vmem:[%s4910_s29 + $0xc8] sm:$0xff]  ;;  %v285_v15 = vld [vmem:[%s4910_s29 + $0xc0] sm:$0xff]  ;;  %v284_v17 = vld [vmem:[%s4910_s29 + $0xb8] sm:$0xff] }
  0x1b   : > { %2551 = vmatpush1.msra.mxu1 %v353_v8  ;;  %v350_v14 = vld [vmem:[%s4910_s29 + $0x2c8] sm:$0xff]  ;;  %2481 = vmatprep.subr.mxu0 %v288_v9  ;;  %v349_v16 = vld [vmem:[%s4910_s29 + $0x2c0] sm:$0xff]  ;;  %v348_v18 = vld [vmem:[%s4910_s29 + $0x2b8] sm:$0xff] }
  0x1c   : > { %2552 = vmatprep.subr.mxu1 %v352_v10  ;;  %2482 = vmatpush1.msra.mxu0 %v287_v11  ;;  %v283_v19 = vld [vmem:[%s4910_s29 + $0xb0] sm:$0xff]  ;;  %v282_v21 = vld [vmem:[%s4910_s29 + $0xa8] sm:$0xff]  ;;  %v281_v23 = vld [vmem:[%s4910_s29 + $0xa0] sm:$0xff] }
  0x1d   : > { %2553 = vmatpush1.msra.mxu1 %v351_v12  ;;  %2483 = vmatprep.subr.mxu0 %v286_v13  ;;  %v347_v20 = vld [vmem:[%s4910_s29 + $0x2b0] sm:$0xff]  ;;  %v346_v22 = vld [vmem:[%s4910_s29 + $0x2a8] sm:$0xff]  ;;  %v345_v24 = vld [vmem:[%s4910_s29 + $0x2a0] sm:$0xff] }
  0x1e   : > { %2554 = vmatprep.subr.mxu1 %v350_v14  ;;  %2484 = vmatpush1.msra.mxu0 %v285_v15  ;;  %v280_v25 = vld [vmem:[%s4910_s29 + $0x98] sm:$0xff]  ;;  %v279_v27 = vld [vmem:[%s4910_s29 + $0x90] sm:$0xff]  ;;  %v278_v29 = vld [vmem:[%s4910_s29 + $0x88] sm:$0xff] }
  0x1f   : > { %2555 = vmatpush1.msra.mxu1 %v349_v16  ;;  %2485 = vmatprep.subr.mxu0 %v284_v17  ;;  %v344_v26 = vld [vmem:[%s4910_s29 + $0x298] sm:$0xff]  ;;  %v343_v28 = vld [vmem:[%s4910_s29 + $0x290] sm:$0xff]  ;;  %v342_v30 = vld [vmem:[%s4910_s29 + $0x288] sm:$0xff] }
  0x20   : > { %2556 = vmatprep.subr.mxu1 %v348_v18  ;;  %2486 = vmatpush1.msra.mxu0 %v283_v19  ;;  %v277_v31 = vld [vmem:[%s4910_s29 + $0x80] sm:$0xff]  ;;  %v276_v33 = vld [vmem:[%s4910_s29 + $0x78] sm:$0xff]  ;;  %v275_v35 = vld [vmem:[%s4910_s29 + $0x70] sm:$0xff] }
  0x21   : > { %2557 = vmatpush1.msra.mxu1 %v347_v20  ;;  %2487 = vmatprep.subr.mxu0 %v282_v21  ;;  %v341_v32 = vld [vmem:[%s4910_s29 + $0x280] sm:$0xff]  ;;  %v340_v34 = vld [vmem:[%s4910_s29 + $0x278] sm:$0xff]  ;;  %v339_v36 = vld [vmem:[%s4910_s29 + $0x270] sm:$0xff] }
  0x22   : > { %2558 = vmatprep.subr.mxu1 %v346_v22  ;;  %2488 = vmatpush1.msra.mxu0 %v281_v23  ;;  %v274_v37 = vld [vmem:[%s4910_s29 + $0x68] sm:$0xff]  ;;  %v273_v39 = vld [vmem:[%s4910_s29 + $0x60] sm:$0xff]  ;;  %v272_v41 = vld [vmem:[%s4910_s29 + $0x58] sm:$0xff] }
  0x23   : > { %2559 = vmatpush1.msra.mxu1 %v345_v24  ;;  %2489 = vmatprep.subr.mxu0 %v280_v25  ;;  %v338_v38 = vld [vmem:[%s4910_s29 + $0x268] sm:$0xff]  ;;  %v337_v40 = vld [vmem:[%s4910_s29 + $0x260] sm:$0xff]  ;;  %v336_v42 = vld [vmem:[%s4910_s29 + $0x258] sm:$0xff] }
  0x24   : > { %2560 = vmatprep.subr.mxu1 %v344_v26  ;;  %2490 = vmatpush1.msra.mxu0 %v279_v27  ;;  %v271_v43 = vld [vmem:[%s4910_s29 + $0x50] sm:$0xff]  ;;  %v270_v45 = vld [vmem:[%s4910_s29 + $0x48] sm:$0xff]  ;;  %v269_v47 = vld [vmem:[%s4910_s29 + $0x40] sm:$0xff] }
  0x25   : > { %2561 = vmatpush1.msra.mxu1 %v343_v28  ;;  %2491 = vmatprep.subr.mxu0 %v278_v29  ;;  %v335_v44 = vld [vmem:[%s4910_s29 + $0x250] sm:$0xff]  ;;  %v334_v46 = vld [vmem:[%s4910_s29 + $0x248] sm:$0xff]  ;;  %v333_v48 = vld [vmem:[%s4910_s29 + $0x240] sm:$0xff] }
  0x26   : > { %2562 = vmatprep.subr.mxu1 %v342_v30  ;;  %2492 = vmatpush1.msra.mxu0 %v277_v31  ;;  %v268_v49 = vld [vmem:[%s4910_s29 + $0x38] sm:$0xff]  ;;  %v267_v51 = vld [vmem:[%s4910_s29 + $0x30] sm:$0xff]  ;;  %v266_v53 = vld [vmem:[%s4910_s29 + $0x28] sm:$0xff]  ;;  %v4857_v31 = vmov 1983009808  }
  0x27   : > { %2563 = vmatpush1.msra.mxu1 %v341_v32  ;;  %2493 = vmatprep.subr.mxu0 %v276_v33  ;;  %v332_v50 = vld [vmem:[%s4910_s29 + $0x238] sm:$0xff]  ;;  %v331_v52 = vld [vmem:[%s4910_s29 + $0x230] sm:$0xff]  ;;  %v330_v54 = vld [vmem:[%s4910_s29 + $0x228] sm:$0xff]  ;;  %v2166_v32 = vunpack.c.l.s4 %v4857_v31  ;;  %v2168_v33 = vlaneseq }
  0x28   : > { %2564 = vmatprep.subr.mxu1 %v340_v34  ;;  %2494 = vmatpush1.msra.mxu0 %v275_v35  ;;  %v265_v55 = vld [vmem:[%s4910_s29 + $0x20] sm:$0xff]  ;;  %v264_v57 = vld [vmem:[%s4910_s29 + $0x18] sm:$0xff]  ;;  %v263_v59 = vld [vmem:[%s4910_s29 + $0x10] sm:$0xff] }
  0x29   : > { %2565 = vmatpush1.msra.mxu1 %v339_v36  ;;  %2495 = vmatprep.subr.mxu0 %v274_v37  ;;  %v329_v56 = vld [vmem:[%s4910_s29 + $0x220] sm:$0xff]  ;;  %v328_v58 = vld [vmem:[%s4910_s29 + $0x218] sm:$0xff]  ;;  %v327_v60 = vld [vmem:[%s4910_s29 + $0x210] sm:$0xff] }
  0x2a   : > { %2566 = vmatprep.subr.mxu1 %v338_v38  ;;  %2496 = vmatpush1.msra.mxu0 %v273_v39  ;;  %v262_v61 = vld [vmem:[%s4910_s29 + $0x8] sm:$0xff]  ;;  %v261_v63 = vld [vmem:[%s4910_s29] sm:$0xff]  ;;  %v324_v1 = vld [vmem:[%s4910_s29 + $0x1f8] sm:$0xff] }
  0x2b   : > { %2567 = vmatpush1.msra.mxu1 %v337_v40  ;;  %2497 = vmatprep.subr.mxu0 %v272_v41  ;;  %v326_v62 = vld [vmem:[%s4910_s29 + $0x208] sm:$0xff]  ;;  %v325_v0 = vld [vmem:[%s4910_s29 + $0x200] sm:$0xff]  ;;  %v388_v2 = vld [vmem:[%s4910_s29 + $0x3f8] sm:$0xff] }
  0x2c   : > { %2568 = vmatprep.subr.mxu1 %v336_v42  ;;  %2498 = vmatpush1.msra.mxu0 %v271_v43  ;;  %v323_v3 = vld [vmem:[%s4910_s29 + $0x1f0] sm:$0xff]  ;;  %v322_v5 = vld [vmem:[%s4910_s29 + $0x1e8] sm:$0xff]  ;;  %v321_v7 = vld [vmem:[%s4910_s29 + $0x1e0] sm:$0xff]  ;;  %v2167_v42 = vunpack.c.0.s8 %v2166_v32  ;;  %v5015_v43 = vshrl.u32 %v2168_v33, 7 }
  0x2d   : > { %2569 = vmatpush1.msra.mxu1 %v335_v44  ;;  %2499 = vmatprep.subr.mxu0 %v270_v45  ;;  %v387_v4 = vld [vmem:[%s4910_s29 + $0x3f0] sm:$0xff]  ;;  %v386_v6 = vld [vmem:[%s4910_s29 + $0x3e8] sm:$0xff]  ;;  %v385_v8 = vld [vmem:[%s4910_s29 + $0x3e0] sm:$0xff] }
  0x2e   : > { %2570 = vmatprep.subr.mxu1 %v334_v46  ;;  %2500 = vmatpush1.msra.mxu0 %v269_v47  ;;  %v320_v9 = vld [vmem:[%s4910_s29 + $0x1d8] sm:$0xff]  ;;  %v319_v11 = vld [vmem:[%s4910_s29 + $0x1d0] sm:$0xff]  ;;  %v318_v13 = vld [vmem:[%s4910_s29 + $0x1c8] sm:$0xff] }
  0x2f   : > { %2571 = vmatpush1.msra.mxu1 %v333_v48  ;;  %2501 = vmatprep.subr.mxu0 %v268_v49  ;;  %v384_v10 = vld [vmem:[%s4910_s29 + $0x3d8] sm:$0xff]  ;;  %v383_v12 = vld [vmem:[%s4910_s29 + $0x3d0] sm:$0xff]  ;;  %v382_v14 = vld [vmem:[%s4910_s29 + $0x3c8] sm:$0xff] }
  0x30   : > { %2572 = vmatprep.subr.mxu1 %v332_v50  ;;  %2502 = vmatpush1.msra.mxu0 %v267_v51  ;;  %v317_v15 = vld [vmem:[%s4910_s29 + $0x1c0] sm:$0xff]  ;;  %v316_v17 = vld [vmem:[%s4910_s29 + $0x1b8] sm:$0xff]  ;;  %v315_v19 = vld [vmem:[%s4910_s29 + $0x1b0] sm:$0xff] }
  0x31   : > { %2573 = vmatpush1.msra.mxu1 %v331_v52  ;;  %2503 = vmatprep.subr.mxu0 %v266_v53  ;;  %v381_v16 = vld [vmem:[%s4910_s29 + $0x3c0] sm:$0xff]  ;;  %v380_v18 = vld [vmem:[%s4910_s29 + $0x3b8] sm:$0xff]  ;;  %v379_v20 = vld [vmem:[%s4910_s29 + $0x3b0] sm:$0xff]  ;;  %v5027_v53 = vsub.s32 %v2167_v42, %v5015_v43 }
  0x32   : > { %2574 = vmatprep.subr.mxu1 %v330_v54  ;;  %2504 = vmatpush1.msra.mxu0 %v265_v55  ;;  %v314_v21 = vld [vmem:[%s4910_s29 + $0x1a8] sm:$0xff]  ;;  %v313_v23 = vld [vmem:[%s4910_s29 + $0x1a0] sm:$0xff]  ;;  %v312_v25 = vld [vmem:[%s4910_s29 + $0x198] sm:$0xff] }
  0x33   : > { %2575 = vmatpush1.msra.mxu1 %v329_v56  ;;  %2505 = vmatprep.subr.mxu0 %v264_v57  ;;  %v378_v22 = vld [vmem:[%s4910_s29 + $0x3a8] sm:$0xff]  ;;  %v377_v24 = vld [vmem:[%s4910_s29 + $0x3a0] sm:$0xff]  ;;  %v376_v26 = vld [vmem:[%s4910_s29 + $0x398] sm:$0xff] }
  0x34   : > { %2576 = vmatprep.subr.mxu1 %v328_v58  ;;  %2506 = vmatpush1.msra.mxu0 %v263_v59  ;;  %v311_v27 = vld [vmem:[%s4910_s29 + $0x190] sm:$0xff]  ;;  %v310_v29 = vld [vmem:[%s4910_s29 + $0x188] sm:$0xff]  ;;  %v309_v34 = vld [vmem:[%s4910_s29 + $0x180] sm:$0xff] }
  0x35   : > { %2577 = vmatpush1.msra.mxu1 %v327_v60  ;;  %2507 = vmatprep.subr.mxu0 %v262_v61  ;;  %v375_v28 = vld [vmem:[%s4910_s29 + $0x390] sm:$0xff]  ;;  %v374_v30 = vld [vmem:[%s4910_s29 + $0x388] sm:$0xff]  ;;  %v373_v35 = vld [vmem:[%s4910_s29 + $0x380] sm:$0xff] }
  0x36   : > { %2578 = vmatprep.subr.mxu1 %v326_v62  ;;  %2508 = vmatpush1.msra.mxu0 %v261_v63  ;;  %v308_v36 = vld [vmem:[%s4910_s29 + $0x178] sm:$0xff]  ;;  %v307_v38 = vld [vmem:[%s4910_s29 + $0x170] sm:$0xff]  ;;  %v306_v40 = vld [vmem:[%s4910_s29 + $0x168] sm:$0xff] }
  0x37   : > { %2579 = vmatpush1.msra.mxu1 %v325_v0  ;;  %2509 = vmatprep.subr.mxu0 %v324_v1  ;;  %v372_v37 = vld [vmem:[%s4910_s29 + $0x378] sm:$0xff]  ;;  %v371_v39 = vld [vmem:[%s4910_s29 + $0x370] sm:$0xff]  ;;  %v370_v41 = vld [vmem:[%s4910_s29 + $0x368] sm:$0xff] }
  0x38   : > { %2580 = vmatprep.subr.mxu1 %v388_v2  ;;  %2510 = vmatpush2.msra.mxu0 %v323_v3  ;;  %v305_v44 = vld [vmem:[%s4910_s29 + $0x160] sm:$0xff]  ;;  %v304_v46 = vld [vmem:[%s4910_s29 + $0x158] sm:$0xff]  ;;  %v303_v49 = vld [vmem:[%s4910_s29 + $0x150] sm:$0xff] }
  0x39   : > { %2581 = vmatpush2.msra.mxu1 %v387_v4  ;;  %2511 = vmatprep.subr.mxu0 %v322_v5  ;;  %v369_v45 = vld [vmem:[%s4910_s29 + $0x360] sm:$0xff]  ;;  %v368_v47 = vld [vmem:[%s4910_s29 + $0x358] sm:$0xff]  ;;  %v367_v50 = vld [vmem:[%s4910_s29 + $0x350] sm:$0xff] }
  0x3a   : > { %2582 = vmatprep.subr.mxu1 %v386_v6  ;;  %2512 = vmatpush2.msra.mxu0 %v321_v7  ;;  %v246_v48 = vld [vmem:[%s4905_s25] sm:$0xff]  ;;  %v302_v51 = vld [vmem:[%s4910_s29 + $0x148] sm:$0xff]  ;;  %v300_v57 = vld [vmem:[%s4910_s29 + $0x138] sm:$0xff] }
  0x3b   : > { %2583 = vmatpush2.msra.mxu1 %v385_v8  ;;  %2513 = vmatprep.subr.mxu0 %v320_v9  ;;  %v366_v52 = vld [vmem:[%s4910_s29 + $0x348] sm:$0xff]  ;;  %v301_v54 = vld [vmem:[%s4910_s29 + $0x140] sm:$0xff]  ;;  %v2164_v56 = vcombine.high %v246_v48, %v246_v48  ;;  %v364_v58 = vld [vmem:[%s4910_s29 + $0x338] sm:$0xff]  ;;  %v2171_v63 = vrot.slane %v246_v48, %v5027_v53 }
  0x3c   : > { %2584 = vmatprep.subr.mxu1 %v384_v10  ;;  %2514 = vmatpush2.msra.mxu0 %v319_v11  ;;  %v365_v55 = vld [vmem:[%s4910_s29 + $0x340] sm:$0xff]  ;;  %v299_v59 = vld [vmem:[%s4910_s29 + $0x130] sm:$0xff]  ;;  %v298_v61 = vld [vmem:[%s4910_s29 + $0x128] sm:$0xff] }
  0x3d   : > { %2585 = vmatpush2.msra.mxu1 %v383_v12  ;;  %2515 = vmatprep.subr.mxu0 %v318_v13  ;;  %v363_v60 = vld [vmem:[%s4910_s29 + $0x330] sm:$0xff]  ;;  %v362_v62 = vld [vmem:[%s4910_s29 + $0x328] sm:$0xff]  ;;  %v297_v0 = vld [vmem:[%s4910_s29 + $0x120] sm:$0xff]  ;;  %v2178_v2 = vrot.slane %v2164_v56, %v5027_v53  ;;  %v2179_v9 = vcombine.high %v2171_v63, %v2171_v63 }
  0x3e   : > { %2586 = vmatprep.subr.mxu1 %v382_v14  ;;  %2516 = vmatpush2.msra.mxu0 %v317_v15  ;;  %v361_v1 = vld [vmem:[%s4910_s29 + $0x320] sm:$0xff]  ;;  %v296_v3 = vld [vmem:[%s4910_s29 + $0x118] sm:$0xff]  ;;  %v295_v5 = vld [vmem:[%s4910_s29 + $0x110] sm:$0xff] }
  0x3f   : > { %2587 = vmatpush2.msra.mxu1 %v381_v16  ;;  %2517 = vmatprep.subr.mxu0 %v316_v17  ;;  %v360_v4 = vld [vmem:[%s4910_s29 + $0x318] sm:$0xff]  ;;  %v359_v6 = vld [vmem:[%s4910_s29 + $0x310] sm:$0xff]  ;;  %v294_v7 = vld [vmem:[%s4910_s29 + $0x108] sm:$0xff]  ;;  %v2180_v11 = vcombine.high %v2178_v2, %v2178_v2 }
  0x40   : > { %2588 = vmatprep.subr.mxu1 %v380_v18  ;;  %2518 = vmatpush2.msra.mxu0 %v315_v19  ;;  %v358_v8 = vld [vmem:[%s4910_s29 + $0x308] sm:$0xff]  ;;  %v293_v10 = vld [vmem:[%s4910_s29 + $0x100] sm:$0xff]  ;;  %v420_v13 = vld [vmem:[%s4910_s29 + $0x4f8] sm:$0xff] }
  0x41   : > { %2589 = vmatpush2.msra.mxu1 %v379_v20  ;;  %2519 = vmatprep.subr.mxu0 %v314_v21  ;;  %v357_v12 = vld [vmem:[%s4910_s29 + $0x300] sm:$0xff]  ;;  %v484_v14 = vld [vmem:[%s4910_s29 + $0x6f8] sm:$0xff]  ;;  %v419_v15 = vld [vmem:[%s4910_s29 + $0x4f0] sm:$0xff] }
  0x42   : > { %2590 = vmatprep.subr.mxu1 %v378_v22  ;;  %2520 = vmatpush2.msra.mxu0 %v313_v23  ;;  %v483_v16 = vld [vmem:[%s4910_s29 + $0x6f0] sm:$0xff]  ;;  %v418_v17 = vld [vmem:[%s4910_s29 + $0x4e8] sm:$0xff]  ;;  %v417_v19 = vld [vmem:[%s4910_s29 + $0x4e0] sm:$0xff] }
  0x43   : > { %2591 = vmatpush2.msra.mxu1 %v377_v24  ;;  %2521 = vmatprep.subr.mxu0 %v312_v25  ;;  %v482_v18 = vld [vmem:[%s4910_s29 + $0x6e8] sm:$0xff]  ;;  %v481_v20 = vld [vmem:[%s4910_s29 + $0x6e0] sm:$0xff]  ;;  %v416_v21 = vld [vmem:[%s4910_s29 + $0x4d8] sm:$0xff] }
  0x44   : > { %2592 = vmatprep.subr.mxu1 %v376_v26  ;;  %2522 = vmatpush2.msra.mxu0 %v311_v27  ;;  %v480_v22 = vld [vmem:[%s4910_s29 + $0x6d8] sm:$0xff]  ;;  %v415_v23 = vld [vmem:[%s4910_s29 + $0x4d0] sm:$0xff]  ;;  %v414_v25 = vld [vmem:[%s4910_s29 + $0x4c8] sm:$0xff] }
  0x45   : > { %2593 = vmatpush2.msra.mxu1 %v375_v28  ;;  %2523 = vmatprep.subr.mxu0 %v310_v29  ;;  %v479_v24 = vld [vmem:[%s4910_s29 + $0x6d0] sm:$0xff]  ;;  %v478_v26 = vld [vmem:[%s4910_s29 + $0x6c8] sm:$0xff]  ;;  %v413_v27 = vld [vmem:[%s4910_s29 + $0x4c0] sm:$0xff] }
  0x46   : > { %2594 = vmatprep.subr.mxu1 %v374_v30  ;;  %2524 = vmatpush2.msra.mxu0 %v309_v34  ;;  %v477_v28 = vld [vmem:[%s4910_s29 + $0x6c0] sm:$0xff]  ;;  %v412_v29 = vld [vmem:[%s4910_s29 + $0x4b8] sm:$0xff]  ;;  %v411_v31 = vld [vmem:[%s4910_s29 + $0x4b0] sm:$0xff] }
  0x47   : > { %2595 = vmatpush2.msra.mxu1 %v373_v35  ;;  %2525 = vmatprep.subr.mxu0 %v308_v36  ;;  %v476_v30 = vld [vmem:[%s4910_s29 + $0x6b8] sm:$0xff]  ;;  %v475_v32 = vld [vmem:[%s4910_s29 + $0x6b0] sm:$0xff]  ;;  %v410_v33 = vld [vmem:[%s4910_s29 + $0x4a8] sm:$0xff] }
  0x48   : > { %2596 = vmatprep.subr.mxu1 %v372_v37  ;;  %2526 = vmatpush2.msra.mxu0 %v307_v38  ;;  %v474_v34 = vld [vmem:[%s4910_s29 + $0x6a8] sm:$0xff]  ;;  %v409_v35 = vld [vmem:[%s4910_s29 + $0x4a0] sm:$0xff]  ;;  %v408_v37 = vld [vmem:[%s4910_s29 + $0x498] sm:$0xff] }
  0x49   : > { %2597 = vmatpush2.msra.mxu1 %v371_v39  ;;  %2527 = vmatprep.subr.mxu0 %v306_v40  ;;  %v473_v36 = vld [vmem:[%s4910_s29 + $0x6a0] sm:$0xff]  ;;  %v472_v38 = vld [vmem:[%s4910_s29 + $0x698] sm:$0xff]  ;;  %v407_v39 = vld [vmem:[%s4910_s29 + $0x490] sm:$0xff] }
  0x4a   : > { %2598 = vmatprep.subr.mxu1 %v370_v41  ;;  %2528 = vmatpush2.msra.mxu0 %v305_v44  ;;  %v471_v40 = vld [vmem:[%s4910_s29 + $0x690] sm:$0xff]  ;;  %v406_v41 = vld [vmem:[%s4910_s29 + $0x488] sm:$0xff]  ;;  %v405_v44 = vld [vmem:[%s4910_s29 + $0x480] sm:$0xff] }
  0x4b   : > { %2599 = vmatpush2.msra.mxu1 %v369_v45  ;;  %2529 = vmatprep.subr.mxu0 %v304_v46  ;;  %v470_v42 = vld [vmem:[%s4910_s29 + $0x688] sm:$0xff]  ;;  %v469_v45 = vld [vmem:[%s4910_s29 + $0x680] sm:$0xff]  ;;  %v404_v46 = vld [vmem:[%s4910_s29 + $0x478] sm:$0xff] }
  0x4c   : > { %2600 = vmatprep.subr.mxu1 %v368_v47  ;;  %2530 = vmatpush2.msra.mxu0 %v303_v49  ;;  %v468_v47 = vld [vmem:[%s4910_s29 + $0x678] sm:$0xff]  ;;  %v403_v48 = vld [vmem:[%s4910_s29 + $0x470] sm:$0xff]  ;;  %vm4621_vm5 = vmor %vm4620_vm4, %vm4619_vm3 }
  0x4d   : > { %2601 = vmatpush2.msra.mxu1 %v367_v50  ;;  %2531 = vmatprep.subr.mxu0 %v302_v51  ;;  %v467_v49 = vld [vmem:[%s4910_s29 + $0x670] sm:$0xff]  ;;  %v402_v50 = vld [vmem:[%s4910_s29 + $0x468] sm:$0xff]  ;;  %v464_v56 = vld [vmem:[%s4910_s29 + $0x658] sm:$0xff] }
  0x4e   : > { %2602 = vmatprep.subr.mxu1 %v366_v52  ;;  %2532 = vmatpush2.msra.mxu0 %v301_v54  ;;  %v466_v51 = vld [vmem:[%s4910_s29 + $0x668] sm:$0xff]  ;;  %v401_v52 = vld [vmem:[%s4910_s29 + $0x460] sm:$0xff] }
  0x4f   : > { %2603 = vmatpush2.msra.mxu1 %v365_v55  ;;  %2533 = vmatprep.subr.mxu0 %v300_v57  ;;  %v465_v54 = vld [vmem:[%s4910_s29 + $0x660] sm:$0xff]  ;;  %v400_v55 = vld [vmem:[%s4910_s29 + $0x458] sm:$0xff]  ;;  %v399_v57 = vld [vmem:[%s4910_s29 + $0x450] sm:$0xff] }
  0x50   : > { %2604 = vmatprep.subr.mxu1 %v364_v58  ;;  %2534 = vmatpush2.msra.mxu0 %v299_v59  ;;  %v463_v58 = vld [vmem:[%s4910_s29 + $0x650] sm:$0xff]  ;;  %v398_v59 = vld [vmem:[%s4910_s29 + $0x448] sm:$0xff] }
  0x51   : > { %2605 = vmatpush2.msra.mxu1 %v363_v60  ;;  %2535 = vmatprep.subr.mxu0 %v298_v61  ;;  %v462_v60 = vld [vmem:[%s4910_s29 + $0x648] sm:$0xff]  ;;  %v397_v61 = vld [vmem:[%s4910_s29 + $0x440] sm:$0xff] }
  0x52   : > { %2606 = vmatprep.subr.mxu1 %v362_v62  ;;  %2536 = vmatpush2.msra.mxu0 %v297_v0  ;;  %v461_v62 = vld [vmem:[%s4910_s29 + $0x640] sm:$0xff]  ;;  %v460_v0 = vld [vmem:[%s4910_s29 + $0x638] sm:$0xff] }
  0x53   : > { %2607 = vmatpush2.msra.mxu1 %v361_v1  ;;  %2537 = vmatprep.subr.mxu0 %v296_v3  ;;  %v395_v1 = vld [vmem:[%s4910_s29 + $0x430] sm:$0xff]  ;;  %v394_v3 = vld [vmem:[%s4910_s29 + $0x428] sm:$0xff] }
  0x54   : > { %2608 = vmatprep.subr.mxu1 %v360_v4  ;;  %2538 = vmatpush2.msra.mxu0 %v295_v5  ;;  %v458_v4 = vld [vmem:[%s4910_s29 + $0x628] sm:$0xff]  ;;  %v393_v5 = vld [vmem:[%s4910_s29 + $0x420] sm:$0xff] }
  0x55   : > { %2609 = vmatpush2.msra.mxu1 %v359_v6  ;;  %2539 = vmatprep.subr.mxu0 %v294_v7  ;;  %v457_v6 = vld [vmem:[%s4910_s29 + $0x620] sm:$0xff]  ;;  %v392_v7 = vld [vmem:[%s4910_s29 + $0x418] sm:$0xff] }
  0x56   : > { %2610 = vmatprep.subr.mxu1 %v358_v8  ;;  %2540 = vmatpush2.msra.mxu0 %v293_v10  ;;  %v456_v8 = vld [vmem:[%s4910_s29 + $0x618] sm:$0xff]  ;;  %v455_v10 = vld [vmem:[%s4910_s29 + $0x610] sm:$0xff] }
  0x57   : > { %2541 = vmatprep.mubr.f32.mxu0 %v2179_v9  ;;  %2611 = vmatpush2.msra.mxu1 %v357_v12  ;;  %v391_v9 = vld [vmem:[%s4910_s29 + $0x410] sm:$0xff]  ;;  %v454_v12 = vld [vmem:[%s4910_s29 + $0x608] sm:$0xff] }
  0x58   : > { %2612 = vmatprep.mubr.f32.mxu1 %v2180_v11  ;;  %2542 = vmatmul.mubr.f32.vlgmr.msra.gmra.mxu0 %v2171_v63  ;;  %v396_v63 = vld [vmem:[%s4910_s29 + $0x438] sm:$0xff]  ;;  %v390_v11 = vld [vmem:[%s4910_s29 + $0x408] sm:$0xff] }
  0x59   : > { %2613 = vmatmul.mubr.f32.vlgmr.msra.gmra.mxu1 %v2178_v2  ;;  %2619 = vmatprep.subr.mxu0 %v420_v13  ;;  %v459_v2 = vld [vmem:[%s4910_s29 + $0x630] sm:$0xff]  ;;  %v389_v13 = vld [vmem:[%s4910_s29 + $0x400] sm:$0xff] }
  0x5a   : > { %2690 = vmatprep.subr.mxu1 %v484_v14  ;;  %2620 = vmatpush1.msra.mxu0 %v419_v15  ;;  %v453_v14 = vld [vmem:[%s4910_s29 + $0x600] sm:$0xff]  ;;  %v452_v15 = vld [vmem:[%s4910_s29 + $0x5f8] sm:$0xff] }
  0x5b   : > { %2691 = vmatpush1.msra.mxu1 %v483_v16  ;;  %2621 = vmatprep.subr.mxu0 %v418_v17  ;;  %v516_v16 = vld [vmem:[%s4910_s29 + $0x7f8] sm:$0xff]  ;;  %v451_v17 = vld [vmem:[%s4910_s29 + $0x5f0] sm:$0xff] }
  0x5c   : > { %2692 = vmatprep.subr.mxu1 %v482_v18  ;;  %2622 = vmatpush1.msra.mxu0 %v417_v19  ;;  %v515_v18 = vld [vmem:[%s4910_s29 + $0x7f0] sm:$0xff]  ;;  %v450_v19 = vld [vmem:[%s4910_s29 + $0x5e8] sm:$0xff] }
  0x5d   : > { %2693 = vmatpush1.msra.mxu1 %v481_v20  ;;  %2623 = vmatprep.subr.mxu0 %v416_v21  ;;  %v514_v20 = vld [vmem:[%s4910_s29 + $0x7e8] sm:$0xff]  ;;  %v449_v21 = vld [vmem:[%s4910_s29 + $0x5e0] sm:$0xff] }
  0x5e   : > { %2694 = vmatprep.subr.mxu1 %v480_v22  ;;  %2624 = vmatpush1.msra.mxu0 %v415_v23  ;;  %v513_v22 = vld [vmem:[%s4910_s29 + $0x7e0] sm:$0xff]  ;;  %v448_v23 = vld [vmem:[%s4910_s29 + $0x5d8] sm:$0xff] }
  0x5f   : > { %2695 = vmatpush1.msra.mxu1 %v479_v24  ;;  %2625 = vmatprep.subr.mxu0 %v414_v25  ;;  %v512_v24 = vld [vmem:[%s4910_s29 + $0x7d8] sm:$0xff]  ;;  %v447_v25 = vld [vmem:[%s4910_s29 + $0x5d0] sm:$0xff] }
  0x60   : > { %2696 = vmatprep.subr.mxu1 %v478_v26  ;;  %2626 = vmatpush1.msra.mxu0 %v413_v27  ;;  %v511_v26 = vld [vmem:[%s4910_s29 + $0x7d0] sm:$0xff]  ;;  %v446_v27 = vld [vmem:[%s4910_s29 + $0x5c8] sm:$0xff] }
  0x61   : > { %2697 = vmatpush1.msra.mxu1 %v477_v28  ;;  %2627 = vmatprep.subr.mxu0 %v412_v29  ;;  %v510_v28 = vld [vmem:[%s4910_s29 + $0x7c8] sm:$0xff]  ;;  %v445_v29 = vld [vmem:[%s4910_s29 + $0x5c0] sm:$0xff] }
  0x62   : > { %2698 = vmatprep.subr.mxu1 %v476_v30  ;;  %2628 = vmatpush1.msra.mxu0 %v411_v31  ;;  %v509_v30 = vld [vmem:[%s4910_s29 + $0x7c0] sm:$0xff]  ;;  %v444_v31 = vld [vmem:[%s4910_s29 + $0x5b8] sm:$0xff] }
  0x63   : > { %2699 = vmatpush1.msra.mxu1 %v475_v32  ;;  %2629 = vmatprep.subr.mxu0 %v410_v33  ;;  %v508_v32 = vld [vmem:[%s4910_s29 + $0x7b8] sm:$0xff]  ;;  %v443_v33 = vld [vmem:[%s4910_s29 + $0x5b0] sm:$0xff] }
  0x64   : > { %2700 = vmatprep.subr.mxu1 %v474_v34  ;;  %2630 = vmatpush1.msra.mxu0 %v409_v35  ;;  %v507_v34 = vld [vmem:[%s4910_s29 + $0x7b0] sm:$0xff]  ;;  %v442_v35 = vld [vmem:[%s4910_s29 + $0x5a8] sm:$0xff] }
  0x65   : > { %2701 = vmatpush1.msra.mxu1 %v473_v36  ;;  %2631 = vmatprep.subr.mxu0 %v408_v37  ;;  %v506_v36 = vld [vmem:[%s4910_s29 + $0x7a8] sm:$0xff]  ;;  %v441_v37 = vld [vmem:[%s4910_s29 + $0x5a0] sm:$0xff] }
  0x66   : > { %2702 = vmatprep.subr.mxu1 %v472_v38  ;;  %2632 = vmatpush1.msra.mxu0 %v407_v39  ;;  %v505_v38 = vld [vmem:[%s4910_s29 + $0x7a0] sm:$0xff]  ;;  %v440_v39 = vld [vmem:[%s4910_s29 + $0x598] sm:$0xff] }
  0x67   : > { %2703 = vmatpush1.msra.mxu1 %v471_v40  ;;  %2633 = vmatprep.subr.mxu0 %v406_v41  ;;  %v504_v40 = vld [vmem:[%s4910_s29 + $0x798] sm:$0xff]  ;;  %v439_v41 = vld [vmem:[%s4910_s29 + $0x590] sm:$0xff] }
  0x68   : > { %2704 = vmatprep.subr.mxu1 %v470_v42  ;;  %2634 = vmatpush1.msra.mxu0 %v405_v44  ;;  %v503_v42 = vld [vmem:[%s4910_s29 + $0x790] sm:$0xff]  ;;  %v438_v44 = vld [vmem:[%s4910_s29 + $0x588] sm:$0xff] }
  0x69   : > { %2705 = vmatpush1.msra.mxu1 %v469_v45  ;;  %2635 = vmatprep.subr.mxu0 %v404_v46  ;;  %v502_v45 = vld [vmem:[%s4910_s29 + $0x788] sm:$0xff]  ;;  %v437_v46 = vld [vmem:[%s4910_s29 + $0x580] sm:$0xff] }
  0x6a   : > { %2706 = vmatprep.subr.mxu1 %v468_v47  ;;  %2636 = vmatpush1.msra.mxu0 %v403_v48  ;;  %v501_v47 = vld [vmem:[%s4910_s29 + $0x780] sm:$0xff]  ;;  %v436_v48 = vld [vmem:[%s4910_s29 + $0x578] sm:$0xff] }
  0x6b   : > { %2707 = vmatpush1.msra.mxu1 %v467_v49  ;;  %2637 = vmatprep.subr.mxu0 %v402_v50  ;;  %v500_v49 = vld [vmem:[%s4910_s29 + $0x778] sm:$0xff]  ;;  %v435_v50 = vld [vmem:[%s4910_s29 + $0x570] sm:$0xff] }
  0x6c   : > { %2708 = vmatprep.subr.mxu1 %v466_v51  ;;  %2638 = vmatpush1.msra.mxu0 %v401_v52  ;;  %v499_v51 = vld [vmem:[%s4910_s29 + $0x770] sm:$0xff]  ;;  %v434_v52 = vld [vmem:[%s4910_s29 + $0x568] sm:$0xff] }
  0x6d   : > { %2709 = vmatpush1.msra.mxu1 %v465_v54  ;;  %2639 = vmatprep.subr.mxu0 %v400_v55  ;;  %v498_v54 = vld [vmem:[%s4910_s29 + $0x768] sm:$0xff]  ;;  %v433_v55 = vld [vmem:[%s4910_s29 + $0x560] sm:$0xff] }
  0x6e   : > { %2710 = vmatprep.subr.mxu1 %v464_v56  ;;  %2640 = vmatpush1.msra.mxu0 %v399_v57  ;;  %v497_v56 = vld [vmem:[%s4910_s29 + $0x760] sm:$0xff]  ;;  %v432_v57 = vld [vmem:[%s4910_s29 + $0x558] sm:$0xff] }
  0x6f   : > { %2711 = vmatpush1.msra.mxu1 %v463_v58  ;;  %2641 = vmatprep.subr.mxu0 %v398_v59  ;;  %v496_v58 = vld [vmem:[%s4910_s29 + $0x758] sm:$0xff]  ;;  %v431_v59 = vld [vmem:[%s4910_s29 + $0x550] sm:$0xff] }
  0x70   : > { %2712 = vmatprep.subr.mxu1 %v462_v60  ;;  %2642 = vmatpush1.msra.mxu0 %v397_v61  ;;  %v495_v60 = vld [vmem:[%s4910_s29 + $0x750] sm:$0xff]  ;;  %v247_v61 = vld [vmem:[%s4905_s25 + $0x8] sm:$0xff] }
  0x71   : > { %2713 = vmatpush1.msra.mxu1 %v461_v62  ;;  %2643 = vmatprep.subr.mxu0 %v396_v63  ;;  %v430_v62 = vld [vmem:[%s4910_s29 + $0x548] sm:$0xff] }
  0x72   : > { %2714 = vmatprep.subr.mxu1 %v460_v0  ;;  %2644 = vmatpush1.msra.mxu0 %v395_v1  ;;  %v494_v63 = vld [vmem:[%s4910_s29 + $0x748] sm:$0xff]  ;;  %v429_v0 = vld [vmem:[%s4910_s29 + $0x540] sm:$0xff] }
  0x73   : > { %2715 = vmatpush1.msra.mxu1 %v459_v2  ;;  %2645 = vmatprep.subr.mxu0 %v394_v3  ;;  %v493_v1 = vld [vmem:[%s4910_s29 + $0x740] sm:$0xff]  ;;  %v428_v2 = vld [vmem:[%s4910_s29 + $0x538] sm:$0xff] }
  0x74   : > { %2716 = vmatprep.subr.mxu1 %v458_v4  ;;  %2646 = vmatpush1.msra.mxu0 %v393_v5  ;;  %v492_v3 = vld [vmem:[%s4910_s29 + $0x738] sm:$0xff]  ;;  %v2188_v4 = vrot.slane %v247_v61, %v5027_v53  ;;  %v2181_v5 = vcombine.high %v247_v61, %v247_v61  ;;  %v529_v61 = vld [vmem:[%s4910_s29 + $0x860] sm:$0xff] }
  0x75   : > { %2717 = vmatpush1.msra.mxu1 %v457_v6  ;;  %2647 = vmatprep.subr.mxu0 %v392_v7  ;;  %v427_v6 = vld [vmem:[%s4910_s29 + $0x530] sm:$0xff] }
  0x76   : > { %2718 = vmatprep.subr.mxu1 %v456_v8  ;;  %2648 = vmatpush1.msra.mxu0 %v391_v9  ;;  %v491_v7 = vld [vmem:[%s4910_s29 + $0x730] sm:$0xff]  ;;  %v426_v8 = vld [vmem:[%s4910_s29 + $0x528] sm:$0xff] }
  0x77   : > { %2719 = vmatpush1.msra.mxu1 %v455_v10  ;;  %2649 = vmatprep.subr.mxu0 %v390_v11  ;;  %v490_v9 = vld [vmem:[%s4910_s29 + $0x728] sm:$0xff]  ;;  %v425_v10 = vld [vmem:[%s4910_s29 + $0x520] sm:$0xff] }
  0x78   : > { %2720 = vmatprep.subr.mxu1 %v454_v12  ;;  %2650 = vmatpush1.msra.mxu0 %v389_v13  ;;  %v489_v11 = vld [vmem:[%s4910_s29 + $0x720] sm:$0xff]  ;;  %v424_v12 = vld [vmem:[%s4910_s29 + $0x518] sm:$0xff] }
  0x79   : > { %2721 = vmatpush1.msra.mxu1 %v453_v14  ;;  %2651 = vmatprep.subr.mxu0 %v452_v15  ;;  %v488_v13 = vld [vmem:[%s4910_s29 + $0x718] sm:$0xff]  ;;  %v2196_v14 = vcombine.high %v2188_v4, %v2188_v4  ;;  %v2195_v15 = vrot.slane %v2181_v5, %v5027_v53  ;;  %v525_v5 = vld [vmem:[%s4910_s29 + $0x840] sm:$0xff] }
  0x7a   : > { %2722 = vmatprep.subr.mxu1 %v516_v16  ;;  %2652 = vmatpush2.msra.mxu0 %v451_v17  ;;  %v423_v16 = vld [vmem:[%s4910_s29 + $0x510] sm:$0xff]  ;;  %v422_v17 = vld [vmem:[%s4910_s29 + $0x508] sm:$0xff] }
  0x7b   : > { %2723 = vmatpush2.msra.mxu1 %v515_v18  ;;  %2653 = vmatprep.subr.mxu0 %v450_v19  ;;  %v487_v18 = vld [vmem:[%s4910_s29 + $0x710] sm:$0xff]  ;;  %v421_v19 = vld [vmem:[%s4910_s29 + $0x500] sm:$0xff] }
  0x7c   : > { %2724 = vmatprep.subr.mxu1 %v514_v20  ;;  %2654 = vmatpush2.msra.mxu0 %v449_v21  ;;  %v486_v20 = vld [vmem:[%s4910_s29 + $0x708] sm:$0xff]  ;;  %v548_v21 = vld [vmem:[%s4910_s29 + $0x8f8] sm:$0xff] }
  0x7d   : > { %2725 = vmatpush2.msra.mxu1 %v513_v22  ;;  %2655 = vmatprep.subr.mxu0 %v448_v23  ;;  %v2197_v22 = vcombine.high %v2195_v15, %v2195_v15  ;;  %v485_v23 = vld [vmem:[%s4910_s29 + $0x700] sm:$0xff] }
  0x7e   : > { %2726 = vmatprep.subr.mxu1 %v512_v24  ;;  %2656 = vmatpush2.msra.mxu0 %v447_v25  ;;  %v547_v24 = vld [vmem:[%s4910_s29 + $0x8f0] sm:$0xff]  ;;  %v546_v25 = vld [vmem:[%s4910_s29 + $0x8e8] sm:$0xff] }
  0x7f   : > { %2727 = vmatpush2.msra.mxu1 %v511_v26  ;;  %2657 = vmatprep.subr.mxu0 %v446_v27  ;;  %v612_v26 = vld [vmem:[%s4910_s29 + $0xaf8] sm:$0xff]  ;;  %v545_v27 = vld [vmem:[%s4910_s29 + $0x8e0] sm:$0xff] }
  0x80   : > { %2728 = vmatprep.subr.mxu1 %v510_v28  ;;  %2658 = vmatpush2.msra.mxu0 %v445_v29  ;;  %v611_v28 = vld [vmem:[%s4910_s29 + $0xaf0] sm:$0xff]  ;;  %v544_v29 = vld [vmem:[%s4910_s29 + $0x8d8] sm:$0xff] }
  0x81   : > { %2729 = vmatpush2.msra.mxu1 %v509_v30  ;;  %2659 = vmatprep.subr.mxu0 %v444_v31  ;;  %v610_v30 = vld [vmem:[%s4910_s29 + $0xae8] sm:$0xff]  ;;  %v543_v31 = vld [vmem:[%s4910_s29 + $0x8d0] sm:$0xff] }
  0x82   : > { %2730 = vmatprep.subr.mxu1 %v508_v32  ;;  %2660 = vmatpush2.msra.mxu0 %v443_v33  ;;  %v609_v32 = vld [vmem:[%s4910_s29 + $0xae0] sm:$0xff]  ;;  %v542_v33 = vld [vmem:[%s4910_s29 + $0x8c8] sm:$0xff] }
  0x83   : > { %2731 = vmatpush2.msra.mxu1 %v507_v34  ;;  %2661 = vmatprep.subr.mxu0 %v442_v35  ;;  %v608_v34 = vld [vmem:[%s4910_s29 + $0xad8] sm:$0xff]  ;;  %v541_v35 = vld [vmem:[%s4910_s29 + $0x8c0] sm:$0xff] }
  0x84   : > { %2732 = vmatprep.subr.mxu1 %v506_v36  ;;  %2662 = vmatpush2.msra.mxu0 %v441_v37  ;;  %v607_v36 = vld [vmem:[%s4910_s29 + $0xad0] sm:$0xff]  ;;  %v540_v37 = vld [vmem:[%s4910_s29 + $0x8b8] sm:$0xff] }
  0x85   : > { %2733 = vmatpush2.msra.mxu1 %v505_v38  ;;  %2663 = vmatprep.subr.mxu0 %v440_v39  ;;  %v606_v38 = vld [vmem:[%s4910_s29 + $0xac8] sm:$0xff]  ;;  %v539_v39 = vld [vmem:[%s4910_s29 + $0x8b0] sm:$0xff] }
  0x86   : > { %2734 = vmatprep.subr.mxu1 %v504_v40  ;;  %2664 = vmatpush2.msra.mxu0 %v439_v41  ;;  %v605_v40 = vld [vmem:[%s4910_s29 + $0xac0] sm:$0xff]  ;;  %v538_v41 = vld [vmem:[%s4910_s29 + $0x8a8] sm:$0xff] }
  0x87   : > { %2735 = vmatpush2.msra.mxu1 %v503_v42  ;;  %2665 = vmatprep.subr.mxu0 %v438_v44  ;;  %v604_v42 = vld [vmem:[%s4910_s29 + $0xab8] sm:$0xff]  ;;  %v537_v44 = vld [vmem:[%s4910_s29 + $0x8a0] sm:$0xff] }
  0x88   : > { %2736 = vmatprep.subr.mxu1 %v502_v45  ;;  %2666 = vmatpush2.msra.mxu0 %v437_v46  ;;  %v603_v45 = vld [vmem:[%s4910_s29 + $0xab0] sm:$0xff]  ;;  %v536_v46 = vld [vmem:[%s4910_s29 + $0x898] sm:$0xff] }
  0x89   : > { %2737 = vmatpush2.msra.mxu1 %v501_v47  ;;  %2667 = vmatprep.subr.mxu0 %v436_v48  ;;  %v602_v47 = vld [vmem:[%s4910_s29 + $0xaa8] sm:$0xff]  ;;  %v535_v48 = vld [vmem:[%s4910_s29 + $0x890] sm:$0xff] }
  0x8a   : > { %2738 = vmatprep.subr.mxu1 %v500_v49  ;;  %2668 = vmatpush2.msra.mxu0 %v435_v50  ;;  %v601_v49 = vld [vmem:[%s4910_s29 + $0xaa0] sm:$0xff]  ;;  %v534_v50 = vld [vmem:[%s4910_s29 + $0x888] sm:$0xff] }
  0x8b   : > { %2739 = vmatpush2.msra.mxu1 %v499_v51  ;;  %2669 = vmatprep.subr.mxu0 %v434_v52  ;;  %v600_v51 = vld [vmem:[%s4910_s29 + $0xa98] sm:$0xff]  ;;  %v533_v52 = vld [vmem:[%s4910_s29 + $0x880] sm:$0xff] }
  0x8c   : > { %2740 = vmatprep.subr.mxu1 %v498_v54  ;;  %2670 = vmatpush2.msra.mxu0 %v433_v55  ;;  %v599_v54 = vld [vmem:[%s4910_s29 + $0xa90] sm:$0xff]  ;;  %v532_v55 = vld [vmem:[%s4910_s29 + $0x878] sm:$0xff] }
  0x8d   : > { %2741 = vmatpush2.msra.mxu1 %v497_v56  ;;  %2671 = vmatprep.subr.mxu0 %v432_v57  ;;  %v598_v56 = vld [vmem:[%s4910_s29 + $0xa88] sm:$0xff]  ;;  %v531_v57 = vld [vmem:[%s4910_s29 + $0x870] sm:$0xff] }
  0x8e   : > { %2742 = vmatprep.subr.mxu1 %v496_v58  ;;  %2672 = vmatpush2.msra.mxu0 %v431_v59  ;;  %v597_v58 = vld [vmem:[%s4910_s29 + $0xa80] sm:$0xff]  ;;  %v530_v59 = vld [vmem:[%s4910_s29 + $0x868] sm:$0xff] }
  0x8f   : > { %2743 = vmatpush2.msra.mxu1 %v495_v60  ;;  %2673 = vmatprep.subr.mxu0 %v430_v62  ;;  %v596_v60 = vld [vmem:[%s4910_s29 + $0xa78] sm:$0xff]  ;;  %v595_v62 = vld [vmem:[%s4910_s29 + $0xa70] sm:$0xff] }
  0x90   : > { %2744 = vmatprep.subr.mxu1 %v494_v63  ;;  %2674 = vmatpush2.msra.mxu0 %v429_v0  ;;  %v528_v63 = vld [vmem:[%s4910_s29 + $0x858] sm:$0xff]  ;;  %v594_v0 = vld [vmem:[%s4910_s29 + $0xa68] sm:$0xff] }
  0x91   : > { %2745 = vmatpush2.msra.mxu1 %v493_v1  ;;  %2675 = vmatprep.subr.mxu0 %v428_v2  ;;  %v527_v1 = vld [vmem:[%s4910_s29 + $0x850] sm:$0xff]  ;;  %v593_v2 = vld [vmem:[%s4910_s29 + $0xa60] sm:$0xff] }
  0x92   : > { %2746 = vmatprep.subr.mxu1 %v492_v3  ;;  %2676 = vmatpush2.msra.mxu0 %v427_v6  ;;  %v526_v3 = vld [vmem:[%s4910_s29 + $0x848] sm:$0xff]  ;;  %v591_v6 = vld [vmem:[%s4910_s29 + $0xa50] sm:$0xff] }
  0x93   : > { %2747 = vmatpush2.msra.mxu1 %v491_v7  ;;  %2677 = vmatprep.subr.mxu0 %v426_v8  ;;  %v524_v7 = vld [vmem:[%s4910_s29 + $0x838] sm:$0xff]  ;;  %v590_v8 = vld [vmem:[%s4910_s29 + $0xa48] sm:$0xff] }
  0x94   : > { %2748 = vmatprep.subr.mxu1 %v490_v9  ;;  %2678 = vmatpush2.msra.mxu0 %v425_v10  ;;  %v523_v9 = vld [vmem:[%s4910_s29 + $0x830] sm:$0xff]  ;;  %v589_v10 = vld [vmem:[%s4910_s29 + $0xa40] sm:$0xff] }
  0x95   : > { %2749 = vmatpush2.msra.mxu1 %v489_v11  ;;  %2679 = vmatprep.subr.mxu0 %v424_v12  ;;  %v522_v11 = vld [vmem:[%s4910_s29 + $0x828] sm:$0xff]  ;;  %v588_v12 = vld [vmem:[%s4910_s29 + $0xa38] sm:$0xff] }
  0x96   : > { %2750 = vmatprep.subr.mxu1 %v488_v13  ;;  %2680 = vmatpush2.msra.mxu0 %v423_v16  ;;  %v521_v13 = vld [vmem:[%s4910_s29 + $0x820] sm:$0xff]  ;;  %v586_v16 = vld [vmem:[%s4910_s29 + $0xa28] sm:$0xff] }
  0x97   : > { %2683 = vmatprep.mubr.f32.mxu0 %v2196_v14  ;;  %2681 = vmatprep.subr.mxu0 %v422_v17  ;;  %v587_v14 = vld [vmem:[%s4910_s29 + $0xa30] sm:$0xff] }
  0x98   : > { %2751 = vmatpush2.msra.mxu1 %v487_v18  ;;  %2682 = vmatpush2.msra.mxu0 %v421_v19  ;;  %v519_v17 = vld [vmem:[%s4910_s29 + $0x810] sm:$0xff]  ;;  %v585_v18 = vld [vmem:[%s4910_s29 + $0xa20] sm:$0xff]  ;;  %v518_v19 = vld [vmem:[%s4910_s29 + $0x808] sm:$0xff] }
  0x99   : > { %2752 = vmatprep.subr.mxu1 %v486_v20  ;;  %2684 = vmatmul.mubr.f32.vlgmr.msra.gmra.mxu0 %v2188_v4  ;;  %v592_v4 = vld [vmem:[%s4910_s29 + $0xa58] sm:$0xff] }
  0x9a   : > { %2761 = vmatprep.subr.mxu0 %v548_v21  ;;  %2753 = vmatpush2.msra.mxu1 %v485_v23  ;;  %v584_v20 = vld [vmem:[%s4910_s29 + $0xa18] sm:$0xff]  ;;  %v517_v21 = vld [vmem:[%s4910_s29 + $0x800] sm:$0xff] }
  0x9b   : > { %2754 = vmatprep.mubr.f32.mxu1 %v2197_v22  ;;  %2762 = vmatpush1.msra.mxu0 %v547_v24  ;;  %v583_v22 = vld [vmem:[%s4910_s29 + $0xa10] sm:$0xff]  ;;  %v580_v23 = vld [vmem:[%s4910_s29 + $0x9f8] sm:$0xff]  ;;  %v582_v24 = vld [vmem:[%s4910_s29 + $0xa08] sm:$0xff] }
  0x9c   : > { %2755 = vmatmul.mubr.f32.vlgmr.msra.gmra.mxu1 %v2195_v15  ;;  %2763 = vmatprep.subr.mxu0 %v546_v25  ;;  %v520_v15 = vld [vmem:[%s4910_s29 + $0x818] sm:$0xff]  ;;  %v579_v25 = vld [vmem:[%s4910_s29 + $0x9f0] sm:$0xff] }
  0x9d   : > { %2832 = vmatprep.subr.mxu1 %v612_v26  ;;  %2764 = vmatpush1.msra.mxu0 %v545_v27  ;;  %v581_v26 = vld [vmem:[%s4910_s29 + $0xa00] sm:$0xff]  ;;  %v578_v27 = vld [vmem:[%s4910_s29 + $0x9e8] sm:$0xff] }
  0x9e   : > { %2833 = vmatpush1.msra.mxu1 %v611_v28  ;;  %2765 = vmatprep.subr.mxu0 %v544_v29  ;;  %v644_v28 = vld [vmem:[%s4910_s29 + $0xbf8] sm:$0xff]  ;;  %v577_v29 = vld [vmem:[%s4910_s29 + $0x9e0] sm:$0xff] }
  0x9f   : > { %2834 = vmatprep.subr.mxu1 %v610_v30  ;;  %2766 = vmatpush1.msra.mxu0 %v543_v31  ;;  %v643_v30 = vld [vmem:[%s4910_s29 + $0xbf0] sm:$0xff]  ;;  %v576_v31 = vld [vmem:[%s4910_s29 + $0x9d8] sm:$0xff] }
  0xa0   : > { %2835 = vmatpush1.msra.mxu1 %v609_v32  ;;  %2767 = vmatprep.subr.mxu0 %v542_v33  ;;  %v642_v32 = vld [vmem:[%s4910_s29 + $0xbe8] sm:$0xff]  ;;  %v575_v33 = vld [vmem:[%s4910_s29 + $0x9d0] sm:$0xff] }
  0xa1   : > { %2836 = vmatprep.subr.mxu1 %v608_v34  ;;  %2768 = vmatpush1.msra.mxu0 %v541_v35  ;;  %v641_v34 = vld [vmem:[%s4910_s29 + $0xbe0] sm:$0xff]  ;;  %v574_v35 = vld [vmem:[%s4910_s29 + $0x9c8] sm:$0xff] }
  0xa2   : > { %2837 = vmatpush1.msra.mxu1 %v607_v36  ;;  %2769 = vmatprep.subr.mxu0 %v540_v37  ;;  %v640_v36 = vld [vmem:[%s4910_s29 + $0xbd8] sm:$0xff]  ;;  %v573_v37 = vld [vmem:[%s4910_s29 + $0x9c0] sm:$0xff] }
  0xa3   : > { %2838 = vmatprep.subr.mxu1 %v606_v38  ;;  %2770 = vmatpush1.msra.mxu0 %v539_v39  ;;  %v639_v38 = vld [vmem:[%s4910_s29 + $0xbd0] sm:$0xff]  ;;  %v572_v39 = vld [vmem:[%s4910_s29 + $0x9b8] sm:$0xff] }
  0xa4   : > { %2839 = vmatpush1.msra.mxu1 %v605_v40  ;;  %2771 = vmatprep.subr.mxu0 %v538_v41  ;;  %v638_v40 = vld [vmem:[%s4910_s29 + $0xbc8] sm:$0xff]  ;;  %v571_v41 = vld [vmem:[%s4910_s29 + $0x9b0] sm:$0xff] }
  0xa5   : > { %2840 = vmatprep.subr.mxu1 %v604_v42  ;;  %2772 = vmatpush1.msra.mxu0 %v537_v44  ;;  %v637_v42 = vld [vmem:[%s4910_s29 + $0xbc0] sm:$0xff]  ;;  %v570_v44 = vld [vmem:[%s4910_s29 + $0x9a8] sm:$0xff] }
  0xa6   : > { %2841 = vmatpush1.msra.mxu1 %v603_v45  ;;  %2773 = vmatprep.subr.mxu0 %v536_v46  ;;  %v636_v45 = vld [vmem:[%s4910_s29 + $0xbb8] sm:$0xff]  ;;  %v569_v46 = vld [vmem:[%s4910_s29 + $0x9a0] sm:$0xff] }
  0xa7   : > { %2842 = vmatprep.subr.mxu1 %v602_v47  ;;  %2774 = vmatpush1.msra.mxu0 %v535_v48  ;;  %v635_v47 = vld [vmem:[%s4910_s29 + $0xbb0] sm:$0xff]  ;;  %v568_v48 = vld [vmem:[%s4910_s29 + $0x998] sm:$0xff] }
  0xa8   : > { %2843 = vmatpush1.msra.mxu1 %v601_v49  ;;  %2775 = vmatprep.subr.mxu0 %v534_v50  ;;  %v634_v49 = vld [vmem:[%s4910_s29 + $0xba8] sm:$0xff]  ;;  %v567_v50 = vld [vmem:[%s4910_s29 + $0x990] sm:$0xff] }
  0xa9   : > { %2844 = vmatprep.subr.mxu1 %v600_v51  ;;  %2776 = vmatpush1.msra.mxu0 %v533_v52  ;;  %v633_v51 = vld [vmem:[%s4910_s29 + $0xba0] sm:$0xff]  ;;  %v566_v52 = vld [vmem:[%s4910_s29 + $0x988] sm:$0xff] }
  0xaa   : > { %2845 = vmatpush1.msra.mxu1 %v599_v54  ;;  %2777 = vmatprep.subr.mxu0 %v532_v55  ;;  %v632_v54 = vld [vmem:[%s4910_s29 + $0xb98] sm:$0xff]  ;;  %v565_v55 = vld [vmem:[%s4910_s29 + $0x980] sm:$0xff] }
  0xab   : > { %2846 = vmatprep.subr.mxu1 %v598_v56  ;;  %2778 = vmatpush1.msra.mxu0 %v531_v57  ;;  %v631_v56 = vld [vmem:[%s4910_s29 + $0xb90] sm:$0xff]  ;;  %v564_v57 = vld [vmem:[%s4910_s29 + $0x978] sm:$0xff] }
  0xac   : > { %2847 = vmatpush1.msra.mxu1 %v597_v58  ;;  %2779 = vmatprep.subr.mxu0 %v530_v59  ;;  %v630_v58 = vld [vmem:[%s4910_s29 + $0xb88] sm:$0xff]  ;;  %v563_v59 = vld [vmem:[%s4910_s29 + $0x970] sm:$0xff] }
  0xad   : > { %2848 = vmatprep.subr.mxu1 %v596_v60  ;;  %2780 = vmatpush1.msra.mxu0 %v529_v61  ;;  %v629_v60 = vld [vmem:[%s4910_s29 + $0xb80] sm:$0xff]  ;;  %v562_v61 = vld [vmem:[%s4910_s29 + $0x968] sm:$0xff] }
  0xae   : > { %2849 = vmatpush1.msra.mxu1 %v595_v62  ;;  %2781 = vmatprep.subr.mxu0 %v528_v63  ;;  %v628_v62 = vld [vmem:[%s4910_s29 + $0xb78] sm:$0xff]  ;;  %v561_v63 = vld [vmem:[%s4910_s29 + $0x960] sm:$0xff] }
  0xaf   : > { %2850 = vmatprep.subr.mxu1 %v594_v0  ;;  %2782 = vmatpush1.msra.mxu0 %v527_v1  ;;  %v627_v0 = vld [vmem:[%s4910_s29 + $0xb70] sm:$0xff]  ;;  %v560_v1 = vld [vmem:[%s4910_s29 + $0x958] sm:$0xff] }
  0xb0   : > { %2851 = vmatpush1.msra.mxu1 %v593_v2  ;;  %2783 = vmatprep.subr.mxu0 %v526_v3  ;;  %v626_v2 = vld [vmem:[%s4910_s29 + $0xb68] sm:$0xff]  ;;  %v559_v3 = vld [vmem:[%s4910_s29 + $0x950] sm:$0xff] }
  0xb1   : > { %2852 = vmatprep.subr.mxu1 %v592_v4  ;;  %2784 = vmatpush1.msra.mxu0 %v525_v5  ;;  %v625_v4 = vld [vmem:[%s4910_s29 + $0xb60] sm:$0xff]  ;;  %v558_v5 = vld [vmem:[%s4910_s29 + $0x948] sm:$0xff] }
  0xb2   : > { %2853 = vmatpush1.msra.mxu1 %v591_v6  ;;  %2785 = vmatprep.subr.mxu0 %v524_v7  ;;  %v624_v6 = vld [vmem:[%s4910_s29 + $0xb58] sm:$0xff]  ;;  %v248_v7 = vld [vmem:[%s4905_s25 + $0x10] sm:$0xff] }
  0xb3   : > { %2854 = vmatprep.subr.mxu1 %v590_v8  ;;  %2786 = vmatpush1.msra.mxu0 %v523_v9  ;;  %v557_v8 = vld [vmem:[%s4910_s29 + $0x940] sm:$0xff]  ;;  %v623_v9 = vld [vmem:[%s4910_s29 + $0xb50] sm:$0xff] }
  0xb4   : > { %2855 = vmatpush1.msra.mxu1 %v589_v10  ;;  %2787 = vmatprep.subr.mxu0 %v522_v11  ;;  %v556_v10 = vld [vmem:[%s4910_s29 + $0x938] sm:$0xff]  ;;  %v622_v11 = vld [vmem:[%s4910_s29 + $0xb48] sm:$0xff] }
  0xb5   : > { %2856 = vmatprep.subr.mxu1 %v588_v12  ;;  %2788 = vmatpush1.msra.mxu0 %v521_v13  ;;  %v555_v12 = vld [vmem:[%s4910_s29 + $0x930] sm:$0xff]  ;;  %v621_v13 = vld [vmem:[%s4910_s29 + $0xb40] sm:$0xff] }
  0xb6   : > { %2857 = vmatpush1.msra.mxu1 %v587_v14  ;;  %2789 = vmatprep.subr.mxu0 %v520_v15  ;;  %v2198_v14 = vcombine.high %v248_v7, %v248_v7  ;;  %v554_v15 = vld [vmem:[%s4910_s29 + $0x928] sm:$0xff] }
  0xb7   : > { %2858 = vmatprep.subr.mxu1 %v586_v16  ;;  %2790 = vmatpush1.msra.mxu0 %v519_v17  ;;  %v620_v16 = vld [vmem:[%s4910_s29 + $0xb38] sm:$0xff]  ;;  %v2205_v17 = vrot.slane %v248_v7, %v5027_v53  ;;  %v657_v7 = vld [vmem:[%s4910_s29 + $0xc60] sm:$0xff] }
  0xb8   : > { %2859 = vmatpush1.msra.mxu1 %v585_v18  ;;  %2791 = vmatprep.subr.mxu0 %v518_v19  ;;  %v553_v18 = vld [vmem:[%s4910_s29 + $0x920] sm:$0xff]  ;;  %v619_v19 = vld [vmem:[%s4910_s29 + $0xb30] sm:$0xff] }
  0xb9   : > { %2860 = vmatprep.subr.mxu1 %v584_v20  ;;  %2792 = vmatpush1.msra.mxu0 %v517_v21  ;;  %v552_v20 = vld [vmem:[%s4910_s29 + $0x918] sm:$0xff]  ;;  %v618_v21 = vld [vmem:[%s4910_s29 + $0xb28] sm:$0xff] }
  0xba   : > { %2861 = vmatpush1.msra.mxu1 %v583_v22  ;;  %2793 = vmatprep.subr.mxu0 %v580_v23  ;;  %v551_v22 = vld [vmem:[%s4910_s29 + $0x910] sm:$0xff]  ;;  %v617_v23 = vld [vmem:[%s4910_s29 + $0xb20] sm:$0xff] }
  0xbb   : > { %2862 = vmatprep.subr.mxu1 %v582_v24  ;;  %2794 = vmatpush2.msra.mxu0 %v579_v25  ;;  %v2212_v24 = vrot.slane %v2198_v14, %v5027_v53  ;;  %v550_v25 = vld [vmem:[%s4910_s29 + $0x908] sm:$0xff]  ;;  %v720_v14 = vld [vmem:[%s4910_s29 + $0xe58] sm:$0xff] }
  0xbc   : > { %2863 = vmatpush1.msra.mxu1 %v581_v26  ;;  %2795 = vmatprep.subr.mxu0 %v578_v27  ;;  %v616_v26 = vld [vmem:[%s4910_s29 + $0xb18] sm:$0xff]  ;;  %v2213_v27 = vcombine.high %v2205_v17, %v2205_v17 }
  0xbd   : > { %2864 = vmatprep.subr.mxu1 %v644_v28  ;;  %2796 = vmatpush2.msra.mxu0 %v577_v29  ;;  %v549_v28 = vld [vmem:[%s4910_s29 + $0x900] sm:$0xff]  ;;  %v615_v29 = vld [vmem:[%s4910_s29 + $0xb10] sm:$0xff] }
  0xbe   : > { %2865 = vmatpush2.msra.mxu1 %v643_v30  ;;  %2797 = vmatprep.subr.mxu0 %v576_v31  ;;  %v614_v30 = vld [vmem:[%s4910_s29 + $0xb08] sm:$0xff]  ;;  %v676_v31 = vld [vmem:[%s4910_s29 + $0xcf8] sm:$0xff] }
  0xbf   : > { %2866 = vmatprep.subr.mxu1 %v642_v32  ;;  %2798 = vmatpush2.msra.mxu0 %v575_v33  ;;  %v2214_v32 = vcombine.high %v2212_v24, %v2212_v24  ;;  %v613_v33 = vld [vmem:[%s4910_s29 + $0xb00] sm:$0xff] }
  0xc0   : > { %2867 = vmatpush2.msra.mxu1 %v641_v34  ;;  %2799 = vmatprep.subr.mxu0 %v574_v35  ;;  %v675_v34 = vld [vmem:[%s4910_s29 + $0xcf0] sm:$0xff]  ;;  %v674_v35 = vld [vmem:[%s4910_s29 + $0xce8] sm:$0xff] }
  0xc1   : > { %2868 = vmatprep.subr.mxu1 %v640_v36  ;;  %2800 = vmatpush2.msra.mxu0 %v573_v37  ;;  %v740_v36 = vld [vmem:[%s4910_s29 + $0xef8] sm:$0xff]  ;;  %v673_v37 = vld [vmem:[%s4910_s29 + $0xce0] sm:$0xff] }
  0xc2   : > { %2869 = vmatpush2.msra.mxu1 %v639_v38  ;;  %2801 = vmatprep.subr.mxu0 %v572_v39  ;;  %v739_v38 = vld [vmem:[%s4910_s29 + $0xef0] sm:$0xff]  ;;  %v672_v39 = vld [vmem:[%s4910_s29 + $0xcd8] sm:$0xff] }
  0xc3   : > { %2870 = vmatprep.subr.mxu1 %v638_v40  ;;  %2802 = vmatpush2.msra.mxu0 %v571_v41  ;;  %v738_v40 = vld [vmem:[%s4910_s29 + $0xee8] sm:$0xff]  ;;  %v671_v41 = vld [vmem:[%s4910_s29 + $0xcd0] sm:$0xff] }
  0xc4   : > { %2871 = vmatpush2.msra.mxu1 %v637_v42  ;;  %2803 = vmatprep.subr.mxu0 %v570_v44  ;;  %v737_v42 = vld [vmem:[%s4910_s29 + $0xee0] sm:$0xff]  ;;  %v670_v44 = vld [vmem:[%s4910_s29 + $0xcc8] sm:$0xff] }
  0xc5   : > { %2872 = vmatprep.subr.mxu1 %v636_v45  ;;  %2804 = vmatpush2.msra.mxu0 %v569_v46  ;;  %v736_v45 = vld [vmem:[%s4910_s29 + $0xed8] sm:$0xff]  ;;  %v669_v46 = vld [vmem:[%s4910_s29 + $0xcc0] sm:$0xff] }
  0xc6   : > { %2873 = vmatpush2.msra.mxu1 %v635_v47  ;;  %2805 = vmatprep.subr.mxu0 %v568_v48  ;;  %v735_v47 = vld [vmem:[%s4910_s29 + $0xed0] sm:$0xff]  ;;  %v668_v48 = vld [vmem:[%s4910_s29 + $0xcb8] sm:$0xff] }
  0xc7   : > { %2874 = vmatprep.subr.mxu1 %v634_v49  ;;  %2806 = vmatpush2.msra.mxu0 %v567_v50  ;;  %v734_v49 = vld [vmem:[%s4910_s29 + $0xec8] sm:$0xff]  ;;  %v667_v50 = vld [vmem:[%s4910_s29 + $0xcb0] sm:$0xff] }
  0xc8   : > { %2875 = vmatpush2.msra.mxu1 %v633_v51  ;;  %2807 = vmatprep.subr.mxu0 %v566_v52  ;;  %v733_v51 = vld [vmem:[%s4910_s29 + $0xec0] sm:$0xff]  ;;  %v666_v52 = vld [vmem:[%s4910_s29 + $0xca8] sm:$0xff] }
  0xc9   : > { %2876 = vmatprep.subr.mxu1 %v632_v54  ;;  %2808 = vmatpush2.msra.mxu0 %v565_v55  ;;  %v732_v54 = vld [vmem:[%s4910_s29 + $0xeb8] sm:$0xff]  ;;  %v665_v55 = vld [vmem:[%s4910_s29 + $0xca0] sm:$0xff] }
  0xca   : > { %2877 = vmatpush2.msra.mxu1 %v631_v56  ;;  %2809 = vmatprep.subr.mxu0 %v564_v57  ;;  %v731_v56 = vld [vmem:[%s4910_s29 + $0xeb0] sm:$0xff]  ;;  %v664_v57 = vld [vmem:[%s4910_s29 + $0xc98] sm:$0xff] }
  0xcb   : > { %2878 = vmatprep.subr.mxu1 %v630_v58  ;;  %2810 = vmatpush2.msra.mxu0 %v563_v59  ;;  %v730_v58 = vld [vmem:[%s4910_s29 + $0xea8] sm:$0xff]  ;;  %v663_v59 = vld [vmem:[%s4910_s29 + $0xc90] sm:$0xff] }
  0xcc   : > { %2879 = vmatpush2.msra.mxu1 %v629_v60  ;;  %2811 = vmatprep.subr.mxu0 %v562_v61  ;;  %v729_v60 = vld [vmem:[%s4910_s29 + $0xea0] sm:$0xff]  ;;  %v662_v61 = vld [vmem:[%s4910_s29 + $0xc88] sm:$0xff] }
  0xcd   : > { %2880 = vmatprep.subr.mxu1 %v628_v62  ;;  %2812 = vmatpush2.msra.mxu0 %v561_v63  ;;  %v728_v62 = vld [vmem:[%s4910_s29 + $0xe98] sm:$0xff]  ;;  %v661_v63 = vld [vmem:[%s4910_s29 + $0xc80] sm:$0xff] }
  0xce   : > { %2881 = vmatpush2.msra.mxu1 %v627_v0  ;;  %2813 = vmatprep.subr.mxu0 %v560_v1  ;;  %v727_v0 = vld [vmem:[%s4910_s29 + $0xe90] sm:$0xff]  ;;  %v660_v1 = vld [vmem:[%s4910_s29 + $0xc78] sm:$0xff] }
  0xcf   : > { %2882 = vmatprep.subr.mxu1 %v626_v2  ;;  %2814 = vmatpush2.msra.mxu0 %v559_v3  ;;  %v726_v2 = vld [vmem:[%s4910_s29 + $0xe88] sm:$0xff]  ;;  %v659_v3 = vld [vmem:[%s4910_s29 + $0xc70] sm:$0xff] }
  0xd0   : > { %2883 = vmatpush2.msra.mxu1 %v625_v4  ;;  %2815 = vmatprep.subr.mxu0 %v558_v5  ;;  %v725_v4 = vld [vmem:[%s4910_s29 + $0xe80] sm:$0xff]  ;;  %v658_v5 = vld [vmem:[%s4910_s29 + $0xc68] sm:$0xff] }
  0xd1   : > { %2884 = vmatprep.subr.mxu1 %v624_v6  ;;  %2816 = vmatpush2.msra.mxu0 %v557_v8  ;;  %v724_v6 = vld [vmem:[%s4910_s29 + $0xe78] sm:$0xff]  ;;  %v723_v8 = vld [vmem:[%s4910_s29 + $0xe70] sm:$0xff] }
  0xd2   : > { %2885 = vmatpush2.msra.mxu1 %v623_v9  ;;  %2817 = vmatprep.subr.mxu0 %v556_v10  ;;  %v656_v9 = vld [vmem:[%s4910_s29 + $0xc58] sm:$0xff]  ;;  %v722_v10 = vld [vmem:[%s4910_s29 + $0xe68] sm:$0xff] }
  0xd3   : > { %2886 = vmatprep.subr.mxu1 %v622_v11  ;;  %2818 = vmatpush2.msra.mxu0 %v555_v12  ;;  %v655_v11 = vld [vmem:[%s4910_s29 + $0xc50] sm:$0xff]  ;;  %v721_v12 = vld [vmem:[%s4910_s29 + $0xe60] sm:$0xff] }
  0xd4   : > { %2887 = vmatpush2.msra.mxu1 %v621_v13  ;;  %2819 = vmatprep.subr.mxu0 %v554_v15  ;;  %v654_v13 = vld [vmem:[%s4910_s29 + $0xc48] sm:$0xff]  ;;  %v653_v15 = vld [vmem:[%s4910_s29 + $0xc40] sm:$0xff] }
  0xd5   : > { %2888 = vmatprep.subr.mxu1 %v620_v16  ;;  %2820 = vmatpush2.msra.mxu0 %v553_v18  ;;  %v719_v16 = vld [vmem:[%s4910_s29 + $0xe50] sm:$0xff]  ;;  %v718_v18 = vld [vmem:[%s4910_s29 + $0xe48] sm:$0xff] }
  0xd6   : > { %2889 = vmatpush2.msra.mxu1 %v619_v19  ;;  %2821 = vmatprep.subr.mxu0 %v552_v20  ;;  %v651_v19 = vld [vmem:[%s4910_s29 + $0xc30] sm:$0xff]  ;;  %v717_v20 = vld [vmem:[%s4910_s29 + $0xe40] sm:$0xff] }
  0xd7   : > { %2890 = vmatprep.subr.mxu1 %v618_v21  ;;  %2822 = vmatpush2.msra.mxu0 %v551_v22  ;;  %v650_v21 = vld [vmem:[%s4910_s29 + $0xc28] sm:$0xff]  ;;  %v716_v22 = vld [vmem:[%s4910_s29 + $0xe38] sm:$0xff] }
  0xd8   : > { %2891 = vmatpush2.msra.mxu1 %v617_v23  ;;  %2823 = vmatprep.subr.mxu0 %v550_v25  ;;  %v649_v23 = vld [vmem:[%s4910_s29 + $0xc20] sm:$0xff]  ;;  %v648_v25 = vld [vmem:[%s4910_s29 + $0xc18] sm:$0xff] }
  0xd9   : > { %2892 = vmatprep.subr.mxu1 %v616_v26  ;;  %2824 = vmatpush2.msra.mxu0 %v549_v28  ;;  %v714_v26 = vld [vmem:[%s4910_s29 + $0xe28] sm:$0xff]  ;;  %v713_v28 = vld [vmem:[%s4910_s29 + $0xe20] sm:$0xff] }
  0xda   : > { %2825 = vmatprep.mubr.f32.mxu0 %v2213_v27  ;;  %2893 = vmatpush2.msra.mxu1 %v615_v29  ;;  %v647_v27 = vld [vmem:[%s4910_s29 + $0xc10] sm:$0xff]  ;;  %v646_v29 = vld [vmem:[%s4910_s29 + $0xc08] sm:$0xff] }
  0xdb   : > { %2826 = vmatmul.mubr.f32.vlgmr.msra.gmra.mxu0 %v2205_v17  ;;  %2894 = vmatprep.subr.mxu1 %v614_v30  ;;  %v652_v17 = vld [vmem:[%s4910_s29 + $0xc38] sm:$0xff] }
  0xdc   : > { %2903 = vmatprep.subr.mxu0 %v676_v31  ;;  %2895 = vmatpush2.msra.mxu1 %v613_v33  ;;  %v712_v30 = vld [vmem:[%s4910_s29 + $0xe18] sm:$0xff]  ;;  %v645_v31 = vld [vmem:[%s4910_s29 + $0xc00] sm:$0xff] }
  0xdd   : > { %2896 = vmatprep.mubr.f32.mxu1 %v2214_v32  ;;  %2904 = vmatpush1.msra.mxu0 %v675_v34  ;;  %v711_v32 = vld [vmem:[%s4910_s29 + $0xe10] sm:$0xff]  ;;  %v708_v33 = vld [vmem:[%s4910_s29 + $0xdf8] sm:$0xff]  ;;  %v710_v34 = vld [vmem:[%s4910_s29 + $0xe08] sm:$0xff] }
  0xde   : > { %2897 = vmatmul.mubr.f32.vlgmr.msra.gmra.mxu1 %v2212_v24  ;;  %2905 = vmatprep.subr.mxu0 %v674_v35  ;;  %v715_v24 = vld [vmem:[%s4910_s29 + $0xe30] sm:$0xff] }
  0xdf   : > { %2974 = vmatprep.subr.mxu1 %v740_v36  ;;  %2906 = vmatpush1.msra.mxu0 %v673_v37  ;;  %v707_v35 = vld [vmem:[%s4910_s29 + $0xdf0] sm:$0xff]  ;;  %v709_v36 = vld [vmem:[%s4910_s29 + $0xe00] sm:$0xff]  ;;  %v706_v37 = vld [vmem:[%s4910_s29 + $0xde8] sm:$0xff] }
  0xe0   : > { %2975 = vmatpush1.msra.mxu1 %v739_v38  ;;  %2907 = vmatprep.subr.mxu0 %v672_v39  ;;  %v772_v38 = vld [vmem:[%s4910_s29 + $0xff8] sm:$0xff]  ;;  %v705_v39 = vld [vmem:[%s4910_s29 + $0xde0] sm:$0xff] }
  0xe1   : > { %2976 = vmatprep.subr.mxu1 %v738_v40  ;;  %2908 = vmatpush1.msra.mxu0 %v671_v41  ;;  %v771_v40 = vld [vmem:[%s4910_s29 + $0xff0] sm:$0xff]  ;;  %v704_v41 = vld [vmem:[%s4910_s29 + $0xdd8] sm:$0xff] }
  0xe2   : > { %2977 = vmatpush1.msra.mxu1 %v737_v42  ;;  %2909 = vmatprep.subr.mxu0 %v670_v44  ;;  %v770_v42 = vld [vmem:[%s4910_s29 + $0xfe8] sm:$0xff]  ;;  %v703_v44 = vld [vmem:[%s4910_s29 + $0xdd0] sm:$0xff] }
  0xe3   : > { %2978 = vmatprep.subr.mxu1 %v736_v45  ;;  %2910 = vmatpush1.msra.mxu0 %v669_v46  ;;  %v769_v45 = vld [vmem:[%s4910_s29 + $0xfe0] sm:$0xff]  ;;  %v702_v46 = vld [vmem:[%s4910_s29 + $0xdc8] sm:$0xff] }
  0xe4   : > { %2979 = vmatpush1.msra.mxu1 %v735_v47  ;;  %2911 = vmatprep.subr.mxu0 %v668_v48  ;;  %v768_v47 = vld [vmem:[%s4910_s29 + $0xfd8] sm:$0xff]  ;;  %v701_v48 = vld [vmem:[%s4910_s29 + $0xdc0] sm:$0xff] }
  0xe5   : > { %2980 = vmatprep.subr.mxu1 %v734_v49  ;;  %2912 = vmatpush1.msra.mxu0 %v667_v50  ;;  %v767_v49 = vld [vmem:[%s4910_s29 + $0xfd0] sm:$0xff]  ;;  %v700_v50 = vld [vmem:[%s4910_s29 + $0xdb8] sm:$0xff] }
  0xe6   : > { %2981 = vmatpush1.msra.mxu1 %v733_v51  ;;  %2913 = vmatprep.subr.mxu0 %v666_v52  ;;  %v766_v51 = vld [vmem:[%s4910_s29 + $0xfc8] sm:$0xff]  ;;  %v699_v52 = vld [vmem:[%s4910_s29 + $0xdb0] sm:$0xff] }
  0xe7   : > { %2982 = vmatprep.subr.mxu1 %v732_v54  ;;  %2914 = vmatpush1.msra.mxu0 %v665_v55  ;;  %v765_v54 = vld [vmem:[%s4910_s29 + $0xfc0] sm:$0xff]  ;;  %v698_v55 = vld [vmem:[%s4910_s29 + $0xda8] sm:$0xff] }
  0xe8   : > { %2983 = vmatpush1.msra.mxu1 %v731_v56  ;;  %2915 = vmatprep.subr.mxu0 %v664_v57  ;;  %v764_v56 = vld [vmem:[%s4910_s29 + $0xfb8] sm:$0xff]  ;;  %v697_v57 = vld [vmem:[%s4910_s29 + $0xda0] sm:$0xff] }
  0xe9   : > { %2984 = vmatprep.subr.mxu1 %v730_v58  ;;  %2916 = vmatpush1.msra.mxu0 %v663_v59  ;;  %v763_v58 = vld [vmem:[%s4910_s29 + $0xfb0] sm:$0xff]  ;;  %v696_v59 = vld [vmem:[%s4910_s29 + $0xd98] sm:$0xff] }
  0xea   : > { %2985 = vmatpush1.msra.mxu1 %v729_v60  ;;  %2917 = vmatprep.subr.mxu0 %v662_v61  ;;  %v762_v60 = vld [vmem:[%s4910_s29 + $0xfa8] sm:$0xff]  ;;  %v695_v61 = vld [vmem:[%s4910_s29 + $0xd90] sm:$0xff] }
  0xeb   : > { %2986 = vmatprep.subr.mxu1 %v728_v62  ;;  %2918 = vmatpush1.msra.mxu0 %v661_v63  ;;  %v761_v62 = vld [vmem:[%s4910_s29 + $0xfa0] sm:$0xff]  ;;  %v694_v63 = vld [vmem:[%s4910_s29 + $0xd88] sm:$0xff] }
  0xec   : > { %2987 = vmatpush1.msra.mxu1 %v727_v0  ;;  %2919 = vmatprep.subr.mxu0 %v660_v1  ;;  %v760_v0 = vld [vmem:[%s4910_s29 + $0xf98] sm:$0xff]  ;;  %v693_v1 = vld [vmem:[%s4910_s29 + $0xd80] sm:$0xff] }
  0xed   : > { %2988 = vmatprep.subr.mxu1 %v726_v2  ;;  %2920 = vmatpush1.msra.mxu0 %v659_v3  ;;  %v759_v2 = vld [vmem:[%s4910_s29 + $0xf90] sm:$0xff]  ;;  %v692_v3 = vld [vmem:[%s4910_s29 + $0xd78] sm:$0xff] }
  0xee   : > { %2989 = vmatpush1.msra.mxu1 %v725_v4  ;;  %2921 = vmatprep.subr.mxu0 %v658_v5  ;;  %v758_v4 = vld [vmem:[%s4910_s29 + $0xf88] sm:$0xff]  ;;  %v691_v5 = vld [vmem:[%s4910_s29 + $0xd70] sm:$0xff] }
  0xef   : > { %2990 = vmatprep.subr.mxu1 %v724_v6  ;;  %2922 = vmatpush1.msra.mxu0 %v657_v7  ;;  %v757_v6 = vld [vmem:[%s4910_s29 + $0xf80] sm:$0xff]  ;;  %v690_v7 = vld [vmem:[%s4910_s29 + $0xd68] sm:$0xff] }
  0xf0   : > { %2991 = vmatpush1.msra.mxu1 %v723_v8  ;;  %2923 = vmatprep.subr.mxu0 %v656_v9  ;;  %v756_v8 = vld [vmem:[%s4910_s29 + $0xf78] sm:$0xff]  ;;  %v689_v9 = vld [vmem:[%s4910_s29 + $0xd60] sm:$0xff] }
  0xf1   : > { %2992 = vmatprep.subr.mxu1 %v722_v10  ;;  %2924 = vmatpush1.msra.mxu0 %v655_v11  ;;  %v755_v10 = vld [vmem:[%s4910_s29 + $0xf70] sm:$0xff]  ;;  %v688_v11 = vld [vmem:[%s4910_s29 + $0xd58] sm:$0xff] }
  0xf2   : > { %2993 = vmatpush1.msra.mxu1 %v721_v12  ;;  %2925 = vmatprep.subr.mxu0 %v654_v13  ;;  %v754_v12 = vld [vmem:[%s4910_s29 + $0xf68] sm:$0xff]  ;;  %v687_v13 = vld [vmem:[%s4910_s29 + $0xd50] sm:$0xff] }
  0xf3   : > { %2994 = vmatprep.subr.mxu1 %v720_v14  ;;  %2926 = vmatpush1.msra.mxu0 %v653_v15  ;;  %v753_v14 = vld [vmem:[%s4910_s29 + $0xf60] sm:$0xff]  ;;  %v686_v15 = vld [vmem:[%s4910_s29 + $0xd48] sm:$0xff] }
  0xf4   : > { %2995 = vmatpush1.msra.mxu1 %v719_v16  ;;  %2927 = vmatprep.subr.mxu0 %v652_v17  ;;  %v752_v16 = vld [vmem:[%s4910_s29 + $0xf58] sm:$0xff] }
  0xf5   : > { %2996 = vmatprep.subr.mxu1 %v718_v18  ;;  %2928 = vmatpush1.msra.mxu0 %v651_v19  ;;  %v249_v17 = vld [vmem:[%s4905_s25 + $0x18] sm:$0xff]  ;;  %v685_v18 = vld [vmem:[%s4910_s29 + $0xd40] sm:$0xff]  ;;  %v751_v19 = vld [vmem:[%s4910_s29 + $0xf50] sm:$0xff] }
  0xf6   : > { %2997 = vmatpush1.msra.mxu1 %v717_v20  ;;  %2929 = vmatprep.subr.mxu0 %v650_v21  ;;  %v684_v20 = vld [vmem:[%s4910_s29 + $0xd38] sm:$0xff]  ;;  %v750_v21 = vld [vmem:[%s4910_s29 + $0xf48] sm:$0xff] }
  0xf7   : > { %2998 = vmatprep.subr.mxu1 %v716_v22  ;;  %2930 = vmatpush1.msra.mxu0 %v649_v23  ;;  %v683_v22 = vld [vmem:[%s4910_s29 + $0xd30] sm:$0xff]  ;;  %v749_v23 = vld [vmem:[%s4910_s29 + $0xf40] sm:$0xff] }
  0xf8   : > { %2999 = vmatpush1.msra.mxu1 %v715_v24  ;;  %2931 = vmatprep.subr.mxu0 %v648_v25  ;;  %v2215_v24 = vcombine.high %v249_v17, %v249_v17  ;;  %v682_v25 = vld [vmem:[%s4910_s29 + $0xd28] sm:$0xff] }
  0xf9   : > { %3000 = vmatprep.subr.mxu1 %v714_v26  ;;  %2932 = vmatpush1.msra.mxu0 %v647_v27  ;;  %v748_v26 = vld [vmem:[%s4910_s29 + $0xf38] sm:$0xff]  ;;  %v2222_v27 = vrot.slane %v249_v17, %v5027_v53  ;;  %v785_v17 = vld [vmem:[%s4910_s29 + $0x1060] sm:$0xff] }
  0xfa   : > { %3001 = vmatpush1.msra.mxu1 %v713_v28  ;;  %2933 = vmatprep.subr.mxu0 %v646_v29  ;;  %v681_v28 = vld [vmem:[%s4910_s29 + $0xd20] sm:$0xff]  ;;  %v747_v29 = vld [vmem:[%s4910_s29 + $0xf30] sm:$0xff] }
  0xfb   : > { %3002 = vmatprep.subr.mxu1 %v712_v30  ;;  %2934 = vmatpush1.msra.mxu0 %v645_v31  ;;  %v680_v30 = vld [vmem:[%s4910_s29 + $0xd18] sm:$0xff]  ;;  %v746_v31 = vld [vmem:[%s4910_s29 + $0xf28] sm:$0xff] }
  0xfc   : > { %3003 = vmatpush1.msra.mxu1 %v711_v32  ;;  %2935 = vmatprep.subr.mxu0 %v708_v33  ;;  %v679_v32 = vld [vmem:[%s4910_s29 + $0xd10] sm:$0xff]  ;;  %v745_v33 = vld [vmem:[%s4910_s29 + $0xf20] sm:$0xff] }
  0xfd   : > { %3004 = vmatprep.subr.mxu1 %v710_v34  ;;  %2936 = vmatpush2.msra.mxu0 %v707_v35  ;;  %v2229_v34 = vrot.slane %v2215_v24, %v5027_v53  ;;  %v678_v35 = vld [vmem:[%s4910_s29 + $0xd08] sm:$0xff]  ;;  %v848_v24 = vld [vmem:[%s4910_s29 + $0x1258] sm:$0xff] }
  0xfe   : > { %3005 = vmatpush1.msra.mxu1 %v709_v36  ;;  %2937 = vmatprep.subr.mxu0 %v706_v37  ;;  %v744_v36 = vld [vmem:[%s4910_s29 + $0xf18] sm:$0xff]  ;;  %v2230_v37 = vcombine.high %v2222_v27, %v2222_v27 }
  0xff   : > { %3006 = vmatprep.subr.mxu1 %v772_v38  ;;  %2938 = vmatpush2.msra.mxu0 %v705_v39  ;;  %v677_v38 = vld [vmem:[%s4910_s29 + $0xd00] sm:$0xff]  ;;  %v743_v39 = vld [vmem:[%s4910_s29 + $0xf10] sm:$0xff] }
 0x100   : > { %3007 = vmatpush2.msra.mxu1 %v771_v40  ;;  %2939 = vmatprep.subr.mxu0 %v704_v41  ;;  %v742_v40 = vld [vmem:[%s4910_s29 + $0xf08] sm:$0xff]  ;;  %v804_v41 = vld [vmem:[%s4910_s29 + $0x10f8] sm:$0xff] }
 0x101   : > { %3008 = vmatprep.subr.mxu1 %v770_v42  ;;  %2940 = vmatpush2.msra.mxu0 %v703_v44  ;;  %v2231_v42 = vcombine.high %v2229_v34, %v2229_v34  ;;  %v741_v44 = vld [vmem:[%s4910_s29 + $0xf00] sm:$0xff] }
 0x102   : > { %3009 = vmatpush2.msra.mxu1 %v769_v45  ;;  %2941 = vmatprep.subr.mxu0 %v702_v46  ;;  %v803_v45 = vld [vmem:[%s4910_s29 + $0x10f0] sm:$0xff]  ;;  %v802_v46 = vld [vmem:[%s4910_s29 + $0x10e8] sm:$0xff] }
 0x103   : > { %3010 = vmatprep.subr.mxu1 %v768_v47  ;;  %2942 = vmatpush2.msra.mxu0 %v701_v48  ;;  %v868_v47 = vld [vmem:[%s4910_s29 + $0x12f8] sm:$0xff]  ;;  %v801_v48 = vld [vmem:[%s4910_s29 + $0x10e0] sm:$0xff] }
 0x104   : > { %3011 = vmatpush2.msra.mxu1 %v767_v49  ;;  %2943 = vmatprep.subr.mxu0 %v700_v50  ;;  %v867_v49 = vld [vmem:[%s4910_s29 + $0x12f0] sm:$0xff]  ;;  %v800_v50 = vld [vmem:[%s4910_s29 + $0x10d8] sm:$0xff] }
 0x105   : > { %3012 = vmatprep.subr.mxu1 %v766_v51  ;;  %2944 = vmatpush2.msra.mxu0 %v699_v52  ;;  %v866_v51 = vld [vmem:[%s4910_s29 + $0x12e8] sm:$0xff]  ;;  %v799_v52 = vld [vmem:[%s4910_s29 + $0x10d0] sm:$0xff] }
 0x106   : > { %3013 = vmatpush2.msra.mxu1 %v765_v54  ;;  %2945 = vmatprep.subr.mxu0 %v698_v55  ;;  %v865_v54 = vld [vmem:[%s4910_s29 + $0x12e0] sm:$0xff]  ;;  %v798_v55 = vld [vmem:[%s4910_s29 + $0x10c8] sm:$0xff] }
 0x107   : > { %3014 = vmatprep.subr.mxu1 %v764_v56  ;;  %2946 = vmatpush2.msra.mxu0 %v697_v57  ;;  %v864_v56 = vld [vmem:[%s4910_s29 + $0x12d8] sm:$0xff]  ;;  %v797_v57 = vld [vmem:[%s4910_s29 + $0x10c0] sm:$0xff] }
 0x108   : > { %3015 = vmatpush2.msra.mxu1 %v763_v58  ;;  %2947 = vmatprep.subr.mxu0 %v696_v59  ;;  %v863_v58 = vld [vmem:[%s4910_s29 + $0x12d0] sm:$0xff]  ;;  %v796_v59 = vld [vmem:[%s4910_s29 + $0x10b8] sm:$0xff] }
 0x109   : > { %3016 = vmatprep.subr.mxu1 %v762_v60  ;;  %2948 = vmatpush2.msra.mxu0 %v695_v61  ;;  %v862_v60 = vld [vmem:[%s4910_s29 + $0x12c8] sm:$0xff]  ;;  %v795_v61 = vld [vmem:[%s4910_s29 + $0x10b0] sm:$0xff] }
 0x10a   : > { %3017 = vmatpush2.msra.mxu1 %v761_v62  ;;  %2949 = vmatprep.subr.mxu0 %v694_v63  ;;  %v861_v62 = vld [vmem:[%s4910_s29 + $0x12c0] sm:$0xff]  ;;  %v794_v63 = vld [vmem:[%s4910_s29 + $0x10a8] sm:$0xff] }
 0x10b   : > { %3018 = vmatprep.subr.mxu1 %v760_v0  ;;  %2950 = vmatpush2.msra.mxu0 %v693_v1  ;;  %v860_v0 = vld [vmem:[%s4910_s29 + $0x12b8] sm:$0xff]  ;;  %v793_v1 = vld [vmem:[%s4910_s29 + $0x10a0] sm:$0xff] }
 0x10c   : > { %3019 = vmatpush2.msra.mxu1 %v759_v2  ;;  %2951 = vmatprep.subr.mxu0 %v692_v3  ;;  %v859_v2 = vld [vmem:[%s4910_s29 + $0x12b0] sm:$0xff]  ;;  %v792_v3 = vld [vmem:[%s4910_s29 + $0x1098] sm:$0xff] }
 0x10d   : > { %3020 = vmatprep.subr.mxu1 %v758_v4  ;;  %2952 = vmatpush2.msra.mxu0 %v691_v5  ;;  %v858_v4 = vld [vmem:[%s4910_s29 + $0x12a8] sm:$0xff]  ;;  %v791_v5 = vld [vmem:[%s4910_s29 + $0x1090] sm:$0xff] }
 0x10e   : > { %3021 = vmatpush2.msra.mxu1 %v757_v6  ;;  %2953 = vmatprep.subr.mxu0 %v690_v7  ;;  %v857_v6 = vld [vmem:[%s4910_s29 + $0x12a0] sm:$0xff]  ;;  %v790_v7 = vld [vmem:[%s4910_s29 + $0x1088] sm:$0xff] }
 0x10f   : > { %3022 = vmatprep.subr.mxu1 %v756_v8  ;;  %2954 = vmatpush2.msra.mxu0 %v689_v9  ;;  %v856_v8 = vld [vmem:[%s4910_s29 + $0x1298] sm:$0xff]  ;;  %v789_v9 = vld [vmem:[%s4910_s29 + $0x1080] sm:$0xff] }
 0x110   : > { %3023 = vmatpush2.msra.mxu1 %v755_v10  ;;  %2955 = vmatprep.subr.mxu0 %v688_v11  ;;  %v855_v10 = vld [vmem:[%s4910_s29 + $0x1290] sm:$0xff]  ;;  %v788_v11 = vld [vmem:[%s4910_s29 + $0x1078] sm:$0xff] }
 0x111   : > { %3024 = vmatprep.subr.mxu1 %v754_v12  ;;  %2956 = vmatpush2.msra.mxu0 %v687_v13  ;;  %v854_v12 = vld [vmem:[%s4910_s29 + $0x1288] sm:$0xff]  ;;  %v787_v13 = vld [vmem:[%s4910_s29 + $0x1070] sm:$0xff] }
 0x112   : > { %3025 = vmatpush2.msra.mxu1 %v753_v14  ;;  %2957 = vmatprep.subr.mxu0 %v686_v15  ;;  %v853_v14 = vld [vmem:[%s4910_s29 + $0x1280] sm:$0xff]  ;;  %v786_v15 = vld [vmem:[%s4910_s29 + $0x1068] sm:$0xff] }
 0x113   : > { %3026 = vmatprep.subr.mxu1 %v752_v16  ;;  %2958 = vmatpush2.msra.mxu0 %v685_v18  ;;  %v852_v16 = vld [vmem:[%s4910_s29 + $0x1278] sm:$0xff]  ;;  %v851_v18 = vld [vmem:[%s4910_s29 + $0x1270] sm:$0xff] }
 0x114   : > { %3027 = vmatpush2.msra.mxu1 %v751_v19  ;;  %2959 = vmatprep.subr.mxu0 %v684_v20  ;;  %v784_v19 = vld [vmem:[%s4910_s29 + $0x1058] sm:$0xff]  ;;  %v850_v20 = vld [vmem:[%s4910_s29 + $0x1268] sm:$0xff] }
 0x115   : > { %3028 = vmatprep.subr.mxu1 %v750_v21  ;;  %2960 = vmatpush2.msra.mxu0 %v683_v22  ;;  %v783_v21 = vld [vmem:[%s4910_s29 + $0x1050] sm:$0xff]  ;;  %v849_v22 = vld [vmem:[%s4910_s29 + $0x1260] sm:$0xff] }
 0x116   : > { %3029 = vmatpush2.msra.mxu1 %v749_v23  ;;  %2961 = vmatprep.subr.mxu0 %v682_v25  ;;  %v782_v23 = vld [vmem:[%s4910_s29 + $0x1048] sm:$0xff]  ;;  %v781_v25 = vld [vmem:[%s4910_s29 + $0x1040] sm:$0xff] }
 0x117   : > { %3030 = vmatprep.subr.mxu1 %v748_v26  ;;  %2962 = vmatpush2.msra.mxu0 %v681_v28  ;;  %v847_v26 = vld [vmem:[%s4910_s29 + $0x1250] sm:$0xff]  ;;  %v846_v28 = vld [vmem:[%s4910_s29 + $0x1248] sm:$0xff] }
 0x118   : > { %3031 = vmatpush2.msra.mxu1 %v747_v29  ;;  %2963 = vmatprep.subr.mxu0 %v680_v30  ;;  %v779_v29 = vld [vmem:[%s4910_s29 + $0x1030] sm:$0xff]  ;;  %v845_v30 = vld [vmem:[%s4910_s29 + $0x1240] sm:$0xff] }
 0x119   : > { %3032 = vmatprep.subr.mxu1 %v746_v31  ;;  %2964 = vmatpush2.msra.mxu0 %v679_v32  ;;  %v778_v31 = vld [vmem:[%s4910_s29 + $0x1028] sm:$0xff]  ;;  %v844_v32 = vld [vmem:[%s4910_s29 + $0x1238] sm:$0xff] }
 0x11a   : > { %3033 = vmatpush2.msra.mxu1 %v745_v33  ;;  %2965 = vmatprep.subr.mxu0 %v678_v35  ;;  %v777_v33 = vld [vmem:[%s4910_s29 + $0x1020] sm:$0xff]  ;;  %v776_v35 = vld [vmem:[%s4910_s29 + $0x1018] sm:$0xff] }
 0x11b   : > { %3034 = vmatprep.subr.mxu1 %v744_v36  ;;  %2966 = vmatpush2.msra.mxu0 %v677_v38  ;;  %v842_v36 = vld [vmem:[%s4910_s29 + $0x1228] sm:$0xff]  ;;  %v841_v38 = vld [vmem:[%s4910_s29 + $0x1220] sm:$0xff] }
 0x11c   : > { %2967 = vmatprep.mubr.f32.mxu0 %v2230_v37  ;;  %3035 = vmatpush2.msra.mxu1 %v743_v39  ;;  %v775_v37 = vld [vmem:[%s4910_s29 + $0x1010] sm:$0xff]  ;;  %v774_v39 = vld [vmem:[%s4910_s29 + $0x1008] sm:$0xff] }
 0x11d   : > { %2968 = vmatmul.mubr.f32.vlgmr.msra.gmra.mxu0 %v2222_v27  ;;  %3036 = vmatprep.subr.mxu1 %v742_v40  ;;  %v780_v27 = vld [vmem:[%s4910_s29 + $0x1038] sm:$0xff] }
 0x11e   : > { %3045 = vmatprep.subr.mxu0 %v804_v41  ;;  %3037 = vmatpush2.msra.mxu1 %v741_v44  ;;  %v840_v40 = vld [vmem:[%s4910_s29 + $0x1218] sm:$0xff]  ;;  %v773_v41 = vld [vmem:[%s4910_s29 + $0x1000] sm:$0xff] }
 0x11f   : > { %3038 = vmatprep.mubr.f32.mxu1 %v2231_v42  ;;  %3046 = vmatpush1.msra.mxu0 %v803_v45  ;;  %v839_v42 = vld [vmem:[%s4910_s29 + $0x1210] sm:$0xff]  ;;  %v836_v44 = vld [vmem:[%s4910_s29 + $0x11f8] sm:$0xff]  ;;  %v838_v45 = vld [vmem:[%s4910_s29 + $0x1208] sm:$0xff] }
 0x120   : > { %3039 = vmatmul.mubr.f32.vlgmr.msra.gmra.mxu1 %v2229_v34  ;;  %3047 = vmatprep.subr.mxu0 %v802_v46  ;;  %v843_v34 = vld [vmem:[%s4910_s29 + $0x1230] sm:$0xff] }
 0x121   : > { %3116 = vmatprep.subr.mxu1 %v868_v47  ;;  %3048 = vmatpush1.msra.mxu0 %v801_v48  ;;  %v835_v46 = vld [vmem:[%s4910_s29 + $0x11f0] sm:$0xff]  ;;  %v837_v47 = vld [vmem:[%s4910_s29 + $0x1200] sm:$0xff]  ;;  %v834_v48 = vld [vmem:[%s4910_s29 + $0x11e8] sm:$0xff] }
 0x122   : > { %3117 = vmatpush1.msra.mxu1 %v867_v49  ;;  %3049 = vmatprep.subr.mxu0 %v800_v50  ;;  %v900_v49 = vld [vmem:[%s4910_s29 + $0x13f8] sm:$0xff]  ;;  %v833_v50 = vld [vmem:[%s4910_s29 + $0x11e0] sm:$0xff] }
 0x123   : > { %3118 = vmatprep.subr.mxu1 %v866_v51  ;;  %3050 = vmatpush1.msra.mxu0 %v799_v52  ;;  %v899_v51 = vld [vmem:[%s4910_s29 + $0x13f0] sm:$0xff]  ;;  %v832_v52 = vld [vmem:[%s4910_s29 + $0x11d8] sm:$0xff] }
 0x124   : > { %3119 = vmatpush1.msra.mxu1 %v865_v54  ;;  %3051 = vmatprep.subr.mxu0 %v798_v55  ;;  %v898_v54 = vld [vmem:[%s4910_s29 + $0x13e8] sm:$0xff]  ;;  %v831_v55 = vld [vmem:[%s4910_s29 + $0x11d0] sm:$0xff] }
 0x125   : > { %3120 = vmatprep.subr.mxu1 %v864_v56  ;;  %3052 = vmatpush1.msra.mxu0 %v797_v57  ;;  %v897_v56 = vld [vmem:[%s4910_s29 + $0x13e0] sm:$0xff]  ;;  %v830_v57 = vld [vmem:[%s4910_s29 + $0x11c8] sm:$0xff] }
 0x126   : > { %3121 = vmatpush1.msra.mxu1 %v863_v58  ;;  %3053 = vmatprep.subr.mxu0 %v796_v59  ;;  %v896_v58 = vld [vmem:[%s4910_s29 + $0x13d8] sm:$0xff]  ;;  %v829_v59 = vld [vmem:[%s4910_s29 + $0x11c0] sm:$0xff] }
 0x127   : > { %3122 = vmatprep.subr.mxu1 %v862_v60  ;;  %3054 = vmatpush1.msra.mxu0 %v795_v61  ;;  %v895_v60 = vld [vmem:[%s4910_s29 + $0x13d0] sm:$0xff]  ;;  %v828_v61 = vld [vmem:[%s4910_s29 + $0x11b8] sm:$0xff] }
 0x128   : > { %3123 = vmatpush1.msra.mxu1 %v861_v62  ;;  %3055 = vmatprep.subr.mxu0 %v794_v63  ;;  %v894_v62 = vld [vmem:[%s4910_s29 + $0x13c8] sm:$0xff]  ;;  %v827_v63 = vld [vmem:[%s4910_s29 + $0x11b0] sm:$0xff] }
 0x129   : > { %3124 = vmatprep.subr.mxu1 %v860_v0  ;;  %3056 = vmatpush1.msra.mxu0 %v793_v1  ;;  %v893_v0 = vld [vmem:[%s4910_s29 + $0x13c0] sm:$0xff]  ;;  %v826_v1 = vld [vmem:[%s4910_s29 + $0x11a8] sm:$0xff] }
 0x12a   : > { %3125 = vmatpush1.msra.mxu1 %v859_v2  ;;  %3057 = vmatprep.subr.mxu0 %v792_v3  ;;  %v892_v2 = vld [vmem:[%s4910_s29 + $0x13b8] sm:$0xff]  ;;  %v825_v3 = vld [vmem:[%s4910_s29 + $0x11a0] sm:$0xff] }
 0x12b   : > { %3126 = vmatprep.subr.mxu1 %v858_v4  ;;  %3058 = vmatpush1.msra.mxu0 %v791_v5  ;;  %v891_v4 = vld [vmem:[%s4910_s29 + $0x13b0] sm:$0xff]  ;;  %v824_v5 = vld [vmem:[%s4910_s29 + $0x1198] sm:$0xff] }
 0x12c   : > { %3127 = vmatpush1.msra.mxu1 %v857_v6  ;;  %3059 = vmatprep.subr.mxu0 %v790_v7  ;;  %v890_v6 = vld [vmem:[%s4910_s29 + $0x13a8] sm:$0xff]  ;;  %v823_v7 = vld [vmem:[%s4910_s29 + $0x1190] sm:$0xff] }
 0x12d   : > { %3128 = vmatprep.subr.mxu1 %v856_v8  ;;  %3060 = vmatpush1.msra.mxu0 %v789_v9  ;;  %v889_v8 = vld [vmem:[%s4910_s29 + $0x13a0] sm:$0xff]  ;;  %v822_v9 = vld [vmem:[%s4910_s29 + $0x1188] sm:$0xff] }
 0x12e   : > { %3129 = vmatpush1.msra.mxu1 %v855_v10  ;;  %3061 = vmatprep.subr.mxu0 %v788_v11  ;;  %v888_v10 = vld [vmem:[%s4910_s29 + $0x1398] sm:$0xff]  ;;  %v821_v11 = vld [vmem:[%s4910_s29 + $0x1180] sm:$0xff] }
 0x12f   : > { %3130 = vmatprep.subr.mxu1 %v854_v12  ;;  %3062 = vmatpush1.msra.mxu0 %v787_v13  ;;  %v887_v12 = vld [vmem:[%s4910_s29 + $0x1390] sm:$0xff]  ;;  %v820_v13 = vld [vmem:[%s4910_s29 + $0x1178] sm:$0xff] }
 0x130   : > { %3131 = vmatpush1.msra.mxu1 %v853_v14  ;;  %3063 = vmatprep.subr.mxu0 %v786_v15  ;;  %v886_v14 = vld [vmem:[%s4910_s29 + $0x1388] sm:$0xff]  ;;  %v819_v15 = vld [vmem:[%s4910_s29 + $0x1170] sm:$0xff] }
 0x131   : > { %3132 = vmatprep.subr.mxu1 %v852_v16  ;;  %3064 = vmatpush1.msra.mxu0 %v785_v17  ;;  %v885_v16 = vld [vmem:[%s4910_s29 + $0x1380] sm:$0xff]  ;;  %v818_v17 = vld [vmem:[%s4910_s29 + $0x1168] sm:$0xff] }
 0x132   : > { %3133 = vmatpush1.msra.mxu1 %v851_v18  ;;  %3065 = vmatprep.subr.mxu0 %v784_v19  ;;  %v884_v18 = vld [vmem:[%s4910_s29 + $0x1378] sm:$0xff]  ;;  %v817_v19 = vld [vmem:[%s4910_s29 + $0x1160] sm:$0xff] }
 0x133   : > { %3134 = vmatprep.subr.mxu1 %v850_v20  ;;  %3066 = vmatpush1.msra.mxu0 %v783_v21  ;;  %v883_v20 = vld [vmem:[%s4910_s29 + $0x1370] sm:$0xff]  ;;  %v816_v21 = vld [vmem:[%s4910_s29 + $0x1158] sm:$0xff] }
 0x134   : > { %3135 = vmatpush1.msra.mxu1 %v849_v22  ;;  %3067 = vmatprep.subr.mxu0 %v782_v23  ;;  %v882_v22 = vld [vmem:[%s4910_s29 + $0x1368] sm:$0xff]  ;;  %v815_v23 = vld [vmem:[%s4910_s29 + $0x1150] sm:$0xff] }
 0x135   : > { %3136 = vmatprep.subr.mxu1 %v848_v24  ;;  %3068 = vmatpush1.msra.mxu0 %v781_v25  ;;  %v881_v24 = vld [vmem:[%s4910_s29 + $0x1360] sm:$0xff]  ;;  %v814_v25 = vld [vmem:[%s4910_s29 + $0x1148] sm:$0xff] }
 0x136   : > { %3137 = vmatpush1.msra.mxu1 %v847_v26  ;;  %3069 = vmatprep.subr.mxu0 %v780_v27  ;;  %v880_v26 = vld [vmem:[%s4910_s29 + $0x1358] sm:$0xff]  ;;  %v250_v27 = vld [vmem:[%s4905_s25 + $0x20] sm:$0xff] }
 0x137   : > { %3138 = vmatprep.subr.mxu1 %v846_v28  ;;  %3070 = vmatpush1.msra.mxu0 %v779_v29  ;;  %v813_v28 = vld [vmem:[%s4910_s29 + $0x1140] sm:$0xff]  ;;  %v879_v29 = vld [vmem:[%s4910_s29 + $0x1350] sm:$0xff] }
 0x138   : > { %3139 = vmatpush1.msra.mxu1 %v845_v30  ;;  %3071 = vmatprep.subr.mxu0 %v778_v31  ;;  %v812_v30 = vld [vmem:[%s4910_s29 + $0x1138] sm:$0xff]  ;;  %v878_v31 = vld [vmem:[%s4910_s29 + $0x1348] sm:$0xff] }
 0x139   : > { %3140 = vmatprep.subr.mxu1 %v844_v32  ;;  %3072 = vmatpush1.msra.mxu0 %v777_v33  ;;  %v811_v32 = vld [vmem:[%s4910_s29 + $0x1130] sm:$0xff]  ;;  %v877_v33 = vld [vmem:[%s4910_s29 + $0x1340] sm:$0xff] }
 0x13a   : > { %3141 = vmatpush1.msra.mxu1 %v843_v34  ;;  %3073 = vmatprep.subr.mxu0 %v776_v35  ;;  %v2232_v34 = vcombine.high %v250_v27, %v250_v27  ;;  %v810_v35 = vld [vmem:[%s4910_s29 + $0x1128] sm:$0xff] }
 0x13b   : > { %3142 = vmatprep.subr.mxu1 %v842_v36  ;;  %3074 = vmatpush1.msra.mxu0 %v775_v37  ;;  %v876_v36 = vld [vmem:[%s4910_s29 + $0x1338] sm:$0xff]  ;;  %v2239_v37 = vrot.slane %v250_v27, %v5027_v53  ;;  %v913_v27 = vld [vmem:[%s4910_s29 + $0x1460] sm:$0xff] }
 0x13c   : > { %3143 = vmatpush1.msra.mxu1 %v841_v38  ;;  %3075 = vmatprep.subr.mxu0 %v774_v39  ;;  %v809_v38 = vld [vmem:[%s4910_s29 + $0x1120] sm:$0xff]  ;;  %v875_v39 = vld [vmem:[%s4910_s29 + $0x1330] sm:$0xff] }
 0x13d   : > { %3144 = vmatprep.subr.mxu1 %v840_v40  ;;  %3076 = vmatpush1.msra.mxu0 %v773_v41  ;;  %v808_v40 = vld [vmem:[%s4910_s29 + $0x1118] sm:$0xff]  ;;  %v874_v41 = vld [vmem:[%s4910_s29 + $0x1328] sm:$0xff] }
 0x13e   : > { %3145 = vmatpush1.msra.mxu1 %v839_v42  ;;  %3077 = vmatprep.subr.mxu0 %v836_v44  ;;  %v807_v42 = vld [vmem:[%s4910_s29 + $0x1110] sm:$0xff]  ;;  %v873_v44 = vld [vmem:[%s4910_s29 + $0x1320] sm:$0xff] }
 0x13f   : > { %3146 = vmatprep.subr.mxu1 %v838_v45  ;;  %3078 = vmatpush2.msra.mxu0 %v835_v46  ;;  %v2246_v45 = vrot.slane %v2232_v34, %v5027_v53  ;;  %v806_v46 = vld [vmem:[%s4910_s29 + $0x1108] sm:$0xff]  ;;  %v976_v34 = vld [vmem:[%s4910_s29 + $0x1658] sm:$0xff] }
 0x140   : > { %3147 = vmatpush1.msra.mxu1 %v837_v47  ;;  %3079 = vmatprep.subr.mxu0 %v834_v48  ;;  %v872_v47 = vld [vmem:[%s4910_s29 + $0x1318] sm:$0xff]  ;;  %v2247_v48 = vcombine.high %v2239_v37, %v2239_v37 }
 0x141   : > { %3148 = vmatprep.subr.mxu1 %v900_v49  ;;  %3080 = vmatpush2.msra.mxu0 %v833_v50  ;;  %v805_v49 = vld [vmem:[%s4910_s29 + $0x1100] sm:$0xff]  ;;  %v871_v50 = vld [vmem:[%s4910_s29 + $0x1310] sm:$0xff] }
 0x142   : > { %3149 = vmatpush2.msra.mxu1 %v899_v51  ;;  %3081 = vmatprep.subr.mxu0 %v832_v52  ;;  %v870_v51 = vld [vmem:[%s4910_s29 + $0x1308] sm:$0xff]  ;;  %v932_v52 = vld [vmem:[%s4910_s29 + $0x14f8] sm:$0xff] }
 0x143   : > { %3150 = vmatprep.subr.mxu1 %v898_v54  ;;  %3082 = vmatpush2.msra.mxu0 %v831_v55  ;;  %v2248_v54 = vcombine.high %v2246_v45, %v2246_v45  ;;  %v869_v55 = vld [vmem:[%s4910_s29 + $0x1300] sm:$0xff] }
 0x144   : > { %3151 = vmatpush2.msra.mxu1 %v897_v56  ;;  %3083 = vmatprep.subr.mxu0 %v830_v57  ;;  %v931_v56 = vld [vmem:[%s4910_s29 + $0x14f0] sm:$0xff]  ;;  %v930_v57 = vld [vmem:[%s4910_s29 + $0x14e8] sm:$0xff] }
 0x145   : > { %3152 = vmatprep.subr.mxu1 %v896_v58  ;;  %3084 = vmatpush2.msra.mxu0 %v829_v59  ;;  %v996_v58 = vld [vmem:[%s4910_s29 + $0x16f8] sm:$0xff]  ;;  %v929_v59 = vld [vmem:[%s4910_s29 + $0x14e0] sm:$0xff] }
 0x146   : > { %3153 = vmatpush2.msra.mxu1 %v895_v60  ;;  %3085 = vmatprep.subr.mxu0 %v828_v61  ;;  %v995_v60 = vld [vmem:[%s4910_s29 + $0x16f0] sm:$0xff]  ;;  %v928_v61 = vld [vmem:[%s4910_s29 + $0x14d8] sm:$0xff] }
 0x147   : > { %3154 = vmatprep.subr.mxu1 %v894_v62  ;;  %3086 = vmatpush2.msra.mxu0 %v827_v63  ;;  %v994_v62 = vld [vmem:[%s4910_s29 + $0x16e8] sm:$0xff]  ;;  %v927_v63 = vld [vmem:[%s4910_s29 + $0x14d0] sm:$0xff] }
 0x148   : > { %3155 = vmatpush2.msra.mxu1 %v893_v0  ;;  %3087 = vmatprep.subr.mxu0 %v826_v1  ;;  %v993_v0 = vld [vmem:[%s4910_s29 + $0x16e0] sm:$0xff]  ;;  %v926_v1 = vld [vmem:[%s4910_s29 + $0x14c8] sm:$0xff] }
 0x149   : > { %3156 = vmatprep.subr.mxu1 %v892_v2  ;;  %3088 = vmatpush2.msra.mxu0 %v825_v3  ;;  %v992_v2 = vld [vmem:[%s4910_s29 + $0x16d8] sm:$0xff]  ;;  %v925_v3 = vld [vmem:[%s4910_s29 + $0x14c0] sm:$0xff] }
 0x14a   : > { %3157 = vmatpush2.msra.mxu1 %v891_v4  ;;  %3089 = vmatprep.subr.mxu0 %v824_v5  ;;  %v991_v4 = vld [vmem:[%s4910_s29 + $0x16d0] sm:$0xff]  ;;  %v924_v5 = vld [vmem:[%s4910_s29 + $0x14b8] sm:$0xff] }
 0x14b   : > { %3158 = vmatprep.subr.mxu1 %v890_v6  ;;  %3090 = vmatpush2.msra.mxu0 %v823_v7  ;;  %v990_v6 = vld [vmem:[%s4910_s29 + $0x16c8] sm:$0xff]  ;;  %v923_v7 = vld [vmem:[%s4910_s29 + $0x14b0] sm:$0xff] }
 0x14c   : > { %3159 = vmatpush2.msra.mxu1 %v889_v8  ;;  %3091 = vmatprep.subr.mxu0 %v822_v9  ;;  %v989_v8 = vld [vmem:[%s4910_s29 + $0x16c0] sm:$0xff]  ;;  %v922_v9 = vld [vmem:[%s4910_s29 + $0x14a8] sm:$0xff] }
 0x14d   : > { %3160 = vmatprep.subr.mxu1 %v888_v10  ;;  %3092 = vmatpush2.msra.mxu0 %v821_v11  ;;  %v988_v10 = vld [vmem:[%s4910_s29 + $0x16b8] sm:$0xff]  ;;  %v921_v11 = vld [vmem:[%s4910_s29 + $0x14a0] sm:$0xff] }
 0x14e   : > { %3161 = vmatpush2.msra.mxu1 %v887_v12  ;;  %3093 = vmatprep.subr.mxu0 %v820_v13  ;;  %v987_v12 = vld [vmem:[%s4910_s29 + $0x16b0] sm:$0xff]  ;;  %v920_v13 = vld [vmem:[%s4910_s29 + $0x1498] sm:$0xff] }
 0x14f   : > { %3162 = vmatprep.subr.mxu1 %v886_v14  ;;  %3094 = vmatpush2.msra.mxu0 %v819_v15  ;;  %v986_v14 = vld [vmem:[%s4910_s29 + $0x16a8] sm:$0xff]  ;;  %v919_v15 = vld [vmem:[%s4910_s29 + $0x1490] sm:$0xff] }
 0x150   : > { %3163 = vmatpush2.msra.mxu1 %v885_v16  ;;  %3095 = vmatprep.subr.mxu0 %v818_v17  ;;  %v985_v16 = vld [vmem:[%s4910_s29 + $0x16a0] sm:$0xff]  ;;  %v918_v17 = vld [vmem:[%s4910_s29 + $0x1488] sm:$0xff] }
 0x151   : > { %3164 = vmatprep.subr.mxu1 %v884_v18  ;;  %3096 = vmatpush2.msra.mxu0 %v817_v19  ;;  %v984_v18 = vld [vmem:[%s4910_s29 + $0x1698] sm:$0xff]  ;;  %v917_v19 = vld [vmem:[%s4910_s29 + $0x1480] sm:$0xff] }
 0x152   : > { %3165 = vmatpush2.msra.mxu1 %v883_v20  ;;  %3097 = vmatprep.subr.mxu0 %v816_v21  ;;  %v983_v20 = vld [vmem:[%s4910_s29 + $0x1690] sm:$0xff]  ;;  %v916_v21 = vld [vmem:[%s4910_s29 + $0x1478] sm:$0xff] }
 0x153   : > { %3166 = vmatprep.subr.mxu1 %v882_v22  ;;  %3098 = vmatpush2.msra.mxu0 %v815_v23  ;;  %v982_v22 = vld [vmem:[%s4910_s29 + $0x1688] sm:$0xff]  ;;  %v915_v23 = vld [vmem:[%s4910_s29 + $0x1470] sm:$0xff] }
 0x154   : > { %3167 = vmatpush2.msra.mxu1 %v881_v24  ;;  %3099 = vmatprep.subr.mxu0 %v814_v25  ;;  %v981_v24 = vld [vmem:[%s4910_s29 + $0x1680] sm:$0xff]  ;;  %v914_v25 = vld [vmem:[%s4910_s29 + $0x1468] sm:$0xff] }
 0x155   : > { %3168 = vmatprep.subr.mxu1 %v880_v26  ;;  %3100 = vmatpush2.msra.mxu0 %v813_v28  ;;  %v980_v26 = vld [vmem:[%s4910_s29 + $0x1678] sm:$0xff]  ;;  %v979_v28 = vld [vmem:[%s4910_s29 + $0x1670] sm:$0xff] }
 0x156   : > { %3169 = vmatpush2.msra.mxu1 %v879_v29  ;;  %3101 = vmatprep.subr.mxu0 %v812_v30  ;;  %v912_v29 = vld [vmem:[%s4910_s29 + $0x1458] sm:$0xff]  ;;  %v978_v30 = vld [vmem:[%s4910_s29 + $0x1668] sm:$0xff] }
 0x157   : > { %3170 = vmatprep.subr.mxu1 %v878_v31  ;;  %3102 = vmatpush2.msra.mxu0 %v811_v32  ;;  %v911_v31 = vld [vmem:[%s4910_s29 + $0x1450] sm:$0xff]  ;;  %v977_v32 = vld [vmem:[%s4910_s29 + $0x1660] sm:$0xff] }
 0x158   : > { %3171 = vmatpush2.msra.mxu1 %v877_v33  ;;  %3103 = vmatprep.subr.mxu0 %v810_v35  ;;  %v910_v33 = vld [vmem:[%s4910_s29 + $0x1448] sm:$0xff]  ;;  %v909_v35 = vld [vmem:[%s4910_s29 + $0x1440] sm:$0xff] }
 0x159   : > { %3172 = vmatprep.subr.mxu1 %v876_v36  ;;  %3104 = vmatpush2.msra.mxu0 %v809_v38  ;;  %v975_v36 = vld [vmem:[%s4910_s29 + $0x1650] sm:$0xff]  ;;  %v974_v38 = vld [vmem:[%s4910_s29 + $0x1648] sm:$0xff] }
 0x15a   : > { %3173 = vmatpush2.msra.mxu1 %v875_v39  ;;  %3105 = vmatprep.subr.mxu0 %v808_v40  ;;  %v907_v39 = vld [vmem:[%s4910_s29 + $0x1430] sm:$0xff]  ;;  %v973_v40 = vld [vmem:[%s4910_s29 + $0x1640] sm:$0xff] }
 0x15b   : > { %3174 = vmatprep.subr.mxu1 %v874_v41  ;;  %3106 = vmatpush2.msra.mxu0 %v807_v42  ;;  %v906_v41 = vld [vmem:[%s4910_s29 + $0x1428] sm:$0xff]  ;;  %v972_v42 = vld [vmem:[%s4910_s29 + $0x1638] sm:$0xff] }
 0x15c   : > { %3175 = vmatpush2.msra.mxu1 %v873_v44  ;;  %3107 = vmatprep.subr.mxu0 %v806_v46  ;;  %v905_v44 = vld [vmem:[%s4910_s29 + $0x1420] sm:$0xff]  ;;  %v904_v46 = vld [vmem:[%s4910_s29 + $0x1418] sm:$0xff] }
 0x15d   : > { %3176 = vmatprep.subr.mxu1 %v872_v47  ;;  %3108 = vmatpush2.msra.mxu0 %v805_v49  ;;  %v970_v47 = vld [vmem:[%s4910_s29 + $0x1628] sm:$0xff]  ;;  %v969_v49 = vld [vmem:[%s4910_s29 + $0x1620] sm:$0xff] }
 0x15e   : > { %3109 = vmatprep.mubr.f32.mxu0 %v2247_v48  ;;  %3177 = vmatpush2.msra.mxu1 %v871_v50  ;;  %v903_v48 = vld [vmem:[%s4910_s29 + $0x1410] sm:$0xff]  ;;  %v902_v50 = vld [vmem:[%s4910_s29 + $0x1408] sm:$0xff] }
 0x15f   : > { %3110 = vmatmul.mubr.f32.vlgmr.msra.gmra.mxu0 %v2239_v37  ;;  %3178 = vmatprep.subr.mxu1 %v870_v51  ;;  %v908_v37 = vld [vmem:[%s4910_s29 + $0x1438] sm:$0xff] }
 0x160   : > { %3187 = vmatprep.subr.mxu0 %v932_v52  ;;  %3179 = vmatpush2.msra.mxu1 %v869_v55  ;;  %v968_v51 = vld [vmem:[%s4910_s29 + $0x1618] sm:$0xff]  ;;  %v901_v52 = vld [vmem:[%s4910_s29 + $0x1400] sm:$0xff] }
 0x161   : > { %3180 = vmatprep.mubr.f32.mxu1 %v2248_v54  ;;  %3188 = vmatpush1.msra.mxu0 %v931_v56  ;;  %v967_v54 = vld [vmem:[%s4910_s29 + $0x1610] sm:$0xff]  ;;  %v964_v55 = vld [vmem:[%s4910_s29 + $0x15f8] sm:$0xff]  ;;  %v966_v56 = vld [vmem:[%s4910_s29 + $0x1608] sm:$0xff] }
 0x162   : > { %3181 = vmatmul.mubr.f32.vlgmr.msra.gmra.mxu1 %v2246_v45  ;;  %3189 = vmatprep.subr.mxu0 %v930_v57  ;;  %v971_v45 = vld [vmem:[%s4910_s29 + $0x1630] sm:$0xff] }
 0x163   : > { %3258 = vmatprep.subr.mxu1 %v996_v58  ;;  %3190 = vmatpush1.msra.mxu0 %v929_v59  ;;  %v963_v57 = vld [vmem:[%s4910_s29 + $0x15f0] sm:$0xff]  ;;  %v965_v58 = vld [vmem:[%s4910_s29 + $0x1600] sm:$0xff]  ;;  %v962_v59 = vld [vmem:[%s4910_s29 + $0x15e8] sm:$0xff] }
 0x164   : > { %3259 = vmatpush1.msra.mxu1 %v995_v60  ;;  %3191 = vmatprep.subr.mxu0 %v928_v61  ;;  %v1028_v60 = vld [vmem:[%s4910_s29 + $0x17f8] sm:$0xff]  ;;  %v961_v61 = vld [vmem:[%s4910_s29 + $0x15e0] sm:$0xff] }
 0x165   : > { %3260 = vmatprep.subr.mxu1 %v994_v62  ;;  %3192 = vmatpush1.msra.mxu0 %v927_v63  ;;  %v1027_v62 = vld [vmem:[%s4910_s29 + $0x17f0] sm:$0xff]  ;;  %v960_v63 = vld [vmem:[%s4910_s29 + $0x15d8] sm:$0xff] }
 0x166   : > { %3261 = vmatpush1.msra.mxu1 %v993_v0  ;;  %3193 = vmatprep.subr.mxu0 %v926_v1  ;;  %v1026_v0 = vld [vmem:[%s4910_s29 + $0x17e8] sm:$0xff]  ;;  %v959_v1 = vld [vmem:[%s4910_s29 + $0x15d0] sm:$0xff] }
 0x167   : > { %3262 = vmatprep.subr.mxu1 %v992_v2  ;;  %3194 = vmatpush1.msra.mxu0 %v925_v3  ;;  %v1025_v2 = vld [vmem:[%s4910_s29 + $0x17e0] sm:$0xff]  ;;  %v958_v3 = vld [vmem:[%s4910_s29 + $0x15c8] sm:$0xff] }
 0x168   : > { %3263 = vmatpush1.msra.mxu1 %v991_v4  ;;  %3195 = vmatprep.subr.mxu0 %v924_v5  ;;  %v1024_v4 = vld [vmem:[%s4910_s29 + $0x17d8] sm:$0xff]  ;;  %v957_v5 = vld [vmem:[%s4910_s29 + $0x15c0] sm:$0xff] }
 0x169   : > { %3264 = vmatprep.subr.mxu1 %v990_v6  ;;  %3196 = vmatpush1.msra.mxu0 %v923_v7  ;;  %v1023_v6 = vld [vmem:[%s4910_s29 + $0x17d0] sm:$0xff]  ;;  %v956_v7 = vld [vmem:[%s4910_s29 + $0x15b8] sm:$0xff] }
 0x16a   : > { %3265 = vmatpush1.msra.mxu1 %v989_v8  ;;  %3197 = vmatprep.subr.mxu0 %v922_v9  ;;  %v1022_v8 = vld [vmem:[%s4910_s29 + $0x17c8] sm:$0xff]  ;;  %v955_v9 = vld [vmem:[%s4910_s29 + $0x15b0] sm:$0xff] }
 0x16b   : > { %3266 = vmatprep.subr.mxu1 %v988_v10  ;;  %3198 = vmatpush1.msra.mxu0 %v921_v11  ;;  %v1021_v10 = vld [vmem:[%s4910_s29 + $0x17c0] sm:$0xff]  ;;  %v954_v11 = vld [vmem:[%s4910_s29 + $0x15a8] sm:$0xff] }
 0x16c   : > { %3267 = vmatpush1.msra.mxu1 %v987_v12  ;;  %3199 = vmatprep.subr.mxu0 %v920_v13  ;;  %v1020_v12 = vld [vmem:[%s4910_s29 + $0x17b8] sm:$0xff]  ;;  %v953_v13 = vld [vmem:[%s4910_s29 + $0x15a0] sm:$0xff] }
 0x16d   : > { %3268 = vmatprep.subr.mxu1 %v986_v14  ;;  %3200 = vmatpush1.msra.mxu0 %v919_v15  ;;  %v1019_v14 = vld [vmem:[%s4910_s29 + $0x17b0] sm:$0xff]  ;;  %v952_v15 = vld [vmem:[%s4910_s29 + $0x1598] sm:$0xff] }
 0x16e   : > { %3269 = vmatpush1.msra.mxu1 %v985_v16  ;;  %3201 = vmatprep.subr.mxu0 %v918_v17  ;;  %v1018_v16 = vld [vmem:[%s4910_s29 + $0x17a8] sm:$0xff]  ;;  %v951_v17 = vld [vmem:[%s4910_s29 + $0x1590] sm:$0xff] }
 0x16f   : > { %3270 = vmatprep.subr.mxu1 %v984_v18  ;;  %3202 = vmatpush1.msra.mxu0 %v917_v19  ;;  %v1017_v18 = vld [vmem:[%s4910_s29 + $0x17a0] sm:$0xff]  ;;  %v950_v19 = vld [vmem:[%s4910_s29 + $0x1588] sm:$0xff] }
 0x170   : > { %3271 = vmatpush1.msra.mxu1 %v983_v20  ;;  %3203 = vmatprep.subr.mxu0 %v916_v21  ;;  %v1016_v20 = vld [vmem:[%s4910_s29 + $0x1798] sm:$0xff]  ;;  %v949_v21 = vld [vmem:[%s4910_s29 + $0x1580] sm:$0xff] }
 0x171   : > { %3272 = vmatprep.subr.mxu1 %v982_v22  ;;  %3204 = vmatpush1.msra.mxu0 %v915_v23  ;;  %v1015_v22 = vld [vmem:[%s4910_s29 + $0x1790] sm:$0xff]  ;;  %v948_v23 = vld [vmem:[%s4910_s29 + $0x1578] sm:$0xff] }
 0x172   : > { %3273 = vmatpush1.msra.mxu1 %v981_v24  ;;  %3205 = vmatprep.subr.mxu0 %v914_v25  ;;  %v1014_v24 = vld [vmem:[%s4910_s29 + $0x1788] sm:$0xff]  ;;  %v947_v25 = vld [vmem:[%s4910_s29 + $0x1570] sm:$0xff] }
 0x173   : > { %3274 = vmatprep.subr.mxu1 %v980_v26  ;;  %3206 = vmatpush1.msra.mxu0 %v913_v27  ;;  %v1013_v26 = vld [vmem:[%s4910_s29 + $0x1780] sm:$0xff]  ;;  %v946_v27 = vld [vmem:[%s4910_s29 + $0x1568] sm:$0xff] }
 0x174   : > { %3275 = vmatpush1.msra.mxu1 %v979_v28  ;;  %3207 = vmatprep.subr.mxu0 %v912_v29  ;;  %v1012_v28 = vld [vmem:[%s4910_s29 + $0x1778] sm:$0xff]  ;;  %v945_v29 = vld [vmem:[%s4910_s29 + $0x1560] sm:$0xff] }
 0x175   : > { %3276 = vmatprep.subr.mxu1 %v978_v30  ;;  %3208 = vmatpush1.msra.mxu0 %v911_v31  ;;  %v1011_v30 = vld [vmem:[%s4910_s29 + $0x1770] sm:$0xff]  ;;  %v944_v31 = vld [vmem:[%s4910_s29 + $0x1558] sm:$0xff] }
 0x176   : > { %3277 = vmatpush1.msra.mxu1 %v977_v32  ;;  %3209 = vmatprep.subr.mxu0 %v910_v33  ;;  %v1010_v32 = vld [vmem:[%s4910_s29 + $0x1768] sm:$0xff]  ;;  %v943_v33 = vld [vmem:[%s4910_s29 + $0x1550] sm:$0xff] }
 0x177   : > { %3278 = vmatprep.subr.mxu1 %v976_v34  ;;  %3210 = vmatpush1.msra.mxu0 %v909_v35  ;;  %v1009_v34 = vld [vmem:[%s4910_s29 + $0x1760] sm:$0xff]  ;;  %v942_v35 = vld [vmem:[%s4910_s29 + $0x1548] sm:$0xff] }
 0x178   : > { %3279 = vmatpush1.msra.mxu1 %v975_v36  ;;  %3211 = vmatprep.subr.mxu0 %v908_v37  ;;  %v1008_v36 = vld [vmem:[%s4910_s29 + $0x1758] sm:$0xff]  ;;  %v251_v37 = vld [vmem:[%s4905_s25 + $0x28] sm:$0xff] }
 0x179   : > { %3280 = vmatprep.subr.mxu1 %v974_v38  ;;  %3212 = vmatpush1.msra.mxu0 %v907_v39  ;;  %v941_v38 = vld [vmem:[%s4910_s29 + $0x1540] sm:$0xff]  ;;  %v1007_v39 = vld [vmem:[%s4910_s29 + $0x1750] sm:$0xff] }
 0x17a   : > { %3281 = vmatpush1.msra.mxu1 %v973_v40  ;;  %3213 = vmatprep.subr.mxu0 %v906_v41  ;;  %v940_v40 = vld [vmem:[%s4910_s29 + $0x1538] sm:$0xff]  ;;  %v1006_v41 = vld [vmem:[%s4910_s29 + $0x1748] sm:$0xff] }
 0x17b   : > { %3282 = vmatprep.subr.mxu1 %v972_v42  ;;  %3214 = vmatpush1.msra.mxu0 %v905_v44  ;;  %v939_v42 = vld [vmem:[%s4910_s29 + $0x1530] sm:$0xff]  ;;  %v1005_v44 = vld [vmem:[%s4910_s29 + $0x1740] sm:$0xff] }
 0x17c   : > { %3283 = vmatpush1.msra.mxu1 %v971_v45  ;;  %3215 = vmatprep.subr.mxu0 %v904_v46  ;;  %v2249_v45 = vcombine.high %v251_v37, %v251_v37  ;;  %v938_v46 = vld [vmem:[%s4910_s29 + $0x1528] sm:$0xff] }
 0x17d   : > { %3284 = vmatprep.subr.mxu1 %v970_v47  ;;  %3216 = vmatpush1.msra.mxu0 %v903_v48  ;;  %v1004_v47 = vld [vmem:[%s4910_s29 + $0x1738] sm:$0xff]  ;;  %v2256_v48 = vrot.slane %v251_v37, %v5027_v53  ;;  %v1041_v37 = vld [vmem:[%s4910_s29 + $0x1860] sm:$0xff] }
 0x17e   : > { %3285 = vmatpush1.msra.mxu1 %v969_v49  ;;  %3217 = vmatprep.subr.mxu0 %v902_v50  ;;  %v937_v49 = vld [vmem:[%s4910_s29 + $0x1520] sm:$0xff]  ;;  %v1003_v50 = vld [vmem:[%s4910_s29 + $0x1730] sm:$0xff] }
 0x17f   : > { %3286 = vmatprep.subr.mxu1 %v968_v51  ;;  %3218 = vmatpush1.msra.mxu0 %v901_v52  ;;  %v936_v51 = vld [vmem:[%s4910_s29 + $0x1518] sm:$0xff]  ;;  %v1002_v52 = vld [vmem:[%s4910_s29 + $0x1728] sm:$0xff] }
 0x180   : > { %3287 = vmatpush1.msra.mxu1 %v967_v54  ;;  %3219 = vmatprep.subr.mxu0 %v964_v55  ;;  %v935_v54 = vld [vmem:[%s4910_s29 + $0x1510] sm:$0xff]  ;;  %v1001_v55 = vld [vmem:[%s4910_s29 + $0x1720] sm:$0xff] }
 0x181   : > { %3288 = vmatprep.subr.mxu1 %v966_v56  ;;  %3220 = vmatpush2.msra.mxu0 %v963_v57  ;;  %v2263_v56 = vrot.slane %v2249_v45, %v5027_v53  ;;  %v934_v57 = vld [vmem:[%s4910_s29 + $0x1508] sm:$0xff]  ;;  %v1104_v45 = vld [vmem:[%s4910_s29 + $0x1a58] sm:$0xff] }
 0x182   : > { %3289 = vmatpush1.msra.mxu1 %v965_v58  ;;  %3221 = vmatprep.subr.mxu0 %v962_v59  ;;  %v1000_v58 = vld [vmem:[%s4910_s29 + $0x1718] sm:$0xff]  ;;  %v2264_v59 = vcombine.high %v2256_v48, %v2256_v48 }
 0x183   : > { %3290 = vmatprep.subr.mxu1 %v1028_v60  ;;  %3222 = vmatpush2.msra.mxu0 %v961_v61  ;;  %v933_v60 = vld [vmem:[%s4910_s29 + $0x1500] sm:$0xff]  ;;  %v999_v61 = vld [vmem:[%s4910_s29 + $0x1710] sm:$0xff] }
 0x184   : > { %3291 = vmatpush2.msra.mxu1 %v1027_v62  ;;  %3223 = vmatprep.subr.mxu0 %v960_v63  ;;  %v998_v62 = vld [vmem:[%s4910_s29 + $0x1708] sm:$0xff]  ;;  %v1060_v63 = vld [vmem:[%s4910_s29 + $0x18f8] sm:$0xff] }
 0x185   : > { %3292 = vmatprep.subr.mxu1 %v1026_v0  ;;  %3224 = vmatpush2.msra.mxu0 %v959_v1  ;;  %v2265_v0 = vcombine.high %v2263_v56, %v2263_v56  ;;  %v997_v1 = vld [vmem:[%s4910_s29 + $0x1700] sm:$0xff] }
 0x186   : > { %3293 = vmatpush2.msra.mxu1 %v1025_v2  ;;  %3225 = vmatprep.subr.mxu0 %v958_v3  ;;  %v1059_v2 = vld [vmem:[%s4910_s29 + $0x18f0] sm:$0xff]  ;;  %v1058_v3 = vld [vmem:[%s4910_s29 + $0x18e8] sm:$0xff] }
 0x187   : > { %3294 = vmatprep.subr.mxu1 %v1024_v4  ;;  %3226 = vmatpush2.msra.mxu0 %v957_v5  ;;  %v1124_v4 = vld [vmem:[%s4910_s29 + $0x1af8] sm:$0xff]  ;;  %v1057_v5 = vld [vmem:[%s4910_s29 + $0x18e0] sm:$0xff] }
 0x188   : > { %3295 = vmatpush2.msra.mxu1 %v1023_v6  ;;  %3227 = vmatprep.subr.mxu0 %v956_v7  ;;  %v1123_v6 = vld [vmem:[%s4910_s29 + $0x1af0] sm:$0xff]  ;;  %v1056_v7 = vld [vmem:[%s4910_s29 + $0x18d8] sm:$0xff] }
 0x189   : > { %3296 = vmatprep.subr.mxu1 %v1022_v8  ;;  %3228 = vmatpush2.msra.mxu0 %v955_v9  ;;  %v1122_v8 = vld [vmem:[%s4910_s29 + $0x1ae8] sm:$0xff]  ;;  %v1055_v9 = vld [vmem:[%s4910_s29 + $0x18d0] sm:$0xff] }
 0x18a   : > { %3297 = vmatpush2.msra.mxu1 %v1021_v10  ;;  %3229 = vmatprep.subr.mxu0 %v954_v11  ;;  %v1121_v10 = vld [vmem:[%s4910_s29 + $0x1ae0] sm:$0xff]  ;;  %v1054_v11 = vld [vmem:[%s4910_s29 + $0x18c8] sm:$0xff] }
 0x18b   : > { %3298 = vmatprep.subr.mxu1 %v1020_v12  ;;  %3230 = vmatpush2.msra.mxu0 %v953_v13  ;;  %v1120_v12 = vld [vmem:[%s4910_s29 + $0x1ad8] sm:$0xff]  ;;  %v1053_v13 = vld [vmem:[%s4910_s29 + $0x18c0] sm:$0xff] }
 0x18c   : > { %3299 = vmatpush2.msra.mxu1 %v1019_v14  ;;  %3231 = vmatprep.subr.mxu0 %v952_v15  ;;  %v1119_v14 = vld [vmem:[%s4910_s29 + $0x1ad0] sm:$0xff]  ;;  %v1052_v15 = vld [vmem:[%s4910_s29 + $0x18b8] sm:$0xff] }
 0x18d   : > { %3300 = vmatprep.subr.mxu1 %v1018_v16  ;;  %3232 = vmatpush2.msra.mxu0 %v951_v17  ;;  %v1118_v16 = vld [vmem:[%s4910_s29 + $0x1ac8] sm:$0xff]  ;;  %v1051_v17 = vld [vmem:[%s4910_s29 + $0x18b0] sm:$0xff] }
 0x18e   : > { %3301 = vmatpush2.msra.mxu1 %v1017_v18  ;;  %3233 = vmatprep.subr.mxu0 %v950_v19  ;;  %v1117_v18 = vld [vmem:[%s4910_s29 + $0x1ac0] sm:$0xff]  ;;  %v1050_v19 = vld [vmem:[%s4910_s29 + $0x18a8] sm:$0xff] }
 0x18f   : > { %3302 = vmatprep.subr.mxu1 %v1016_v20  ;;  %3234 = vmatpush2.msra.mxu0 %v949_v21  ;;  %v1116_v20 = vld [vmem:[%s4910_s29 + $0x1ab8] sm:$0xff]  ;;  %v1049_v21 = vld [vmem:[%s4910_s29 + $0x18a0] sm:$0xff] }
 0x190   : > { %3303 = vmatpush2.msra.mxu1 %v1015_v22  ;;  %3235 = vmatprep.subr.mxu0 %v948_v23  ;;  %v1115_v22 = vld [vmem:[%s4910_s29 + $0x1ab0] sm:$0xff]  ;;  %v1048_v23 = vld [vmem:[%s4910_s29 + $0x1898] sm:$0xff] }
 0x191   : > { %3304 = vmatprep.subr.mxu1 %v1014_v24  ;;  %3236 = vmatpush2.msra.mxu0 %v947_v25  ;;  %v1114_v24 = vld [vmem:[%s4910_s29 + $0x1aa8] sm:$0xff]  ;;  %v1047_v25 = vld [vmem:[%s4910_s29 + $0x1890] sm:$0xff] }
 0x192   : > { %3305 = vmatpush2.msra.mxu1 %v1013_v26  ;;  %3237 = vmatprep.subr.mxu0 %v946_v27  ;;  %v1113_v26 = vld [vmem:[%s4910_s29 + $0x1aa0] sm:$0xff]  ;;  %v1046_v27 = vld [vmem:[%s4910_s29 + $0x1888] sm:$0xff] }
 0x193   : > { %3306 = vmatprep.subr.mxu1 %v1012_v28  ;;  %3238 = vmatpush2.msra.mxu0 %v945_v29  ;;  %v1112_v28 = vld [vmem:[%s4910_s29 + $0x1a98] sm:$0xff]  ;;  %v1045_v29 = vld [vmem:[%s4910_s29 + $0x1880] sm:$0xff] }
 0x194   : > { %3307 = vmatpush2.msra.mxu1 %v1011_v30  ;;  %3239 = vmatprep.subr.mxu0 %v944_v31  ;;  %v1111_v30 = vld [vmem:[%s4910_s29 + $0x1a90] sm:$0xff]  ;;  %v1044_v31 = vld [vmem:[%s4910_s29 + $0x1878] sm:$0xff] }
 0x195   : > { %3308 = vmatprep.subr.mxu1 %v1010_v32  ;;  %3240 = vmatpush2.msra.mxu0 %v943_v33  ;;  %v1110_v32 = vld [vmem:[%s4910_s29 + $0x1a88] sm:$0xff]  ;;  %v1043_v33 = vld [vmem:[%s4910_s29 + $0x1870] sm:$0xff] }
 0x196   : > { %3309 = vmatpush2.msra.mxu1 %v1009_v34  ;;  %3241 = vmatprep.subr.mxu0 %v942_v35  ;;  %v1109_v34 = vld [vmem:[%s4910_s29 + $0x1a80] sm:$0xff]  ;;  %v1042_v35 = vld [vmem:[%s4910_s29 + $0x1868] sm:$0xff] }
 0x197   : > { %3310 = vmatprep.subr.mxu1 %v1008_v36  ;;  %3242 = vmatpush2.msra.mxu0 %v941_v38  ;;  %v1108_v36 = vld [vmem:[%s4910_s29 + $0x1a78] sm:$0xff]  ;;  %v1107_v38 = vld [vmem:[%s4910_s29 + $0x1a70] sm:$0xff] }
 0x198   : > { %3311 = vmatpush2.msra.mxu1 %v1007_v39  ;;  %3243 = vmatprep.subr.mxu0 %v940_v40  ;;  %v1040_v39 = vld [vmem:[%s4910_s29 + $0x1858] sm:$0xff]  ;;  %v1106_v40 = vld [vmem:[%s4910_s29 + $0x1a68] sm:$0xff] }
 0x199   : > { %3312 = vmatprep.subr.mxu1 %v1006_v41  ;;  %3244 = vmatpush2.msra.mxu0 %v939_v42  ;;  %v1039_v41 = vld [vmem:[%s4910_s29 + $0x1850] sm:$0xff]  ;;  %v1105_v42 = vld [vmem:[%s4910_s29 + $0x1a60] sm:$0xff] }
 0x19a   : > { %3313 = vmatpush2.msra.mxu1 %v1005_v44  ;;  %3245 = vmatprep.subr.mxu0 %v938_v46  ;;  %v1038_v44 = vld [vmem:[%s4910_s29 + $0x1848] sm:$0xff]  ;;  %v1037_v46 = vld [vmem:[%s4910_s29 + $0x1840] sm:$0xff] }
 0x19b   : > { %3314 = vmatprep.subr.mxu1 %v1004_v47  ;;  %3246 = vmatpush2.msra.mxu0 %v937_v49  ;;  %v1103_v47 = vld [vmem:[%s4910_s29 + $0x1a50] sm:$0xff]  ;;  %v1102_v49 = vld [vmem:[%s4910_s29 + $0x1a48] sm:$0xff] }
 0x19c   : > { %3315 = vmatpush2.msra.mxu1 %v1003_v50  ;;  %3247 = vmatprep.subr.mxu0 %v936_v51  ;;  %v1035_v50 = vld [vmem:[%s4910_s29 + $0x1830] sm:$0xff]  ;;  %v1101_v51 = vld [vmem:[%s4910_s29 + $0x1a40] sm:$0xff] }
 0x19d   : > { %3316 = vmatprep.subr.mxu1 %v1002_v52  ;;  %3248 = vmatpush2.msra.mxu0 %v935_v54  ;;  %v1034_v52 = vld [vmem:[%s4910_s29 + $0x1828] sm:$0xff]  ;;  %v1100_v54 = vld [vmem:[%s4910_s29 + $0x1a38] sm:$0xff] }
 0x19e   : > { %3317 = vmatpush2.msra.mxu1 %v1001_v55  ;;  %3249 = vmatprep.subr.mxu0 %v934_v57  ;;  %v1033_v55 = vld [vmem:[%s4910_s29 + $0x1820] sm:$0xff]  ;;  %v1032_v57 = vld [vmem:[%s4910_s29 + $0x1818] sm:$0xff] }
 0x19f   : > { %3318 = vmatprep.subr.mxu1 %v1000_v58  ;;  %3250 = vmatpush2.msra.mxu0 %v933_v60  ;;  %v1098_v58 = vld [vmem:[%s4910_s29 + $0x1a28] sm:$0xff]  ;;  %v1097_v60 = vld [vmem:[%s4910_s29 + $0x1a20] sm:$0xff] }
 0x1a0   : > { %3251 = vmatprep.mubr.f32.mxu0 %v2264_v59  ;;  %3319 = vmatpush2.msra.mxu1 %v999_v61  ;;  %v1031_v59 = vld [vmem:[%s4910_s29 + $0x1810] sm:$0xff]  ;;  %v1030_v61 = vld [vmem:[%s4910_s29 + $0x1808] sm:$0xff] }
 0x1a1   : > { %3252 = vmatmul.mubr.f32.vlgmr.msra.gmra.mxu0 %v2256_v48  ;;  %3320 = vmatprep.subr.mxu1 %v998_v62  ;;  %v1036_v48 = vld [vmem:[%s4910_s29 + $0x1838] sm:$0xff] }
 0x1a2   : > { %3329 = vmatprep.subr.mxu0 %v1060_v63  ;;  %3321 = vmatpush2.msra.mxu1 %v997_v1  ;;  %v1096_v62 = vld [vmem:[%s4910_s29 + $0x1a18] sm:$0xff]  ;;  %v1029_v63 = vld [vmem:[%s4910_s29 + $0x1800] sm:$0xff] }
 0x1a3   : > { %3322 = vmatprep.mubr.f32.mxu1 %v2265_v0  ;;  %3330 = vmatpush1.msra.mxu0 %v1059_v2  ;;  %v1095_v0 = vld [vmem:[%s4910_s29 + $0x1a10] sm:$0xff]  ;;  %v1092_v1 = vld [vmem:[%s4910_s29 + $0x19f8] sm:$0xff]  ;;  %v1094_v2 = vld [vmem:[%s4910_s29 + $0x1a08] sm:$0xff] }
 0x1a4   : > { %3323 = vmatmul.mubr.f32.vlgmr.msra.gmra.mxu1 %v2263_v56  ;;  %3331 = vmatprep.subr.mxu0 %v1058_v3  ;;  %v1099_v56 = vld [vmem:[%s4910_s29 + $0x1a30] sm:$0xff] }
 0x1a5   : > { %3400 = vmatprep.subr.mxu1 %v1124_v4  ;;  %3332 = vmatpush1.msra.mxu0 %v1057_v5  ;;  %v1091_v3 = vld [vmem:[%s4910_s29 + $0x19f0] sm:$0xff]  ;;  %v1093_v4 = vld [vmem:[%s4910_s29 + $0x1a00] sm:$0xff]  ;;  %v1090_v5 = vld [vmem:[%s4910_s29 + $0x19e8] sm:$0xff] }
 0x1a6   : > { %3401 = vmatpush1.msra.mxu1 %v1123_v6  ;;  %3333 = vmatprep.subr.mxu0 %v1056_v7  ;;  %v1156_v6 = vld [vmem:[%s4910_s29 + $0x1bf8] sm:$0xff]  ;;  %v1089_v7 = vld [vmem:[%s4910_s29 + $0x19e0] sm:$0xff] }
 0x1a7   : > { %3402 = vmatprep.subr.mxu1 %v1122_v8  ;;  %3334 = vmatpush1.msra.mxu0 %v1055_v9  ;;  %v1155_v8 = vld [vmem:[%s4910_s29 + $0x1bf0] sm:$0xff]  ;;  %v1088_v9 = vld [vmem:[%s4910_s29 + $0x19d8] sm:$0xff] }
 0x1a8   : > { %3403 = vmatpush1.msra.mxu1 %v1121_v10  ;;  %3335 = vmatprep.subr.mxu0 %v1054_v11  ;;  %v1154_v10 = vld [vmem:[%s4910_s29 + $0x1be8] sm:$0xff]  ;;  %v1087_v11 = vld [vmem:[%s4910_s29 + $0x19d0] sm:$0xff] }
 0x1a9   : > { %3404 = vmatprep.subr.mxu1 %v1120_v12  ;;  %3336 = vmatpush1.msra.mxu0 %v1053_v13  ;;  %v1153_v12 = vld [vmem:[%s4910_s29 + $0x1be0] sm:$0xff]  ;;  %v1086_v13 = vld [vmem:[%s4910_s29 + $0x19c8] sm:$0xff] }
 0x1aa   : > { %3405 = vmatpush1.msra.mxu1 %v1119_v14  ;;  %3337 = vmatprep.subr.mxu0 %v1052_v15  ;;  %v1152_v14 = vld [vmem:[%s4910_s29 + $0x1bd8] sm:$0xff]  ;;  %v1085_v15 = vld [vmem:[%s4910_s29 + $0x19c0] sm:$0xff] }
 0x1ab   : > { %3406 = vmatprep.subr.mxu1 %v1118_v16  ;;  %3338 = vmatpush1.msra.mxu0 %v1051_v17  ;;  %v1151_v16 = vld [vmem:[%s4910_s29 + $0x1bd0] sm:$0xff]  ;;  %v1084_v17 = vld [vmem:[%s4910_s29 + $0x19b8] sm:$0xff] }
 0x1ac   : > { %3407 = vmatpush1.msra.mxu1 %v1117_v18  ;;  %3339 = vmatprep.subr.mxu0 %v1050_v19  ;;  %v1150_v18 = vld [vmem:[%s4910_s29 + $0x1bc8] sm:$0xff]  ;;  %v1083_v19 = vld [vmem:[%s4910_s29 + $0x19b0] sm:$0xff] }
 0x1ad   : > { %3408 = vmatprep.subr.mxu1 %v1116_v20  ;;  %3340 = vmatpush1.msra.mxu0 %v1049_v21  ;;  %v1149_v20 = vld [vmem:[%s4910_s29 + $0x1bc0] sm:$0xff]  ;;  %v1082_v21 = vld [vmem:[%s4910_s29 + $0x19a8] sm:$0xff] }
 0x1ae   : > { %3409 = vmatpush1.msra.mxu1 %v1115_v22  ;;  %3341 = vmatprep.subr.mxu0 %v1048_v23  ;;  %v1148_v22 = vld [vmem:[%s4910_s29 + $0x1bb8] sm:$0xff]  ;;  %v1081_v23 = vld [vmem:[%s4910_s29 + $0x19a0] sm:$0xff] }
 0x1af   : > { %3410 = vmatprep.subr.mxu1 %v1114_v24  ;;  %3342 = vmatpush1.msra.mxu0 %v1047_v25  ;;  %v1147_v24 = vld [vmem:[%s4910_s29 + $0x1bb0] sm:$0xff]  ;;  %v1080_v25 = vld [vmem:[%s4910_s29 + $0x1998] sm:$0xff] }
 0x1b0   : > { %3411 = vmatpush1.msra.mxu1 %v1113_v26  ;;  %3343 = vmatprep.subr.mxu0 %v1046_v27  ;;  %v1146_v26 = vld [vmem:[%s4910_s29 + $0x1ba8] sm:$0xff]  ;;  %v1079_v27 = vld [vmem:[%s4910_s29 + $0x1990] sm:$0xff] }
 0x1b1   : > { %3412 = vmatprep.subr.mxu1 %v1112_v28  ;;  %3344 = vmatpush1.msra.mxu0 %v1045_v29  ;;  %v1145_v28 = vld [vmem:[%s4910_s29 + $0x1ba0] sm:$0xff]  ;;  %v1078_v29 = vld [vmem:[%s4910_s29 + $0x1988] sm:$0xff] }
 0x1b2   : > { %3413 = vmatpush1.msra.mxu1 %v1111_v30  ;;  %3345 = vmatprep.subr.mxu0 %v1044_v31  ;;  %v1144_v30 = vld [vmem:[%s4910_s29 + $0x1b98] sm:$0xff]  ;;  %v1077_v31 = vld [vmem:[%s4910_s29 + $0x1980] sm:$0xff] }
 0x1b3   : > { %3414 = vmatprep.subr.mxu1 %v1110_v32  ;;  %3346 = vmatpush1.msra.mxu0 %v1043_v33  ;;  %v1143_v32 = vld [vmem:[%s4910_s29 + $0x1b90] sm:$0xff]  ;;  %v1076_v33 = vld [vmem:[%s4910_s29 + $0x1978] sm:$0xff] }
 0x1b4   : > { %3415 = vmatpush1.msra.mxu1 %v1109_v34  ;;  %3347 = vmatprep.subr.mxu0 %v1042_v35  ;;  %v1142_v34 = vld [vmem:[%s4910_s29 + $0x1b88] sm:$0xff]  ;;  %v1075_v35 = vld [vmem:[%s4910_s29 + $0x1970] sm:$0xff] }
 0x1b5   : > { %3416 = vmatprep.subr.mxu1 %v1108_v36  ;;  %3348 = vmatpush1.msra.mxu0 %v1041_v37  ;;  %v1141_v36 = vld [vmem:[%s4910_s29 + $0x1b80] sm:$0xff]  ;;  %v1074_v37 = vld [vmem:[%s4910_s29 + $0x1968] sm:$0xff] }
 0x1b6   : > { %3417 = vmatpush1.msra.mxu1 %v1107_v38  ;;  %3349 = vmatprep.subr.mxu0 %v1040_v39  ;;  %v1140_v38 = vld [vmem:[%s4910_s29 + $0x1b78] sm:$0xff]  ;;  %v1073_v39 = vld [vmem:[%s4910_s29 + $0x1960] sm:$0xff] }
 0x1b7   : > { %3418 = vmatprep.subr.mxu1 %v1106_v40  ;;  %3350 = vmatpush1.msra.mxu0 %v1039_v41  ;;  %v1139_v40 = vld [vmem:[%s4910_s29 + $0x1b70] sm:$0xff]  ;;  %v1072_v41 = vld [vmem:[%s4910_s29 + $0x1958] sm:$0xff] }
 0x1b8   : > { %3419 = vmatpush1.msra.mxu1 %v1105_v42  ;;  %3351 = vmatprep.subr.mxu0 %v1038_v44  ;;  %v1138_v42 = vld [vmem:[%s4910_s29 + $0x1b68] sm:$0xff]  ;;  %v1071_v44 = vld [vmem:[%s4910_s29 + $0x1950] sm:$0xff] }
 0x1b9   : > { %3420 = vmatprep.subr.mxu1 %v1104_v45  ;;  %3352 = vmatpush1.msra.mxu0 %v1037_v46  ;;  %v1137_v45 = vld [vmem:[%s4910_s29 + $0x1b60] sm:$0xff]  ;;  %v1070_v46 = vld [vmem:[%s4910_s29 + $0x1948] sm:$0xff] }
 0x1ba   : > { %3421 = vmatpush1.msra.mxu1 %v1103_v47  ;;  %3353 = vmatprep.subr.mxu0 %v1036_v48  ;;  %v1136_v47 = vld [vmem:[%s4910_s29 + $0x1b58] sm:$0xff]  ;;  %v252_v48 = vld [vmem:[%s4905_s25 + $0x30] sm:$0xff] }
 0x1bb   : > { %3422 = vmatprep.subr.mxu1 %v1102_v49  ;;  %3354 = vmatpush1.msra.mxu0 %v1035_v50  ;;  %v1069_v49 = vld [vmem:[%s4910_s29 + $0x1940] sm:$0xff]  ;;  %v1135_v50 = vld [vmem:[%s4910_s29 + $0x1b50] sm:$0xff] }
 0x1bc   : > { %3423 = vmatpush1.msra.mxu1 %v1101_v51  ;;  %3355 = vmatprep.subr.mxu0 %v1034_v52  ;;  %v1068_v51 = vld [vmem:[%s4910_s29 + $0x1938] sm:$0xff]  ;;  %v1134_v52 = vld [vmem:[%s4910_s29 + $0x1b48] sm:$0xff] }
 0x1bd   : > { %3424 = vmatprep.subr.mxu1 %v1100_v54  ;;  %3356 = vmatpush1.msra.mxu0 %v1033_v55  ;;  %v1067_v54 = vld [vmem:[%s4910_s29 + $0x1930] sm:$0xff]  ;;  %v1133_v55 = vld [vmem:[%s4910_s29 + $0x1b40] sm:$0xff] }
 0x1be   : > { %3425 = vmatpush1.msra.mxu1 %v1099_v56  ;;  %3357 = vmatprep.subr.mxu0 %v1032_v57  ;;  %v2266_v56 = vcombine.high %v252_v48, %v252_v48  ;;  %v1066_v57 = vld [vmem:[%s4910_s29 + $0x1928] sm:$0xff] }
 0x1bf   : > { %3426 = vmatprep.subr.mxu1 %v1098_v58  ;;  %3358 = vmatpush1.msra.mxu0 %v1031_v59  ;;  %v1132_v58 = vld [vmem:[%s4910_s29 + $0x1b38] sm:$0xff]  ;;  %v2273_v59 = vrot.slane %v252_v48, %v5027_v53  ;;  %v1169_v48 = vld [vmem:[%s4910_s29 + $0x1c60] sm:$0xff] }
 0x1c0   : > { %3427 = vmatpush1.msra.mxu1 %v1097_v60  ;;  %3359 = vmatprep.subr.mxu0 %v1030_v61  ;;  %v1065_v60 = vld [vmem:[%s4910_s29 + $0x1920] sm:$0xff]  ;;  %v1131_v61 = vld [vmem:[%s4910_s29 + $0x1b30] sm:$0xff] }
 0x1c1   : > { %3428 = vmatprep.subr.mxu1 %v1096_v62  ;;  %3360 = vmatpush1.msra.mxu0 %v1029_v63  ;;  %v1064_v62 = vld [vmem:[%s4910_s29 + $0x1918] sm:$0xff]  ;;  %v1130_v63 = vld [vmem:[%s4910_s29 + $0x1b28] sm:$0xff] }
 0x1c2   : > { %3429 = vmatpush1.msra.mxu1 %v1095_v0  ;;  %3361 = vmatprep.subr.mxu0 %v1092_v1  ;;  %v1063_v0 = vld [vmem:[%s4910_s29 + $0x1910] sm:$0xff]  ;;  %v1129_v1 = vld [vmem:[%s4910_s29 + $0x1b20] sm:$0xff] }
 0x1c3   : > { %3430 = vmatprep.subr.mxu1 %v1094_v2  ;;  %3362 = vmatpush2.msra.mxu0 %v1091_v3  ;;  %v2280_v2 = vrot.slane %v2266_v56, %v5027_v53  ;;  %v1062_v3 = vld [vmem:[%s4910_s29 + $0x1908] sm:$0xff]  ;;  %v1232_v56 = vld [vmem:[%s4910_s29 + $0x1e58] sm:$0xff] }
 0x1c4   : > { %3431 = vmatpush1.msra.mxu1 %v1093_v4  ;;  %3363 = vmatprep.subr.mxu0 %v1090_v5  ;;  %v1128_v4 = vld [vmem:[%s4910_s29 + $0x1b18] sm:$0xff]  ;;  %v2281_v5 = vcombine.high %v2273_v59, %v2273_v59 }
 0x1c5   : > { %3432 = vmatprep.subr.mxu1 %v1156_v6  ;;  %3364 = vmatpush2.msra.mxu0 %v1089_v7  ;;  %v1061_v6 = vld [vmem:[%s4910_s29 + $0x1900] sm:$0xff]  ;;  %v1127_v7 = vld [vmem:[%s4910_s29 + $0x1b10] sm:$0xff] }
 0x1c6   : > { %3433 = vmatpush2.msra.mxu1 %v1155_v8  ;;  %3365 = vmatprep.subr.mxu0 %v1088_v9  ;;  %v1126_v8 = vld [vmem:[%s4910_s29 + $0x1b08] sm:$0xff]  ;;  %v1188_v9 = vld [vmem:[%s4910_s29 + $0x1cf8] sm:$0xff] }
 0x1c7   : > { %3434 = vmatprep.subr.mxu1 %v1154_v10  ;;  %3366 = vmatpush2.msra.mxu0 %v1087_v11  ;;  %v2282_v10 = vcombine.high %v2280_v2, %v2280_v2  ;;  %v1125_v11 = vld [vmem:[%s4910_s29 + $0x1b00] sm:$0xff] }
 0x1c8   : > { %3435 = vmatpush2.msra.mxu1 %v1153_v12  ;;  %3367 = vmatprep.subr.mxu0 %v1086_v13  ;;  %v1187_v12 = vld [vmem:[%s4910_s29 + $0x1cf0] sm:$0xff]  ;;  %v1186_v13 = vld [vmem:[%s4910_s29 + $0x1ce8] sm:$0xff] }
 0x1c9   : > { %3436 = vmatprep.subr.mxu1 %v1152_v14  ;;  %3368 = vmatpush2.msra.mxu0 %v1085_v15  ;;  %v1252_v14 = vld [vmem:[%s4910_s29 + $0x1ef8] sm:$0xff]  ;;  %v1185_v15 = vld [vmem:[%s4910_s29 + $0x1ce0] sm:$0xff] }
 0x1ca   : > { %3437 = vmatpush2.msra.mxu1 %v1151_v16  ;;  %3369 = vmatprep.subr.mxu0 %v1084_v17  ;;  %v1251_v16 = vld [vmem:[%s4910_s29 + $0x1ef0] sm:$0xff]  ;;  %v1184_v17 = vld [vmem:[%s4910_s29 + $0x1cd8] sm:$0xff] }
 0x1cb   : > { %3438 = vmatprep.subr.mxu1 %v1150_v18  ;;  %3370 = vmatpush2.msra.mxu0 %v1083_v19  ;;  %v1250_v18 = vld [vmem:[%s4910_s29 + $0x1ee8] sm:$0xff]  ;;  %v1183_v19 = vld [vmem:[%s4910_s29 + $0x1cd0] sm:$0xff] }
 0x1cc   : > { %3439 = vmatpush2.msra.mxu1 %v1149_v20  ;;  %3371 = vmatprep.subr.mxu0 %v1082_v21  ;;  %v1249_v20 = vld [vmem:[%s4910_s29 + $0x1ee0] sm:$0xff]  ;;  %v1182_v21 = vld [vmem:[%s4910_s29 + $0x1cc8] sm:$0xff] }
 0x1cd   : > { %3440 = vmatprep.subr.mxu1 %v1148_v22  ;;  %3372 = vmatpush2.msra.mxu0 %v1081_v23  ;;  %v1248_v22 = vld [vmem:[%s4910_s29 + $0x1ed8] sm:$0xff]  ;;  %v1181_v23 = vld [vmem:[%s4910_s29 + $0x1cc0] sm:$0xff] }
 0x1ce   : > { %3441 = vmatpush2.msra.mxu1 %v1147_v24  ;;  %3373 = vmatprep.subr.mxu0 %v1080_v25  ;;  %v1247_v24 = vld [vmem:[%s4910_s29 + $0x1ed0] sm:$0xff]  ;;  %v1180_v25 = vld [vmem:[%s4910_s29 + $0x1cb8] sm:$0xff] }
 0x1cf   : > { %3442 = vmatprep.subr.mxu1 %v1146_v26  ;;  %3374 = vmatpush2.msra.mxu0 %v1079_v27  ;;  %v1246_v26 = vld [vmem:[%s4910_s29 + $0x1ec8] sm:$0xff]  ;;  %v1179_v27 = vld [vmem:[%s4910_s29 + $0x1cb0] sm:$0xff] }
 0x1d0   : > { %3443 = vmatpush2.msra.mxu1 %v1145_v28  ;;  %3375 = vmatprep.subr.mxu0 %v1078_v29  ;;  %v1245_v28 = vld [vmem:[%s4910_s29 + $0x1ec0] sm:$0xff]  ;;  %v1178_v29 = vld [vmem:[%s4910_s29 + $0x1ca8] sm:$0xff] }
 0x1d1   : > { %3444 = vmatprep.subr.mxu1 %v1144_v30  ;;  %3376 = vmatpush2.msra.mxu0 %v1077_v31  ;;  %v1244_v30 = vld [vmem:[%s4910_s29 + $0x1eb8] sm:$0xff]  ;;  %v1177_v31 = vld [vmem:[%s4910_s29 + $0x1ca0] sm:$0xff] }
 0x1d2   : > { %3445 = vmatpush2.msra.mxu1 %v1143_v32  ;;  %3377 = vmatprep.subr.mxu0 %v1076_v33  ;;  %v1243_v32 = vld [vmem:[%s4910_s29 + $0x1eb0] sm:$0xff]  ;;  %v1176_v33 = vld [vmem:[%s4910_s29 + $0x1c98] sm:$0xff] }
 0x1d3   : > { %3446 = vmatprep.subr.mxu1 %v1142_v34  ;;  %3378 = vmatpush2.msra.mxu0 %v1075_v35  ;;  %v1242_v34 = vld [vmem:[%s4910_s29 + $0x1ea8] sm:$0xff]  ;;  %v1175_v35 = vld [vmem:[%s4910_s29 + $0x1c90] sm:$0xff] }
 0x1d4   : > { %3447 = vmatpush2.msra.mxu1 %v1141_v36  ;;  %3379 = vmatprep.subr.mxu0 %v1074_v37  ;;  %v1241_v36 = vld [vmem:[%s4910_s29 + $0x1ea0] sm:$0xff]  ;;  %v1174_v37 = vld [vmem:[%s4910_s29 + $0x1c88] sm:$0xff] }
 0x1d5   : > { %3448 = vmatprep.subr.mxu1 %v1140_v38  ;;  %3380 = vmatpush2.msra.mxu0 %v1073_v39  ;;  %v1240_v38 = vld [vmem:[%s4910_s29 + $0x1e98] sm:$0xff]  ;;  %v1173_v39 = vld [vmem:[%s4910_s29 + $0x1c80] sm:$0xff] }
 0x1d6   : > { %3449 = vmatpush2.msra.mxu1 %v1139_v40  ;;  %3381 = vmatprep.subr.mxu0 %v1072_v41  ;;  %v1239_v40 = vld [vmem:[%s4910_s29 + $0x1e90] sm:$0xff]  ;;  %v1172_v41 = vld [vmem:[%s4910_s29 + $0x1c78] sm:$0xff] }
 0x1d7   : > { %3450 = vmatprep.subr.mxu1 %v1138_v42  ;;  %3382 = vmatpush2.msra.mxu0 %v1071_v44  ;;  %v1238_v42 = vld [vmem:[%s4910_s29 + $0x1e88] sm:$0xff]  ;;  %v1171_v44 = vld [vmem:[%s4910_s29 + $0x1c70] sm:$0xff] }
 0x1d8   : > { %3451 = vmatpush2.msra.mxu1 %v1137_v45  ;;  %3383 = vmatprep.subr.mxu0 %v1070_v46  ;;  %v1237_v45 = vld [vmem:[%s4910_s29 + $0x1e80] sm:$0xff]  ;;  %v1170_v46 = vld [vmem:[%s4910_s29 + $0x1c68] sm:$0xff] }
 0x1d9   : > { %3452 = vmatprep.subr.mxu1 %v1136_v47  ;;  %3384 = vmatpush2.msra.mxu0 %v1069_v49  ;;  %v1236_v47 = vld [vmem:[%s4910_s29 + $0x1e78] sm:$0xff]  ;;  %v1235_v49 = vld [vmem:[%s4910_s29 + $0x1e70] sm:$0xff] }
 0x1da   : > { %3453 = vmatpush2.msra.mxu1 %v1135_v50  ;;  %3385 = vmatprep.subr.mxu0 %v1068_v51  ;;  %v1168_v50 = vld [vmem:[%s4910_s29 + $0x1c58] sm:$0xff]  ;;  %v1234_v51 = vld [vmem:[%s4910_s29 + $0x1e68] sm:$0xff] }
 0x1db   : > { %3454 = vmatprep.subr.mxu1 %v1134_v52  ;;  %3386 = vmatpush2.msra.mxu0 %v1067_v54  ;;  %v1167_v52 = vld [vmem:[%s4910_s29 + $0x1c50] sm:$0xff]  ;;  %v1233_v54 = vld [vmem:[%s4910_s29 + $0x1e60] sm:$0xff] }
 0x1dc   : > { %3455 = vmatpush2.msra.mxu1 %v1133_v55  ;;  %3387 = vmatprep.subr.mxu0 %v1066_v57  ;;  %v1166_v55 = vld [vmem:[%s4910_s29 + $0x1c48] sm:$0xff]  ;;  %v1165_v57 = vld [vmem:[%s4910_s29 + $0x1c40] sm:$0xff] }
 0x1dd   : > { %3456 = vmatprep.subr.mxu1 %v1132_v58  ;;  %3388 = vmatpush2.msra.mxu0 %v1065_v60  ;;  %v1231_v58 = vld [vmem:[%s4910_s29 + $0x1e50] sm:$0xff]  ;;  %v1230_v60 = vld [vmem:[%s4910_s29 + $0x1e48] sm:$0xff] }
 0x1de   : > { %3457 = vmatpush2.msra.mxu1 %v1131_v61  ;;  %3389 = vmatprep.subr.mxu0 %v1064_v62  ;;  %v1163_v61 = vld [vmem:[%s4910_s29 + $0x1c30] sm:$0xff]  ;;  %v1229_v62 = vld [vmem:[%s4910_s29 + $0x1e40] sm:$0xff] }
 0x1df   : > { %3458 = vmatprep.subr.mxu1 %v1130_v63  ;;  %3390 = vmatpush2.msra.mxu0 %v1063_v0  ;;  %v1162_v63 = vld [vmem:[%s4910_s29 + $0x1c28] sm:$0xff]  ;;  %v1228_v0 = vld [vmem:[%s4910_s29 + $0x1e38] sm:$0xff] }
 0x1e0   : > { %3459 = vmatpush2.msra.mxu1 %v1129_v1  ;;  %3391 = vmatprep.subr.mxu0 %v1062_v3  ;;  %v1161_v1 = vld [vmem:[%s4910_s29 + $0x1c20] sm:$0xff]  ;;  %v1160_v3 = vld [vmem:[%s4910_s29 + $0x1c18] sm:$0xff] }
 0x1e1   : > { %3460 = vmatprep.subr.mxu1 %v1128_v4  ;;  %3392 = vmatpush2.msra.mxu0 %v1061_v6  ;;  %v1226_v4 = vld [vmem:[%s4910_s29 + $0x1e28] sm:$0xff]  ;;  %v1225_v6 = vld [vmem:[%s4910_s29 + $0x1e20] sm:$0xff] }
 0x1e2   : > { %3393 = vmatprep.mubr.f32.mxu0 %v2281_v5  ;;  %3461 = vmatpush2.msra.mxu1 %v1127_v7  ;;  %v1159_v5 = vld [vmem:[%s4910_s29 + $0x1c10] sm:$0xff]  ;;  %v1158_v7 = vld [vmem:[%s4910_s29 + $0x1c08] sm:$0xff] }
 0x1e3   : > { %3394 = vmatmul.mubr.f32.vlgmr.msra.gmra.mxu0 %v2273_v59  ;;  %3462 = vmatprep.subr.mxu1 %v1126_v8  ;;  %v1164_v59 = vld [vmem:[%s4910_s29 + $0x1c38] sm:$0xff] }
 0x1e4   : > { %3471 = vmatprep.subr.mxu0 %v1188_v9  ;;  %3463 = vmatpush2.msra.mxu1 %v1125_v11  ;;  %v1224_v8 = vld [vmem:[%s4910_s29 + $0x1e18] sm:$0xff]  ;;  %v1157_v9 = vld [vmem:[%s4910_s29 + $0x1c00] sm:$0xff] }
 0x1e5   : > { %3464 = vmatprep.mubr.f32.mxu1 %v2282_v10  ;;  %3472 = vmatpush1.msra.mxu0 %v1187_v12  ;;  %v1223_v10 = vld [vmem:[%s4910_s29 + $0x1e10] sm:$0xff]  ;;  %v1220_v11 = vld [vmem:[%s4910_s29 + $0x1df8] sm:$0xff]  ;;  %v1222_v12 = vld [vmem:[%s4910_s29 + $0x1e08] sm:$0xff] }
 0x1e6   : > { %3465 = vmatmul.mubr.f32.vlgmr.msra.gmra.mxu1 %v2280_v2  ;;  %3473 = vmatprep.subr.mxu0 %v1186_v13  ;;  %v1227_v2 = vld [vmem:[%s4910_s29 + $0x1e30] sm:$0xff] }
 0x1e7   : > { %3542 = vmatprep.subr.mxu1 %v1252_v14  ;;  %3474 = vmatpush1.msra.mxu0 %v1185_v15  ;;  %v1219_v13 = vld [vmem:[%s4910_s29 + $0x1df0] sm:$0xff]  ;;  %v1221_v14 = vld [vmem:[%s4910_s29 + $0x1e00] sm:$0xff]  ;;  %v1218_v15 = vld [vmem:[%s4910_s29 + $0x1de8] sm:$0xff] }
 0x1e8   : > { %3543 = vmatpush1.msra.mxu1 %v1251_v16  ;;  %3475 = vmatprep.subr.mxu0 %v1184_v17  ;;  %v1284_v16 = vld [vmem:[%s4910_s29 + $0x1ff8] sm:$0xff]  ;;  %v1217_v17 = vld [vmem:[%s4910_s29 + $0x1de0] sm:$0xff] }
 0x1e9   : > { %3544 = vmatprep.subr.mxu1 %v1250_v18  ;;  %3476 = vmatpush1.msra.mxu0 %v1183_v19  ;;  %v1283_v18 = vld [vmem:[%s4910_s29 + $0x1ff0] sm:$0xff]  ;;  %v1216_v19 = vld [vmem:[%s4910_s29 + $0x1dd8] sm:$0xff] }
 0x1ea   : > { %3545 = vmatpush1.msra.mxu1 %v1249_v20  ;;  %3477 = vmatprep.subr.mxu0 %v1182_v21  ;;  %v1282_v20 = vld [vmem:[%s4910_s29 + $0x1fe8] sm:$0xff]  ;;  %v1215_v21 = vld [vmem:[%s4910_s29 + $0x1dd0] sm:$0xff] }
 0x1eb   : > { %3546 = vmatprep.subr.mxu1 %v1248_v22  ;;  %3478 = vmatpush1.msra.mxu0 %v1181_v23  ;;  %v1281_v22 = vld [vmem:[%s4910_s29 + $0x1fe0] sm:$0xff]  ;;  %v1214_v23 = vld [vmem:[%s4910_s29 + $0x1dc8] sm:$0xff] }
 0x1ec   : > { %3547 = vmatpush1.msra.mxu1 %v1247_v24  ;;  %3479 = vmatprep.subr.mxu0 %v1180_v25  ;;  %v1280_v24 = vld [vmem:[%s4910_s29 + $0x1fd8] sm:$0xff]  ;;  %v1213_v25 = vld [vmem:[%s4910_s29 + $0x1dc0] sm:$0xff] }
 0x1ed   : > { %3548 = vmatprep.subr.mxu1 %v1246_v26  ;;  %3480 = vmatpush1.msra.mxu0 %v1179_v27  ;;  %v1279_v26 = vld [vmem:[%s4910_s29 + $0x1fd0] sm:$0xff]  ;;  %v1212_v27 = vld [vmem:[%s4910_s29 + $0x1db8] sm:$0xff] }
 0x1ee   : > { %3549 = vmatpush1.msra.mxu1 %v1245_v28  ;;  %3481 = vmatprep.subr.mxu0 %v1178_v29  ;;  %v1278_v28 = vld [vmem:[%s4910_s29 + $0x1fc8] sm:$0xff]  ;;  %v1211_v29 = vld [vmem:[%s4910_s29 + $0x1db0] sm:$0xff] }
 0x1ef   : > { %3550 = vmatprep.subr.mxu1 %v1244_v30  ;;  %3482 = vmatpush1.msra.mxu0 %v1177_v31  ;;  %v1277_v30 = vld [vmem:[%s4910_s29 + $0x1fc0] sm:$0xff]  ;;  %v1210_v31 = vld [vmem:[%s4910_s29 + $0x1da8] sm:$0xff] }
 0x1f0   : > { %3551 = vmatpush1.msra.mxu1 %v1243_v32  ;;  %3483 = vmatprep.subr.mxu0 %v1176_v33  ;;  %v1276_v32 = vld [vmem:[%s4910_s29 + $0x1fb8] sm:$0xff]  ;;  %v1209_v33 = vld [vmem:[%s4910_s29 + $0x1da0] sm:$0xff] }
 0x1f1   : > { %3552 = vmatprep.subr.mxu1 %v1242_v34  ;;  %3484 = vmatpush1.msra.mxu0 %v1175_v35  ;;  %v1275_v34 = vld [vmem:[%s4910_s29 + $0x1fb0] sm:$0xff]  ;;  %v1208_v35 = vld [vmem:[%s4910_s29 + $0x1d98] sm:$0xff] }
 0x1f2   : > { %3553 = vmatpush1.msra.mxu1 %v1241_v36  ;;  %3485 = vmatprep.subr.mxu0 %v1174_v37  ;;  %v1274_v36 = vld [vmem:[%s4910_s29 + $0x1fa8] sm:$0xff]  ;;  %v1207_v37 = vld [vmem:[%s4910_s29 + $0x1d90] sm:$0xff] }
 0x1f3   : > { %3554 = vmatprep.subr.mxu1 %v1240_v38  ;;  %3486 = vmatpush1.msra.mxu0 %v1173_v39  ;;  %v1273_v38 = vld [vmem:[%s4910_s29 + $0x1fa0] sm:$0xff]  ;;  %v1206_v39 = vld [vmem:[%s4910_s29 + $0x1d88] sm:$0xff] }
 0x1f4   : > { %3555 = vmatpush1.msra.mxu1 %v1239_v40  ;;  %3487 = vmatprep.subr.mxu0 %v1172_v41  ;;  %v1272_v40 = vld [vmem:[%s4910_s29 + $0x1f98] sm:$0xff]  ;;  %v1205_v41 = vld [vmem:[%s4910_s29 + $0x1d80] sm:$0xff] }
 0x1f5   : > { %3556 = vmatprep.subr.mxu1 %v1238_v42  ;;  %3488 = vmatpush1.msra.mxu0 %v1171_v44  ;;  %v1271_v42 = vld [vmem:[%s4910_s29 + $0x1f90] sm:$0xff]  ;;  %v1204_v44 = vld [vmem:[%s4910_s29 + $0x1d78] sm:$0xff] }
 0x1f6   : > { %3557 = vmatpush1.msra.mxu1 %v1237_v45  ;;  %3489 = vmatprep.subr.mxu0 %v1170_v46  ;;  %v1270_v45 = vld [vmem:[%s4910_s29 + $0x1f88] sm:$0xff]  ;;  %v1203_v46 = vld [vmem:[%s4910_s29 + $0x1d70] sm:$0xff] }
 0x1f7   : > { %3558 = vmatprep.subr.mxu1 %v1236_v47  ;;  %3490 = vmatpush1.msra.mxu0 %v1169_v48  ;;  %v1269_v47 = vld [vmem:[%s4910_s29 + $0x1f80] sm:$0xff]  ;;  %v1202_v48 = vld [vmem:[%s4910_s29 + $0x1d68] sm:$0xff] }
 0x1f8   : > { %3559 = vmatpush1.msra.mxu1 %v1235_v49  ;;  %3491 = vmatprep.subr.mxu0 %v1168_v50  ;;  %v1268_v49 = vld [vmem:[%s4910_s29 + $0x1f78] sm:$0xff]  ;;  %v1201_v50 = vld [vmem:[%s4910_s29 + $0x1d60] sm:$0xff] }
 0x1f9   : > { %3560 = vmatprep.subr.mxu1 %v1234_v51  ;;  %3492 = vmatpush1.msra.mxu0 %v1167_v52  ;;  %v1267_v51 = vld [vmem:[%s4910_s29 + $0x1f70] sm:$0xff]  ;;  %v1200_v52 = vld [vmem:[%s4910_s29 + $0x1d58] sm:$0xff] }
 0x1fa   : > { %3561 = vmatpush1.msra.mxu1 %v1233_v54  ;;  %3493 = vmatprep.subr.mxu0 %v1166_v55  ;;  %v1266_v54 = vld [vmem:[%s4910_s29 + $0x1f68] sm:$0xff]  ;;  %v1199_v55 = vld [vmem:[%s4910_s29 + $0x1d50] sm:$0xff] }
 0x1fb   : > { %3562 = vmatprep.subr.mxu1 %v1232_v56  ;;  %3494 = vmatpush1.msra.mxu0 %v1165_v57  ;;  %v1265_v56 = vld [vmem:[%s4910_s29 + $0x1f60] sm:$0xff]  ;;  %v1198_v57 = vld [vmem:[%s4910_s29 + $0x1d48] sm:$0xff] }
 0x1fc   : > { %3563 = vmatpush1.msra.mxu1 %v1231_v58  ;;  %3495 = vmatprep.subr.mxu0 %v1164_v59  ;;  %v1264_v58 = vld [vmem:[%s4910_s29 + $0x1f58] sm:$0xff] }
 0x1fd   : > { %3564 = vmatprep.subr.mxu1 %v1230_v60  ;;  %3496 = vmatpush1.msra.mxu0 %v1163_v61  ;;  %v253_v59 = vld [vmem:[%s4905_s25 + $0x38] sm:$0xff]  ;;  %v1197_v60 = vld [vmem:[%s4910_s29 + $0x1d40] sm:$0xff]  ;;  %v1263_v61 = vld [vmem:[%s4910_s29 + $0x1f50] sm:$0xff] }
 0x1fe   : > { %3565 = vmatpush1.msra.mxu1 %v1229_v62  ;;  %3497 = vmatprep.subr.mxu0 %v1162_v63  ;;  %v1196_v62 = vld [vmem:[%s4910_s29 + $0x1d38] sm:$0xff]  ;;  %v1262_v63 = vld [vmem:[%s4910_s29 + $0x1f48] sm:$0xff] }
 0x1ff   : > { %3566 = vmatprep.subr.mxu1 %v1228_v0  ;;  %3498 = vmatpush1.msra.mxu0 %v1161_v1  ;;  %v1195_v0 = vld [vmem:[%s4910_s29 + $0x1d30] sm:$0xff]  ;;  %v1261_v1 = vld [vmem:[%s4910_s29 + $0x1f40] sm:$0xff] }
 0x200   : > { %3567 = vmatpush1.msra.mxu1 %v1227_v2  ;;  %3499 = vmatprep.subr.mxu0 %v1160_v3  ;;  %v2283_v2 = vcombine.high %v253_v59, %v253_v59  ;;  %v1194_v3 = vld [vmem:[%s4910_s29 + $0x1d28] sm:$0xff] }
 0x201   : > { %3568 = vmatprep.subr.mxu1 %v1226_v4  ;;  %3500 = vmatpush1.msra.mxu0 %v1159_v5  ;;  %v1260_v4 = vld [vmem:[%s4910_s29 + $0x1f38] sm:$0xff]  ;;  %v2290_v5 = vrot.slane %v253_v59, %v5027_v53  ;;  %v1297_v59 = vld [vmem:[%s4910_s29 + $0x2060] sm:$0xff] }
 0x202   : > { %3569 = vmatpush1.msra.mxu1 %v1225_v6  ;;  %3501 = vmatprep.subr.mxu0 %v1158_v7  ;;  %v1193_v6 = vld [vmem:[%s4910_s29 + $0x1d20] sm:$0xff]  ;;  %v1259_v7 = vld [vmem:[%s4910_s29 + $0x1f30] sm:$0xff] }
 0x203   : > { %3570 = vmatprep.subr.mxu1 %v1224_v8  ;;  %3502 = vmatpush1.msra.mxu0 %v1157_v9  ;;  %v1192_v8 = vld [vmem:[%s4910_s29 + $0x1d18] sm:$0xff]  ;;  %v1258_v9 = vld [vmem:[%s4910_s29 + $0x1f28] sm:$0xff] }
 0x204   : > { %3571 = vmatpush1.msra.mxu1 %v1223_v10  ;;  %3503 = vmatprep.subr.mxu0 %v1220_v11  ;;  %v1191_v10 = vld [vmem:[%s4910_s29 + $0x1d10] sm:$0xff]  ;;  %v1257_v11 = vld [vmem:[%s4910_s29 + $0x1f20] sm:$0xff] }
 0x205   : > { %3572 = vmatprep.subr.mxu1 %v1222_v12  ;;  %3504 = vmatpush2.msra.mxu0 %v1219_v13  ;;  %v2297_v12 = vrot.slane %v2283_v2, %v5027_v53  ;;  %v1190_v13 = vld [vmem:[%s4910_s29 + $0x1d08] sm:$0xff]  ;;  %v1360_v2 = vld [vmem:[%s4910_s29 + $0x2258] sm:$0xff] }
 0x206   : > { %3573 = vmatpush1.msra.mxu1 %v1221_v14  ;;  %3505 = vmatprep.subr.mxu0 %v1218_v15  ;;  %v1256_v14 = vld [vmem:[%s4910_s29 + $0x1f18] sm:$0xff]  ;;  %v2298_v15 = vcombine.high %v2290_v5, %v2290_v5 }
 0x207   : > { %3574 = vmatprep.subr.mxu1 %v1284_v16  ;;  %3506 = vmatpush2.msra.mxu0 %v1217_v17  ;;  %v1189_v16 = vld [vmem:[%s4910_s29 + $0x1d00] sm:$0xff]  ;;  %v1255_v17 = vld [vmem:[%s4910_s29 + $0x1f10] sm:$0xff] }
 0x208   : > { %3575 = vmatpush2.msra.mxu1 %v1283_v18  ;;  %3507 = vmatprep.subr.mxu0 %v1216_v19  ;;  %v1254_v18 = vld [vmem:[%s4910_s29 + $0x1f08] sm:$0xff]  ;;  %v1316_v19 = vld [vmem:[%s4910_s29 + $0x20f8] sm:$0xff] }
 0x209   : > { %3576 = vmatprep.subr.mxu1 %v1282_v20  ;;  %3508 = vmatpush2.msra.mxu0 %v1215_v21  ;;  %v2299_v20 = vcombine.high %v2297_v12, %v2297_v12  ;;  %v1253_v21 = vld [vmem:[%s4910_s29 + $0x1f00] sm:$0xff] }
 0x20a   : > { %3577 = vmatpush2.msra.mxu1 %v1281_v22  ;;  %3509 = vmatprep.subr.mxu0 %v1214_v23  ;;  %v1315_v22 = vld [vmem:[%s4910_s29 + $0x20f0] sm:$0xff]  ;;  %v1314_v23 = vld [vmem:[%s4910_s29 + $0x20e8] sm:$0xff] }
 0x20b   : > { %3578 = vmatprep.subr.mxu1 %v1280_v24  ;;  %3510 = vmatpush2.msra.mxu0 %v1213_v25  ;;  %v1380_v24 = vld [vmem:[%s4910_s29 + $0x22f8] sm:$0xff]  ;;  %v1313_v25 = vld [vmem:[%s4910_s29 + $0x20e0] sm:$0xff] }
 0x20c   : > { %3579 = vmatpush2.msra.mxu1 %v1279_v26  ;;  %3511 = vmatprep.subr.mxu0 %v1212_v27  ;;  %v1379_v26 = vld [vmem:[%s4910_s29 + $0x22f0] sm:$0xff]  ;;  %v1312_v27 = vld [vmem:[%s4910_s29 + $0x20d8] sm:$0xff] }
 0x20d   : > { %3580 = vmatprep.subr.mxu1 %v1278_v28  ;;  %3512 = vmatpush2.msra.mxu0 %v1211_v29  ;;  %v1378_v28 = vld [vmem:[%s4910_s29 + $0x22e8] sm:$0xff]  ;;  %v1311_v29 = vld [vmem:[%s4910_s29 + $0x20d0] sm:$0xff] }
 0x20e   : > { %3581 = vmatpush2.msra.mxu1 %v1277_v30  ;;  %3513 = vmatprep.subr.mxu0 %v1210_v31  ;;  %v1377_v30 = vld [vmem:[%s4910_s29 + $0x22e0] sm:$0xff]  ;;  %v1310_v31 = vld [vmem:[%s4910_s29 + $0x20c8] sm:$0xff] }
 0x20f   : > { %3582 = vmatprep.subr.mxu1 %v1276_v32  ;;  %3514 = vmatpush2.msra.mxu0 %v1209_v33  ;;  %v1376_v32 = vld [vmem:[%s4910_s29 + $0x22d8] sm:$0xff]  ;;  %v1309_v33 = vld [vmem:[%s4910_s29 + $0x20c0] sm:$0xff] }
 0x210   : > { %3583 = vmatpush2.msra.mxu1 %v1275_v34  ;;  %3515 = vmatprep.subr.mxu0 %v1208_v35  ;;  %v1375_v34 = vld [vmem:[%s4910_s29 + $0x22d0] sm:$0xff]  ;;  %v1308_v35 = vld [vmem:[%s4910_s29 + $0x20b8] sm:$0xff] }
 0x211   : > { %3584 = vmatprep.subr.mxu1 %v1274_v36  ;;  %3516 = vmatpush2.msra.mxu0 %v1207_v37  ;;  %v1374_v36 = vld [vmem:[%s4910_s29 + $0x22c8] sm:$0xff]  ;;  %v1307_v37 = vld [vmem:[%s4910_s29 + $0x20b0] sm:$0xff] }
 0x212   : > { %3585 = vmatpush2.msra.mxu1 %v1273_v38  ;;  %3517 = vmatprep.subr.mxu0 %v1206_v39  ;;  %v1373_v38 = vld [vmem:[%s4910_s29 + $0x22c0] sm:$0xff]  ;;  %v1306_v39 = vld [vmem:[%s4910_s29 + $0x20a8] sm:$0xff] }
 0x213   : > { %3586 = vmatprep.subr.mxu1 %v1272_v40  ;;  %3518 = vmatpush2.msra.mxu0 %v1205_v41  ;;  %v1372_v40 = vld [vmem:[%s4910_s29 + $0x22b8] sm:$0xff]  ;;  %v1305_v41 = vld [vmem:[%s4910_s29 + $0x20a0] sm:$0xff] }
 0x214   : > { %3587 = vmatpush2.msra.mxu1 %v1271_v42  ;;  %3519 = vmatprep.subr.mxu0 %v1204_v44  ;;  %v1371_v42 = vld [vmem:[%s4910_s29 + $0x22b0] sm:$0xff]  ;;  %v1304_v44 = vld [vmem:[%s4910_s29 + $0x2098] sm:$0xff] }
 0x215   : > { %3588 = vmatprep.subr.mxu1 %v1270_v45  ;;  %3520 = vmatpush2.msra.mxu0 %v1203_v46  ;;  %v1370_v45 = vld [vmem:[%s4910_s29 + $0x22a8] sm:$0xff]  ;;  %v1303_v46 = vld [vmem:[%s4910_s29 + $0x2090] sm:$0xff] }
 0x216   : > { %3589 = vmatpush2.msra.mxu1 %v1269_v47  ;;  %3521 = vmatprep.subr.mxu0 %v1202_v48  ;;  %v1369_v47 = vld [vmem:[%s4910_s29 + $0x22a0] sm:$0xff]  ;;  %v1302_v48 = vld [vmem:[%s4910_s29 + $0x2088] sm:$0xff] }
 0x217   : > { %3590 = vmatprep.subr.mxu1 %v1268_v49  ;;  %3522 = vmatpush2.msra.mxu0 %v1201_v50  ;;  %v1368_v49 = vld [vmem:[%s4910_s29 + $0x2298] sm:$0xff]  ;;  %v1301_v50 = vld [vmem:[%s4910_s29 + $0x2080] sm:$0xff] }
 0x218   : > { %3591 = vmatpush2.msra.mxu1 %v1267_v51  ;;  %3523 = vmatprep.subr.mxu0 %v1200_v52  ;;  %v1367_v51 = vld [vmem:[%s4910_s29 + $0x2290] sm:$0xff]  ;;  %v1300_v52 = vld [vmem:[%s4910_s29 + $0x2078] sm:$0xff] }
 0x219   : > { %3592 = vmatprep.subr.mxu1 %v1266_v54  ;;  %3524 = vmatpush2.msra.mxu0 %v1199_v55  ;;  %v1366_v54 = vld [vmem:[%s4910_s29 + $0x2288] sm:$0xff]  ;;  %v1299_v55 = vld [vmem:[%s4910_s29 + $0x2070] sm:$0xff] }
 0x21a   : > { %3593 = vmatpush2.msra.mxu1 %v1265_v56  ;;  %3525 = vmatprep.subr.mxu0 %v1198_v57  ;;  %v1365_v56 = vld [vmem:[%s4910_s29 + $0x2280] sm:$0xff]  ;;  %v1298_v57 = vld [vmem:[%s4910_s29 + $0x2068] sm:$0xff] }
 0x21b   : > { %3594 = vmatprep.subr.mxu1 %v1264_v58  ;;  %3526 = vmatpush2.msra.mxu0 %v1197_v60  ;;  %v1364_v58 = vld [vmem:[%s4910_s29 + $0x2278] sm:$0xff]  ;;  %v1363_v60 = vld [vmem:[%s4910_s29 + $0x2270] sm:$0xff] }
 0x21c   : > { %3595 = vmatpush2.msra.mxu1 %v1263_v61  ;;  %3527 = vmatprep.subr.mxu0 %v1196_v62  ;;  %v1296_v61 = vld [vmem:[%s4910_s29 + $0x2058] sm:$0xff]  ;;  %v1362_v62 = vld [vmem:[%s4910_s29 + $0x2268] sm:$0xff] }
 0x21d   : > { %3596 = vmatprep.subr.mxu1 %v1262_v63  ;;  %3528 = vmatpush2.msra.mxu0 %v1195_v0  ;;  %v1295_v63 = vld [vmem:[%s4910_s29 + $0x2050] sm:$0xff]  ;;  %v1361_v0 = vld [vmem:[%s4910_s29 + $0x2260] sm:$0xff] }
 0x21e   : > { %3597 = vmatpush2.msra.mxu1 %v1261_v1  ;;  %3529 = vmatprep.subr.mxu0 %v1194_v3  ;;  %v1294_v1 = vld [vmem:[%s4910_s29 + $0x2048] sm:$0xff]  ;;  %v1293_v3 = vld [vmem:[%s4910_s29 + $0x2040] sm:$0xff] }
 0x21f   : > { %3598 = vmatprep.subr.mxu1 %v1260_v4  ;;  %3530 = vmatpush2.msra.mxu0 %v1193_v6  ;;  %v1359_v4 = vld [vmem:[%s4910_s29 + $0x2250] sm:$0xff]  ;;  %v1358_v6 = vld [vmem:[%s4910_s29 + $0x2248] sm:$0xff] }
 0x220   : > { %3599 = vmatpush2.msra.mxu1 %v1259_v7  ;;  %3531 = vmatprep.subr.mxu0 %v1192_v8  ;;  %v1291_v7 = vld [vmem:[%s4910_s29 + $0x2030] sm:$0xff]  ;;  %v1357_v8 = vld [vmem:[%s4910_s29 + $0x2240] sm:$0xff] }
 0x221   : > { %3600 = vmatprep.subr.mxu1 %v1258_v9  ;;  %3532 = vmatpush2.msra.mxu0 %v1191_v10  ;;  %v1290_v9 = vld [vmem:[%s4910_s29 + $0x2028] sm:$0xff]  ;;  %v1356_v10 = vld [vmem:[%s4910_s29 + $0x2238] sm:$0xff] }
 0x222   : > { %3601 = vmatpush2.msra.mxu1 %v1257_v11  ;;  %3533 = vmatprep.subr.mxu0 %v1190_v13  ;;  %v1289_v11 = vld [vmem:[%s4910_s29 + $0x2020] sm:$0xff]  ;;  %v1288_v13 = vld [vmem:[%s4910_s29 + $0x2018] sm:$0xff] }
 0x223   : > { %3602 = vmatprep.subr.mxu1 %v1256_v14  ;;  %3534 = vmatpush2.msra.mxu0 %v1189_v16  ;;  %v1354_v14 = vld [vmem:[%s4910_s29 + $0x2228] sm:$0xff]  ;;  %v1353_v16 = vld [vmem:[%s4910_s29 + $0x2220] sm:$0xff] }
 0x224   : > { %3535 = vmatprep.mubr.f32.mxu0 %v2298_v15  ;;  %3603 = vmatpush2.msra.mxu1 %v1255_v17  ;;  %v1287_v15 = vld [vmem:[%s4910_s29 + $0x2010] sm:$0xff]  ;;  %v1286_v17 = vld [vmem:[%s4910_s29 + $0x2008] sm:$0xff] }
 0x225   : > { %3536 = vmatmul.mubr.f32.vlgmr.msra.gmra.mxu0 %v2290_v5  ;;  %3604 = vmatprep.subr.mxu1 %v1254_v18  ;;  %v1292_v5 = vld [vmem:[%s4910_s29 + $0x2038] sm:$0xff] }
 0x226   : > { %3613 = vmatprep.subr.mxu0 %v1316_v19  ;;  %3605 = vmatpush2.msra.mxu1 %v1253_v21  ;;  %v1352_v18 = vld [vmem:[%s4910_s29 + $0x2218] sm:$0xff]  ;;  %v1285_v19 = vld [vmem:[%s4910_s29 + $0x2000] sm:$0xff] }
 0x227   : > { %3606 = vmatprep.mubr.f32.mxu1 %v2299_v20  ;;  %3614 = vmatpush1.msra.mxu0 %v1315_v22  ;;  %v1351_v20 = vld [vmem:[%s4910_s29 + $0x2210] sm:$0xff]  ;;  %v1348_v21 = vld [vmem:[%s4910_s29 + $0x21f8] sm:$0xff]  ;;  %v1350_v22 = vld [vmem:[%s4910_s29 + $0x2208] sm:$0xff] }
 0x228   : > { %3607 = vmatmul.mubr.f32.vlgmr.msra.gmra.mxu1 %v2297_v12  ;;  %3615 = vmatprep.subr.mxu0 %v1314_v23  ;;  %v1355_v12 = vld [vmem:[%s4910_s29 + $0x2230] sm:$0xff] }
 0x229   : > { %3684 = vmatprep.subr.mxu1 %v1380_v24  ;;  %3616 = vmatpush1.msra.mxu0 %v1313_v25  ;;  %v1347_v23 = vld [vmem:[%s4910_s29 + $0x21f0] sm:$0xff]  ;;  %v1349_v24 = vld [vmem:[%s4910_s29 + $0x2200] sm:$0xff]  ;;  %v1346_v25 = vld [vmem:[%s4910_s29 + $0x21e8] sm:$0xff] }
 0x22a   : > { %3685 = vmatpush1.msra.mxu1 %v1379_v26  ;;  %3617 = vmatprep.subr.mxu0 %v1312_v27  ;;  %v1412_v26 = vld [vmem:[%s4910_s29 + $0x23f8] sm:$0xff]  ;;  %v1345_v27 = vld [vmem:[%s4910_s29 + $0x21e0] sm:$0xff] }
 0x22b   : > { %3686 = vmatprep.subr.mxu1 %v1378_v28  ;;  %3618 = vmatpush1.msra.mxu0 %v1311_v29  ;;  %v1411_v28 = vld [vmem:[%s4910_s29 + $0x23f0] sm:$0xff]  ;;  %v1344_v29 = vld [vmem:[%s4910_s29 + $0x21d8] sm:$0xff] }
 0x22c   : > { %3687 = vmatpush1.msra.mxu1 %v1377_v30  ;;  %3619 = vmatprep.subr.mxu0 %v1310_v31  ;;  %v1410_v30 = vld [vmem:[%s4910_s29 + $0x23e8] sm:$0xff]  ;;  %v1343_v31 = vld [vmem:[%s4910_s29 + $0x21d0] sm:$0xff] }
 0x22d   : > { %3688 = vmatprep.subr.mxu1 %v1376_v32  ;;  %3620 = vmatpush1.msra.mxu0 %v1309_v33  ;;  %v1409_v32 = vld [vmem:[%s4910_s29 + $0x23e0] sm:$0xff]  ;;  %v1342_v33 = vld [vmem:[%s4910_s29 + $0x21c8] sm:$0xff] }
 0x22e   : > { %3689 = vmatpush1.msra.mxu1 %v1375_v34  ;;  %3621 = vmatprep.subr.mxu0 %v1308_v35  ;;  %v1408_v34 = vld [vmem:[%s4910_s29 + $0x23d8] sm:$0xff]  ;;  %v1341_v35 = vld [vmem:[%s4910_s29 + $0x21c0] sm:$0xff] }
 0x22f   : > { %3690 = vmatprep.subr.mxu1 %v1374_v36  ;;  %3622 = vmatpush1.msra.mxu0 %v1307_v37  ;;  %v1407_v36 = vld [vmem:[%s4910_s29 + $0x23d0] sm:$0xff]  ;;  %v1340_v37 = vld [vmem:[%s4910_s29 + $0x21b8] sm:$0xff] }
 0x230   : > { %3691 = vmatpush1.msra.mxu1 %v1373_v38  ;;  %3623 = vmatprep.subr.mxu0 %v1306_v39  ;;  %v1406_v38 = vld [vmem:[%s4910_s29 + $0x23c8] sm:$0xff]  ;;  %v1339_v39 = vld [vmem:[%s4910_s29 + $0x21b0] sm:$0xff] }
 0x231   : > { %3692 = vmatprep.subr.mxu1 %v1372_v40  ;;  %3624 = vmatpush1.msra.mxu0 %v1305_v41  ;;  %v1405_v40 = vld [vmem:[%s4910_s29 + $0x23c0] sm:$0xff]  ;;  %v1338_v41 = vld [vmem:[%s4910_s29 + $0x21a8] sm:$0xff] }
 0x232   : > { %3693 = vmatpush1.msra.mxu1 %v1371_v42  ;;  %3625 = vmatprep.subr.mxu0 %v1304_v44  ;;  %v1404_v42 = vld [vmem:[%s4910_s29 + $0x23b8] sm:$0xff]  ;;  %v1337_v44 = vld [vmem:[%s4910_s29 + $0x21a0] sm:$0xff] }
 0x233   : > { %3694 = vmatprep.subr.mxu1 %v1370_v45  ;;  %3626 = vmatpush1.msra.mxu0 %v1303_v46  ;;  %v1403_v45 = vld [vmem:[%s4910_s29 + $0x23b0] sm:$0xff]  ;;  %v1336_v46 = vld [vmem:[%s4910_s29 + $0x2198] sm:$0xff] }
 0x234   : > { %3695 = vmatpush1.msra.mxu1 %v1369_v47  ;;  %3627 = vmatprep.subr.mxu0 %v1302_v48  ;;  %v1402_v47 = vld [vmem:[%s4910_s29 + $0x23a8] sm:$0xff]  ;;  %v1335_v48 = vld [vmem:[%s4910_s29 + $0x2190] sm:$0xff] }
 0x235   : > { %3696 = vmatprep.subr.mxu1 %v1368_v49  ;;  %3628 = vmatpush1.msra.mxu0 %v1301_v50  ;;  %v1401_v49 = vld [vmem:[%s4910_s29 + $0x23a0] sm:$0xff]  ;;  %v1334_v50 = vld [vmem:[%s4910_s29 + $0x2188] sm:$0xff] }
 0x236   : > { %3697 = vmatpush1.msra.mxu1 %v1367_v51  ;;  %3629 = vmatprep.subr.mxu0 %v1300_v52  ;;  %v1400_v51 = vld [vmem:[%s4910_s29 + $0x2398] sm:$0xff]  ;;  %v1333_v52 = vld [vmem:[%s4910_s29 + $0x2180] sm:$0xff] }
 0x237   : > { %3698 = vmatprep.subr.mxu1 %v1366_v54  ;;  %3630 = vmatpush1.msra.mxu0 %v1299_v55  ;;  %v1399_v54 = vld [vmem:[%s4910_s29 + $0x2390] sm:$0xff]  ;;  %v1332_v55 = vld [vmem:[%s4910_s29 + $0x2178] sm:$0xff] }
 0x238   : > { %3699 = vmatpush1.msra.mxu1 %v1365_v56  ;;  %3631 = vmatprep.subr.mxu0 %v1298_v57  ;;  %v1398_v56 = vld [vmem:[%s4910_s29 + $0x2388] sm:$0xff]  ;;  %v1331_v57 = vld [vmem:[%s4910_s29 + $0x2170] sm:$0xff] }
 0x239   : > { %3700 = vmatprep.subr.mxu1 %v1364_v58  ;;  %3632 = vmatpush1.msra.mxu0 %v1297_v59  ;;  %v1397_v58 = vld [vmem:[%s4910_s29 + $0x2380] sm:$0xff]  ;;  %v1330_v59 = vld [vmem:[%s4910_s29 + $0x2168] sm:$0xff] }
 0x23a   : > { %3701 = vmatpush1.msra.mxu1 %v1363_v60  ;;  %3633 = vmatprep.subr.mxu0 %v1296_v61  ;;  %v1396_v60 = vld [vmem:[%s4910_s29 + $0x2378] sm:$0xff]  ;;  %v1329_v61 = vld [vmem:[%s4910_s29 + $0x2160] sm:$0xff] }
 0x23b   : > { %3702 = vmatprep.subr.mxu1 %v1362_v62  ;;  %3634 = vmatpush1.msra.mxu0 %v1295_v63  ;;  %v1395_v62 = vld [vmem:[%s4910_s29 + $0x2370] sm:$0xff]  ;;  %v1328_v63 = vld [vmem:[%s4910_s29 + $0x2158] sm:$0xff] }
 0x23c   : > { %3703 = vmatpush1.msra.mxu1 %v1361_v0  ;;  %3635 = vmatprep.subr.mxu0 %v1294_v1  ;;  %v1394_v0 = vld [vmem:[%s4910_s29 + $0x2368] sm:$0xff]  ;;  %v1327_v1 = vld [vmem:[%s4910_s29 + $0x2150] sm:$0xff] }
 0x23d   : > { %3704 = vmatprep.subr.mxu1 %v1360_v2  ;;  %3636 = vmatpush1.msra.mxu0 %v1293_v3  ;;  %v1393_v2 = vld [vmem:[%s4910_s29 + $0x2360] sm:$0xff]  ;;  %v1326_v3 = vld [vmem:[%s4910_s29 + $0x2148] sm:$0xff] }
 0x23e   : > { %3705 = vmatpush1.msra.mxu1 %v1359_v4  ;;  %3637 = vmatprep.subr.mxu0 %v1292_v5  ;;  %v1392_v4 = vld [vmem:[%s4910_s29 + $0x2358] sm:$0xff]  ;;  %v254_v5 = vld [vmem:[%s4905_s25 + $0x40] sm:$0xff] }
 0x23f   : > { %3706 = vmatprep.subr.mxu1 %v1358_v6  ;;  %3638 = vmatpush1.msra.mxu0 %v1291_v7  ;;  %v1325_v6 = vld [vmem:[%s4910_s29 + $0x2140] sm:$0xff]  ;;  %v1391_v7 = vld [vmem:[%s4910_s29 + $0x2350] sm:$0xff] }
 0x240   : > { %3707 = vmatpush1.msra.mxu1 %v1357_v8  ;;  %3639 = vmatprep.subr.mxu0 %v1290_v9  ;;  %v1324_v8 = vld [vmem:[%s4910_s29 + $0x2138] sm:$0xff]  ;;  %v1390_v9 = vld [vmem:[%s4910_s29 + $0x2348] sm:$0xff] }
 0x241   : > { %3708 = vmatprep.subr.mxu1 %v1356_v10  ;;  %3640 = vmatpush1.msra.mxu0 %v1289_v11  ;;  %v1323_v10 = vld [vmem:[%s4910_s29 + $0x2130] sm:$0xff]  ;;  %v1389_v11 = vld [vmem:[%s4910_s29 + $0x2340] sm:$0xff] }
 0x242   : > { %3709 = vmatpush1.msra.mxu1 %v1355_v12  ;;  %3641 = vmatprep.subr.mxu0 %v1288_v13  ;;  %v2300_v12 = vcombine.high %v254_v5, %v254_v5  ;;  %v1322_v13 = vld [vmem:[%s4910_s29 + $0x2128] sm:$0xff] }
 0x243   : > { %3710 = vmatprep.subr.mxu1 %v1354_v14  ;;  %3642 = vmatpush1.msra.mxu0 %v1287_v15  ;;  %v1388_v14 = vld [vmem:[%s4910_s29 + $0x2338] sm:$0xff]  ;;  %v2307_v15 = vrot.slane %v254_v5, %v5027_v53  ;;  %v1425_v5 = vld [vmem:[%s4910_s29 + $0x2460] sm:$0xff] }
 0x244   : > { %3711 = vmatpush1.msra.mxu1 %v1353_v16  ;;  %3643 = vmatprep.subr.mxu0 %v1286_v17  ;;  %v1321_v16 = vld [vmem:[%s4910_s29 + $0x2120] sm:$0xff]  ;;  %v1387_v17 = vld [vmem:[%s4910_s29 + $0x2330] sm:$0xff] }
 0x245   : > { %3712 = vmatprep.subr.mxu1 %v1352_v18  ;;  %3644 = vmatpush1.msra.mxu0 %v1285_v19  ;;  %v1320_v18 = vld [vmem:[%s4910_s29 + $0x2118] sm:$0xff]  ;;  %v1386_v19 = vld [vmem:[%s4910_s29 + $0x2328] sm:$0xff] }
 0x246   : > { %3713 = vmatpush1.msra.mxu1 %v1351_v20  ;;  %3645 = vmatprep.subr.mxu0 %v1348_v21  ;;  %v1319_v20 = vld [vmem:[%s4910_s29 + $0x2110] sm:$0xff]  ;;  %v1385_v21 = vld [vmem:[%s4910_s29 + $0x2320] sm:$0xff] }
 0x247   : > { %3714 = vmatprep.subr.mxu1 %v1350_v22  ;;  %3646 = vmatpush2.msra.mxu0 %v1347_v23  ;;  %v2314_v22 = vrot.slane %v2300_v12, %v5027_v53  ;;  %v1318_v23 = vld [vmem:[%s4910_s29 + $0x2108] sm:$0xff]  ;;  %v1488_v12 = vld [vmem:[%s4910_s29 + $0x2658] sm:$0xff] }
 0x248   : > { %3715 = vmatpush1.msra.mxu1 %v1349_v24  ;;  %3647 = vmatprep.subr.mxu0 %v1346_v25  ;;  %v1384_v24 = vld [vmem:[%s4910_s29 + $0x2318] sm:$0xff]  ;;  %v2315_v25 = vcombine.high %v2307_v15, %v2307_v15 }
 0x249   : > { %3716 = vmatprep.subr.mxu1 %v1412_v26  ;;  %3648 = vmatpush2.msra.mxu0 %v1345_v27  ;;  %v1317_v26 = vld [vmem:[%s4910_s29 + $0x2100] sm:$0xff]  ;;  %v1383_v27 = vld [vmem:[%s4910_s29 + $0x2310] sm:$0xff] }
 0x24a   : > { %3717 = vmatpush2.msra.mxu1 %v1411_v28  ;;  %3649 = vmatprep.subr.mxu0 %v1344_v29  ;;  %v1382_v28 = vld [vmem:[%s4910_s29 + $0x2308] sm:$0xff]  ;;  %v1444_v29 = vld [vmem:[%s4910_s29 + $0x24f8] sm:$0xff] }
 0x24b   : > { %3718 = vmatprep.subr.mxu1 %v1410_v30  ;;  %3650 = vmatpush2.msra.mxu0 %v1343_v31  ;;  %v2316_v30 = vcombine.high %v2314_v22, %v2314_v22  ;;  %v1381_v31 = vld [vmem:[%s4910_s29 + $0x2300] sm:$0xff] }
 0x24c   : > { %3719 = vmatpush2.msra.mxu1 %v1409_v32  ;;  %3651 = vmatprep.subr.mxu0 %v1342_v33  ;;  %v1443_v32 = vld [vmem:[%s4910_s29 + $0x24f0] sm:$0xff]  ;;  %v1442_v33 = vld [vmem:[%s4910_s29 + $0x24e8] sm:$0xff] }
 0x24d   : > { %3720 = vmatprep.subr.mxu1 %v1408_v34  ;;  %3652 = vmatpush2.msra.mxu0 %v1341_v35  ;;  %v1508_v34 = vld [vmem:[%s4910_s29 + $0x26f8] sm:$0xff]  ;;  %v1441_v35 = vld [vmem:[%s4910_s29 + $0x24e0] sm:$0xff] }
 0x24e   : > { %3721 = vmatpush2.msra.mxu1 %v1407_v36  ;;  %3653 = vmatprep.subr.mxu0 %v1340_v37  ;;  %v1507_v36 = vld [vmem:[%s4910_s29 + $0x26f0] sm:$0xff]  ;;  %v1440_v37 = vld [vmem:[%s4910_s29 + $0x24d8] sm:$0xff] }
 0x24f   : > { %3722 = vmatprep.subr.mxu1 %v1406_v38  ;;  %3654 = vmatpush2.msra.mxu0 %v1339_v39  ;;  %v1506_v38 = vld [vmem:[%s4910_s29 + $0x26e8] sm:$0xff]  ;;  %v1439_v39 = vld [vmem:[%s4910_s29 + $0x24d0] sm:$0xff] }
 0x250   : > { %3723 = vmatpush2.msra.mxu1 %v1405_v40  ;;  %3655 = vmatprep.subr.mxu0 %v1338_v41  ;;  %v1505_v40 = vld [vmem:[%s4910_s29 + $0x26e0] sm:$0xff]  ;;  %v1438_v41 = vld [vmem:[%s4910_s29 + $0x24c8] sm:$0xff] }
 0x251   : > { %3724 = vmatprep.subr.mxu1 %v1404_v42  ;;  %3656 = vmatpush2.msra.mxu0 %v1337_v44  ;;  %v1504_v42 = vld [vmem:[%s4910_s29 + $0x26d8] sm:$0xff]  ;;  %v1437_v44 = vld [vmem:[%s4910_s29 + $0x24c0] sm:$0xff] }
 0x252   : > { %3725 = vmatpush2.msra.mxu1 %v1403_v45  ;;  %3657 = vmatprep.subr.mxu0 %v1336_v46  ;;  %v1503_v45 = vld [vmem:[%s4910_s29 + $0x26d0] sm:$0xff]  ;;  %v1436_v46 = vld [vmem:[%s4910_s29 + $0x24b8] sm:$0xff] }
 0x253   : > { %3726 = vmatprep.subr.mxu1 %v1402_v47  ;;  %3658 = vmatpush2.msra.mxu0 %v1335_v48  ;;  %v1502_v47 = vld [vmem:[%s4910_s29 + $0x26c8] sm:$0xff]  ;;  %v1435_v48 = vld [vmem:[%s4910_s29 + $0x24b0] sm:$0xff] }
 0x254   : > { %3727 = vmatpush2.msra.mxu1 %v1401_v49  ;;  %3659 = vmatprep.subr.mxu0 %v1334_v50  ;;  %v1501_v49 = vld [vmem:[%s4910_s29 + $0x26c0] sm:$0xff]  ;;  %v1434_v50 = vld [vmem:[%s4910_s29 + $0x24a8] sm:$0xff] }
 0x255   : > { %3728 = vmatprep.subr.mxu1 %v1400_v51  ;;  %3660 = vmatpush2.msra.mxu0 %v1333_v52  ;;  %v1500_v51 = vld [vmem:[%s4910_s29 + $0x26b8] sm:$0xff]  ;;  %v1433_v52 = vld [vmem:[%s4910_s29 + $0x24a0] sm:$0xff] }
 0x256   : > { %3729 = vmatpush2.msra.mxu1 %v1399_v54  ;;  %3661 = vmatprep.subr.mxu0 %v1332_v55  ;;  %v1499_v54 = vld [vmem:[%s4910_s29 + $0x26b0] sm:$0xff]  ;;  %v1432_v55 = vld [vmem:[%s4910_s29 + $0x2498] sm:$0xff] }
 0x257   : > { %3730 = vmatprep.subr.mxu1 %v1398_v56  ;;  %3662 = vmatpush2.msra.mxu0 %v1331_v57  ;;  %v1498_v56 = vld [vmem:[%s4910_s29 + $0x26a8] sm:$0xff]  ;;  %v1431_v57 = vld [vmem:[%s4910_s29 + $0x2490] sm:$0xff] }
 0x258   : > { %3731 = vmatpush2.msra.mxu1 %v1397_v58  ;;  %3663 = vmatprep.subr.mxu0 %v1330_v59  ;;  %v1497_v58 = vld [vmem:[%s4910_s29 + $0x26a0] sm:$0xff]  ;;  %v1430_v59 = vld [vmem:[%s4910_s29 + $0x2488] sm:$0xff] }
 0x259   : > { %3732 = vmatprep.subr.mxu1 %v1396_v60  ;;  %3664 = vmatpush2.msra.mxu0 %v1329_v61  ;;  %v1496_v60 = vld [vmem:[%s4910_s29 + $0x2698] sm:$0xff]  ;;  %v1429_v61 = vld [vmem:[%s4910_s29 + $0x2480] sm:$0xff] }
 0x25a   : > { %3733 = vmatpush2.msra.mxu1 %v1395_v62  ;;  %3665 = vmatprep.subr.mxu0 %v1328_v63  ;;  %v1495_v62 = vld [vmem:[%s4910_s29 + $0x2690] sm:$0xff]  ;;  %v1428_v63 = vld [vmem:[%s4910_s29 + $0x2478] sm:$0xff] }
 0x25b   : > { %3734 = vmatprep.subr.mxu1 %v1394_v0  ;;  %3666 = vmatpush2.msra.mxu0 %v1327_v1  ;;  %v1494_v0 = vld [vmem:[%s4910_s29 + $0x2688] sm:$0xff]  ;;  %v1427_v1 = vld [vmem:[%s4910_s29 + $0x2470] sm:$0xff] }
 0x25c   : > { %3735 = vmatpush2.msra.mxu1 %v1393_v2  ;;  %3667 = vmatprep.subr.mxu0 %v1326_v3  ;;  %v1493_v2 = vld [vmem:[%s4910_s29 + $0x2680] sm:$0xff]  ;;  %v1426_v3 = vld [vmem:[%s4910_s29 + $0x2468] sm:$0xff] }
 0x25d   : > { %3736 = vmatprep.subr.mxu1 %v1392_v4  ;;  %3668 = vmatpush2.msra.mxu0 %v1325_v6  ;;  %v1492_v4 = vld [vmem:[%s4910_s29 + $0x2678] sm:$0xff]  ;;  %v1491_v6 = vld [vmem:[%s4910_s29 + $0x2670] sm:$0xff] }
 0x25e   : > { %3737 = vmatpush2.msra.mxu1 %v1391_v7  ;;  %3669 = vmatprep.subr.mxu0 %v1324_v8  ;;  %v1424_v7 = vld [vmem:[%s4910_s29 + $0x2458] sm:$0xff]  ;;  %v1490_v8 = vld [vmem:[%s4910_s29 + $0x2668] sm:$0xff] }
 0x25f   : > { %3738 = vmatprep.subr.mxu1 %v1390_v9  ;;  %3670 = vmatpush2.msra.mxu0 %v1323_v10  ;;  %v1423_v9 = vld [vmem:[%s4910_s29 + $0x2450] sm:$0xff]  ;;  %v1489_v10 = vld [vmem:[%s4910_s29 + $0x2660] sm:$0xff] }
 0x260   : > { %3739 = vmatpush2.msra.mxu1 %v1389_v11  ;;  %3671 = vmatprep.subr.mxu0 %v1322_v13  ;;  %v1422_v11 = vld [vmem:[%s4910_s29 + $0x2448] sm:$0xff]  ;;  %v1421_v13 = vld [vmem:[%s4910_s29 + $0x2440] sm:$0xff] }
 0x261   : > { %3740 = vmatprep.subr.mxu1 %v1388_v14  ;;  %3672 = vmatpush2.msra.mxu0 %v1321_v16  ;;  %v1487_v14 = vld [vmem:[%s4910_s29 + $0x2650] sm:$0xff]  ;;  %v1486_v16 = vld [vmem:[%s4910_s29 + $0x2648] sm:$0xff] }
 0x262   : > { %3741 = vmatpush2.msra.mxu1 %v1387_v17  ;;  %3673 = vmatprep.subr.mxu0 %v1320_v18  ;;  %v1419_v17 = vld [vmem:[%s4910_s29 + $0x2430] sm:$0xff]  ;;  %v1485_v18 = vld [vmem:[%s4910_s29 + $0x2640] sm:$0xff] }
 0x263   : > { %3742 = vmatprep.subr.mxu1 %v1386_v19  ;;  %3674 = vmatpush2.msra.mxu0 %v1319_v20  ;;  %v1418_v19 = vld [vmem:[%s4910_s29 + $0x2428] sm:$0xff]  ;;  %v1484_v20 = vld [vmem:[%s4910_s29 + $0x2638] sm:$0xff] }
 0x264   : > { %3743 = vmatpush2.msra.mxu1 %v1385_v21  ;;  %3675 = vmatprep.subr.mxu0 %v1318_v23  ;;  %v1417_v21 = vld [vmem:[%s4910_s29 + $0x2420] sm:$0xff]  ;;  %v1416_v23 = vld [vmem:[%s4910_s29 + $0x2418] sm:$0xff] }
 0x265   : > { %3744 = vmatprep.subr.mxu1 %v1384_v24  ;;  %3676 = vmatpush2.msra.mxu0 %v1317_v26  ;;  %v1482_v24 = vld [vmem:[%s4910_s29 + $0x2628] sm:$0xff]  ;;  %v1481_v26 = vld [vmem:[%s4910_s29 + $0x2620] sm:$0xff] }
 0x266   : > { %3677 = vmatprep.mubr.f32.mxu0 %v2315_v25  ;;  %3745 = vmatpush2.msra.mxu1 %v1383_v27  ;;  %v1415_v25 = vld [vmem:[%s4910_s29 + $0x2410] sm:$0xff]  ;;  %v1414_v27 = vld [vmem:[%s4910_s29 + $0x2408] sm:$0xff] }
 0x267   : > { %3678 = vmatmul.mubr.f32.vlgmr.msra.gmra.mxu0 %v2307_v15  ;;  %3746 = vmatprep.subr.mxu1 %v1382_v28  ;;  %v1420_v15 = vld [vmem:[%s4910_s29 + $0x2438] sm:$0xff] }
 0x268   : > { %3755 = vmatprep.subr.mxu0 %v1444_v29  ;;  %3747 = vmatpush2.msra.mxu1 %v1381_v31  ;;  %v1480_v28 = vld [vmem:[%s4910_s29 + $0x2618] sm:$0xff]  ;;  %v1413_v29 = vld [vmem:[%s4910_s29 + $0x2400] sm:$0xff] }
 0x269   : > { %3748 = vmatprep.mubr.f32.mxu1 %v2316_v30  ;;  %3756 = vmatpush1.msra.mxu0 %v1443_v32  ;;  %v1479_v30 = vld [vmem:[%s4910_s29 + $0x2610] sm:$0xff]  ;;  %v1476_v31 = vld [vmem:[%s4910_s29 + $0x25f8] sm:$0xff]  ;;  %v1478_v32 = vld [vmem:[%s4910_s29 + $0x2608] sm:$0xff] }
 0x26a   : > { %3749 = vmatmul.mubr.f32.vlgmr.msra.gmra.mxu1 %v2314_v22  ;;  %3757 = vmatprep.subr.mxu0 %v1442_v33  ;;  %v1483_v22 = vld [vmem:[%s4910_s29 + $0x2630] sm:$0xff] }
 0x26b   : > { %3826 = vmatprep.subr.mxu1 %v1508_v34  ;;  %3758 = vmatpush1.msra.mxu0 %v1441_v35  ;;  %v1475_v33 = vld [vmem:[%s4910_s29 + $0x25f0] sm:$0xff]  ;;  %v1477_v34 = vld [vmem:[%s4910_s29 + $0x2600] sm:$0xff]  ;;  %v1474_v35 = vld [vmem:[%s4910_s29 + $0x25e8] sm:$0xff] }
 0x26c   : > { %3827 = vmatpush1.msra.mxu1 %v1507_v36  ;;  %3759 = vmatprep.subr.mxu0 %v1440_v37  ;;  %v1540_v36 = vld [vmem:[%s4910_s29 + $0x27f8] sm:$0xff]  ;;  %v1473_v37 = vld [vmem:[%s4910_s29 + $0x25e0] sm:$0xff] }
 0x26d   : > { %3828 = vmatprep.subr.mxu1 %v1506_v38  ;;  %3760 = vmatpush1.msra.mxu0 %v1439_v39  ;;  %v1539_v38 = vld [vmem:[%s4910_s29 + $0x27f0] sm:$0xff]  ;;  %v1472_v39 = vld [vmem:[%s4910_s29 + $0x25d8] sm:$0xff] }
 0x26e   : > { %3829 = vmatpush1.msra.mxu1 %v1505_v40  ;;  %3761 = vmatprep.subr.mxu0 %v1438_v41  ;;  %v1538_v40 = vld [vmem:[%s4910_s29 + $0x27e8] sm:$0xff]  ;;  %v1471_v41 = vld [vmem:[%s4910_s29 + $0x25d0] sm:$0xff] }
 0x26f   : > { %3830 = vmatprep.subr.mxu1 %v1504_v42  ;;  %3762 = vmatpush1.msra.mxu0 %v1437_v44  ;;  %v1537_v42 = vld [vmem:[%s4910_s29 + $0x27e0] sm:$0xff]  ;;  %v1470_v44 = vld [vmem:[%s4910_s29 + $0x25c8] sm:$0xff] }
 0x270   : > { %3831 = vmatpush1.msra.mxu1 %v1503_v45  ;;  %3763 = vmatprep.subr.mxu0 %v1436_v46  ;;  %v1536_v45 = vld [vmem:[%s4910_s29 + $0x27d8] sm:$0xff]  ;;  %v1469_v46 = vld [vmem:[%s4910_s29 + $0x25c0] sm:$0xff] }
 0x271   : > { %3832 = vmatprep.subr.mxu1 %v1502_v47  ;;  %3764 = vmatpush1.msra.mxu0 %v1435_v48  ;;  %v1535_v47 = vld [vmem:[%s4910_s29 + $0x27d0] sm:$0xff]  ;;  %v1468_v48 = vld [vmem:[%s4910_s29 + $0x25b8] sm:$0xff] }
 0x272   : > { %3833 = vmatpush1.msra.mxu1 %v1501_v49  ;;  %3765 = vmatprep.subr.mxu0 %v1434_v50  ;;  %v1534_v49 = vld [vmem:[%s4910_s29 + $0x27c8] sm:$0xff]  ;;  %v1467_v50 = vld [vmem:[%s4910_s29 + $0x25b0] sm:$0xff] }
 0x273   : > { %3834 = vmatprep.subr.mxu1 %v1500_v51  ;;  %3766 = vmatpush1.msra.mxu0 %v1433_v52  ;;  %v1533_v51 = vld [vmem:[%s4910_s29 + $0x27c0] sm:$0xff]  ;;  %v1466_v52 = vld [vmem:[%s4910_s29 + $0x25a8] sm:$0xff] }
 0x274   : > { %3835 = vmatpush1.msra.mxu1 %v1499_v54  ;;  %3767 = vmatprep.subr.mxu0 %v1432_v55  ;;  %v1532_v54 = vld [vmem:[%s4910_s29 + $0x27b8] sm:$0xff]  ;;  %v1465_v55 = vld [vmem:[%s4910_s29 + $0x25a0] sm:$0xff] }
 0x275   : > { %3836 = vmatprep.subr.mxu1 %v1498_v56  ;;  %3768 = vmatpush1.msra.mxu0 %v1431_v57  ;;  %v1531_v56 = vld [vmem:[%s4910_s29 + $0x27b0] sm:$0xff]  ;;  %v1464_v57 = vld [vmem:[%s4910_s29 + $0x2598] sm:$0xff] }
 0x276   : > { %3837 = vmatpush1.msra.mxu1 %v1497_v58  ;;  %3769 = vmatprep.subr.mxu0 %v1430_v59  ;;  %v1530_v58 = vld [vmem:[%s4910_s29 + $0x27a8] sm:$0xff]  ;;  %v1463_v59 = vld [vmem:[%s4910_s29 + $0x2590] sm:$0xff] }
 0x277   : > { %3838 = vmatprep.subr.mxu1 %v1496_v60  ;;  %3770 = vmatpush1.msra.mxu0 %v1429_v61  ;;  %v1529_v60 = vld [vmem:[%s4910_s29 + $0x27a0] sm:$0xff]  ;;  %v1462_v61 = vld [vmem:[%s4910_s29 + $0x2588] sm:$0xff] }
 0x278   : > { %3839 = vmatpush1.msra.mxu1 %v1495_v62  ;;  %3771 = vmatprep.subr.mxu0 %v1428_v63  ;;  %v1528_v62 = vld [vmem:[%s4910_s29 + $0x2798] sm:$0xff]  ;;  %v1461_v63 = vld [vmem:[%s4910_s29 + $0x2580] sm:$0xff] }
 0x279   : > { %3840 = vmatprep.subr.mxu1 %v1494_v0  ;;  %3772 = vmatpush1.msra.mxu0 %v1427_v1  ;;  %v1527_v0 = vld [vmem:[%s4910_s29 + $0x2790] sm:$0xff]  ;;  %v1460_v1 = vld [vmem:[%s4910_s29 + $0x2578] sm:$0xff] }
 0x27a   : > { %3841 = vmatpush1.msra.mxu1 %v1493_v2  ;;  %3773 = vmatprep.subr.mxu0 %v1426_v3  ;;  %v1526_v2 = vld [vmem:[%s4910_s29 + $0x2788] sm:$0xff]  ;;  %v1459_v3 = vld [vmem:[%s4910_s29 + $0x2570] sm:$0xff] }
 0x27b   : > { %3842 = vmatprep.subr.mxu1 %v1492_v4  ;;  %3774 = vmatpush1.msra.mxu0 %v1425_v5  ;;  %v1525_v4 = vld [vmem:[%s4910_s29 + $0x2780] sm:$0xff]  ;;  %v1458_v5 = vld [vmem:[%s4910_s29 + $0x2568] sm:$0xff] }
 0x27c   : > { %3843 = vmatpush1.msra.mxu1 %v1491_v6  ;;  %3775 = vmatprep.subr.mxu0 %v1424_v7  ;;  %v1524_v6 = vld [vmem:[%s4910_s29 + $0x2778] sm:$0xff]  ;;  %v1457_v7 = vld [vmem:[%s4910_s29 + $0x2560] sm:$0xff] }
 0x27d   : > { %3844 = vmatprep.subr.mxu1 %v1490_v8  ;;  %3776 = vmatpush1.msra.mxu0 %v1423_v9  ;;  %v1523_v8 = vld [vmem:[%s4910_s29 + $0x2770] sm:$0xff]  ;;  %v1456_v9 = vld [vmem:[%s4910_s29 + $0x2558] sm:$0xff] }
 0x27e   : > { %3845 = vmatpush1.msra.mxu1 %v1489_v10  ;;  %3777 = vmatprep.subr.mxu0 %v1422_v11  ;;  %v1522_v10 = vld [vmem:[%s4910_s29 + $0x2768] sm:$0xff]  ;;  %v1455_v11 = vld [vmem:[%s4910_s29 + $0x2550] sm:$0xff] }
 0x27f   : > { %3846 = vmatprep.subr.mxu1 %v1488_v12  ;;  %3778 = vmatpush1.msra.mxu0 %v1421_v13  ;;  %v1521_v12 = vld [vmem:[%s4910_s29 + $0x2760] sm:$0xff]  ;;  %v1454_v13 = vld [vmem:[%s4910_s29 + $0x2548] sm:$0xff] }
 0x280   : > { %3847 = vmatpush1.msra.mxu1 %v1487_v14  ;;  %3779 = vmatprep.subr.mxu0 %v1420_v15  ;;  %v1520_v14 = vld [vmem:[%s4910_s29 + $0x2758] sm:$0xff]  ;;  %v255_v15 = vld [vmem:[%s4905_s25 + $0x48] sm:$0xff] }
 0x281   : > { %3848 = vmatprep.subr.mxu1 %v1486_v16  ;;  %3780 = vmatpush1.msra.mxu0 %v1419_v17  ;;  %v1453_v16 = vld [vmem:[%s4910_s29 + $0x2540] sm:$0xff]  ;;  %v1519_v17 = vld [vmem:[%s4910_s29 + $0x2750] sm:$0xff] }
 0x282   : > { %3849 = vmatpush1.msra.mxu1 %v1485_v18  ;;  %3781 = vmatprep.subr.mxu0 %v1418_v19  ;;  %v1452_v18 = vld [vmem:[%s4910_s29 + $0x2538] sm:$0xff]  ;;  %v1518_v19 = vld [vmem:[%s4910_s29 + $0x2748] sm:$0xff] }
 0x283   : > { %3850 = vmatprep.subr.mxu1 %v1484_v20  ;;  %3782 = vmatpush1.msra.mxu0 %v1417_v21  ;;  %v1451_v20 = vld [vmem:[%s4910_s29 + $0x2530] sm:$0xff]  ;;  %v1517_v21 = vld [vmem:[%s4910_s29 + $0x2740] sm:$0xff] }
 0x284   : > { %3851 = vmatpush1.msra.mxu1 %v1483_v22  ;;  %3783 = vmatprep.subr.mxu0 %v1416_v23  ;;  %v2317_v22 = vcombine.high %v255_v15, %v255_v15  ;;  %v1450_v23 = vld [vmem:[%s4910_s29 + $0x2528] sm:$0xff] }
 0x285   : > { %3852 = vmatprep.subr.mxu1 %v1482_v24  ;;  %3784 = vmatpush1.msra.mxu0 %v1415_v25  ;;  %v1516_v24 = vld [vmem:[%s4910_s29 + $0x2738] sm:$0xff]  ;;  %v2324_v25 = vrot.slane %v255_v15, %v5027_v53  ;;  %v1553_v15 = vld [vmem:[%s4910_s29 + $0x2860] sm:$0xff] }
 0x286   : > { %3853 = vmatpush1.msra.mxu1 %v1481_v26  ;;  %3785 = vmatprep.subr.mxu0 %v1414_v27  ;;  %v1449_v26 = vld [vmem:[%s4910_s29 + $0x2520] sm:$0xff]  ;;  %v1515_v27 = vld [vmem:[%s4910_s29 + $0x2730] sm:$0xff] }
 0x287   : > { %3854 = vmatprep.subr.mxu1 %v1480_v28  ;;  %3786 = vmatpush1.msra.mxu0 %v1413_v29  ;;  %v1448_v28 = vld [vmem:[%s4910_s29 + $0x2518] sm:$0xff]  ;;  %v1514_v29 = vld [vmem:[%s4910_s29 + $0x2728] sm:$0xff] }
 0x288   : > { %3855 = vmatpush1.msra.mxu1 %v1479_v30  ;;  %3787 = vmatprep.subr.mxu0 %v1476_v31  ;;  %v1447_v30 = vld [vmem:[%s4910_s29 + $0x2510] sm:$0xff]  ;;  %v1513_v31 = vld [vmem:[%s4910_s29 + $0x2720] sm:$0xff] }
 0x289   : > { %3856 = vmatprep.subr.mxu1 %v1478_v32  ;;  %3788 = vmatpush2.msra.mxu0 %v1475_v33  ;;  %v2331_v32 = vrot.slane %v2317_v22, %v5027_v53  ;;  %v1446_v33 = vld [vmem:[%s4910_s29 + $0x2508] sm:$0xff]  ;;  %v1616_v22 = vld [vmem:[%s4910_s29 + $0x2a58] sm:$0xff] }
 0x28a   : > { %3857 = vmatpush1.msra.mxu1 %v1477_v34  ;;  %3789 = vmatprep.subr.mxu0 %v1474_v35  ;;  %v1512_v34 = vld [vmem:[%s4910_s29 + $0x2718] sm:$0xff]  ;;  %v2332_v35 = vcombine.high %v2324_v25, %v2324_v25 }
 0x28b   : > { %3858 = vmatprep.subr.mxu1 %v1540_v36  ;;  %3790 = vmatpush2.msra.mxu0 %v1473_v37  ;;  %v1445_v36 = vld [vmem:[%s4910_s29 + $0x2500] sm:$0xff]  ;;  %v1511_v37 = vld [vmem:[%s4910_s29 + $0x2710] sm:$0xff] }
 0x28c   : > { %3859 = vmatpush2.msra.mxu1 %v1539_v38  ;;  %3791 = vmatprep.subr.mxu0 %v1472_v39  ;;  %v1510_v38 = vld [vmem:[%s4910_s29 + $0x2708] sm:$0xff]  ;;  %v1572_v39 = vld [vmem:[%s4910_s29 + $0x28f8] sm:$0xff] }
 0x28d   : > { %3860 = vmatprep.subr.mxu1 %v1538_v40  ;;  %3792 = vmatpush2.msra.mxu0 %v1471_v41  ;;  %v2333_v40 = vcombine.high %v2331_v32, %v2331_v32  ;;  %v1509_v41 = vld [vmem:[%s4910_s29 + $0x2700] sm:$0xff] }
 0x28e   : > { %3861 = vmatpush2.msra.mxu1 %v1537_v42  ;;  %3793 = vmatprep.subr.mxu0 %v1470_v44  ;;  %v1571_v42 = vld [vmem:[%s4910_s29 + $0x28f0] sm:$0xff]  ;;  %v1570_v44 = vld [vmem:[%s4910_s29 + $0x28e8] sm:$0xff] }
 0x28f   : > { %3862 = vmatprep.subr.mxu1 %v1536_v45  ;;  %3794 = vmatpush2.msra.mxu0 %v1469_v46  ;;  %v1636_v45 = vld [vmem:[%s4910_s29 + $0x2af8] sm:$0xff]  ;;  %v1569_v46 = vld [vmem:[%s4910_s29 + $0x28e0] sm:$0xff] }
 0x290   : > { %3863 = vmatpush2.msra.mxu1 %v1535_v47  ;;  %3795 = vmatprep.subr.mxu0 %v1468_v48  ;;  %v1635_v47 = vld [vmem:[%s4910_s29 + $0x2af0] sm:$0xff]  ;;  %v1568_v48 = vld [vmem:[%s4910_s29 + $0x28d8] sm:$0xff] }
 0x291   : > { %3864 = vmatprep.subr.mxu1 %v1534_v49  ;;  %3796 = vmatpush2.msra.mxu0 %v1467_v50  ;;  %v1634_v49 = vld [vmem:[%s4910_s29 + $0x2ae8] sm:$0xff]  ;;  %v1567_v50 = vld [vmem:[%s4910_s29 + $0x28d0] sm:$0xff] }
 0x292   : > { %3865 = vmatpush2.msra.mxu1 %v1533_v51  ;;  %3797 = vmatprep.subr.mxu0 %v1466_v52  ;;  %v1633_v51 = vld [vmem:[%s4910_s29 + $0x2ae0] sm:$0xff]  ;;  %v1566_v52 = vld [vmem:[%s4910_s29 + $0x28c8] sm:$0xff] }
 0x293   : > { %3866 = vmatprep.subr.mxu1 %v1532_v54  ;;  %3798 = vmatpush2.msra.mxu0 %v1465_v55  ;;  %v1632_v54 = vld [vmem:[%s4910_s29 + $0x2ad8] sm:$0xff]  ;;  %v1565_v55 = vld [vmem:[%s4910_s29 + $0x28c0] sm:$0xff] }
 0x294   : > { %3867 = vmatpush2.msra.mxu1 %v1531_v56  ;;  %3799 = vmatprep.subr.mxu0 %v1464_v57  ;;  %v1631_v56 = vld [vmem:[%s4910_s29 + $0x2ad0] sm:$0xff]  ;;  %v1564_v57 = vld [vmem:[%s4910_s29 + $0x28b8] sm:$0xff] }
 0x295   : > { %3868 = vmatprep.subr.mxu1 %v1530_v58  ;;  %3800 = vmatpush2.msra.mxu0 %v1463_v59  ;;  %v1630_v58 = vld [vmem:[%s4910_s29 + $0x2ac8] sm:$0xff]  ;;  %v1563_v59 = vld [vmem:[%s4910_s29 + $0x28b0] sm:$0xff] }
 0x296   : > { %3869 = vmatpush2.msra.mxu1 %v1529_v60  ;;  %3801 = vmatprep.subr.mxu0 %v1462_v61  ;;  %v1629_v60 = vld [vmem:[%s4910_s29 + $0x2ac0] sm:$0xff]  ;;  %v1562_v61 = vld [vmem:[%s4910_s29 + $0x28a8] sm:$0xff] }
 0x297   : > { %3870 = vmatprep.subr.mxu1 %v1528_v62  ;;  %3802 = vmatpush2.msra.mxu0 %v1461_v63  ;;  %v1628_v62 = vld [vmem:[%s4910_s29 + $0x2ab8] sm:$0xff]  ;;  %v1561_v63 = vld [vmem:[%s4910_s29 + $0x28a0] sm:$0xff] }
 0x298   : > { %3871 = vmatpush2.msra.mxu1 %v1527_v0  ;;  %3803 = vmatprep.subr.mxu0 %v1460_v1  ;;  %v1627_v0 = vld [vmem:[%s4910_s29 + $0x2ab0] sm:$0xff]  ;;  %v1560_v1 = vld [vmem:[%s4910_s29 + $0x2898] sm:$0xff] }
 0x299   : > { %3872 = vmatprep.subr.mxu1 %v1526_v2  ;;  %3804 = vmatpush2.msra.mxu0 %v1459_v3  ;;  %v1626_v2 = vld [vmem:[%s4910_s29 + $0x2aa8] sm:$0xff]  ;;  %v1559_v3 = vld [vmem:[%s4910_s29 + $0x2890] sm:$0xff] }
 0x29a   : > { %3873 = vmatpush2.msra.mxu1 %v1525_v4  ;;  %3805 = vmatprep.subr.mxu0 %v1458_v5  ;;  %v1625_v4 = vld [vmem:[%s4910_s29 + $0x2aa0] sm:$0xff]  ;;  %v1558_v5 = vld [vmem:[%s4910_s29 + $0x2888] sm:$0xff] }
 0x29b   : > { %3874 = vmatprep.subr.mxu1 %v1524_v6  ;;  %3806 = vmatpush2.msra.mxu0 %v1457_v7  ;;  %v1624_v6 = vld [vmem:[%s4910_s29 + $0x2a98] sm:$0xff]  ;;  %v1557_v7 = vld [vmem:[%s4910_s29 + $0x2880] sm:$0xff] }
 0x29c   : > { %3875 = vmatpush2.msra.mxu1 %v1523_v8  ;;  %3807 = vmatprep.subr.mxu0 %v1456_v9  ;;  %v1623_v8 = vld [vmem:[%s4910_s29 + $0x2a90] sm:$0xff]  ;;  %v1556_v9 = vld [vmem:[%s4910_s29 + $0x2878] sm:$0xff] }
 0x29d   : > { %3876 = vmatprep.subr.mxu1 %v1522_v10  ;;  %3808 = vmatpush2.msra.mxu0 %v1455_v11  ;;  %v1622_v10 = vld [vmem:[%s4910_s29 + $0x2a88] sm:$0xff]  ;;  %v1555_v11 = vld [vmem:[%s4910_s29 + $0x2870] sm:$0xff] }
 0x29e   : > { %3877 = vmatpush2.msra.mxu1 %v1521_v12  ;;  %3809 = vmatprep.subr.mxu0 %v1454_v13  ;;  %v1621_v12 = vld [vmem:[%s4910_s29 + $0x2a80] sm:$0xff]  ;;  %v1554_v13 = vld [vmem:[%s4910_s29 + $0x2868] sm:$0xff] }
 0x29f   : > { %3878 = vmatprep.subr.mxu1 %v1520_v14  ;;  %3810 = vmatpush2.msra.mxu0 %v1453_v16  ;;  %v1620_v14 = vld [vmem:[%s4910_s29 + $0x2a78] sm:$0xff]  ;;  %v1619_v16 = vld [vmem:[%s4910_s29 + $0x2a70] sm:$0xff] }
 0x2a0   : > { %3879 = vmatpush2.msra.mxu1 %v1519_v17  ;;  %3811 = vmatprep.subr.mxu0 %v1452_v18  ;;  %v1552_v17 = vld [vmem:[%s4910_s29 + $0x2858] sm:$0xff]  ;;  %v1618_v18 = vld [vmem:[%s4910_s29 + $0x2a68] sm:$0xff] }
 0x2a1   : > { %3880 = vmatprep.subr.mxu1 %v1518_v19  ;;  %3812 = vmatpush2.msra.mxu0 %v1451_v20  ;;  %v1551_v19 = vld [vmem:[%s4910_s29 + $0x2850] sm:$0xff]  ;;  %v1617_v20 = vld [vmem:[%s4910_s29 + $0x2a60] sm:$0xff] }
 0x2a2   : > { %3881 = vmatpush2.msra.mxu1 %v1517_v21  ;;  %3813 = vmatprep.subr.mxu0 %v1450_v23  ;;  %v1550_v21 = vld [vmem:[%s4910_s29 + $0x2848] sm:$0xff]  ;;  %v1549_v23 = vld [vmem:[%s4910_s29 + $0x2840] sm:$0xff] }
 0x2a3   : > { %3882 = vmatprep.subr.mxu1 %v1516_v24  ;;  %3814 = vmatpush2.msra.mxu0 %v1449_v26  ;;  %v1615_v24 = vld [vmem:[%s4910_s29 + $0x2a50] sm:$0xff]  ;;  %v1614_v26 = vld [vmem:[%s4910_s29 + $0x2a48] sm:$0xff] }
 0x2a4   : > { %3883 = vmatpush2.msra.mxu1 %v1515_v27  ;;  %3815 = vmatprep.subr.mxu0 %v1448_v28  ;;  %v1547_v27 = vld [vmem:[%s4910_s29 + $0x2830] sm:$0xff]  ;;  %v1613_v28 = vld [vmem:[%s4910_s29 + $0x2a40] sm:$0xff] }
 0x2a5   : > { %3884 = vmatprep.subr.mxu1 %v1514_v29  ;;  %3816 = vmatpush2.msra.mxu0 %v1447_v30  ;;  %v1546_v29 = vld [vmem:[%s4910_s29 + $0x2828] sm:$0xff]  ;;  %v1612_v30 = vld [vmem:[%s4910_s29 + $0x2a38] sm:$0xff] }
 0x2a6   : > { %3885 = vmatpush2.msra.mxu1 %v1513_v31  ;;  %3817 = vmatprep.subr.mxu0 %v1446_v33  ;;  %v1545_v31 = vld [vmem:[%s4910_s29 + $0x2820] sm:$0xff]  ;;  %v1544_v33 = vld [vmem:[%s4910_s29 + $0x2818] sm:$0xff] }
 0x2a7   : > { %3886 = vmatprep.subr.mxu1 %v1512_v34  ;;  %3818 = vmatpush2.msra.mxu0 %v1445_v36  ;;  %v1610_v34 = vld [vmem:[%s4910_s29 + $0x2a28] sm:$0xff]  ;;  %v1609_v36 = vld [vmem:[%s4910_s29 + $0x2a20] sm:$0xff] }
 0x2a8   : > { %3819 = vmatprep.mubr.f32.mxu0 %v2332_v35  ;;  %3887 = vmatpush2.msra.mxu1 %v1511_v37  ;;  %v1543_v35 = vld [vmem:[%s4910_s29 + $0x2810] sm:$0xff]  ;;  %v1542_v37 = vld [vmem:[%s4910_s29 + $0x2808] sm:$0xff] }
 0x2a9   : > { %3820 = vmatmul.mubr.f32.vlgmr.msra.gmra.mxu0 %v2324_v25  ;;  %3888 = vmatprep.subr.mxu1 %v1510_v38  ;;  %v1548_v25 = vld [vmem:[%s4910_s29 + $0x2838] sm:$0xff] }
 0x2aa   : > { %3897 = vmatprep.subr.mxu0 %v1572_v39  ;;  %3889 = vmatpush2.msra.mxu1 %v1509_v41  ;;  %v1608_v38 = vld [vmem:[%s4910_s29 + $0x2a18] sm:$0xff]  ;;  %v1541_v39 = vld [vmem:[%s4910_s29 + $0x2800] sm:$0xff] }
 0x2ab   : > { %3890 = vmatprep.mubr.f32.mxu1 %v2333_v40  ;;  %3898 = vmatpush1.msra.mxu0 %v1571_v42  ;;  %v1607_v40 = vld [vmem:[%s4910_s29 + $0x2a10] sm:$0xff]  ;;  %v1604_v41 = vld [vmem:[%s4910_s29 + $0x29f8] sm:$0xff]  ;;  %v1606_v42 = vld [vmem:[%s4910_s29 + $0x2a08] sm:$0xff] }
 0x2ac   : > { %3891 = vmatmul.mubr.f32.vlgmr.msra.gmra.mxu1 %v2331_v32  ;;  %3899 = vmatprep.subr.mxu0 %v1570_v44  ;;  %v1611_v32 = vld [vmem:[%s4910_s29 + $0x2a30] sm:$0xff] }
 0x2ad   : > { %3968 = vmatprep.subr.mxu1 %v1636_v45  ;;  %3900 = vmatpush1.msra.mxu0 %v1569_v46  ;;  %v1603_v44 = vld [vmem:[%s4910_s29 + $0x29f0] sm:$0xff]  ;;  %v1605_v45 = vld [vmem:[%s4910_s29 + $0x2a00] sm:$0xff]  ;;  %v1602_v46 = vld [vmem:[%s4910_s29 + $0x29e8] sm:$0xff] }
 0x2ae   : > { %3969 = vmatpush1.msra.mxu1 %v1635_v47  ;;  %3901 = vmatprep.subr.mxu0 %v1568_v48  ;;  %v1668_v47 = vld [vmem:[%s4910_s29 + $0x2bf8] sm:$0xff]  ;;  %v1601_v48 = vld [vmem:[%s4910_s29 + $0x29e0] sm:$0xff] }
 0x2af   : > { %3970 = vmatprep.subr.mxu1 %v1634_v49  ;;  %3902 = vmatpush1.msra.mxu0 %v1567_v50  ;;  %v1667_v49 = vld [vmem:[%s4910_s29 + $0x2bf0] sm:$0xff]  ;;  %v1600_v50 = vld [vmem:[%s4910_s29 + $0x29d8] sm:$0xff] }
 0x2b0   : > { %3971 = vmatpush1.msra.mxu1 %v1633_v51  ;;  %3903 = vmatprep.subr.mxu0 %v1566_v52  ;;  %v1666_v51 = vld [vmem:[%s4910_s29 + $0x2be8] sm:$0xff]  ;;  %v1599_v52 = vld [vmem:[%s4910_s29 + $0x29d0] sm:$0xff] }
 0x2b1   : > { %3972 = vmatprep.subr.mxu1 %v1632_v54  ;;  %3904 = vmatpush1.msra.mxu0 %v1565_v55  ;;  %v1665_v54 = vld [vmem:[%s4910_s29 + $0x2be0] sm:$0xff]  ;;  %v1598_v55 = vld [vmem:[%s4910_s29 + $0x29c8] sm:$0xff] }
 0x2b2   : > { %3973 = vmatpush1.msra.mxu1 %v1631_v56  ;;  %3905 = vmatprep.subr.mxu0 %v1564_v57  ;;  %v1664_v56 = vld [vmem:[%s4910_s29 + $0x2bd8] sm:$0xff]  ;;  %v1597_v57 = vld [vmem:[%s4910_s29 + $0x29c0] sm:$0xff] }
 0x2b3   : > { %3974 = vmatprep.subr.mxu1 %v1630_v58  ;;  %3906 = vmatpush1.msra.mxu0 %v1563_v59  ;;  %v1663_v58 = vld [vmem:[%s4910_s29 + $0x2bd0] sm:$0xff]  ;;  %v1596_v59 = vld [vmem:[%s4910_s29 + $0x29b8] sm:$0xff] }
 0x2b4   : > { %3975 = vmatpush1.msra.mxu1 %v1629_v60  ;;  %3907 = vmatprep.subr.mxu0 %v1562_v61  ;;  %v1662_v60 = vld [vmem:[%s4910_s29 + $0x2bc8] sm:$0xff]  ;;  %v1595_v61 = vld [vmem:[%s4910_s29 + $0x29b0] sm:$0xff] }
 0x2b5   : > { %3976 = vmatprep.subr.mxu1 %v1628_v62  ;;  %3908 = vmatpush1.msra.mxu0 %v1561_v63  ;;  %v1661_v62 = vld [vmem:[%s4910_s29 + $0x2bc0] sm:$0xff]  ;;  %v1594_v63 = vld [vmem:[%s4910_s29 + $0x29a8] sm:$0xff] }
 0x2b6   : > { %3977 = vmatpush1.msra.mxu1 %v1627_v0  ;;  %3909 = vmatprep.subr.mxu0 %v1560_v1  ;;  %v1660_v0 = vld [vmem:[%s4910_s29 + $0x2bb8] sm:$0xff]  ;;  %v1593_v1 = vld [vmem:[%s4910_s29 + $0x29a0] sm:$0xff] }
 0x2b7   : > { %3978 = vmatprep.subr.mxu1 %v1626_v2  ;;  %3910 = vmatpush1.msra.mxu0 %v1559_v3  ;;  %v1659_v2 = vld [vmem:[%s4910_s29 + $0x2bb0] sm:$0xff]  ;;  %v1592_v3 = vld [vmem:[%s4910_s29 + $0x2998] sm:$0xff] }
 0x2b8   : > { %3979 = vmatpush1.msra.mxu1 %v1625_v4  ;;  %3911 = vmatprep.subr.mxu0 %v1558_v5  ;;  %v1658_v4 = vld [vmem:[%s4910_s29 + $0x2ba8] sm:$0xff]  ;;  %v1591_v5 = vld [vmem:[%s4910_s29 + $0x2990] sm:$0xff] }
 0x2b9   : > { %3980 = vmatprep.subr.mxu1 %v1624_v6  ;;  %3912 = vmatpush1.msra.mxu0 %v1557_v7  ;;  %v1657_v6 = vld [vmem:[%s4910_s29 + $0x2ba0] sm:$0xff]  ;;  %v1590_v7 = vld [vmem:[%s4910_s29 + $0x2988] sm:$0xff] }
 0x2ba   : > { %3981 = vmatpush1.msra.mxu1 %v1623_v8  ;;  %3913 = vmatprep.subr.mxu0 %v1556_v9  ;;  %v1656_v8 = vld [vmem:[%s4910_s29 + $0x2b98] sm:$0xff]  ;;  %v1589_v9 = vld [vmem:[%s4910_s29 + $0x2980] sm:$0xff] }
 0x2bb   : > { %3982 = vmatprep.subr.mxu1 %v1622_v10  ;;  %3914 = vmatpush1.msra.mxu0 %v1555_v11  ;;  %v1655_v10 = vld [vmem:[%s4910_s29 + $0x2b90] sm:$0xff]  ;;  %v1588_v11 = vld [vmem:[%s4910_s29 + $0x2978] sm:$0xff] }
 0x2bc   : > { %3983 = vmatpush1.msra.mxu1 %v1621_v12  ;;  %3915 = vmatprep.subr.mxu0 %v1554_v13  ;;  %v1654_v12 = vld [vmem:[%s4910_s29 + $0x2b88] sm:$0xff]  ;;  %v1587_v13 = vld [vmem:[%s4910_s29 + $0x2970] sm:$0xff] }
 0x2bd   : > { %3984 = vmatprep.subr.mxu1 %v1620_v14  ;;  %3916 = vmatpush1.msra.mxu0 %v1553_v15  ;;  %v1653_v14 = vld [vmem:[%s4910_s29 + $0x2b80] sm:$0xff]  ;;  %v1586_v15 = vld [vmem:[%s4910_s29 + $0x2968] sm:$0xff] }
 0x2be   : > { %3985 = vmatpush1.msra.mxu1 %v1619_v16  ;;  %3917 = vmatprep.subr.mxu0 %v1552_v17  ;;  %v1652_v16 = vld [vmem:[%s4910_s29 + $0x2b78] sm:$0xff]  ;;  %v1585_v17 = vld [vmem:[%s4910_s29 + $0x2960] sm:$0xff] }
 0x2bf   : > { %3986 = vmatprep.subr.mxu1 %v1618_v18  ;;  %3918 = vmatpush1.msra.mxu0 %v1551_v19  ;;  %v1651_v18 = vld [vmem:[%s4910_s29 + $0x2b70] sm:$0xff]  ;;  %v1584_v19 = vld [vmem:[%s4910_s29 + $0x2958] sm:$0xff] }
 0x2c0   : > { %3987 = vmatpush1.msra.mxu1 %v1617_v20  ;;  %3919 = vmatprep.subr.mxu0 %v1550_v21  ;;  %v1650_v20 = vld [vmem:[%s4910_s29 + $0x2b68] sm:$0xff]  ;;  %v1583_v21 = vld [vmem:[%s4910_s29 + $0x2950] sm:$0xff] }
 0x2c1   : > { %3988 = vmatprep.subr.mxu1 %v1616_v22  ;;  %3920 = vmatpush1.msra.mxu0 %v1549_v23  ;;  %v1649_v22 = vld [vmem:[%s4910_s29 + $0x2b60] sm:$0xff]  ;;  %v1582_v23 = vld [vmem:[%s4910_s29 + $0x2948] sm:$0xff] }
 0x2c2   : > { %3989 = vmatpush1.msra.mxu1 %v1615_v24  ;;  %3921 = vmatprep.subr.mxu0 %v1548_v25  ;;  %v1648_v24 = vld [vmem:[%s4910_s29 + $0x2b58] sm:$0xff]  ;;  %v256_v25 = vld [vmem:[%s4905_s25 + $0x50] sm:$0xff] }
 0x2c3   : > { %3990 = vmatprep.subr.mxu1 %v1614_v26  ;;  %3922 = vmatpush1.msra.mxu0 %v1547_v27  ;;  %v1581_v26 = vld [vmem:[%s4910_s29 + $0x2940] sm:$0xff]  ;;  %v1647_v27 = vld [vmem:[%s4910_s29 + $0x2b50] sm:$0xff] }
 0x2c4   : > { %3991 = vmatpush1.msra.mxu1 %v1613_v28  ;;  %3923 = vmatprep.subr.mxu0 %v1546_v29  ;;  %v1580_v28 = vld [vmem:[%s4910_s29 + $0x2938] sm:$0xff]  ;;  %v1646_v29 = vld [vmem:[%s4910_s29 + $0x2b48] sm:$0xff] }
 0x2c5   : > { %3992 = vmatprep.subr.mxu1 %v1612_v30  ;;  %3924 = vmatpush1.msra.mxu0 %v1545_v31  ;;  %v1579_v30 = vld [vmem:[%s4910_s29 + $0x2930] sm:$0xff]  ;;  %v1645_v31 = vld [vmem:[%s4910_s29 + $0x2b40] sm:$0xff] }
 0x2c6   : > { %3993 = vmatpush1.msra.mxu1 %v1611_v32  ;;  %3925 = vmatprep.subr.mxu0 %v1544_v33  ;;  %v2334_v32 = vcombine.high %v256_v25, %v256_v25  ;;  %v1578_v33 = vld [vmem:[%s4910_s29 + $0x2928] sm:$0xff] }
 0x2c7   : > { %3994 = vmatprep.subr.mxu1 %v1610_v34  ;;  %3926 = vmatpush1.msra.mxu0 %v1543_v35  ;;  %v1644_v34 = vld [vmem:[%s4910_s29 + $0x2b38] sm:$0xff]  ;;  %v2341_v35 = vrot.slane %v256_v25, %v5027_v53  ;;  %v1681_v25 = vld [vmem:[%s4910_s29 + $0x2c60] sm:$0xff] }
 0x2c8   : > { %3995 = vmatpush1.msra.mxu1 %v1609_v36  ;;  %3927 = vmatprep.subr.mxu0 %v1542_v37  ;;  %v1577_v36 = vld [vmem:[%s4910_s29 + $0x2920] sm:$0xff]  ;;  %v1643_v37 = vld [vmem:[%s4910_s29 + $0x2b30] sm:$0xff] }
 0x2c9   : > { %3996 = vmatprep.subr.mxu1 %v1608_v38  ;;  %3928 = vmatpush1.msra.mxu0 %v1541_v39  ;;  %v1576_v38 = vld [vmem:[%s4910_s29 + $0x2918] sm:$0xff]  ;;  %v1642_v39 = vld [vmem:[%s4910_s29 + $0x2b28] sm:$0xff] }
 0x2ca   : > { %3997 = vmatpush1.msra.mxu1 %v1607_v40  ;;  %3929 = vmatprep.subr.mxu0 %v1604_v41  ;;  %v1575_v40 = vld [vmem:[%s4910_s29 + $0x2910] sm:$0xff]  ;;  %v1641_v41 = vld [vmem:[%s4910_s29 + $0x2b20] sm:$0xff] }
 0x2cb   : > { %3998 = vmatprep.subr.mxu1 %v1606_v42  ;;  %3930 = vmatpush2.msra.mxu0 %v1603_v44  ;;  %v2348_v42 = vrot.slane %v2334_v32, %v5027_v53  ;;  %v1574_v44 = vld [vmem:[%s4910_s29 + $0x2908] sm:$0xff]  ;;  %v1744_v32 = vld [vmem:[%s4910_s29 + $0x2e58] sm:$0xff] }
 0x2cc   : > { %3999 = vmatpush1.msra.mxu1 %v1605_v45  ;;  %3931 = vmatprep.subr.mxu0 %v1602_v46  ;;  %v1640_v45 = vld [vmem:[%s4910_s29 + $0x2b18] sm:$0xff]  ;;  %v2349_v46 = vcombine.high %v2341_v35, %v2341_v35 }
 0x2cd   : > { %4000 = vmatprep.subr.mxu1 %v1668_v47  ;;  %3932 = vmatpush2.msra.mxu0 %v1601_v48  ;;  %v1573_v47 = vld [vmem:[%s4910_s29 + $0x2900] sm:$0xff]  ;;  %v1639_v48 = vld [vmem:[%s4910_s29 + $0x2b10] sm:$0xff] }
 0x2ce   : > { %4001 = vmatpush2.msra.mxu1 %v1667_v49  ;;  %3933 = vmatprep.subr.mxu0 %v1600_v50  ;;  %v1638_v49 = vld [vmem:[%s4910_s29 + $0x2b08] sm:$0xff]  ;;  %v1700_v50 = vld [vmem:[%s4910_s29 + $0x2cf8] sm:$0xff] }
 0x2cf   : > { %4002 = vmatprep.subr.mxu1 %v1666_v51  ;;  %3934 = vmatpush2.msra.mxu0 %v1599_v52  ;;  %v2350_v51 = vcombine.high %v2348_v42, %v2348_v42  ;;  %v1637_v52 = vld [vmem:[%s4910_s29 + $0x2b00] sm:$0xff] }
 0x2d0   : > { %4003 = vmatpush2.msra.mxu1 %v1665_v54  ;;  %3935 = vmatprep.subr.mxu0 %v1598_v55  ;;  %v1699_v54 = vld [vmem:[%s4910_s29 + $0x2cf0] sm:$0xff]  ;;  %v1698_v55 = vld [vmem:[%s4910_s29 + $0x2ce8] sm:$0xff] }
 0x2d1   : > { %4004 = vmatprep.subr.mxu1 %v1664_v56  ;;  %3936 = vmatpush2.msra.mxu0 %v1597_v57  ;;  %v1764_v56 = vld [vmem:[%s4910_s29 + $0x2ef8] sm:$0xff]  ;;  %v1697_v57 = vld [vmem:[%s4910_s29 + $0x2ce0] sm:$0xff] }
 0x2d2   : > { %4005 = vmatpush2.msra.mxu1 %v1663_v58  ;;  %3937 = vmatprep.subr.mxu0 %v1596_v59  ;;  %v1763_v58 = vld [vmem:[%s4910_s29 + $0x2ef0] sm:$0xff]  ;;  %v1696_v59 = vld [vmem:[%s4910_s29 + $0x2cd8] sm:$0xff] }
 0x2d3   : > { %4006 = vmatprep.subr.mxu1 %v1662_v60  ;;  %3938 = vmatpush2.msra.mxu0 %v1595_v61  ;;  %v1762_v60 = vld [vmem:[%s4910_s29 + $0x2ee8] sm:$0xff]  ;;  %v1695_v61 = vld [vmem:[%s4910_s29 + $0x2cd0] sm:$0xff] }
 0x2d4   : > { %4007 = vmatpush2.msra.mxu1 %v1661_v62  ;;  %3939 = vmatprep.subr.mxu0 %v1594_v63  ;;  %v1761_v62 = vld [vmem:[%s4910_s29 + $0x2ee0] sm:$0xff]  ;;  %v1694_v63 = vld [vmem:[%s4910_s29 + $0x2cc8] sm:$0xff] }
 0x2d5   : > { %4008 = vmatprep.subr.mxu1 %v1660_v0  ;;  %3940 = vmatpush2.msra.mxu0 %v1593_v1  ;;  %v1760_v0 = vld [vmem:[%s4910_s29 + $0x2ed8] sm:$0xff]  ;;  %v1693_v1 = vld [vmem:[%s4910_s29 + $0x2cc0] sm:$0xff] }
 0x2d6   : > { %4009 = vmatpush2.msra.mxu1 %v1659_v2  ;;  %3941 = vmatprep.subr.mxu0 %v1592_v3  ;;  %v1759_v2 = vld [vmem:[%s4910_s29 + $0x2ed0] sm:$0xff]  ;;  %v1692_v3 = vld [vmem:[%s4910_s29 + $0x2cb8] sm:$0xff] }
 0x2d7   : > { %4010 = vmatprep.subr.mxu1 %v1658_v4  ;;  %3942 = vmatpush2.msra.mxu0 %v1591_v5  ;;  %v1758_v4 = vld [vmem:[%s4910_s29 + $0x2ec8] sm:$0xff]  ;;  %v1691_v5 = vld [vmem:[%s4910_s29 + $0x2cb0] sm:$0xff] }
 0x2d8   : > { %4011 = vmatpush2.msra.mxu1 %v1657_v6  ;;  %3943 = vmatprep.subr.mxu0 %v1590_v7  ;;  %v1757_v6 = vld [vmem:[%s4910_s29 + $0x2ec0] sm:$0xff]  ;;  %v1690_v7 = vld [vmem:[%s4910_s29 + $0x2ca8] sm:$0xff] }
 0x2d9   : > { %4012 = vmatprep.subr.mxu1 %v1656_v8  ;;  %3944 = vmatpush2.msra.mxu0 %v1589_v9  ;;  %v1756_v8 = vld [vmem:[%s4910_s29 + $0x2eb8] sm:$0xff]  ;;  %v1689_v9 = vld [vmem:[%s4910_s29 + $0x2ca0] sm:$0xff] }
 0x2da   : > { %4013 = vmatpush2.msra.mxu1 %v1655_v10  ;;  %3945 = vmatprep.subr.mxu0 %v1588_v11  ;;  %v1755_v10 = vld [vmem:[%s4910_s29 + $0x2eb0] sm:$0xff]  ;;  %v1688_v11 = vld [vmem:[%s4910_s29 + $0x2c98] sm:$0xff] }
 0x2db   : > { %4014 = vmatprep.subr.mxu1 %v1654_v12  ;;  %3946 = vmatpush2.msra.mxu0 %v1587_v13  ;;  %v1754_v12 = vld [vmem:[%s4910_s29 + $0x2ea8] sm:$0xff]  ;;  %v1687_v13 = vld [vmem:[%s4910_s29 + $0x2c90] sm:$0xff] }
 0x2dc   : > { %4015 = vmatpush2.msra.mxu1 %v1653_v14  ;;  %3947 = vmatprep.subr.mxu0 %v1586_v15  ;;  %v1753_v14 = vld [vmem:[%s4910_s29 + $0x2ea0] sm:$0xff]  ;;  %v1686_v15 = vld [vmem:[%s4910_s29 + $0x2c88] sm:$0xff] }
 0x2dd   : > { %4016 = vmatprep.subr.mxu1 %v1652_v16  ;;  %3948 = vmatpush2.msra.mxu0 %v1585_v17  ;;  %v1752_v16 = vld [vmem:[%s4910_s29 + $0x2e98] sm:$0xff]  ;;  %v1685_v17 = vld [vmem:[%s4910_s29 + $0x2c80] sm:$0xff] }
 0x2de   : > { %4017 = vmatpush2.msra.mxu1 %v1651_v18  ;;  %3949 = vmatprep.subr.mxu0 %v1584_v19  ;;  %v1751_v18 = vld [vmem:[%s4910_s29 + $0x2e90] sm:$0xff]  ;;  %v1684_v19 = vld [vmem:[%s4910_s29 + $0x2c78] sm:$0xff] }
 0x2df   : > { %4018 = vmatprep.subr.mxu1 %v1650_v20  ;;  %3950 = vmatpush2.msra.mxu0 %v1583_v21  ;;  %v1750_v20 = vld [vmem:[%s4910_s29 + $0x2e88] sm:$0xff]  ;;  %v1683_v21 = vld [vmem:[%s4910_s29 + $0x2c70] sm:$0xff] }
 0x2e0   : > { %4019 = vmatpush2.msra.mxu1 %v1649_v22  ;;  %3951 = vmatprep.subr.mxu0 %v1582_v23  ;;  %v1749_v22 = vld [vmem:[%s4910_s29 + $0x2e80] sm:$0xff]  ;;  %v1682_v23 = vld [vmem:[%s4910_s29 + $0x2c68] sm:$0xff] }
 0x2e1   : > { %4020 = vmatprep.subr.mxu1 %v1648_v24  ;;  %3952 = vmatpush2.msra.mxu0 %v1581_v26  ;;  %v1748_v24 = vld [vmem:[%s4910_s29 + $0x2e78] sm:$0xff]  ;;  %v1747_v26 = vld [vmem:[%s4910_s29 + $0x2e70] sm:$0xff] }
 0x2e2   : > { %4021 = vmatpush2.msra.mxu1 %v1647_v27  ;;  %3953 = vmatprep.subr.mxu0 %v1580_v28  ;;  %v1680_v27 = vld [vmem:[%s4910_s29 + $0x2c58] sm:$0xff]  ;;  %v1746_v28 = vld [vmem:[%s4910_s29 + $0x2e68] sm:$0xff] }
 0x2e3   : > { %4022 = vmatprep.subr.mxu1 %v1646_v29  ;;  %3954 = vmatpush2.msra.mxu0 %v1579_v30  ;;  %v1679_v29 = vld [vmem:[%s4910_s29 + $0x2c50] sm:$0xff]  ;;  %v1745_v30 = vld [vmem:[%s4910_s29 + $0x2e60] sm:$0xff] }
 0x2e4   : > { %4023 = vmatpush2.msra.mxu1 %v1645_v31  ;;  %3955 = vmatprep.subr.mxu0 %v1578_v33  ;;  %v1678_v31 = vld [vmem:[%s4910_s29 + $0x2c48] sm:$0xff]  ;;  %v1677_v33 = vld [vmem:[%s4910_s29 + $0x2c40] sm:$0xff] }
 0x2e5   : > { %4024 = vmatprep.subr.mxu1 %v1644_v34  ;;  %3956 = vmatpush2.msra.mxu0 %v1577_v36  ;;  %v1743_v34 = vld [vmem:[%s4910_s29 + $0x2e50] sm:$0xff]  ;;  %v1742_v36 = vld [vmem:[%s4910_s29 + $0x2e48] sm:$0xff] }
 0x2e6   : > { %4025 = vmatpush2.msra.mxu1 %v1643_v37  ;;  %3957 = vmatprep.subr.mxu0 %v1576_v38  ;;  %v1675_v37 = vld [vmem:[%s4910_s29 + $0x2c30] sm:$0xff]  ;;  %v1741_v38 = vld [vmem:[%s4910_s29 + $0x2e40] sm:$0xff] }
 0x2e7   : > { %4026 = vmatprep.subr.mxu1 %v1642_v39  ;;  %3958 = vmatpush2.msra.mxu0 %v1575_v40  ;;  %v1674_v39 = vld [vmem:[%s4910_s29 + $0x2c28] sm:$0xff]  ;;  %v1740_v40 = vld [vmem:[%s4910_s29 + $0x2e38] sm:$0xff] }
 0x2e8   : > { %4027 = vmatpush2.msra.mxu1 %v1641_v41  ;;  %3959 = vmatprep.subr.mxu0 %v1574_v44  ;;  %v1673_v41 = vld [vmem:[%s4910_s29 + $0x2c20] sm:$0xff]  ;;  %v1672_v44 = vld [vmem:[%s4910_s29 + $0x2c18] sm:$0xff] }
 0x2e9   : > { %4028 = vmatprep.subr.mxu1 %v1640_v45  ;;  %3960 = vmatpush2.msra.mxu0 %v1573_v47  ;;  %v1738_v45 = vld [vmem:[%s4910_s29 + $0x2e28] sm:$0xff]  ;;  %v1737_v47 = vld [vmem:[%s4910_s29 + $0x2e20] sm:$0xff] }
 0x2ea   : > { %3961 = vmatprep.mubr.f32.mxu0 %v2349_v46  ;;  %4029 = vmatpush2.msra.mxu1 %v1639_v48  ;;  %v1671_v46 = vld [vmem:[%s4910_s29 + $0x2c10] sm:$0xff]  ;;  %v1670_v48 = vld [vmem:[%s4910_s29 + $0x2c08] sm:$0xff] }
 0x2eb   : > { %3962 = vmatmul.mubr.f32.vlgmr.msra.gmra.mxu0 %v2341_v35  ;;  %4030 = vmatprep.subr.mxu1 %v1638_v49  ;;  %v1676_v35 = vld [vmem:[%s4910_s29 + $0x2c38] sm:$0xff] }
 0x2ec   : > { %4039 = vmatprep.subr.mxu0 %v1700_v50  ;;  %4031 = vmatpush2.msra.mxu1 %v1637_v52  ;;  %v1736_v49 = vld [vmem:[%s4910_s29 + $0x2e18] sm:$0xff]  ;;  %v1669_v50 = vld [vmem:[%s4910_s29 + $0x2c00] sm:$0xff] }
 0x2ed   : > { %4032 = vmatprep.mubr.f32.mxu1 %v2350_v51  ;;  %4040 = vmatpush1.msra.mxu0 %v1699_v54  ;;  %v1735_v51 = vld [vmem:[%s4910_s29 + $0x2e10] sm:$0xff]  ;;  %v1732_v52 = vld [vmem:[%s4910_s29 + $0x2df8] sm:$0xff]  ;;  %v1734_v54 = vld [vmem:[%s4910_s29 + $0x2e08] sm:$0xff] }
 0x2ee   : > { %4033 = vmatmul.mubr.f32.vlgmr.msra.gmra.mxu1 %v2348_v42  ;;  %4041 = vmatprep.subr.mxu0 %v1698_v55  ;;  %v1739_v42 = vld [vmem:[%s4910_s29 + $0x2e30] sm:$0xff] }
 0x2ef   : > { %4110 = vmatprep.subr.mxu1 %v1764_v56  ;;  %4042 = vmatpush1.msra.mxu0 %v1697_v57  ;;  %v1731_v55 = vld [vmem:[%s4910_s29 + $0x2df0] sm:$0xff]  ;;  %v1733_v56 = vld [vmem:[%s4910_s29 + $0x2e00] sm:$0xff]  ;;  %v1730_v57 = vld [vmem:[%s4910_s29 + $0x2de8] sm:$0xff] }
 0x2f0   : > { %4111 = vmatpush1.msra.mxu1 %v1763_v58  ;;  %4043 = vmatprep.subr.mxu0 %v1696_v59  ;;  %v1796_v58 = vld [vmem:[%s4910_s29 + $0x2ff8] sm:$0xff]  ;;  %v1729_v59 = vld [vmem:[%s4910_s29 + $0x2de0] sm:$0xff] }
 0x2f1   : > { %4112 = vmatprep.subr.mxu1 %v1762_v60  ;;  %4044 = vmatpush1.msra.mxu0 %v1695_v61  ;;  %v1795_v60 = vld [vmem:[%s4910_s29 + $0x2ff0] sm:$0xff]  ;;  %v1728_v61 = vld [vmem:[%s4910_s29 + $0x2dd8] sm:$0xff] }
 0x2f2   : > { %4113 = vmatpush1.msra.mxu1 %v1761_v62  ;;  %4045 = vmatprep.subr.mxu0 %v1694_v63  ;;  %v1794_v62 = vld [vmem:[%s4910_s29 + $0x2fe8] sm:$0xff]  ;;  %v1727_v63 = vld [vmem:[%s4910_s29 + $0x2dd0] sm:$0xff] }
 0x2f3   : > { %4114 = vmatprep.subr.mxu1 %v1760_v0  ;;  %4046 = vmatpush1.msra.mxu0 %v1693_v1  ;;  %v1793_v0 = vld [vmem:[%s4910_s29 + $0x2fe0] sm:$0xff]  ;;  %v1726_v1 = vld [vmem:[%s4910_s29 + $0x2dc8] sm:$0xff] }
 0x2f4   : > { %4115 = vmatpush1.msra.mxu1 %v1759_v2  ;;  %4047 = vmatprep.subr.mxu0 %v1692_v3  ;;  %v1792_v2 = vld [vmem:[%s4910_s29 + $0x2fd8] sm:$0xff]  ;;  %v1725_v3 = vld [vmem:[%s4910_s29 + $0x2dc0] sm:$0xff] }
 0x2f5   : > { %4116 = vmatprep.subr.mxu1 %v1758_v4  ;;  %4048 = vmatpush1.msra.mxu0 %v1691_v5  ;;  %v1791_v4 = vld [vmem:[%s4910_s29 + $0x2fd0] sm:$0xff]  ;;  %v1724_v5 = vld [vmem:[%s4910_s29 + $0x2db8] sm:$0xff] }
 0x2f6   : > { %4117 = vmatpush1.msra.mxu1 %v1757_v6  ;;  %4049 = vmatprep.subr.mxu0 %v1690_v7  ;;  %v1790_v6 = vld [vmem:[%s4910_s29 + $0x2fc8] sm:$0xff]  ;;  %v1723_v7 = vld [vmem:[%s4910_s29 + $0x2db0] sm:$0xff] }
 0x2f7   : > { %4118 = vmatprep.subr.mxu1 %v1756_v8  ;;  %4050 = vmatpush1.msra.mxu0 %v1689_v9  ;;  %v1789_v8 = vld [vmem:[%s4910_s29 + $0x2fc0] sm:$0xff]  ;;  %v1722_v9 = vld [vmem:[%s4910_s29 + $0x2da8] sm:$0xff] }
 0x2f8   : > { %4119 = vmatpush1.msra.mxu1 %v1755_v10  ;;  %4051 = vmatprep.subr.mxu0 %v1688_v11  ;;  %v1788_v10 = vld [vmem:[%s4910_s29 + $0x2fb8] sm:$0xff]  ;;  %v1721_v11 = vld [vmem:[%s4910_s29 + $0x2da0] sm:$0xff] }
 0x2f9   : > { %4120 = vmatprep.subr.mxu1 %v1754_v12  ;;  %4052 = vmatpush1.msra.mxu0 %v1687_v13  ;;  %v1787_v12 = vld [vmem:[%s4910_s29 + $0x2fb0] sm:$0xff]  ;;  %v1720_v13 = vld [vmem:[%s4910_s29 + $0x2d98] sm:$0xff] }
 0x2fa   : > { %4121 = vmatpush1.msra.mxu1 %v1753_v14  ;;  %4053 = vmatprep.subr.mxu0 %v1686_v15  ;;  %v1786_v14 = vld [vmem:[%s4910_s29 + $0x2fa8] sm:$0xff]  ;;  %v1719_v15 = vld [vmem:[%s4910_s29 + $0x2d90] sm:$0xff] }
 0x2fb   : > { %4122 = vmatprep.subr.mxu1 %v1752_v16  ;;  %4054 = vmatpush1.msra.mxu0 %v1685_v17  ;;  %v1785_v16 = vld [vmem:[%s4910_s29 + $0x2fa0] sm:$0xff]  ;;  %v1718_v17 = vld [vmem:[%s4910_s29 + $0x2d88] sm:$0xff] }
 0x2fc   : > { %4123 = vmatpush1.msra.mxu1 %v1751_v18  ;;  %4055 = vmatprep.subr.mxu0 %v1684_v19  ;;  %v1784_v18 = vld [vmem:[%s4910_s29 + $0x2f98] sm:$0xff]  ;;  %v1717_v19 = vld [vmem:[%s4910_s29 + $0x2d80] sm:$0xff] }
 0x2fd   : > { %4124 = vmatprep.subr.mxu1 %v1750_v20  ;;  %4056 = vmatpush1.msra.mxu0 %v1683_v21  ;;  %v1783_v20 = vld [vmem:[%s4910_s29 + $0x2f90] sm:$0xff]  ;;  %v1716_v21 = vld [vmem:[%s4910_s29 + $0x2d78] sm:$0xff] }
 0x2fe   : > { %4125 = vmatpush1.msra.mxu1 %v1749_v22  ;;  %4057 = vmatprep.subr.mxu0 %v1682_v23  ;;  %v1782_v22 = vld [vmem:[%s4910_s29 + $0x2f88] sm:$0xff]  ;;  %v1715_v23 = vld [vmem:[%s4910_s29 + $0x2d70] sm:$0xff] }
 0x2ff   : > { %4126 = vmatprep.subr.mxu1 %v1748_v24  ;;  %4058 = vmatpush1.msra.mxu0 %v1681_v25  ;;  %v1781_v24 = vld [vmem:[%s4910_s29 + $0x2f80] sm:$0xff]  ;;  %v1714_v25 = vld [vmem:[%s4910_s29 + $0x2d68] sm:$0xff] }
 0x300   : > { %4127 = vmatpush1.msra.mxu1 %v1747_v26  ;;  %4059 = vmatprep.subr.mxu0 %v1680_v27  ;;  %v1780_v26 = vld [vmem:[%s4910_s29 + $0x2f78] sm:$0xff]  ;;  %v1713_v27 = vld [vmem:[%s4910_s29 + $0x2d60] sm:$0xff] }
 0x301   : > { %4128 = vmatprep.subr.mxu1 %v1746_v28  ;;  %4060 = vmatpush1.msra.mxu0 %v1679_v29  ;;  %v1779_v28 = vld [vmem:[%s4910_s29 + $0x2f70] sm:$0xff]  ;;  %v1712_v29 = vld [vmem:[%s4910_s29 + $0x2d58] sm:$0xff] }
 0x302   : > { %4129 = vmatpush1.msra.mxu1 %v1745_v30  ;;  %4061 = vmatprep.subr.mxu0 %v1678_v31  ;;  %v1778_v30 = vld [vmem:[%s4910_s29 + $0x2f68] sm:$0xff]  ;;  %v1711_v31 = vld [vmem:[%s4910_s29 + $0x2d50] sm:$0xff] }
 0x303   : > { %4130 = vmatprep.subr.mxu1 %v1744_v32  ;;  %4062 = vmatpush1.msra.mxu0 %v1677_v33  ;;  %v1777_v32 = vld [vmem:[%s4910_s29 + $0x2f60] sm:$0xff]  ;;  %v1710_v33 = vld [vmem:[%s4910_s29 + $0x2d48] sm:$0xff] }
 0x304   : > { %4131 = vmatpush1.msra.mxu1 %v1743_v34  ;;  %4063 = vmatprep.subr.mxu0 %v1676_v35  ;;  %v1776_v34 = vld [vmem:[%s4910_s29 + $0x2f58] sm:$0xff] }
 0x305   : > { %4132 = vmatprep.subr.mxu1 %v1742_v36  ;;  %4064 = vmatpush1.msra.mxu0 %v1675_v37  ;;  %v257_v35 = vld [vmem:[%s4905_s25 + $0x58] sm:$0xff]  ;;  %v1709_v36 = vld [vmem:[%s4910_s29 + $0x2d40] sm:$0xff]  ;;  %v1775_v37 = vld [vmem:[%s4910_s29 + $0x2f50] sm:$0xff] }
 0x306   : > { %4133 = vmatpush1.msra.mxu1 %v1741_v38  ;;  %4065 = vmatprep.subr.mxu0 %v1674_v39  ;;  %v1708_v38 = vld [vmem:[%s4910_s29 + $0x2d38] sm:$0xff]  ;;  %v1774_v39 = vld [vmem:[%s4910_s29 + $0x2f48] sm:$0xff] }
 0x307   : > { %4134 = vmatprep.subr.mxu1 %v1740_v40  ;;  %4066 = vmatpush1.msra.mxu0 %v1673_v41  ;;  %v1707_v40 = vld [vmem:[%s4910_s29 + $0x2d30] sm:$0xff]  ;;  %v1773_v41 = vld [vmem:[%s4910_s29 + $0x2f40] sm:$0xff] }
 0x308   : > { %4135 = vmatpush1.msra.mxu1 %v1739_v42  ;;  %4067 = vmatprep.subr.mxu0 %v1672_v44  ;;  %v2351_v42 = vcombine.high %v257_v35, %v257_v35  ;;  %v1706_v44 = vld [vmem:[%s4910_s29 + $0x2d28] sm:$0xff] }
 0x309   : > { %4136 = vmatprep.subr.mxu1 %v1738_v45  ;;  %4068 = vmatpush1.msra.mxu0 %v1671_v46  ;;  %v1772_v45 = vld [vmem:[%s4910_s29 + $0x2f38] sm:$0xff]  ;;  %v2358_v46 = vrot.slane %v257_v35, %v5027_v53  ;;  %v1809_v35 = vld [vmem:[%s4910_s29 + $0x3060] sm:$0xff] }
 0x30a   : > { %4137 = vmatpush1.msra.mxu1 %v1737_v47  ;;  %4069 = vmatprep.subr.mxu0 %v1670_v48  ;;  %v1705_v47 = vld [vmem:[%s4910_s29 + $0x2d20] sm:$0xff]  ;;  %v1771_v48 = vld [vmem:[%s4910_s29 + $0x2f30] sm:$0xff] }
 0x30b   : > { %4138 = vmatprep.subr.mxu1 %v1736_v49  ;;  %4070 = vmatpush1.msra.mxu0 %v1669_v50  ;;  %v1704_v49 = vld [vmem:[%s4910_s29 + $0x2d18] sm:$0xff]  ;;  %v1770_v50 = vld [vmem:[%s4910_s29 + $0x2f28] sm:$0xff] }
 0x30c   : > { %4139 = vmatpush1.msra.mxu1 %v1735_v51  ;;  %4071 = vmatprep.subr.mxu0 %v1732_v52  ;;  %v1703_v51 = vld [vmem:[%s4910_s29 + $0x2d10] sm:$0xff]  ;;  %v1769_v52 = vld [vmem:[%s4910_s29 + $0x2f20] sm:$0xff] }
 0x30d   : > { %4140 = vmatprep.subr.mxu1 %v1734_v54  ;;  %4072 = vmatpush2.msra.mxu0 %v1731_v55  ;;  %v2365_v54 = vrot.slane %v2351_v42, %v5027_v53  ;;  %v1702_v55 = vld [vmem:[%s4910_s29 + $0x2d08] sm:$0xff]  ;;  %v1872_v42 = vld [vmem:[%s4910_s29 + $0x3258] sm:$0xff] }
 0x30e   : > { %4141 = vmatpush1.msra.mxu1 %v1733_v56  ;;  %4073 = vmatprep.subr.mxu0 %v1730_v57  ;;  %v1768_v56 = vld [vmem:[%s4910_s29 + $0x2f18] sm:$0xff]  ;;  %v2366_v57 = vcombine.high %v2358_v46, %v2358_v46 }
 0x30f   : > { %4142 = vmatprep.subr.mxu1 %v1796_v58  ;;  %4074 = vmatpush2.msra.mxu0 %v1729_v59  ;;  %v1701_v58 = vld [vmem:[%s4910_s29 + $0x2d00] sm:$0xff]  ;;  %v1767_v59 = vld [vmem:[%s4910_s29 + $0x2f10] sm:$0xff] }
 0x310   : > { %4143 = vmatpush2.msra.mxu1 %v1795_v60  ;;  %4075 = vmatprep.subr.mxu0 %v1728_v61  ;;  %v1766_v60 = vld [vmem:[%s4910_s29 + $0x2f08] sm:$0xff]  ;;  %v1828_v61 = vld [vmem:[%s4910_s29 + $0x30f8] sm:$0xff] }
 0x311   : > { %4144 = vmatprep.subr.mxu1 %v1794_v62  ;;  %4076 = vmatpush2.msra.mxu0 %v1727_v63  ;;  %v2367_v62 = vcombine.high %v2365_v54, %v2365_v54  ;;  %v1765_v63 = vld [vmem:[%s4910_s29 + $0x2f00] sm:$0xff] }
 0x312   : > { %4145 = vmatpush2.msra.mxu1 %v1793_v0  ;;  %4077 = vmatprep.subr.mxu0 %v1726_v1  ;;  %v1827_v0 = vld [vmem:[%s4910_s29 + $0x30f0] sm:$0xff]  ;;  %v1826_v1 = vld [vmem:[%s4910_s29 + $0x30e8] sm:$0xff] }
 0x313   : > { %4146 = vmatprep.subr.mxu1 %v1792_v2  ;;  %4078 = vmatpush2.msra.mxu0 %v1725_v3  ;;  %v1892_v2 = vld [vmem:[%s4910_s29 + $0x32f8] sm:$0xff]  ;;  %v1825_v3 = vld [vmem:[%s4910_s29 + $0x30e0] sm:$0xff] }
 0x314   : > { %4147 = vmatpush2.msra.mxu1 %v1791_v4  ;;  %4079 = vmatprep.subr.mxu0 %v1724_v5  ;;  %v1891_v4 = vld [vmem:[%s4910_s29 + $0x32f0] sm:$0xff]  ;;  %v1824_v5 = vld [vmem:[%s4910_s29 + $0x30d8] sm:$0xff] }
 0x315   : > { %4148 = vmatprep.subr.mxu1 %v1790_v6  ;;  %4080 = vmatpush2.msra.mxu0 %v1723_v7  ;;  %v1890_v6 = vld [vmem:[%s4910_s29 + $0x32e8] sm:$0xff]  ;;  %v1823_v7 = vld [vmem:[%s4910_s29 + $0x30d0] sm:$0xff] }
 0x316   : > { %4149 = vmatpush2.msra.mxu1 %v1789_v8  ;;  %4081 = vmatprep.subr.mxu0 %v1722_v9  ;;  %v1889_v8 = vld [vmem:[%s4910_s29 + $0x32e0] sm:$0xff]  ;;  %v1822_v9 = vld [vmem:[%s4910_s29 + $0x30c8] sm:$0xff] }
 0x317   : > { %4150 = vmatprep.subr.mxu1 %v1788_v10  ;;  %4082 = vmatpush2.msra.mxu0 %v1721_v11  ;;  %v1888_v10 = vld [vmem:[%s4910_s29 + $0x32d8] sm:$0xff]  ;;  %v1821_v11 = vld [vmem:[%s4910_s29 + $0x30c0] sm:$0xff] }
 0x318   : > { %4151 = vmatpush2.msra.mxu1 %v1787_v12  ;;  %4083 = vmatprep.subr.mxu0 %v1720_v13  ;;  %v1887_v12 = vld [vmem:[%s4910_s29 + $0x32d0] sm:$0xff]  ;;  %v1820_v13 = vld [vmem:[%s4910_s29 + $0x30b8] sm:$0xff] }
 0x319   : > { %4152 = vmatprep.subr.mxu1 %v1786_v14  ;;  %4084 = vmatpush2.msra.mxu0 %v1719_v15  ;;  %v1886_v14 = vld [vmem:[%s4910_s29 + $0x32c8] sm:$0xff]  ;;  %v1819_v15 = vld [vmem:[%s4910_s29 + $0x30b0] sm:$0xff] }
 0x31a   : > { %4153 = vmatpush2.msra.mxu1 %v1785_v16  ;;  %4085 = vmatprep.subr.mxu0 %v1718_v17  ;;  %v1885_v16 = vld [vmem:[%s4910_s29 + $0x32c0] sm:$0xff]  ;;  %v1818_v17 = vld [vmem:[%s4910_s29 + $0x30a8] sm:$0xff] }
 0x31b   : > { %4154 = vmatprep.subr.mxu1 %v1784_v18  ;;  %4086 = vmatpush2.msra.mxu0 %v1717_v19  ;;  %v1884_v18 = vld [vmem:[%s4910_s29 + $0x32b8] sm:$0xff]  ;;  %v1817_v19 = vld [vmem:[%s4910_s29 + $0x30a0] sm:$0xff] }
 0x31c   : > { %4155 = vmatpush2.msra.mxu1 %v1783_v20  ;;  %4087 = vmatprep.subr.mxu0 %v1716_v21  ;;  %v1883_v20 = vld [vmem:[%s4910_s29 + $0x32b0] sm:$0xff]  ;;  %v1816_v21 = vld [vmem:[%s4910_s29 + $0x3098] sm:$0xff] }
 0x31d   : > { %4156 = vmatprep.subr.mxu1 %v1782_v22  ;;  %4088 = vmatpush2.msra.mxu0 %v1715_v23  ;;  %v1882_v22 = vld [vmem:[%s4910_s29 + $0x32a8] sm:$0xff]  ;;  %v1815_v23 = vld [vmem:[%s4910_s29 + $0x3090] sm:$0xff] }
 0x31e   : > { %4157 = vmatpush2.msra.mxu1 %v1781_v24  ;;  %4089 = vmatprep.subr.mxu0 %v1714_v25  ;;  %v1881_v24 = vld [vmem:[%s4910_s29 + $0x32a0] sm:$0xff]  ;;  %v1814_v25 = vld [vmem:[%s4910_s29 + $0x3088] sm:$0xff] }
 0x31f   : > { %4158 = vmatprep.subr.mxu1 %v1780_v26  ;;  %4090 = vmatpush2.msra.mxu0 %v1713_v27  ;;  %v1880_v26 = vld [vmem:[%s4910_s29 + $0x3298] sm:$0xff]  ;;  %v1813_v27 = vld [vmem:[%s4910_s29 + $0x3080] sm:$0xff] }
 0x320   : > { %4159 = vmatpush2.msra.mxu1 %v1779_v28  ;;  %4091 = vmatprep.subr.mxu0 %v1712_v29  ;;  %v1879_v28 = vld [vmem:[%s4910_s29 + $0x3290] sm:$0xff]  ;;  %v1812_v29 = vld [vmem:[%s4910_s29 + $0x3078] sm:$0xff] }
 0x321   : > { %4160 = vmatprep.subr.mxu1 %v1778_v30  ;;  %4092 = vmatpush2.msra.mxu0 %v1711_v31  ;;  %v1878_v30 = vld [vmem:[%s4910_s29 + $0x3288] sm:$0xff]  ;;  %v1811_v31 = vld [vmem:[%s4910_s29 + $0x3070] sm:$0xff] }
 0x322   : > { %4161 = vmatpush2.msra.mxu1 %v1777_v32  ;;  %4093 = vmatprep.subr.mxu0 %v1710_v33  ;;  %v1877_v32 = vld [vmem:[%s4910_s29 + $0x3280] sm:$0xff]  ;;  %v1810_v33 = vld [vmem:[%s4910_s29 + $0x3068] sm:$0xff] }
 0x323   : > { %4162 = vmatprep.subr.mxu1 %v1776_v34  ;;  %4094 = vmatpush2.msra.mxu0 %v1709_v36  ;;  %v1876_v34 = vld [vmem:[%s4910_s29 + $0x3278] sm:$0xff]  ;;  %v1875_v36 = vld [vmem:[%s4910_s29 + $0x3270] sm:$0xff] }
 0x324   : > { %4163 = vmatpush2.msra.mxu1 %v1775_v37  ;;  %4095 = vmatprep.subr.mxu0 %v1708_v38  ;;  %v1808_v37 = vld [vmem:[%s4910_s29 + $0x3058] sm:$0xff]  ;;  %v1874_v38 = vld [vmem:[%s4910_s29 + $0x3268] sm:$0xff] }
 0x325   : > { %4164 = vmatprep.subr.mxu1 %v1774_v39  ;;  %4096 = vmatpush2.msra.mxu0 %v1707_v40  ;;  %v1807_v39 = vld [vmem:[%s4910_s29 + $0x3050] sm:$0xff]  ;;  %v1873_v40 = vld [vmem:[%s4910_s29 + $0x3260] sm:$0xff] }
 0x326   : > { %4165 = vmatpush2.msra.mxu1 %v1773_v41  ;;  %4097 = vmatprep.subr.mxu0 %v1706_v44  ;;  %v1806_v41 = vld [vmem:[%s4910_s29 + $0x3048] sm:$0xff]  ;;  %v1805_v44 = vld [vmem:[%s4910_s29 + $0x3040] sm:$0xff] }
 0x327   : > { %4166 = vmatprep.subr.mxu1 %v1772_v45  ;;  %4098 = vmatpush2.msra.mxu0 %v1705_v47  ;;  %v1871_v45 = vld [vmem:[%s4910_s29 + $0x3250] sm:$0xff]  ;;  %v1870_v47 = vld [vmem:[%s4910_s29 + $0x3248] sm:$0xff] }
 0x328   : > { %4167 = vmatpush2.msra.mxu1 %v1771_v48  ;;  %4099 = vmatprep.subr.mxu0 %v1704_v49  ;;  %v1803_v48 = vld [vmem:[%s4910_s29 + $0x3030] sm:$0xff]  ;;  %v1869_v49 = vld [vmem:[%s4910_s29 + $0x3240] sm:$0xff] }
 0x329   : > { %4168 = vmatprep.subr.mxu1 %v1770_v50  ;;  %4100 = vmatpush2.msra.mxu0 %v1703_v51  ;;  %v1802_v50 = vld [vmem:[%s4910_s29 + $0x3028] sm:$0xff]  ;;  %v1868_v51 = vld [vmem:[%s4910_s29 + $0x3238] sm:$0xff] }
 0x32a   : > { %4169 = vmatpush2.msra.mxu1 %v1769_v52  ;;  %4101 = vmatprep.subr.mxu0 %v1702_v55  ;;  %v1801_v52 = vld [vmem:[%s4910_s29 + $0x3020] sm:$0xff]  ;;  %v1800_v55 = vld [vmem:[%s4910_s29 + $0x3018] sm:$0xff] }
 0x32b   : > { %4170 = vmatprep.subr.mxu1 %v1768_v56  ;;  %4102 = vmatpush2.msra.mxu0 %v1701_v58  ;;  %v1866_v56 = vld [vmem:[%s4910_s29 + $0x3228] sm:$0xff]  ;;  %v1865_v58 = vld [vmem:[%s4910_s29 + $0x3220] sm:$0xff] }
 0x32c   : > { %4103 = vmatprep.mubr.f32.mxu0 %v2366_v57  ;;  %4171 = vmatpush2.msra.mxu1 %v1767_v59  ;;  %v1799_v57 = vld [vmem:[%s4910_s29 + $0x3010] sm:$0xff]  ;;  %v1798_v59 = vld [vmem:[%s4910_s29 + $0x3008] sm:$0xff] }
 0x32d   : > { %4104 = vmatmul.mubr.f32.vlgmr.msra.gmra.mxu0 %v2358_v46  ;;  %4172 = vmatprep.subr.mxu1 %v1766_v60  ;;  %v1804_v46 = vld [vmem:[%s4910_s29 + $0x3038] sm:$0xff] }
 0x32e   : > { %4181 = vmatprep.subr.mxu0 %v1828_v61  ;;  %4173 = vmatpush2.msra.mxu1 %v1765_v63  ;;  %v1864_v60 = vld [vmem:[%s4910_s29 + $0x3218] sm:$0xff]  ;;  %v1797_v61 = vld [vmem:[%s4910_s29 + $0x3000] sm:$0xff] }
 0x32f   : > { %4174 = vmatprep.mubr.f32.mxu1 %v2367_v62  ;;  %4182 = vmatpush1.msra.mxu0 %v1827_v0  ;;  %v1863_v62 = vld [vmem:[%s4910_s29 + $0x3210] sm:$0xff]  ;;  %v1860_v63 = vld [vmem:[%s4910_s29 + $0x31f8] sm:$0xff]  ;;  %v1862_v0 = vld [vmem:[%s4910_s29 + $0x3208] sm:$0xff] }
 0x330   : > { %4175 = vmatmul.mubr.f32.vlgmr.msra.gmra.mxu1 %v2365_v54  ;;  %4183 = vmatprep.subr.mxu0 %v1826_v1  ;;  %v1867_v54 = vld [vmem:[%s4910_s29 + $0x3230] sm:$0xff] }
 0x331   : > { %4252 = vmatprep.subr.mxu1 %v1892_v2  ;;  %4184 = vmatpush1.msra.mxu0 %v1825_v3  ;;  %v1859_v1 = vld [vmem:[%s4910_s29 + $0x31f0] sm:$0xff]  ;;  %v1861_v2 = vld [vmem:[%s4910_s29 + $0x3200] sm:$0xff]  ;;  %v1858_v3 = vld [vmem:[%s4910_s29 + $0x31e8] sm:$0xff] }
 0x332   : > { %4253 = vmatpush1.msra.mxu1 %v1891_v4  ;;  %4185 = vmatprep.subr.mxu0 %v1824_v5  ;;  %v1924_v4 = vld [vmem:[%s4910_s29 + $0x33f8] sm:$0xff]  ;;  %v1857_v5 = vld [vmem:[%s4910_s29 + $0x31e0] sm:$0xff] }
 0x333   : > { %4254 = vmatprep.subr.mxu1 %v1890_v6  ;;  %4186 = vmatpush1.msra.mxu0 %v1823_v7  ;;  %v1923_v6 = vld [vmem:[%s4910_s29 + $0x33f0] sm:$0xff]  ;;  %v1856_v7 = vld [vmem:[%s4910_s29 + $0x31d8] sm:$0xff] }
 0x334   : > { %4255 = vmatpush1.msra.mxu1 %v1889_v8  ;;  %4187 = vmatprep.subr.mxu0 %v1822_v9  ;;  %v1922_v8 = vld [vmem:[%s4910_s29 + $0x33e8] sm:$0xff]  ;;  %v1855_v9 = vld [vmem:[%s4910_s29 + $0x31d0] sm:$0xff] }
 0x335   : > { %4256 = vmatprep.subr.mxu1 %v1888_v10  ;;  %4188 = vmatpush1.msra.mxu0 %v1821_v11  ;;  %v1921_v10 = vld [vmem:[%s4910_s29 + $0x33e0] sm:$0xff]  ;;  %v1854_v11 = vld [vmem:[%s4910_s29 + $0x31c8] sm:$0xff] }
 0x336   : > { %4257 = vmatpush1.msra.mxu1 %v1887_v12  ;;  %4189 = vmatprep.subr.mxu0 %v1820_v13  ;;  %v1920_v12 = vld [vmem:[%s4910_s29 + $0x33d8] sm:$0xff]  ;;  %v1853_v13 = vld [vmem:[%s4910_s29 + $0x31c0] sm:$0xff] }
 0x337   : > { %4258 = vmatprep.subr.mxu1 %v1886_v14  ;;  %4190 = vmatpush1.msra.mxu0 %v1819_v15  ;;  %v1919_v14 = vld [vmem:[%s4910_s29 + $0x33d0] sm:$0xff]  ;;  %v1852_v15 = vld [vmem:[%s4910_s29 + $0x31b8] sm:$0xff] }
 0x338   : > { %4259 = vmatpush1.msra.mxu1 %v1885_v16  ;;  %4191 = vmatprep.subr.mxu0 %v1818_v17  ;;  %v1918_v16 = vld [vmem:[%s4910_s29 + $0x33c8] sm:$0xff]  ;;  %v1851_v17 = vld [vmem:[%s4910_s29 + $0x31b0] sm:$0xff] }
 0x339   : > { %4260 = vmatprep.subr.mxu1 %v1884_v18  ;;  %4192 = vmatpush1.msra.mxu0 %v1817_v19  ;;  %v1917_v18 = vld [vmem:[%s4910_s29 + $0x33c0] sm:$0xff]  ;;  %v1850_v19 = vld [vmem:[%s4910_s29 + $0x31a8] sm:$0xff] }
 0x33a   : > { %4261 = vmatpush1.msra.mxu1 %v1883_v20  ;;  %4193 = vmatprep.subr.mxu0 %v1816_v21  ;;  %v1916_v20 = vld [vmem:[%s4910_s29 + $0x33b8] sm:$0xff]  ;;  %v1849_v21 = vld [vmem:[%s4910_s29 + $0x31a0] sm:$0xff] }
 0x33b   : > { %4262 = vmatprep.subr.mxu1 %v1882_v22  ;;  %4194 = vmatpush1.msra.mxu0 %v1815_v23  ;;  %v1915_v22 = vld [vmem:[%s4910_s29 + $0x33b0] sm:$0xff]  ;;  %v1848_v23 = vld [vmem:[%s4910_s29 + $0x3198] sm:$0xff] }
 0x33c   : > { %4263 = vmatpush1.msra.mxu1 %v1881_v24  ;;  %4195 = vmatprep.subr.mxu0 %v1814_v25  ;;  %v1914_v24 = vld [vmem:[%s4910_s29 + $0x33a8] sm:$0xff]  ;;  %v1847_v25 = vld [vmem:[%s4910_s29 + $0x3190] sm:$0xff] }
 0x33d   : > { %4264 = vmatprep.subr.mxu1 %v1880_v26  ;;  %4196 = vmatpush1.msra.mxu0 %v1813_v27  ;;  %v1913_v26 = vld [vmem:[%s4910_s29 + $0x33a0] sm:$0xff]  ;;  %v1846_v27 = vld [vmem:[%s4910_s29 + $0x3188] sm:$0xff] }
 0x33e   : > { %4265 = vmatpush1.msra.mxu1 %v1879_v28  ;;  %4197 = vmatprep.subr.mxu0 %v1812_v29  ;;  %v1912_v28 = vld [vmem:[%s4910_s29 + $0x3398] sm:$0xff]  ;;  %v1845_v29 = vld [vmem:[%s4910_s29 + $0x3180] sm:$0xff] }
 0x33f   : > { %4266 = vmatprep.subr.mxu1 %v1878_v30  ;;  %4198 = vmatpush1.msra.mxu0 %v1811_v31  ;;  %v1911_v30 = vld [vmem:[%s4910_s29 + $0x3390] sm:$0xff]  ;;  %v1844_v31 = vld [vmem:[%s4910_s29 + $0x3178] sm:$0xff] }
 0x340   : > { %4267 = vmatpush1.msra.mxu1 %v1877_v32  ;;  %4199 = vmatprep.subr.mxu0 %v1810_v33  ;;  %v1910_v32 = vld [vmem:[%s4910_s29 + $0x3388] sm:$0xff]  ;;  %v1843_v33 = vld [vmem:[%s4910_s29 + $0x3170] sm:$0xff] }
 0x341   : > { %4268 = vmatprep.subr.mxu1 %v1876_v34  ;;  %4200 = vmatpush1.msra.mxu0 %v1809_v35  ;;  %v1909_v34 = vld [vmem:[%s4910_s29 + $0x3380] sm:$0xff]  ;;  %v1842_v35 = vld [vmem:[%s4910_s29 + $0x3168] sm:$0xff] }
 0x342   : > { %4269 = vmatpush1.msra.mxu1 %v1875_v36  ;;  %4201 = vmatprep.subr.mxu0 %v1808_v37  ;;  %v1908_v36 = vld [vmem:[%s4910_s29 + $0x3378] sm:$0xff]  ;;  %v1841_v37 = vld [vmem:[%s4910_s29 + $0x3160] sm:$0xff] }
 0x343   : > { %4270 = vmatprep.subr.mxu1 %v1874_v38  ;;  %4202 = vmatpush1.msra.mxu0 %v1807_v39  ;;  %v1907_v38 = vld [vmem:[%s4910_s29 + $0x3370] sm:$0xff]  ;;  %v1840_v39 = vld [vmem:[%s4910_s29 + $0x3158] sm:$0xff] }
 0x344   : > { %4271 = vmatpush1.msra.mxu1 %v1873_v40  ;;  %4203 = vmatprep.subr.mxu0 %v1806_v41  ;;  %v1906_v40 = vld [vmem:[%s4910_s29 + $0x3368] sm:$0xff]  ;;  %v1839_v41 = vld [vmem:[%s4910_s29 + $0x3150] sm:$0xff] }
 0x345   : > { %4272 = vmatprep.subr.mxu1 %v1872_v42  ;;  %4204 = vmatpush1.msra.mxu0 %v1805_v44  ;;  %v1905_v42 = vld [vmem:[%s4910_s29 + $0x3360] sm:$0xff]  ;;  %v1838_v44 = vld [vmem:[%s4910_s29 + $0x3148] sm:$0xff] }
 0x346   : > { %4273 = vmatpush1.msra.mxu1 %v1871_v45  ;;  %4205 = vmatprep.subr.mxu0 %v1804_v46  ;;  %v1904_v45 = vld [vmem:[%s4910_s29 + $0x3358] sm:$0xff]  ;;  %v258_v46 = vld [vmem:[%s4905_s25 + $0x60] sm:$0xff] }
 0x347   : > { %4274 = vmatprep.subr.mxu1 %v1870_v47  ;;  %4206 = vmatpush1.msra.mxu0 %v1803_v48  ;;  %v1837_v47 = vld [vmem:[%s4910_s29 + $0x3140] sm:$0xff]  ;;  %v1903_v48 = vld [vmem:[%s4910_s29 + $0x3350] sm:$0xff] }
 0x348   : > { %4275 = vmatpush1.msra.mxu1 %v1869_v49  ;;  %4207 = vmatprep.subr.mxu0 %v1802_v50  ;;  %v1836_v49 = vld [vmem:[%s4910_s29 + $0x3138] sm:$0xff]  ;;  %v1902_v50 = vld [vmem:[%s4910_s29 + $0x3348] sm:$0xff] }
 0x349   : > { %4276 = vmatprep.subr.mxu1 %v1868_v51  ;;  %4208 = vmatpush1.msra.mxu0 %v1801_v52  ;;  %v1835_v51 = vld [vmem:[%s4910_s29 + $0x3130] sm:$0xff]  ;;  %v1901_v52 = vld [vmem:[%s4910_s29 + $0x3340] sm:$0xff] }
 0x34a   : > { %4277 = vmatpush1.msra.mxu1 %v1867_v54  ;;  %4209 = vmatprep.subr.mxu0 %v1800_v55  ;;  %v2368_v54 = vcombine.high %v258_v46, %v258_v46  ;;  %v1834_v55 = vld [vmem:[%s4910_s29 + $0x3128] sm:$0xff] }
 0x34b   : > { %4278 = vmatprep.subr.mxu1 %v1866_v56  ;;  %4210 = vmatpush1.msra.mxu0 %v1799_v57  ;;  %v1900_v56 = vld [vmem:[%s4910_s29 + $0x3338] sm:$0xff]  ;;  %v2375_v57 = vrot.slane %v258_v46, %v5027_v53  ;;  %v1937_v46 = vld [vmem:[%s4910_s29 + $0x3460] sm:$0xff] }
 0x34c   : > { %4279 = vmatpush1.msra.mxu1 %v1865_v58  ;;  %4211 = vmatprep.subr.mxu0 %v1798_v59  ;;  %v1833_v58 = vld [vmem:[%s4910_s29 + $0x3120] sm:$0xff]  ;;  %v1899_v59 = vld [vmem:[%s4910_s29 + $0x3330] sm:$0xff] }
 0x34d   : > { %4280 = vmatprep.subr.mxu1 %v1864_v60  ;;  %4212 = vmatpush1.msra.mxu0 %v1797_v61  ;;  %v1832_v60 = vld [vmem:[%s4910_s29 + $0x3118] sm:$0xff]  ;;  %v1898_v61 = vld [vmem:[%s4910_s29 + $0x3328] sm:$0xff] }
 0x34e   : > { %4281 = vmatpush1.msra.mxu1 %v1863_v62  ;;  %4213 = vmatprep.subr.mxu0 %v1860_v63  ;;  %v1831_v62 = vld [vmem:[%s4910_s29 + $0x3110] sm:$0xff]  ;;  %v1897_v63 = vld [vmem:[%s4910_s29 + $0x3320] sm:$0xff] }
 0x34f   : > { %4282 = vmatprep.subr.mxu1 %v1862_v0  ;;  %4214 = vmatpush2.msra.mxu0 %v1859_v1  ;;  %v2382_v0 = vrot.slane %v2368_v54, %v5027_v53  ;;  %v1830_v1 = vld [vmem:[%s4910_s29 + $0x3108] sm:$0xff]  ;;  %v2000_v54 = vld [vmem:[%s4910_s29 + $0x3658] sm:$0xff] }
 0x350   : > { %4283 = vmatpush1.msra.mxu1 %v1861_v2  ;;  %4215 = vmatprep.subr.mxu0 %v1858_v3  ;;  %v1896_v2 = vld [vmem:[%s4910_s29 + $0x3318] sm:$0xff]  ;;  %v2383_v3 = vcombine.high %v2375_v57, %v2375_v57 }
 0x351   : > { %4284 = vmatprep.subr.mxu1 %v1924_v4  ;;  %4216 = vmatpush2.msra.mxu0 %v1857_v5  ;;  %v1829_v4 = vld [vmem:[%s4910_s29 + $0x3100] sm:$0xff]  ;;  %v1895_v5 = vld [vmem:[%s4910_s29 + $0x3310] sm:$0xff] }
 0x352   : > { %4285 = vmatpush2.msra.mxu1 %v1923_v6  ;;  %4217 = vmatprep.subr.mxu0 %v1856_v7  ;;  %v1894_v6 = vld [vmem:[%s4910_s29 + $0x3308] sm:$0xff]  ;;  %v1956_v7 = vld [vmem:[%s4910_s29 + $0x34f8] sm:$0xff] }
 0x353   : > { %4286 = vmatprep.subr.mxu1 %v1922_v8  ;;  %4218 = vmatpush2.msra.mxu0 %v1855_v9  ;;  %v2384_v8 = vcombine.high %v2382_v0, %v2382_v0  ;;  %v1893_v9 = vld [vmem:[%s4910_s29 + $0x3300] sm:$0xff] }
 0x354   : > { %4287 = vmatpush2.msra.mxu1 %v1921_v10  ;;  %4219 = vmatprep.subr.mxu0 %v1854_v11  ;;  %v1955_v10 = vld [vmem:[%s4910_s29 + $0x34f0] sm:$0xff]  ;;  %v1954_v11 = vld [vmem:[%s4910_s29 + $0x34e8] sm:$0xff] }
 0x355   : > { %4288 = vmatprep.subr.mxu1 %v1920_v12  ;;  %4220 = vmatpush2.msra.mxu0 %v1853_v13  ;;  %v2020_v12 = vld [vmem:[%s4910_s29 + $0x36f8] sm:$0xff]  ;;  %v1953_v13 = vld [vmem:[%s4910_s29 + $0x34e0] sm:$0xff] }
 0x356   : > { %4289 = vmatpush2.msra.mxu1 %v1919_v14  ;;  %4221 = vmatprep.subr.mxu0 %v1852_v15  ;;  %v2019_v14 = vld [vmem:[%s4910_s29 + $0x36f0] sm:$0xff]  ;;  %v1952_v15 = vld [vmem:[%s4910_s29 + $0x34d8] sm:$0xff] }
 0x357   : > { %4290 = vmatprep.subr.mxu1 %v1918_v16  ;;  %4222 = vmatpush2.msra.mxu0 %v1851_v17  ;;  %v2018_v16 = vld [vmem:[%s4910_s29 + $0x36e8] sm:$0xff]  ;;  %v1951_v17 = vld [vmem:[%s4910_s29 + $0x34d0] sm:$0xff] }
 0x358   : > { %4291 = vmatpush2.msra.mxu1 %v1917_v18  ;;  %4223 = vmatprep.subr.mxu0 %v1850_v19  ;;  %v2017_v18 = vld [vmem:[%s4910_s29 + $0x36e0] sm:$0xff]  ;;  %v1950_v19 = vld [vmem:[%s4910_s29 + $0x34c8] sm:$0xff] }
 0x359   : > { %4292 = vmatprep.subr.mxu1 %v1916_v20  ;;  %4224 = vmatpush2.msra.mxu0 %v1849_v21  ;;  %v2016_v20 = vld [vmem:[%s4910_s29 + $0x36d8] sm:$0xff]  ;;  %v1949_v21 = vld [vmem:[%s4910_s29 + $0x34c0] sm:$0xff] }
 0x35a   : > { %4293 = vmatpush2.msra.mxu1 %v1915_v22  ;;  %4225 = vmatprep.subr.mxu0 %v1848_v23  ;;  %v2015_v22 = vld [vmem:[%s4910_s29 + $0x36d0] sm:$0xff]  ;;  %v1948_v23 = vld [vmem:[%s4910_s29 + $0x34b8] sm:$0xff] }
 0x35b   : > { %4294 = vmatprep.subr.mxu1 %v1914_v24  ;;  %4226 = vmatpush2.msra.mxu0 %v1847_v25  ;;  %v2014_v24 = vld [vmem:[%s4910_s29 + $0x36c8] sm:$0xff]  ;;  %v1947_v25 = vld [vmem:[%s4910_s29 + $0x34b0] sm:$0xff] }
 0x35c   : > { %4295 = vmatpush2.msra.mxu1 %v1913_v26  ;;  %4227 = vmatprep.subr.mxu0 %v1846_v27  ;;  %v2013_v26 = vld [vmem:[%s4910_s29 + $0x36c0] sm:$0xff]  ;;  %v1946_v27 = vld [vmem:[%s4910_s29 + $0x34a8] sm:$0xff] }
 0x35d   : > { %4296 = vmatprep.subr.mxu1 %v1912_v28  ;;  %4228 = vmatpush2.msra.mxu0 %v1845_v29  ;;  %v2012_v28 = vld [vmem:[%s4910_s29 + $0x36b8] sm:$0xff]  ;;  %v1945_v29 = vld [vmem:[%s4910_s29 + $0x34a0] sm:$0xff] }
 0x35e   : > { %4297 = vmatpush2.msra.mxu1 %v1911_v30  ;;  %4229 = vmatprep.subr.mxu0 %v1844_v31  ;;  %v2011_v30 = vld [vmem:[%s4910_s29 + $0x36b0] sm:$0xff]  ;;  %v1944_v31 = vld [vmem:[%s4910_s29 + $0x3498] sm:$0xff] }
 0x35f   : > { %4298 = vmatprep.subr.mxu1 %v1910_v32  ;;  %4230 = vmatpush2.msra.mxu0 %v1843_v33  ;;  %v2010_v32 = vld [vmem:[%s4910_s29 + $0x36a8] sm:$0xff]  ;;  %v1943_v33 = vld [vmem:[%s4910_s29 + $0x3490] sm:$0xff] }
 0x360   : > { %4299 = vmatpush2.msra.mxu1 %v1909_v34  ;;  %4231 = vmatprep.subr.mxu0 %v1842_v35  ;;  %v2009_v34 = vld [vmem:[%s4910_s29 + $0x36a0] sm:$0xff]  ;;  %v1942_v35 = vld [vmem:[%s4910_s29 + $0x3488] sm:$0xff] }
 0x361   : > { %4300 = vmatprep.subr.mxu1 %v1908_v36  ;;  %4232 = vmatpush2.msra.mxu0 %v1841_v37  ;;  %v2008_v36 = vld [vmem:[%s4910_s29 + $0x3698] sm:$0xff]  ;;  %v1941_v37 = vld [vmem:[%s4910_s29 + $0x3480] sm:$0xff] }
 0x362   : > { %4301 = vmatpush2.msra.mxu1 %v1907_v38  ;;  %4233 = vmatprep.subr.mxu0 %v1840_v39  ;;  %v2007_v38 = vld [vmem:[%s4910_s29 + $0x3690] sm:$0xff]  ;;  %v1940_v39 = vld [vmem:[%s4910_s29 + $0x3478] sm:$0xff] }
 0x363   : > { %4302 = vmatprep.subr.mxu1 %v1906_v40  ;;  %4234 = vmatpush2.msra.mxu0 %v1839_v41  ;;  %v2006_v40 = vld [vmem:[%s4910_s29 + $0x3688] sm:$0xff]  ;;  %v1939_v41 = vld [vmem:[%s4910_s29 + $0x3470] sm:$0xff] }
 0x364   : > { %4303 = vmatpush2.msra.mxu1 %v1905_v42  ;;  %4235 = vmatprep.subr.mxu0 %v1838_v44  ;;  %v2005_v42 = vld [vmem:[%s4910_s29 + $0x3680] sm:$0xff]  ;;  %v1938_v44 = vld [vmem:[%s4910_s29 + $0x3468] sm:$0xff] }
 0x365   : > { %4304 = vmatprep.subr.mxu1 %v1904_v45  ;;  %4236 = vmatpush2.msra.mxu0 %v1837_v47  ;;  %v2004_v45 = vld [vmem:[%s4910_s29 + $0x3678] sm:$0xff]  ;;  %v2003_v47 = vld [vmem:[%s4910_s29 + $0x3670] sm:$0xff] }
 0x366   : > { %4305 = vmatpush2.msra.mxu1 %v1903_v48  ;;  %4237 = vmatprep.subr.mxu0 %v1836_v49  ;;  %v1936_v48 = vld [vmem:[%s4910_s29 + $0x3458] sm:$0xff]  ;;  %v2002_v49 = vld [vmem:[%s4910_s29 + $0x3668] sm:$0xff] }
 0x367   : > { %4306 = vmatprep.subr.mxu1 %v1902_v50  ;;  %4238 = vmatpush2.msra.mxu0 %v1835_v51  ;;  %v1935_v50 = vld [vmem:[%s4910_s29 + $0x3450] sm:$0xff]  ;;  %v2001_v51 = vld [vmem:[%s4910_s29 + $0x3660] sm:$0xff] }
 0x368   : > { %4307 = vmatpush2.msra.mxu1 %v1901_v52  ;;  %4239 = vmatprep.subr.mxu0 %v1834_v55  ;;  %v1934_v52 = vld [vmem:[%s4910_s29 + $0x3448] sm:$0xff]  ;;  %v1933_v55 = vld [vmem:[%s4910_s29 + $0x3440] sm:$0xff] }
 0x369   : > { %4308 = vmatprep.subr.mxu1 %v1900_v56  ;;  %4240 = vmatpush2.msra.mxu0 %v1833_v58  ;;  %v1999_v56 = vld [vmem:[%s4910_s29 + $0x3650] sm:$0xff]  ;;  %v1998_v58 = vld [vmem:[%s4910_s29 + $0x3648] sm:$0xff] }
 0x36a   : > { %4309 = vmatpush2.msra.mxu1 %v1899_v59  ;;  %4241 = vmatprep.subr.mxu0 %v1832_v60  ;;  %v1931_v59 = vld [vmem:[%s4910_s29 + $0x3430] sm:$0xff]  ;;  %v1997_v60 = vld [vmem:[%s4910_s29 + $0x3640] sm:$0xff] }
 0x36b   : > { %4310 = vmatprep.subr.mxu1 %v1898_v61  ;;  %4242 = vmatpush2.msra.mxu0 %v1831_v62  ;;  %v1930_v61 = vld [vmem:[%s4910_s29 + $0x3428] sm:$0xff]  ;;  %v1996_v62 = vld [vmem:[%s4910_s29 + $0x3638] sm:$0xff] }
 0x36c   : > { %4311 = vmatpush2.msra.mxu1 %v1897_v63  ;;  %4243 = vmatprep.subr.mxu0 %v1830_v1  ;;  %v1929_v63 = vld [vmem:[%s4910_s29 + $0x3420] sm:$0xff]  ;;  %v1928_v1 = vld [vmem:[%s4910_s29 + $0x3418] sm:$0xff] }
 0x36d   : > { %4312 = vmatprep.subr.mxu1 %v1896_v2  ;;  %4244 = vmatpush2.msra.mxu0 %v1829_v4  ;;  %v1994_v2 = vld [vmem:[%s4910_s29 + $0x3628] sm:$0xff]  ;;  %v1993_v4 = vld [vmem:[%s4910_s29 + $0x3620] sm:$0xff] }
 0x36e   : > { %4245 = vmatprep.mubr.f32.mxu0 %v2383_v3  ;;  %4313 = vmatpush2.msra.mxu1 %v1895_v5  ;;  %v1927_v3 = vld [vmem:[%s4910_s29 + $0x3410] sm:$0xff]  ;;  %v1926_v5 = vld [vmem:[%s4910_s29 + $0x3408] sm:$0xff] }
 0x36f   : > { %4246 = vmatmul.mubr.f32.vlgmr.msra.gmra.mxu0 %v2375_v57  ;;  %4314 = vmatprep.subr.mxu1 %v1894_v6  ;;  %v1932_v57 = vld [vmem:[%s4910_s29 + $0x3438] sm:$0xff] }
 0x370   : > { %4323 = vmatprep.subr.mxu0 %v1956_v7  ;;  %4315 = vmatpush2.msra.mxu1 %v1893_v9  ;;  %v1992_v6 = vld [vmem:[%s4910_s29 + $0x3618] sm:$0xff]  ;;  %v1925_v7 = vld [vmem:[%s4910_s29 + $0x3400] sm:$0xff] }
 0x371   : > { %4316 = vmatprep.mubr.f32.mxu1 %v2384_v8  ;;  %4324 = vmatpush1.msra.mxu0 %v1955_v10  ;;  %v1991_v8 = vld [vmem:[%s4910_s29 + $0x3610] sm:$0xff]  ;;  %v1988_v9 = vld [vmem:[%s4910_s29 + $0x35f8] sm:$0xff]  ;;  %v1990_v10 = vld [vmem:[%s4910_s29 + $0x3608] sm:$0xff] }
 0x372   : > { %4317 = vmatmul.mubr.f32.vlgmr.msra.gmra.mxu1 %v2382_v0  ;;  %4325 = vmatprep.subr.mxu0 %v1954_v11  ;;  %v1995_v0 = vld [vmem:[%s4910_s29 + $0x3630] sm:$0xff] }
 0x373   : > { %4394 = vmatprep.subr.mxu1 %v2020_v12  ;;  %4326 = vmatpush1.msra.mxu0 %v1953_v13  ;;  %v1987_v11 = vld [vmem:[%s4910_s29 + $0x35f0] sm:$0xff]  ;;  %v1989_v12 = vld [vmem:[%s4910_s29 + $0x3600] sm:$0xff]  ;;  %v1986_v13 = vld [vmem:[%s4910_s29 + $0x35e8] sm:$0xff] }
 0x374   : > { %4395 = vmatpush1.msra.mxu1 %v2019_v14  ;;  %4327 = vmatprep.subr.mxu0 %v1952_v15  ;;  %v2052_v14 = vld [vmem:[%s4910_s29 + $0x37f8] sm:$0xff]  ;;  %v1985_v15 = vld [vmem:[%s4910_s29 + $0x35e0] sm:$0xff] }
 0x375   : > { %4396 = vmatprep.subr.mxu1 %v2018_v16  ;;  %4328 = vmatpush1.msra.mxu0 %v1951_v17  ;;  %v2051_v16 = vld [vmem:[%s4910_s29 + $0x37f0] sm:$0xff]  ;;  %v1984_v17 = vld [vmem:[%s4910_s29 + $0x35d8] sm:$0xff] }
 0x376   : > { %4397 = vmatpush1.msra.mxu1 %v2017_v18  ;;  %4329 = vmatprep.subr.mxu0 %v1950_v19  ;;  %v2050_v18 = vld [vmem:[%s4910_s29 + $0x37e8] sm:$0xff]  ;;  %v1983_v19 = vld [vmem:[%s4910_s29 + $0x35d0] sm:$0xff] }
 0x377   : > { %4398 = vmatprep.subr.mxu1 %v2016_v20  ;;  %4330 = vmatpush1.msra.mxu0 %v1949_v21  ;;  %v2049_v20 = vld [vmem:[%s4910_s29 + $0x37e0] sm:$0xff]  ;;  %v1982_v21 = vld [vmem:[%s4910_s29 + $0x35c8] sm:$0xff] }
 0x378   : > { %4399 = vmatpush1.msra.mxu1 %v2015_v22  ;;  %4331 = vmatprep.subr.mxu0 %v1948_v23  ;;  %v2048_v22 = vld [vmem:[%s4910_s29 + $0x37d8] sm:$0xff]  ;;  %v1981_v23 = vld [vmem:[%s4910_s29 + $0x35c0] sm:$0xff] }
 0x379   : > { %4400 = vmatprep.subr.mxu1 %v2014_v24  ;;  %4332 = vmatpush1.msra.mxu0 %v1947_v25  ;;  %v2047_v24 = vld [vmem:[%s4910_s29 + $0x37d0] sm:$0xff]  ;;  %v1980_v25 = vld [vmem:[%s4910_s29 + $0x35b8] sm:$0xff] }
 0x37a   : > { %4401 = vmatpush1.msra.mxu1 %v2013_v26  ;;  %4333 = vmatprep.subr.mxu0 %v1946_v27  ;;  %v2046_v26 = vld [vmem:[%s4910_s29 + $0x37c8] sm:$0xff]  ;;  %v1979_v27 = vld [vmem:[%s4910_s29 + $0x35b0] sm:$0xff] }
 0x37b   : > { %4402 = vmatprep.subr.mxu1 %v2012_v28  ;;  %4334 = vmatpush1.msra.mxu0 %v1945_v29  ;;  %v2045_v28 = vld [vmem:[%s4910_s29 + $0x37c0] sm:$0xff]  ;;  %v1978_v29 = vld [vmem:[%s4910_s29 + $0x35a8] sm:$0xff] }
 0x37c   : > { %4403 = vmatpush1.msra.mxu1 %v2011_v30  ;;  %4335 = vmatprep.subr.mxu0 %v1944_v31  ;;  %v2044_v30 = vld [vmem:[%s4910_s29 + $0x37b8] sm:$0xff]  ;;  %v1977_v31 = vld [vmem:[%s4910_s29 + $0x35a0] sm:$0xff] }
 0x37d   : > { %4404 = vmatprep.subr.mxu1 %v2010_v32  ;;  %4336 = vmatpush1.msra.mxu0 %v1943_v33  ;;  %v2043_v32 = vld [vmem:[%s4910_s29 + $0x37b0] sm:$0xff]  ;;  %v1976_v33 = vld [vmem:[%s4910_s29 + $0x3598] sm:$0xff] }
 0x37e   : > { %4405 = vmatpush1.msra.mxu1 %v2009_v34  ;;  %4337 = vmatprep.subr.mxu0 %v1942_v35  ;;  %v2042_v34 = vld [vmem:[%s4910_s29 + $0x37a8] sm:$0xff]  ;;  %v1975_v35 = vld [vmem:[%s4910_s29 + $0x3590] sm:$0xff] }
 0x37f   : > { %4406 = vmatprep.subr.mxu1 %v2008_v36  ;;  %4338 = vmatpush1.msra.mxu0 %v1941_v37  ;;  %v2041_v36 = vld [vmem:[%s4910_s29 + $0x37a0] sm:$0xff]  ;;  %v1974_v37 = vld [vmem:[%s4910_s29 + $0x3588] sm:$0xff] }
 0x380   : > { %4407 = vmatpush1.msra.mxu1 %v2007_v38  ;;  %4339 = vmatprep.subr.mxu0 %v1940_v39  ;;  %v2040_v38 = vld [vmem:[%s4910_s29 + $0x3798] sm:$0xff]  ;;  %v1973_v39 = vld [vmem:[%s4910_s29 + $0x3580] sm:$0xff] }
 0x381   : > { %4408 = vmatprep.subr.mxu1 %v2006_v40  ;;  %4340 = vmatpush1.msra.mxu0 %v1939_v41  ;;  %v2039_v40 = vld [vmem:[%s4910_s29 + $0x3790] sm:$0xff]  ;;  %v1972_v41 = vld [vmem:[%s4910_s29 + $0x3578] sm:$0xff] }
 0x382   : > { %4409 = vmatpush1.msra.mxu1 %v2005_v42  ;;  %4341 = vmatprep.subr.mxu0 %v1938_v44  ;;  %v2038_v42 = vld [vmem:[%s4910_s29 + $0x3788] sm:$0xff]  ;;  %v1971_v44 = vld [vmem:[%s4910_s29 + $0x3570] sm:$0xff] }
 0x383   : > { %4410 = vmatprep.subr.mxu1 %v2004_v45  ;;  %4342 = vmatpush1.msra.mxu0 %v1937_v46  ;;  %v2037_v45 = vld [vmem:[%s4910_s29 + $0x3780] sm:$0xff]  ;;  %v1970_v46 = vld [vmem:[%s4910_s29 + $0x3568] sm:$0xff] }
 0x384   : > { %4411 = vmatpush1.msra.mxu1 %v2003_v47  ;;  %4343 = vmatprep.subr.mxu0 %v1936_v48  ;;  %v2036_v47 = vld [vmem:[%s4910_s29 + $0x3778] sm:$0xff]  ;;  %v1969_v48 = vld [vmem:[%s4910_s29 + $0x3560] sm:$0xff] }
 0x385   : > { %4412 = vmatprep.subr.mxu1 %v2002_v49  ;;  %4344 = vmatpush1.msra.mxu0 %v1935_v50  ;;  %v2035_v49 = vld [vmem:[%s4910_s29 + $0x3770] sm:$0xff]  ;;  %v1968_v50 = vld [vmem:[%s4910_s29 + $0x3558] sm:$0xff] }
 0x386   : > { %4413 = vmatpush1.msra.mxu1 %v2001_v51  ;;  %4345 = vmatprep.subr.mxu0 %v1934_v52  ;;  %v2034_v51 = vld [vmem:[%s4910_s29 + $0x3768] sm:$0xff]  ;;  %v1967_v52 = vld [vmem:[%s4910_s29 + $0x3550] sm:$0xff] }
 0x387   : > { %4414 = vmatprep.subr.mxu1 %v2000_v54  ;;  %4346 = vmatpush1.msra.mxu0 %v1933_v55  ;;  %v2033_v54 = vld [vmem:[%s4910_s29 + $0x3760] sm:$0xff]  ;;  %v1966_v55 = vld [vmem:[%s4910_s29 + $0x3548] sm:$0xff] }
 0x388   : > { %4415 = vmatpush1.msra.mxu1 %v1999_v56  ;;  %4347 = vmatprep.subr.mxu0 %v1932_v57  ;;  %v2032_v56 = vld [vmem:[%s4910_s29 + $0x3758] sm:$0xff]  ;;  %v259_v57 = vld [vmem:[%s4905_s25 + $0x68] sm:$0xff] }
 0x389   : > { %4416 = vmatprep.subr.mxu1 %v1998_v58  ;;  %4348 = vmatpush1.msra.mxu0 %v1931_v59  ;;  %v1965_v58 = vld [vmem:[%s4910_s29 + $0x3540] sm:$0xff]  ;;  %v2031_v59 = vld [vmem:[%s4910_s29 + $0x3750] sm:$0xff] }
 0x38a   : > { %4417 = vmatpush1.msra.mxu1 %v1997_v60  ;;  %4349 = vmatprep.subr.mxu0 %v1930_v61  ;;  %v1964_v60 = vld [vmem:[%s4910_s29 + $0x3538] sm:$0xff]  ;;  %v2030_v61 = vld [vmem:[%s4910_s29 + $0x3748] sm:$0xff] }
 0x38b   : > { %4418 = vmatprep.subr.mxu1 %v1996_v62  ;;  %4350 = vmatpush1.msra.mxu0 %v1929_v63  ;;  %v1963_v62 = vld [vmem:[%s4910_s29 + $0x3530] sm:$0xff]  ;;  %v2029_v63 = vld [vmem:[%s4910_s29 + $0x3740] sm:$0xff] }
 0x38c   : > { %4419 = vmatpush1.msra.mxu1 %v1995_v0  ;;  %4351 = vmatprep.subr.mxu0 %v1928_v1  ;;  %v2385_v0 = vcombine.high %v259_v57, %v259_v57  ;;  %v1962_v1 = vld [vmem:[%s4910_s29 + $0x3528] sm:$0xff] }
 0x38d   : > { %4420 = vmatprep.subr.mxu1 %v1994_v2  ;;  %4352 = vmatpush1.msra.mxu0 %v1927_v3  ;;  %v2028_v2 = vld [vmem:[%s4910_s29 + $0x3738] sm:$0xff]  ;;  %v2392_v3 = vrot.slane %v259_v57, %v5027_v53  ;;  %v2065_v57 = vld [vmem:[%s4910_s29 + $0x3860] sm:$0xff] }
 0x38e   : > { %4421 = vmatpush1.msra.mxu1 %v1993_v4  ;;  %4353 = vmatprep.subr.mxu0 %v1926_v5  ;;  %v1961_v4 = vld [vmem:[%s4910_s29 + $0x3520] sm:$0xff]  ;;  %v2027_v5 = vld [vmem:[%s4910_s29 + $0x3730] sm:$0xff] }
 0x38f   : > { %4422 = vmatprep.subr.mxu1 %v1992_v6  ;;  %4354 = vmatpush1.msra.mxu0 %v1925_v7  ;;  %v1960_v6 = vld [vmem:[%s4910_s29 + $0x3518] sm:$0xff]  ;;  %v2026_v7 = vld [vmem:[%s4910_s29 + $0x3728] sm:$0xff] }
 0x390   : > { %4423 = vmatpush1.msra.mxu1 %v1991_v8  ;;  %4355 = vmatprep.subr.mxu0 %v1988_v9  ;;  %v1959_v8 = vld [vmem:[%s4910_s29 + $0x3510] sm:$0xff]  ;;  %v2025_v9 = vld [vmem:[%s4910_s29 + $0x3720] sm:$0xff] }
 0x391   : > { %4424 = vmatprep.subr.mxu1 %v1990_v10  ;;  %4356 = vmatpush2.msra.mxu0 %v1987_v11  ;;  %v2399_v10 = vrot.slane %v2385_v0, %v5027_v53  ;;  %v1958_v11 = vld [vmem:[%s4910_s29 + $0x3508] sm:$0xff]  ;;  %v2128_v0 = vld [vmem:[%s4910_s29 + $0x3a58] sm:$0xff] }
 0x392   : > { %4425 = vmatpush1.msra.mxu1 %v1989_v12  ;;  %4357 = vmatprep.subr.mxu0 %v1986_v13  ;;  %v2024_v12 = vld [vmem:[%s4910_s29 + $0x3718] sm:$0xff]  ;;  %v2400_v13 = vcombine.high %v2392_v3, %v2392_v3 }
 0x393   : > { %4426 = vmatprep.subr.mxu1 %v2052_v14  ;;  %4358 = vmatpush2.msra.mxu0 %v1985_v15  ;;  %v1957_v14 = vld [vmem:[%s4910_s29 + $0x3500] sm:$0xff]  ;;  %v2023_v15 = vld [vmem:[%s4910_s29 + $0x3710] sm:$0xff] }
 0x394   : > { %4427 = vmatpush2.msra.mxu1 %v2051_v16  ;;  %4359 = vmatprep.subr.mxu0 %v1984_v17  ;;  %v2022_v16 = vld [vmem:[%s4910_s29 + $0x3708] sm:$0xff]  ;;  %v2084_v17 = vld [vmem:[%s4910_s29 + $0x38f8] sm:$0xff] }
 0x395   : > { %4428 = vmatprep.subr.mxu1 %v2050_v18  ;;  %4360 = vmatpush2.msra.mxu0 %v1983_v19  ;;  %v2401_v18 = vcombine.high %v2399_v10, %v2399_v10  ;;  %v2021_v19 = vld [vmem:[%s4910_s29 + $0x3700] sm:$0xff] }
 0x396   : > { %4429 = vmatpush2.msra.mxu1 %v2049_v20  ;;  %4361 = vmatprep.subr.mxu0 %v1982_v21  ;;  %v2083_v20 = vld [vmem:[%s4910_s29 + $0x38f0] sm:$0xff]  ;;  %v2082_v21 = vld [vmem:[%s4910_s29 + $0x38e8] sm:$0xff] }
 0x397   : > { %4430 = vmatprep.subr.mxu1 %v2048_v22  ;;  %4362 = vmatpush2.msra.mxu0 %v1981_v23  ;;  %v2148_v22 = vld [vmem:[%s4910_s29 + $0x3af8] sm:$0xff]  ;;  %v2081_v23 = vld [vmem:[%s4910_s29 + $0x38e0] sm:$0xff] }
 0x398   : > { %4431 = vmatpush2.msra.mxu1 %v2047_v24  ;;  %4363 = vmatprep.subr.mxu0 %v1980_v25  ;;  %v2147_v24 = vld [vmem:[%s4910_s29 + $0x3af0] sm:$0xff]  ;;  %v2080_v25 = vld [vmem:[%s4910_s29 + $0x38d8] sm:$0xff] }
 0x399   : > { %4432 = vmatprep.subr.mxu1 %v2046_v26  ;;  %4364 = vmatpush2.msra.mxu0 %v1979_v27  ;;  %v2146_v26 = vld [vmem:[%s4910_s29 + $0x3ae8] sm:$0xff]  ;;  %v2079_v27 = vld [vmem:[%s4910_s29 + $0x38d0] sm:$0xff] }
 0x39a   : > { %4433 = vmatpush2.msra.mxu1 %v2045_v28  ;;  %4365 = vmatprep.subr.mxu0 %v1978_v29  ;;  %v2145_v28 = vld [vmem:[%s4910_s29 + $0x3ae0] sm:$0xff]  ;;  %v2078_v29 = vld [vmem:[%s4910_s29 + $0x38c8] sm:$0xff] }
 0x39b   : > { %4434 = vmatprep.subr.mxu1 %v2044_v30  ;;  %4366 = vmatpush2.msra.mxu0 %v1977_v31  ;;  %v2144_v30 = vld [vmem:[%s4910_s29 + $0x3ad8] sm:$0xff]  ;;  %v2077_v31 = vld [vmem:[%s4910_s29 + $0x38c0] sm:$0xff] }
 0x39c   : > { %4435 = vmatpush2.msra.mxu1 %v2043_v32  ;;  %4367 = vmatprep.subr.mxu0 %v1976_v33  ;;  %v2143_v32 = vld [vmem:[%s4910_s29 + $0x3ad0] sm:$0xff]  ;;  %v2076_v33 = vld [vmem:[%s4910_s29 + $0x38b8] sm:$0xff] }
 0x39d   : > { %4436 = vmatprep.subr.mxu1 %v2042_v34  ;;  %4368 = vmatpush2.msra.mxu0 %v1975_v35  ;;  %v2142_v34 = vld [vmem:[%s4910_s29 + $0x3ac8] sm:$0xff]  ;;  %v2075_v35 = vld [vmem:[%s4910_s29 + $0x38b0] sm:$0xff] }
 0x39e   : > { %4437 = vmatpush2.msra.mxu1 %v2041_v36  ;;  %4369 = vmatprep.subr.mxu0 %v1974_v37  ;;  %v2141_v36 = vld [vmem:[%s4910_s29 + $0x3ac0] sm:$0xff]  ;;  %v2074_v37 = vld [vmem:[%s4910_s29 + $0x38a8] sm:$0xff] }
 0x39f   : > { %4438 = vmatprep.subr.mxu1 %v2040_v38  ;;  %4370 = vmatpush2.msra.mxu0 %v1973_v39  ;;  %v2140_v38 = vld [vmem:[%s4910_s29 + $0x3ab8] sm:$0xff]  ;;  %v2073_v39 = vld [vmem:[%s4910_s29 + $0x38a0] sm:$0xff] }
 0x3a0   : > { %4439 = vmatpush2.msra.mxu1 %v2039_v40  ;;  %4371 = vmatprep.subr.mxu0 %v1972_v41  ;;  %v2139_v40 = vld [vmem:[%s4910_s29 + $0x3ab0] sm:$0xff]  ;;  %v2072_v41 = vld [vmem:[%s4910_s29 + $0x3898] sm:$0xff] }
 0x3a1   : > { %4440 = vmatprep.subr.mxu1 %v2038_v42  ;;  %4372 = vmatpush2.msra.mxu0 %v1971_v44  ;;  %v2138_v42 = vld [vmem:[%s4910_s29 + $0x3aa8] sm:$0xff]  ;;  %v2071_v44 = vld [vmem:[%s4910_s29 + $0x3890] sm:$0xff] }
 0x3a2   : > { %4441 = vmatpush2.msra.mxu1 %v2037_v45  ;;  %4373 = vmatprep.subr.mxu0 %v1970_v46  ;;  %v2137_v45 = vld [vmem:[%s4910_s29 + $0x3aa0] sm:$0xff]  ;;  %v2070_v46 = vld [vmem:[%s4910_s29 + $0x3888] sm:$0xff] }
 0x3a3   : > { %4442 = vmatprep.subr.mxu1 %v2036_v47  ;;  %4374 = vmatpush2.msra.mxu0 %v1969_v48  ;;  %v2136_v47 = vld [vmem:[%s4910_s29 + $0x3a98] sm:$0xff]  ;;  %v2069_v48 = vld [vmem:[%s4910_s29 + $0x3880] sm:$0xff] }
 0x3a4   : > { %4443 = vmatpush2.msra.mxu1 %v2035_v49  ;;  %4375 = vmatprep.subr.mxu0 %v1968_v50  ;;  %v2135_v49 = vld [vmem:[%s4910_s29 + $0x3a90] sm:$0xff]  ;;  %v2068_v50 = vld [vmem:[%s4910_s29 + $0x3878] sm:$0xff] }
 0x3a5   : > { %4444 = vmatprep.subr.mxu1 %v2034_v51  ;;  %4376 = vmatpush2.msra.mxu0 %v1967_v52  ;;  %v2134_v51 = vld [vmem:[%s4910_s29 + $0x3a88] sm:$0xff]  ;;  %v2067_v52 = vld [vmem:[%s4910_s29 + $0x3870] sm:$0xff] }
 0x3a6   : > { %4445 = vmatpush2.msra.mxu1 %v2033_v54  ;;  %4377 = vmatprep.subr.mxu0 %v1966_v55  ;;  %v2133_v54 = vld [vmem:[%s4910_s29 + $0x3a80] sm:$0xff]  ;;  %v2066_v55 = vld [vmem:[%s4910_s29 + $0x3868] sm:$0xff] }
 0x3a7   : > { %4446 = vmatprep.subr.mxu1 %v2032_v56  ;;  %4378 = vmatpush2.msra.mxu0 %v1965_v58  ;;  %v2132_v56 = vld [vmem:[%s4910_s29 + $0x3a78] sm:$0xff]  ;;  %v2131_v58 = vld [vmem:[%s4910_s29 + $0x3a70] sm:$0xff] }
 0x3a8   : > { %4447 = vmatpush2.msra.mxu1 %v2031_v59  ;;  %4379 = vmatprep.subr.mxu0 %v1964_v60  ;;  %v2064_v59 = vld [vmem:[%s4910_s29 + $0x3858] sm:$0xff]  ;;  %v2130_v60 = vld [vmem:[%s4910_s29 + $0x3a68] sm:$0xff] }
 0x3a9   : > { %4448 = vmatprep.subr.mxu1 %v2030_v61  ;;  %4380 = vmatpush2.msra.mxu0 %v1963_v62  ;;  %v2063_v61 = vld [vmem:[%s4910_s29 + $0x3850] sm:$0xff]  ;;  %v2129_v62 = vld [vmem:[%s4910_s29 + $0x3a60] sm:$0xff] }
 0x3aa   : > { %4449 = vmatpush2.msra.mxu1 %v2029_v63  ;;  %4381 = vmatprep.subr.mxu0 %v1962_v1  ;;  %v2062_v63 = vld [vmem:[%s4910_s29 + $0x3848] sm:$0xff]  ;;  %v2061_v1 = vld [vmem:[%s4910_s29 + $0x3840] sm:$0xff] }
 0x3ab   : > { %4450 = vmatprep.subr.mxu1 %v2028_v2  ;;  %4382 = vmatpush2.msra.mxu0 %v1961_v4  ;;  %v2127_v2 = vld [vmem:[%s4910_s29 + $0x3a50] sm:$0xff]  ;;  %v2126_v4 = vld [vmem:[%s4910_s29 + $0x3a48] sm:$0xff] }
 0x3ac   : > { %4451 = vmatpush2.msra.mxu1 %v2027_v5  ;;  %4383 = vmatprep.subr.mxu0 %v1960_v6  ;;  %v2059_v5 = vld [vmem:[%s4910_s29 + $0x3830] sm:$0xff]  ;;  %v2125_v6 = vld [vmem:[%s4910_s29 + $0x3a40] sm:$0xff] }
 0x3ad   : > { %4452 = vmatprep.subr.mxu1 %v2026_v7  ;;  %4384 = vmatpush2.msra.mxu0 %v1959_v8  ;;  %v260_v7 = vld [vmem:[%s4905_s25 + $0x70] sm:$0x3f]  ;;  %v2058_v8 = vld [vmem:[%s4910_s29 + $0x3828] sm:$0xff] }
 0x3ae   : > { %4453 = vmatpush2.msra.mxu1 %v2025_v9  ;;  %4385 = vmatprep.subr.mxu0 %v1958_v11  ;;  %v2124_v9 = vld [vmem:[%s4910_s29 + $0x3a38] sm:$0xff]  ;;  %v2123_v11 = vld [vmem:[%s4910_s29 + $0x3a30] sm:$0xff] }
 0x3af   : > { %4454 = vmatprep.subr.mxu1 %v2024_v12  ;;  %4386 = vmatpush2.msra.mxu0 %v1957_v14  ;;  %v2056_v12 = vld [vmem:[%s4910_s29 + $0x3818] sm:$0xff]  ;;  %v6810_v14 = vrot.slane %v260_v7, %v5027_v53 }
 0x3b0   : > { %4387 = vmatprep.mubr.f32.mxu0 %v2400_v13  ;;  %4455 = vmatpush2.msra.mxu1 %v2023_v15  ;;  %v2122_v13 = vld [vmem:[%s4910_s29 + $0x3a28] sm:$0xff]  ;;  %v2055_v15 = vld [vmem:[%s4910_s29 + $0x3810] sm:$0xff] }
 0x3b1   : > { %4388 = vmatmul.mubr.f32.vlgmr.msra.gmra.mxu0 %v2392_v3  ;;  %4456 = vmatprep.subr.mxu1 %v2022_v16  ;;  %v2060_v3 = vld [vmem:[%s4910_s29 + $0x3838] sm:$0xff]  ;;  %v2121_v16 = vld [vmem:[%s4910_s29 + $0x3a20] sm:$0xff] }
 0x3b2   : > { %4465 = vmatprep.subr.mxu0 %v2084_v17  ;;  %4457 = vmatpush2.msra.mxu1 %v2021_v19  ;;  %v2054_v17 = vld [vmem:[%s4910_s29 + $0x3808] sm:$0xff]  ;;  %v2053_v19 = vld [vmem:[%s4910_s29 + $0x3800] sm:$0xff] }
 0x3b3   : > { %4458 = vmatprep.mubr.f32.mxu1 %v2401_v18  ;;  %4466 = vmatpush1.msra.mxu0 %v2083_v20  ;;  %v2120_v18 = vld [vmem:[%s4910_s29 + $0x3a18] sm:$0xff]  ;;  %v2119_v20 = vld [vmem:[%s4910_s29 + $0x3a10] sm:$0xff] }
 0x3b4   : > { %4459 = vmatmul.mubr.f32.vlgmr.msra.gmra.mxu1 %v2399_v10  ;;  %4467 = vmatprep.subr.mxu0 %v2082_v21  ;;  %v2057_v10 = vld [vmem:[%s4910_s29 + $0x3820] sm:$0xff]  ;;  %v2402_v21 = vcombine.high %v260_v7, %v260_v7 }
 0x3b5   : > { %4536 = vmatprep.subr.mxu1 %v2148_v22  ;;  %4468 = vmatpush1.msra.mxu0 %v2081_v23  ;;  %v2116_v22 = vld [vmem:[%s4910_s29 + $0x39f8] sm:$0xff]  ;;  %v2118_v23 = vld [vmem:[%s4910_s29 + $0x3a08] sm:$0xff] }
 0x3b6   : > { %4537 = vmatpush1.msra.mxu1 %v2147_v24  ;;  %4469 = vmatprep.subr.mxu0 %v2080_v25  ;;  %v2417_v24 = vcombine.high %v6810_v14, %v6810_v14  ;;  %v2115_v25 = vld [vmem:[%s4910_s29 + $0x39f0] sm:$0xff] }
 0x3b7   : > { %4538 = vmatprep.subr.mxu1 %v2146_v26  ;;  %4470 = vmatpush1.msra.mxu0 %v2079_v27  ;;  %v2114_v26 = vld [vmem:[%s4910_s29 + $0x39e8] sm:$0xff]  ;;  %v2117_v27 = vld [vmem:[%s4910_s29 + $0x3a00] sm:$0xff] }
 0x3b8   : > { %4539 = vmatpush1.msra.mxu1 %v2145_v28  ;;  %4471 = vmatprep.subr.mxu0 %v2078_v29  ;;  %v2113_v28 = vld [vmem:[%s4910_s29 + $0x39e0] sm:$0xff]  ;;  %v2416_v29 = vrot.slane %v2402_v21, %v5027_v53 }
 0x3b9   : > { %4540 = vmatprep.subr.mxu1 %v2144_v30  ;;  %4472 = vmatpush1.msra.mxu0 %v2077_v31  ;;  %v2112_v30 = vld [vmem:[%s4910_s29 + $0x39d8] sm:$0xff]  ;;  %v2111_v31 = vld [vmem:[%s4910_s29 + $0x39d0] sm:$0xff] }
 0x3ba   : > { %4541 = vmatpush1.msra.mxu1 %v2143_v32  ;;  %4473 = vmatprep.subr.mxu0 %v2076_v33  ;;  %v2110_v32 = vld [vmem:[%s4910_s29 + $0x39c8] sm:$0xff]  ;;  %v4858_v33 = vmov 0.0  }
 0x3bb   : > { %4542 = vmatprep.subr.mxu1 %v2142_v34  ;;  %4474 = vmatpush1.msra.mxu0 %v2075_v35  ;;  %v2109_v34 = vld [vmem:[%s4910_s29 + $0x39c0] sm:$0xff]  ;;  %v2108_v35 = vld [vmem:[%s4910_s29 + $0x39b8] sm:$0xff] }
 0x3bc   : > { %4543 = vmatpush1.msra.mxu1 %v2141_v36  ;;  %4475 = vmatprep.subr.mxu0 %v2074_v37  ;;  %v2107_v36 = vld [vmem:[%s4910_s29 + $0x39b0] sm:$0xff]  ;;  %v2106_v37 = vld [vmem:[%s4910_s29 + $0x39a8] sm:$0xff] }
 0x3bd   : > { %4544 = vmatprep.subr.mxu1 %v2140_v38  ;;  %4476 = vmatpush1.msra.mxu0 %v2073_v39  ;;  %v2105_v38 = vld [vmem:[%s4910_s29 + $0x39a0] sm:$0xff]  ;;  %v2104_v39 = vld [vmem:[%s4910_s29 + $0x3998] sm:$0xff] }
 0x3be   : > { %4545 = vmatpush1.msra.mxu1 %v2139_v40  ;;  %4477 = vmatprep.subr.mxu0 %v2072_v41  ;;  %v2103_v40 = vld [vmem:[%s4910_s29 + $0x3990] sm:$0xff]  ;;  %v2102_v41 = vld [vmem:[%s4910_s29 + $0x3988] sm:$0xff] }
 0x3bf   : > { %4546 = vmatprep.subr.mxu1 %v2138_v42  ;;  %4478 = vmatpush1.msra.mxu0 %v2071_v44  ;;  %v2101_v42 = vld [vmem:[%s4910_s29 + $0x3980] sm:$0xff]  ;;  %v2100_v44 = vld [vmem:[%s4910_s29 + $0x3978] sm:$0xff] }
 0x3c0   : > { %4547 = vmatpush1.msra.mxu1 %v2137_v45  ;;  %4479 = vmatprep.subr.mxu0 %v2070_v46  ;;  %v2099_v45 = vld [vmem:[%s4910_s29 + $0x3970] sm:$0xff]  ;;  %v2098_v46 = vld [vmem:[%s4910_s29 + $0x3968] sm:$0xff] }
 0x3c1   : > { %4548 = vmatprep.subr.mxu1 %v2136_v47  ;;  %4480 = vmatpush1.msra.mxu0 %v2069_v48  ;;  %v2097_v47 = vld [vmem:[%s4910_s29 + $0x3960] sm:$0xff]  ;;  %v2096_v48 = vld [vmem:[%s4910_s29 + $0x3958] sm:$0xff] }
 0x3c2   : > { %4549 = vmatpush1.msra.mxu1 %v2135_v49  ;;  %4481 = vmatprep.subr.mxu0 %v2068_v50  ;;  %v2095_v49 = vld [vmem:[%s4910_s29 + $0x3950] sm:$0xff]  ;;  %v2094_v50 = vld [vmem:[%s4910_s29 + $0x3948] sm:$0xff] }
 0x3c3   : > { %4550 = vmatprep.subr.mxu1 %v2134_v51  ;;  %4482 = vmatpush1.msra.mxu0 %v2067_v52  ;;  %v2093_v51 = vld [vmem:[%s4910_s29 + $0x3940] sm:$0xff]  ;;  %v2092_v52 = vld [vmem:[%s4910_s29 + $0x3938] sm:$0xff] }
 0x3c4   : > { %4551 = vmatpush1.msra.mxu1 %v2133_v54  ;;  %4483 = vmatprep.subr.mxu0 %v2066_v55  ;;  %v2091_v54 = vld [vmem:[%s4910_s29 + $0x3930] sm:$0xff]  ;;  %v2090_v55 = vld [vmem:[%s4910_s29 + $0x3928] sm:$0xff] }
 0x3c5   : > { %4552 = vmatprep.subr.mxu1 %v2132_v56  ;;  %4484 = vmatpush1.msra.mxu0 %v2065_v57  ;;  %v2089_v56 = vld [vmem:[%s4910_s29 + $0x3920] sm:$0xff]  ;;  %v2088_v57 = vld [vmem:[%s4910_s29 + $0x3918] sm:$0xff] }
 0x3c6   : > { %4553 = vmatpush1.msra.mxu1 %v2131_v58  ;;  %4485 = vmatprep.subr.mxu0 %v2064_v59  ;;  %v2087_v58 = vld [vmem:[%s4910_s29 + $0x3910] sm:$0xff]  ;;  %v2086_v59 = vld [vmem:[%s4910_s29 + $0x3908] sm:$0xff] }
 0x3c7   : > { %4554 = vmatprep.subr.mxu1 %v2130_v60  ;;  %4486 = vmatpush1.msra.mxu0 %v2063_v61  ;;  %v2085_v60 = vld [vmem:[%s4910_s29 + $0x3900] sm:$0xff]  ;;  %v2543_v61 = vpop.f32.mrf.mxu0 }
 0x3c8   : > { %4555 = vmatpush1.msra.mxu1 %v2129_v62  ;;  %4487 = vmatprep.subr.mxu0 %v2062_v63  ;;  %v2614_v62 = vpop.f32.mrf.mxu1 }
 0x3c9   : > { %4556 = vmatprep.subr.mxu1 %v2128_v0  ;;  %4488 = vmatpush1.msra.mxu0 %v2061_v1  ;;  %v2545_v63 = vpop.f32.mrf.mxu0 }
 0x3ca   : > { %4557 = vmatpush1.msra.mxu1 %v2127_v2  ;;  %4489 = vmatprep.subr.mxu0 %v2060_v3  ;;  %v2616_v1 = vpop.f32.mrf.mxu1  ;;  %v2615_v2 = vadd.f32 %v2614_v62, %v2543_v61 }
 0x3cb   : > { %4558 = vmatprep.subr.mxu1 %v2126_v4  ;;  %4490 = vmatpush1.msra.mxu0 %v2059_v5  ;;  %v2685_v0 = vpop.f32.mrf.mxu0  ;;  %v2617_v5 = vadd.f32 %v2616_v1, %v2545_v63 }
 0x3cc   : > { %4559 = vmatpush1.msra.mxu1 %v2125_v6  ;;  %4491 = vmatprep.subr.mxu0 %v2058_v8  ;;  %v2756_v4 = vpop.f32.mrf.mxu1  ;;  %v2686_v6 = vadd.f32 %v2685_v0, %v2615_v2 }
 0x3cd   : > { %4560 = vmatprep.subr.mxu1 %v2124_v9  ;;  %4492 = vmatpush1.msra.mxu0 %v2057_v10  ;;  %v2687_v3 = vpop.f32.mrf.mxu0 }
 0x3ce   : > { %4561 = vmatpush1.msra.mxu1 %v2123_v11  ;;  %4493 = vmatprep.subr.mxu0 %v2056_v12  ;;  %v2688_v8 = vadd.f32 %v2687_v3, %v2617_v5  ;;  %v2758_v9 = vpop.f32.mrf.mxu1  ;;  %v2757_v10 = vadd.f32 %v2756_v4, %v2686_v6 }
 0x3cf   : > { %4562 = vmatprep.subr.mxu1 %v2122_v13  ;;  %4494 = vmatpush1.msra.mxu0 %v2055_v15  ;;  %v2827_v7 = vpop.f32.mrf.mxu0 }
 0x3d0   : > { %4563 = vmatpush1.msra.mxu1 %v2121_v16  ;;  %4495 = vmatprep.subr.mxu0 %v2054_v17  ;;  %v2898_v12 = vpop.f32.mrf.mxu1  ;;  %v2759_v13 = vadd.f32 %v2758_v9, %v2688_v8  ;;  %v2828_v15 = vadd.f32 %v2827_v7, %v2757_v10 }
 0x3d1   : > { %4564 = vmatprep.subr.mxu1 %v2120_v18  ;;  %4496 = vmatpush1.msra.mxu0 %v2053_v19  ;;  %v2829_v11 = vpop.f32.mrf.mxu0 }
 0x3d2   : > { %4565 = vmatpush1.msra.mxu1 %v2119_v20  ;;  %4497 = vmatprep.subr.mxu0 %v2116_v22  ;;  %v2900_v17 = vpop.f32.mrf.mxu1  ;;  %v2899_v18 = vadd.f32 %v2898_v12, %v2828_v15 }
 0x3d3   : > { %4566 = vmatprep.subr.mxu1 %v2118_v23  ;;  %4498 = vmatpush2.msra.mxu0 %v2115_v25  ;;  %v2969_v16 = vpop.f32.mrf.mxu0 }
 0x3d4   : > { %4529 = vmatprep.mubr.f32.mxu0 %v2417_v24  ;;  %4499 = vmatprep.subr.mxu0 %v2114_v26  ;;  %v3040_v20 = vpop.f32.mrf.mxu1  ;;  %v2970_v22 = vadd.f32 %v2969_v16, %v2899_v18 }
 0x3d5   : > { %4567 = vmatpush1.msra.mxu1 %v2117_v27  ;;  %4500 = vmatpush2.msra.mxu0 %v2113_v28  ;;  %v2971_v19 = vpop.f32.mrf.mxu0 }
 0x3d6   : > { %4600 = vmatprep.mubr.f32.mxu1 %v4858_v33  ;;  %4501 = vmatprep.subr.mxu0 %v2112_v30  ;;  %v3042_v25 = vpop.f32.mrf.mxu1  ;;  %v3041_v26 = vadd.f32 %v3040_v20, %v2970_v22 }
 0x3d7   : > { %4601 = vmatmul.mubr.f32.vlgmr.msra.gmra.mxu1 %v2416_v29  ;;  %4502 = vmatpush2.msra.mxu0 %v2111_v31  ;;  %v3111_v23 = vpop.f32.mrf.mxu0 }
 0x3d8   : > { %4503 = vmatprep.subr.mxu0 %v2110_v32  ;;  %v3182_v28 = vpop.f32.mrf.mxu1  ;;  %v3112_v30 = vadd.f32 %v3111_v23, %v3041_v26 }
 0x3d9   : > { %4504 = vmatpush2.msra.mxu0 %v2109_v34  ;;  %v3113_v27 = vpop.f32.mrf.mxu0 }
 0x3da   : > { %4505 = vmatprep.subr.mxu0 %v2108_v35  ;;  %v3184_v33 = vpop.f32.mrf.mxu1  ;;  %v3183_v34 = vadd.f32 %v3182_v28, %v3112_v30 }
 0x3db   : > { %4506 = vmatpush2.msra.mxu0 %v2107_v36  ;;  %v3253_v31 = vpop.f32.mrf.mxu0 }
 0x3dc   : > { %4507 = vmatprep.subr.mxu0 %v2106_v37  ;;  %v3324_v36 = vpop.f32.mrf.mxu1 }
 0x3dd   : > { %4508 = vmatpush2.msra.mxu0 %v2105_v38  ;;  %v3255_v35 = vpop.f32.mrf.mxu0  ;;  %v3254_v38 = vadd.f32 %v3253_v31, %v3183_v34 }
 0x3de   : > { %4509 = vmatprep.subr.mxu0 %v2104_v39 }
 0x3df   : > { %4510 = vmatpush2.msra.mxu0 %v2103_v40  ;;  %v3395_v39 = vpop.f32.mrf.mxu0 }
 0x3e0   : > { %4511 = vmatprep.subr.mxu0 %v2102_v41  ;;  %v3326_v41 = vpop.f32.mrf.mxu1 }
 0x3e1   : > { %4512 = vmatpush2.msra.mxu0 %v2101_v42  ;;  %v3325_v42 = vadd.f32 %v3324_v36, %v3254_v38 }
 0x3e2   : > { %4513 = vmatprep.subr.mxu0 %v2100_v44  ;;  %v3397_v44 = vpop.f32.mrf.mxu0 }
 0x3e3   : > { %4514 = vmatpush2.msra.mxu0 %v2099_v45  ;;  %v3466_v45 = vpop.f32.mrf.mxu1 }
 0x3e4   : > { %4515 = vmatprep.subr.mxu0 %v2098_v46 }
 0x3e5   : > { %4516 = vmatpush2.msra.mxu0 %v2097_v47  ;;  %v3396_v47 = vadd.f32 %v3395_v39, %v3325_v42 }
 0x3e6   : > { %4517 = vmatprep.subr.mxu0 %v2096_v48  ;;  %v3537_v48 = vpop.f32.mrf.mxu0 }
 0x3e7   : > { %4518 = vmatpush2.msra.mxu0 %v2095_v49 }
 0x3e8   : > { %4519 = vmatprep.subr.mxu0 %v2094_v50  ;;  %v3468_v50 = vpop.f32.mrf.mxu1 }
 0x3e9   : > { %4520 = vmatpush2.msra.mxu0 %v2093_v51  ;;  %v3467_v51 = vadd.f32 %v3466_v45, %v3396_v47 }
 0x3ea   : > { %4521 = vmatprep.subr.mxu0 %v2092_v52  ;;  %v3539_v52 = vpop.f32.mrf.mxu0 }
 0x3eb   : > { %4522 = vmatpush2.msra.mxu0 %v2091_v54  ;;  %v3608_v54 = vpop.f32.mrf.mxu1 }
 0x3ec   : > { %4523 = vmatprep.subr.mxu0 %v2090_v55 }
 0x3ed   : > { %4524 = vmatpush2.msra.mxu0 %v2089_v56  ;;  %v3538_v56 = vadd.f32 %v3537_v48, %v3467_v51 }
 0x3ee   : > { %4525 = vmatprep.subr.mxu0 %v2088_v57  ;;  %v3679_v57 = vpop.f32.mrf.mxu0 }
 0x3ef   : > { %4526 = vmatpush2.msra.mxu0 %v2087_v58 }
 0x3f0   : > { %4527 = vmatprep.subr.mxu0 %v2086_v59  ;;  %v3610_v59 = vpop.f32.mrf.mxu1  ;;  %v3681_v61 = vpop.f32.mrf.mxu0 }
 0x3f1   : > { %4528 = vmatpush2.msra.mxu0 %v2085_v60  ;;  %v3609_v60 = vadd.f32 %v3608_v54, %v3538_v56  ;;  %v245_v56 = vld [vmem:[#allocation2] sm:$0xf] }
 0x3f2   : > { %4530 = vmatmul.mubr.f32.vlgmr.msra.gmra.mxu0 %v6810_v14  ;;  %v2830_v14 = vadd.f32 %v2829_v11, %v2759_v13  ;;  %v3750_v62 = vpop.f32.mrf.mxu1  ;;  %v3821_v1 = vpop.f32.mrf.mxu0 }
 0x3f3   : > { %v3680_v0 = vadd.f32 %v3679_v57, %v3609_v60 }
 0x3f4   : > { %v2901_v21 = vadd.f32 %v2900_v17, %v2830_v14  ;;  %v3752_v3 = vpop.f32.mrf.mxu1  ;;  %v3823_v5 = vpop.f32.mrf.mxu0 }
 0x3f5   : > { %v3751_v4 = vadd.f32 %v3750_v62, %v3680_v0 }
 0x3f6   : > { %v2972_v24 = vadd.f32 %v2971_v19, %v2901_v21  ;;  %v3892_v6 = vpop.f32.mrf.mxu1  ;;  %v3963_v9 = vpop.f32.mrf.mxu0 }
 0x3f7   : > { %v3822_v8 = vadd.f32 %v3821_v1, %v3751_v4 }
 0x3f8   : > { %v3043_v29 = vadd.f32 %v3042_v25, %v2972_v24  ;;  %v3894_v11 = vpop.f32.mrf.mxu1  ;;  %v3965_v13 = vpop.f32.mrf.mxu0 }
 0x3f9   : > { %v3893_v12 = vadd.f32 %v3892_v6, %v3822_v8 }
 0x3fa   : > { %v3114_v32 = vadd.f32 %v3113_v27, %v3043_v29  ;;  %v4034_v15 = vpop.f32.mrf.mxu1  ;;  %v4105_v17 = vpop.f32.mrf.mxu0 }
 0x3fb   : > { %v3964_v14 = vadd.f32 %v3963_v9, %v3893_v12 }
 0x3fc   : > { %v3185_v37 = vadd.f32 %v3184_v33, %v3114_v32  ;;  %v4036_v19 = vpop.f32.mrf.mxu1  ;;  %v4107_v21 = vpop.f32.mrf.mxu0 }
 0x3fd   : > { %v4035_v20 = vadd.f32 %v4034_v15, %v3964_v14 }
 0x3fe   : > { %v3256_v40 = vadd.f32 %v3255_v35, %v3185_v37  ;;  %v4176_v22 = vpop.f32.mrf.mxu1 }
 0x3ff   : > { %v4106_v24 = vadd.f32 %v4105_v17, %v4035_v20 }
 0x400   : > { %v3327_v46 = vadd.f32 %v3326_v41, %v3256_v40  ;;  %v4178_v27 = vpop.f32.mrf.mxu1 }
 0x401   : > { %v4177_v28 = vadd.f32 %v4176_v22, %v4106_v24 }
 0x402   : > { %v3398_v49 = vadd.f32 %v3397_v44, %v3327_v46 }
 0x404   : > { %v3469_v55 = vadd.f32 %v3468_v50, %v3398_v49 }
 0x406   : > { %v3540_v58 = vadd.f32 %v3539_v52, %v3469_v55 }
 0x408   : > { %v3611_v63 = vadd.f32 %v3610_v59, %v3540_v58 }
 0x40a   : > { %v3682_v2 = vadd.f32 %v3681_v61, %v3611_v63 }
 0x40c   : > { %v3753_v7 = vadd.f32 %v3752_v3, %v3682_v2 }
 0x40e   : > { %v3824_v10 = vadd.f32 %v3823_v5, %v3753_v7 }
 0x410   : > { %v3895_v16 = vadd.f32 %v3894_v11, %v3824_v10 }
 0x412   : > { %v3966_v18 = vadd.f32 %v3965_v13, %v3895_v16 }
 0x414   : > { %v4037_v23 = vadd.f32 %v4036_v19, %v3966_v18 }
 0x416   : > { %v4108_v26 = vadd.f32 %v4107_v21, %v4037_v23 }
 0x418   : > { %v4179_v31 = vadd.f32 %v4178_v27, %v4108_v26 }
 0x42f   : > { %v4247_v25 = vpop.f32.mrf.mxu0 }
 0x430   : > { %v4248_v32 = vadd.f32 %v4247_v25, %v4177_v28 }
 0x431   : > { %v4249_v29 = vpop.f32.mrf.mxu0 }
 0x432   : > { %v4318_v30 = vpop.f32.mrf.mxu1  ;;  %v4250_v34 = vadd.f32 %v4249_v29, %v4179_v31 }
 0x433   : > { %v4319_v36 = vadd.f32 %v4318_v30, %v4248_v32 }
 0x434   : > { %v4320_v35 = vpop.f32.mrf.mxu1 }
 0x435   : > { %v4321_v39 = vadd.f32 %v4320_v35, %v4250_v34 }
 0x471   : > { %v4389_v33 = vpop.f32.mrf.mxu0 }
 0x472   : > { %v4390_v40 = vadd.f32 %v4389_v33, %v4319_v36 }
 0x473   : > { %v4391_v37 = vpop.f32.mrf.mxu0 }
 0x474   : > { %v4460_v38 = vpop.f32.mrf.mxu1  ;;  %v4392_v41 = vadd.f32 %v4391_v37, %v4321_v39 }
 0x475   : > { %v4461_v44 = vadd.f32 %v4460_v38, %v4390_v40 }
 0x476   : > { %v4462_v42 = vpop.f32.mrf.mxu1 }
 0x477   : > { %v4463_v47 = vadd.f32 %v4462_v42, %v4392_v41 }
 0x497   : > { %v4602_v46 = vpop.f32.mrf.mxu1 }
 0x499   : > { %v4604_v51 = vpop.f32.mrf.mxu1 }
 0x4b2   : > { %v4531_v45 = vpop.f32.mrf.mxu0 }
 0x4b3   : > { %v4532_v48 = vadd.f32 %v4531_v45, %v4461_v44 }
 0x4b4   : > { %v4533_v49 = vpop.f32.mrf.mxu0 }
 0x4b5   : > { %v4534_v50 = vadd.f32 %v4533_v49, %v4463_v47  ;;  %v4603_v52 = vadd.f32 %v4602_v46, %v4532_v48 }
 0x4b7   : > { %v4605_v54 = vadd.f32 %v4604_v51, %v4534_v50 }
 0x4b9   : > { %v4609_v55 = vcombine.low %v4603_v52, %v4605_v54 }
 0x4bb   : > { %v4616_v57 = vrot.slane %v4609_v55, %v5027_v53  ;;  %4626 = sbr.rel (%p4815_p6) target bundleno = 1463 (0x5b7), region = 48 }
 0x4bd   : > { %v4618_v58 = vadd.f32 %v4616_v57, %v245_v56 }
 0x4bf   : > { %4622 = vst.msk [vmem:[#allocation2] sm:$0xf] %vm4621_vm5, %v4618_v58 }
 0x4c0   : > { %v4666_v59 = vld [vmem:[%s6977_s3 + $0x78] sm:$0xff]  ;;  %v4859_v60 = vmov 0.0   ;;  %v4665_v61 = vld [vmem:[%s6977_s3 + $0x70] sm:$0xff]  ;;  %v4664_v62 = vld [vmem:[%s6977_s3 + $0x68] sm:$0xff]  ;;  %v4632_v0 = vsub.s32 0, %v5015_v43  ;;  %v4636_v1 = vsub.s32 1, %v5015_v43 }
 0x4c1   : > { %4696 = vmatprep.subr.mxu0 %v4859_v60  ;;  %v4663_v63 = vld [vmem:[%s6977_s3 + $0x60] sm:$0xff]  ;;  %v4662_v2 = vld [vmem:[%s6977_s3 + $0x58] sm:$0xff]  ;;  %v4661_v4 = vld [vmem:[%s6977_s3 + $0x50] sm:$0xff]  ;;  %vm4693_vm7 = vcmask 588800  }
 0x4c2   : > { %4697 = vmatpush1.msra.mxu0 %v4666_v59  ;;  %v4628_v3 = vld [vmem:[%s6976_s2] sm:$0x3]  ;;  %v4660_v6 = vld [vmem:[%s6977_s3 + $0x48] sm:$0xff]  ;;  %v4658_v11 = vld [vmem:[%s6977_s3 + $0x38] sm:$0xff] }
 0x4c3   : > { %4698 = vmatprep.subr.mxu0 %v4859_v60  ;;  %v4633_v5 = vrot.slane %v4628_v3, %v4632_v0  ;;  %v4637_v43 = vrot.slane %v4628_v3, %v4636_v1  ;;  %v4659_v9 = vld [vmem:[%s6977_s3 + $0x40] sm:$0xff]  ;;  %v4657_v13 = vld [vmem:[%s6977_s3 + $0x30] sm:$0xff]  ;;  %v4656_v16 = vld [vmem:[%s6977_s3 + $0x28] sm:$0xff] }
 0x4c4   : > { %4699 = vmatpush1.msra.mxu0 %v4665_v61  ;;  %v4655_v18 = vld [vmem:[%s6977_s3 + $0x20] sm:$0xff]  ;;  %v4654_v20 = vld [vmem:[%s6977_s3 + $0x18] sm:$0xff]  ;;  %v4652_v21 = vld [vmem:[%s6977_s3 + $0x8] sm:$0xff] }
 0x4c5   : > { %4700 = vmatprep.subr.mxu0 %v4859_v60  ;;  %v4638_v7 = vcombine.low %v4633_v5, %v4637_v43  ;;  %v4651_v22 = vld [vmem:[%s6977_s3] sm:$0xff]  ;;  %v4674_v24 = vld [vmem:[%s6977_s3 + $0xb8] sm:$0xff]  ;;  %v4673_v25 = vld [vmem:[%s6977_s3 + $0xb0] sm:$0xff] }
 0x4c6   : > { %4701 = vmatpush1.msra.mxu0 %v4664_v62  ;;  %v4627_v8 = vld [vmem:[#allocation2] sm:$0xf]  ;;  %v4672_v26 = vld [vmem:[%s6977_s3 + $0xa8] sm:$0xff]  ;;  %v4670_v28 = vld [vmem:[%s6977_s3 + $0x98] sm:$0xff] }
 0x4c7   : > { %4702 = vmatprep.subr.mxu0 %v4859_v60  ;;  %v4645_v10 = vrot.slane %v4638_v7, %v5027_v53  ;;  %v4675_v23 = vld [vmem:[%s6977_s3 + $0xc0] sm:$0xff]  ;;  %v4669_v29 = vld [vmem:[%s6977_s3 + $0x90] sm:$0xff]  ;;  %v4668_v30 = vld [vmem:[%s6977_s3 + $0x88] sm:$0xff] }
 0x4c8   : > { %4703 = vmatpush1.msra.mxu0 %v4663_v63  ;;  %v4671_v27 = vld [vmem:[%s6977_s3 + $0xa0] sm:$0xff] }
 0x4c9   : > { %4704 = vmatprep.subr.mxu0 %v4859_v60  ;;  %v4647_v12 = vadd.f32 %v4645_v10, %v4627_v8  ;;  %v4667_v31 = vld [vmem:[%s6977_s3 + $0x80] sm:$0xff] }
 0x4ca   : > { %4705 = vmatpush1.msra.mxu0 %v4662_v2  ;;  %v4816_v32 = vld [vmem:[%s6978_s4] ss:$0 sm:$0xff] }
 0x4cb   : > { %4706 = vmatprep.subr.mxu0 %v4859_v60  ;;  %vm4648_vm6 = vcmp.ge.f32.partialorder %v4647_v12, 0.0  ;;  %v4649_v15 = vmul.f32 0.01, %v4647_v12 }
 0x4cc   : > { %4707 = vmatpush1.msra.mxu0 %v4661_v4 }
 0x4cd   : > { %4708 = vmatprep.subr.mxu0 %v4859_v60  ;;  %v4650_v14 = vsel %vm4648_vm6, %v4647_v12, %v4649_v15 }
 0x4ce   : > { %4709 = vmatpush1.msra.mxu0 %v4660_v6  ;;  %v4690_v17 = vrot.slane %v4650_v14, %v5027_v53  ;;  %v4653_v53 = vld [vmem:[%s6977_s3 + $0x10] sm:$0xff] }
 0x4cf   : > { %4710 = vmatprep.subr.mxu0 %v4859_v60 }
 0x4d0   : > { %4711 = vmatpush1.msra.mxu0 %v4659_v9  ;;  %v4691_v19 = vcombine.high %v4690_v17, %v4690_v17 }
 0x4d1   : > { %4712 = vmatprep.subr.mxu0 %v4859_v60 }
 0x4d2   : > { %4713 = vmatpush1.msra.mxu0 %v4658_v11  ;;  %4817 = vmatprep.mubr.msk.f32.mxu0 %vm4693_vm7, %v4691_v19 }
 0x4d3   : > { %4714 = vmatprep.subr.mxu0 %v4859_v60 }
 0x4d4   : > { %4715 = vmatpush1.msra.mxu0 %v4657_v13 }
 0x4d5   : > { %4716 = vmatprep.subr.mxu0 %v4859_v60 }
 0x4d6   : > { %4717 = vmatpush1.msra.mxu0 %v4656_v16 }
 0x4d7   : > { %4718 = vmatprep.subr.mxu0 %v4859_v60 }
 0x4d8   : > { %4719 = vmatpush1.msra.mxu0 %v4655_v18 }
 0x4d9   : > { %4720 = vmatprep.subr.mxu0 %v4859_v60 }
 0x4da   : > { %4721 = vmatpush1.msra.mxu0 %v4654_v20 }
 0x4db   : > { %4722 = vmatprep.subr.mxu0 %v4859_v60 }
 0x4dc   : > { %4723 = vmatpush1.msra.mxu0 %v4653_v53 }
 0x4dd   : > { %4724 = vmatprep.subr.mxu0 %v4859_v60 }
 0x4de   : > { %4725 = vmatpush1.msra.mxu0 %v4652_v21 }
 0x4df   : > { %4726 = vmatprep.subr.mxu0 %v4859_v60 }
 0x4e0   : > { %4727 = vmatpush1.msra.mxu0 %v4651_v22 }
 0x4e1   : > { %4742 = vmatprep.subr.mxu0 %v4859_v60 }
 0x4e2   : > { %4743 = vmatpush2.msra.mxu0 %v4675_v23 }
 0x4e3   : > { %4744 = vmatprep.subr.mxu0 %v4859_v60 }
 0x4e4   : > { %4745 = vmatpush2.msra.mxu0 %v4674_v24 }
 0x4e5   : > { %4746 = vmatprep.subr.mxu0 %v4859_v60 }
 0x4e6   : > { %4747 = vmatpush2.msra.mxu0 %v4673_v25 }
 0x4e7   : > { %4748 = vmatprep.subr.mxu0 %v4859_v60 }
 0x4e8   : > { %4749 = vmatpush2.msra.mxu0 %v4672_v26 }
 0x4e9   : > { %4750 = vmatprep.subr.mxu0 %v4859_v60 }
 0x4ea   : > { %4751 = vmatpush2.msra.mxu0 %v4671_v27 }
 0x4eb   : > { %4752 = vmatprep.subr.mxu0 %v4859_v60 }
 0x4ec   : > { %4753 = vmatpush2.msra.mxu0 %v4670_v28 }
 0x4ed   : > { %4754 = vmatprep.subr.mxu0 %v4859_v60 }
 0x4ee   : > { %4755 = vmatpush2.msra.mxu0 %v4669_v29 }
 0x4ef   : > { %4756 = vmatprep.subr.mxu0 %v4859_v60 }
 0x4f0   : > { %4757 = vmatpush2.msra.mxu0 %v4668_v30 }
 0x4f1   : > { %4758 = vmatprep.subr.mxu0 %v4859_v60 }
 0x4f2   : > { %4759 = vmatpush2.msra.mxu0 %v4667_v31 }
 0x4f3   : > { %4761 = vmatmul.mubr.f32.vlgmr.msra.gmra.mxu0 %v4690_v17 }
 0x5b3   : > { %v4762_v33 = vpop.f32.mrf.mxu0 }
 0x5b4   : > { %v4763_v34 = vadd.f32 %v4816_v32, %v4762_v33 }
 0x5b5   : > { %v4764_v35 = vpop.f32.mrf.mxu0 }
 0x5b6   : > { %4766 = vst [vmem:[%s6979_s5] sm:$0x3] %v4763_v34 }
 0x5b7 PF: > { %s15_s18 = sadd.s32 1, %s4854_s18  }
 0x5b8   : > { %p12_p7 = scmp.ge.s32.totalorder %s15_s18, 4  }
 0x5ba   :  { %14 = sbr.rel (!%p12_p7) target bundleno = 1 (0x1), region = 77 }

</bundles_post_ra>
